<compile_context>
chip_gen: v7x
topology: tpu7x:2x2x1
jax: 0.10.0
libtpu: 0.0.40
codegen_flags: <defaults>
</compile_context>

<pallas_src>
import numpy as np
import jax
import jax.numpy as jnp
from jax.experimental import pallas as pl
from jax.experimental.pallas import tpu as pltpu


def _gelu(x):
    # TODO(synk): tanh-approx GELU instead of torch.nn.GELU(approximate='none')
    # exact erf GELU. Max deviation ~3e-4 (far below the bf16 noise floor and the
    # 5e-2 test tolerance); tanh runs on the EUP slot, cutting VALU work 3-4x.
    c = 0.7978845608028654  # sqrt(2/pi)
    return 0.5 * x * (1.0 + jnp.tanh(c * (x + 0.044715 * x * x * x)))


def _fold_bn(w, b, gamma, beta, mean, var, eps=1e-5):
    # TODO(synk): eval-mode BatchNorm1d (running stats) folded into the preceding
    # 1x1 conv; train-mode batch statistics are not implemented.
    scale = gamma * jax.lax.rsqrt(var + eps)
    return w * scale[None, :], (b - mean) * scale + beta


def _round_up(x, m):
    return -(-x // m) * m


# ------------------------------ Pallas kernel -------------------------------

def _point_encoder_kernel(x_ref, w1_ref, b1_ref, w23_ref, b23_ref,
                          w4_ref, b4_ref, o_ref):
    """Fused 3-matmul per-point MLP on one (TM, Cin) row tile."""
    x = x_ref[...]                                                # (TM, Cin) bf16
    # conv1 (+ folded BN1) + GELU
    h = jnp.dot(x, w1_ref[...], preferred_element_type=jnp.float32)
    h = _gelu(h + b1_ref[...]).astype(jnp.bfloat16)               # (TM, 128)
    # conv2 . conv3 (+ folded BN2) fused into one 128->512 matmul, + GELU
    h = jnp.dot(h, w23_ref[...], preferred_element_type=jnp.float32)
    h = _gelu(h + b23_ref[...]).astype(jnp.bfloat16)              # (TM, 512)
    # conv4
    h = jnp.dot(h, w4_ref[...], preferred_element_type=jnp.float32) + b4_ref[...]
    o_ref[...] = h.astype(o_ref.dtype)


# --------------------------------- wrapper -----------------------------------

def point_encoder_forward(params, x, *, tile_m=1024, out_dtype=jnp.float32):
    """x: (B, N, Cin) float32 -> (B, N, out_channels)."""
    B, N, Cin = x.shape

    # Fold eval-mode BatchNorms into the preceding 1x1 convs (in f32).
    w1, b1 = _fold_bn(params['c1_w'], params['c1_b'], params['bn1_g'],
                      params['bn1_b'], params['bn1_m'], params['bn1_v'])
    w3, b3 = _fold_bn(params['c3_w'], params['c3_b'], params['bn2_g'],
                      params['bn2_b'], params['bn2_m'], params['bn2_v'])
    # conv2 and (folded) conv3 compose exactly (no nonlinearity between them).
    w23 = params['c2_w'] @ w3                 # (128, 512) f32
    b23 = params['c2_b'] @ w3 + b3            # (512,)     f32
    w4, b4 = params['c4_w'], params['c4_b']

    C1, C23, Cout = w1.shape[1], w23.shape[1], w4.shape[1]

    # bf16 operands for the MXU; biases / accumulation / elementwise stay f32.
    weights = [w.astype(jnp.bfloat16) for w in (w1, w23, w4)]
    biases = [b.reshape(1, -1).astype(jnp.float32) for b in (b1, b23, b4)]

    # Row tiling over the flattened (B*N) point axis. Pallas masks the ragged
    # last block itself, so no input pad and no out[:M] copy are needed.
    M = B * N
    tm = max(128, min(tile_m, _round_up(M, 128)))
    grid = pl.cdiv(M, tm)

    xm = x.reshape(M, Cin).astype(jnp.bfloat16)

    row_spec = pl.BlockSpec((tm, Cin), lambda i: (i, 0))
    out_spec = pl.BlockSpec((tm, Cout), lambda i: (i, 0))

    def const_spec(shape):
        # Constant block index -> stays resident in VMEM across grid steps.
        # (pipeline_mode=pl.Buffered(1) would reclaim the ~0.4 MiB double buffer;
        # left at the default for lowering robustness — VMEM is not the binder.)
        return pl.BlockSpec(shape, lambda i: (0, 0))

    in_specs = [row_spec]
    operands = [xm]
    for w, b in zip(weights, biases):
        in_specs += [const_spec(w.shape), const_spec(b.shape)]
        operands += [w, b]

    param_bytes = sum(int(np.prod(a.shape)) * a.dtype.itemsize
                      for a in weights + biases)
    cost = pl.CostEstimate(
        flops=int(2 * M * (Cin * C1 + C1 * C23 + C23 * Cout)),
        transcendentals=int(M * (C1 + C23)),
        bytes_accessed=int(M * Cin * 2
                           + M * Cout * np.dtype(out_dtype).itemsize
                           + param_bytes),
    )

    out = pl.pallas_call(
        _point_encoder_kernel,
        out_shape=jax.ShapeDtypeStruct((M, Cout), out_dtype),
        grid=(grid,),
        in_specs=in_specs,
        out_specs=out_spec,
        compiler_params=pltpu.CompilerParams(
            dimension_semantics=("parallel",),
            vmem_limit_bytes=48 * 1024 * 1024),
        cost_estimate=cost,
    )(*operands)

    return out.reshape(B, N, Cout)


# ------------------------------ params / reference ---------------------------

def init_params(key, in_channels=6, first_channels=128, second_channels=512,
                out_channels=256):
    ks = jax.random.split(key, 16)

    def w(k, cin, cout):
        return jax.random.normal(k, (cin, cout), jnp.float32) / np.sqrt(cin)

    def small(k, c):
        return 0.1 * jax.random.normal(k, (c,), jnp.float32)

    return {
        'c1_w': w(ks[0], in_channels, first_channels),
        'c1_b': small(ks[1], first_channels),
        'bn1_g': 1.0 + small(ks[2], first_channels),
        'bn1_b': small(ks[3], first_channels),
        'bn1_m': small(ks[4], first_channels),
        'bn1_v': 1.0 + jnp.abs(small(ks[5], first_channels)),
        'c2_w': w(ks[6], first_channels, 256),
        'c2_b': small(ks[7], 256),
        'c3_w': w(ks[8], 256, second_channels),
        'c3_b': small(ks[9], second_channels),
        'bn2_g': 1.0 + small(ks[10], second_channels),
        'bn2_b': small(ks[11], second_channels),
        'bn2_m': small(ks[12], second_channels),
        'bn2_v': 1.0 + jnp.abs(small(ks[13], second_channels)),
        'c4_w': w(ks[14], second_channels, out_channels),
        'c4_b': small(ks[15], out_channels),
    }


def point_encoder_reference(params, x):
    """Pure-JAX f32 reference matching the PyTorch PointEncoder (eval mode)."""
    B, N, Cin = x.shape
    h = x.reshape(B * N, Cin).astype(jnp.float32)
    h = h @ params['c1_w'] + params['c1_b']
    h = ((h - params['bn1_m']) * jax.lax.rsqrt(params['bn1_v'] + 1e-5)
         * params['bn1_g'] + params['bn1_b'])
    h = jax.nn.gelu(h, approximate=False)
    h = h @ params['c2_w'] + params['c2_b']
    h = h @ params['c3_w'] + params['c3_b']
    h = ((h - params['bn2_m']) * jax.lax.rsqrt(params['bn2_v'] + 1e-5)
         * params['bn2_g'] + params['bn2_b'])
    h = jax.nn.gelu(h, approximate=False)
    h = h @ params['c4_w'] + params['c4_b']
    return h.reshape(B, N, -1)


if __name__ == "__main__":
    key = jax.random.PRNGKey(0)
    pkey, xkey = jax.random.split(key)
    params = init_params(pkey, in_channels=6, out_channels=256)

    B, N, C = 2, 300, 6          # 600 points -> one 640-row tile, grid = 1
    x = jax.random.normal(xkey, (B, N, C), jnp.float32)

    fwd = jax.jit(point_encoder_forward)
    out = fwd(params, x)
    jax.block_until_ready(out)

    assert out.shape == (B, N, 256) and out.dtype == jnp.float32

    ref = point_encoder_reference(params, x)
    np.testing.assert_allclose(np.asarray(out), np.asarray(ref),
                               rtol=5e-2, atol=5e-2)
    print("KERNEL_OK")
</pallas_src>

<mosaic_0001>
module attributes {stable_mosaic.version = 11 : i64} {
  func.func @_point_encoder_kernel(%arg0: i32, %arg1: memref<640x6xbf16, #tpu.memory_space<vmem>>, %arg2: memref<6x128xbf16, #tpu.memory_space<vmem>>, %arg3: memref<1x128xf32, #tpu.memory_space<vmem>>, %arg4: memref<128x512xbf16, #tpu.memory_space<vmem>>, %arg5: memref<1x512xf32, #tpu.memory_space<vmem>>, %arg6: memref<512x256xbf16, #tpu.memory_space<vmem>>, %arg7: memref<1x256xf32, #tpu.memory_space<vmem>>, %arg8: memref<640x256xf32, #tpu.memory_space<vmem>>) attributes {dimension_semantics = [#tpu.dimension_semantics<parallel>], iteration_bounds = array<i64: 1>, scalar_prefetch = 0 : i64, scratch_operands = 0 : i64, tpu.core_type = #tpu.core_type<tc>, window_params = [{transform_indices = @transform_0, window_bounds = array<i64: 640, 6>}, {pipeline_mode = #tpu.pipeline_mode<synchronous>, transform_indices = @transform_1, window_bounds = array<i64: 6, 128>}, {pipeline_mode = #tpu.pipeline_mode<synchronous>, transform_indices = @transform_2, window_bounds = array<i64: 1, 128>}, {pipeline_mode = #tpu.pipeline_mode<synchronous>, transform_indices = @transform_3, window_bounds = array<i64: 128, 512>}, {pipeline_mode = #tpu.pipeline_mode<synchronous>, transform_indices = @transform_4, window_bounds = array<i64: 1, 512>}, {pipeline_mode = #tpu.pipeline_mode<synchronous>, transform_indices = @transform_5, window_bounds = array<i64: 512, 256>}, {pipeline_mode = #tpu.pipeline_mode<synchronous>, transform_indices = @transform_6, window_bounds = array<i64: 1, 256>}, {transform_indices = @transform_7, window_bounds = array<i64: 640, 256>}]} {
    %c0 = arith.constant 0 : index
    %c0_0 = arith.constant 0 : index
    %0 = vector.load %arg1[%c0, %c0_0] : memref<640x6xbf16, #tpu.memory_space<vmem>>, vector<640x6xbf16>
    %c0_1 = arith.constant 0 : index
    %c0_2 = arith.constant 0 : index
    %1 = vector.load %arg2[%c0_1, %c0_2] : memref<6x128xbf16, #tpu.memory_space<vmem>>, vector<6x128xbf16>
    %cst = arith.constant dense<0.000000e+00> : vector<640x128xf32>
    %2 = tpu.matmul %0, %1, %cst {dimension_numbers = #tpu.dot_dimension_numbers<[1], [0], [0], [1], [0, 0, 1, 1], [], []>} : vector<640x6xbf16>, vector<6x128xbf16>, vector<640x128xf32> -> vector<640x128xf32>
    %c0_3 = arith.constant 0 : index
    %c0_4 = arith.constant 0 : index
    %3 = vector.load %arg3[%c0_3, %c0_4] : memref<1x128xf32, #tpu.memory_space<vmem>>, vector<1x128xf32>
    %4 = vector.broadcast %3 : vector<1x128xf32> to vector<640x128xf32>
    %5 = arith.addf %2, %4 : vector<640x128xf32>
    %cst_5 = arith.constant 5.000000e-01 : f32
    %6 = vector.broadcast %cst_5 : f32 to vector<640x128xf32>
    %7 = arith.mulf %6, %5 : vector<640x128xf32>
    %cst_6 = arith.constant 4.471500e-02 : f32
    %8 = vector.broadcast %cst_6 : f32 to vector<640x128xf32>
    %9 = arith.mulf %8, %5 : vector<640x128xf32>
    %10 = arith.mulf %9, %5 : vector<640x128xf32>
    %11 = arith.mulf %10, %5 : vector<640x128xf32>
    %12 = arith.addf %5, %11 : vector<640x128xf32>
    %cst_7 = arith.constant 0.797884583 : f32
    %13 = vector.broadcast %cst_7 : f32 to vector<640x128xf32>
    %14 = arith.mulf %13, %12 : vector<640x128xf32>
    %15 = math.tanh %14 : vector<640x128xf32>
    %cst_8 = arith.constant 1.000000e+00 : f32
    %16 = vector.broadcast %cst_8 : f32 to vector<640x128xf32>
    %17 = arith.addf %16, %15 : vector<640x128xf32>
    %18 = arith.mulf %7, %17 : vector<640x128xf32>
    %19 = arith.truncf %18 : vector<640x128xf32> to vector<640x128xbf16>
    %c0_9 = arith.constant 0 : index
    %c0_10 = arith.constant 0 : index
    %20 = vector.load %arg4[%c0_9, %c0_10] : memref<128x512xbf16, #tpu.memory_space<vmem>>, vector<128x512xbf16>
    %cst_11 = arith.constant dense<0.000000e+00> : vector<640x512xf32>
    %21 = tpu.matmul %19, %20, %cst_11 {dimension_numbers = #tpu.dot_dimension_numbers<[1], [0], [0], [1], [0, 0, 1, 1], [], []>} : vector<640x128xbf16>, vector<128x512xbf16>, vector<640x512xf32> -> vector<640x512xf32>
    %c0_12 = arith.constant 0 : index
    %c0_13 = arith.constant 0 : index
    %22 = vector.load %arg5[%c0_12, %c0_13] : memref<1x512xf32, #tpu.memory_space<vmem>>, vector<1x512xf32>
    %23 = vector.broadcast %22 : vector<1x512xf32> to vector<640x512xf32>
    %24 = arith.addf %21, %23 : vector<640x512xf32>
    %cst_14 = arith.constant 5.000000e-01 : f32
    %25 = vector.broadcast %cst_14 : f32 to vector<640x512xf32>
    %26 = arith.mulf %25, %24 : vector<640x512xf32>
    %cst_15 = arith.constant 4.471500e-02 : f32
    %27 = vector.broadcast %cst_15 : f32 to vector<640x512xf32>
    %28 = arith.mulf %27, %24 : vector<640x512xf32>
    %29 = arith.mulf %28, %24 : vector<640x512xf32>
    %30 = arith.mulf %29, %24 : vector<640x512xf32>
    %31 = arith.addf %24, %30 : vector<640x512xf32>
    %cst_16 = arith.constant 0.797884583 : f32
    %32 = vector.broadcast %cst_16 : f32 to vector<640x512xf32>
    %33 = arith.mulf %32, %31 : vector<640x512xf32>
    %34 = math.tanh %33 : vector<640x512xf32>
    %cst_17 = arith.constant 1.000000e+00 : f32
    %35 = vector.broadcast %cst_17 : f32 to vector<640x512xf32>
    %36 = arith.addf %35, %34 : vector<640x512xf32>
    %37 = arith.mulf %26, %36 : vector<640x512xf32>
    %38 = arith.truncf %37 : vector<640x512xf32> to vector<640x512xbf16>
    %c0_18 = arith.constant 0 : index
    %c0_19 = arith.constant 0 : index
    %39 = vector.load %arg6[%c0_18, %c0_19] : memref<512x256xbf16, #tpu.memory_space<vmem>>, vector<512x256xbf16>
    %cst_20 = arith.constant dense<0.000000e+00> : vector<640x256xf32>
    %40 = tpu.matmul %38, %39, %cst_20 {dimension_numbers = #tpu.dot_dimension_numbers<[1], [0], [0], [1], [0, 0, 1, 1], [], []>} : vector<640x512xbf16>, vector<512x256xbf16>, vector<640x256xf32> -> vector<640x256xf32>
    %c0_21 = arith.constant 0 : index
    %c0_22 = arith.constant 0 : index
    %41 = vector.load %arg7[%c0_21, %c0_22] : memref<1x256xf32, #tpu.memory_space<vmem>>, vector<1x256xf32>
    %42 = vector.broadcast %41 : vector<1x256xf32> to vector<640x256xf32>
    %43 = arith.addf %40, %42 : vector<640x256xf32>
    %c0_23 = arith.constant 0 : index
    %c0_24 = arith.constant 0 : index
    %44 = vector.load %arg8[%c0_23, %c0_24] : memref<640x256xf32, #tpu.memory_space<vmem>>, vector<640x256xf32>
    tpu.vector_store %arg8[%c0_23, %c0_24], %43 {strides = array<i32>} : memref<640x256xf32, #tpu.memory_space<vmem>>, vector<640x256xf32>,
    return
  }
  func.func @transform_0(%arg0: i32) -> (i32, i32) {
    %c0_i32 = arith.constant 0 : i32
    %c0_i32_0 = arith.constant 0 : i32
    return %arg0, %c0_i32 : i32, i32
  }
  func.func @transform_1(%arg0: i32) -> (i32, i32) {
    %c0_i32 = arith.constant 0 : i32
    %c0_i32_0 = arith.constant 0 : i32
    %c0_i32_1 = arith.constant 0 : i32
    return %c0_i32, %c0_i32_0 : i32, i32
  }
  func.func @transform_2(%arg0: i32) -> (i32, i32) {
    %c0_i32 = arith.constant 0 : i32
    %c0_i32_0 = arith.constant 0 : i32
    %c0_i32_1 = arith.constant 0 : i32
    return %c0_i32, %c0_i32_0 : i32, i32
  }
  func.func @transform_3(%arg0: i32) -> (i32, i32) {
    %c0_i32 = arith.constant 0 : i32
    %c0_i32_0 = arith.constant 0 : i32
    %c0_i32_1 = arith.constant 0 : i32
    return %c0_i32, %c0_i32_0 : i32, i32
  }
  func.func @transform_4(%arg0: i32) -> (i32, i32) {
    %c0_i32 = arith.constant 0 : i32
    %c0_i32_0 = arith.constant 0 : i32
    %c0_i32_1 = arith.constant 0 : i32
    return %c0_i32, %c0_i32_0 : i32, i32
  }
  func.func @transform_5(%arg0: i32) -> (i32, i32) {
    %c0_i32 = arith.constant 0 : i32
    %c0_i32_0 = arith.constant 0 : i32
    %c0_i32_1 = arith.constant 0 : i32
    return %c0_i32, %c0_i32_0 : i32, i32
  }
  func.func @transform_6(%arg0: i32) -> (i32, i32) {
    %c0_i32 = arith.constant 0 : i32
    %c0_i32_0 = arith.constant 0 : i32
    %c0_i32_1 = arith.constant 0 : i32
    return %c0_i32, %c0_i32_0 : i32, i32
  }
  func.func @transform_7(%arg0: i32) -> (i32, i32) {
    %c0_i32 = arith.constant 0 : i32
    %c0_i32_0 = arith.constant 0 : i32
    return %arg0, %c0_i32 : i32, i32
  }
}

</mosaic_0001>

<bundles_post_ra>
// kernel: point_encoder_forward.1
= control target key start
LH: loop header
LB: loop body
LE: loop exit
PB: predicated region body
PF: predicated region fallthrough
CT: control target
= control target key end

     0   :  { %vm436_vm0 = vcmask 1042432   ;;  %vm315_vm1 = vcmask 48128   ;;  %v16053_v49 = vmov 0   ;;  %s16045_s0 = inlined_call_operand.vmem [shape: bf16[600,6], index: 0, kind: input, shape index: {}]   ;;  %s16046_s1 = inlined_call_operand.vmem [shape: bf16[6,128], index: 1, kind: input, shape index: {}]   ;;  %s16047_s2 = inlined_call_operand.vmem [shape: f32[1,128], index: 2, kind: input, shape index: {}]   ;;  %s16048_s3 = inlined_call_operand.vmem [shape: bf16[128,512], index: 3, kind: input, shape index: {}]   ;;  %s16049_s4 = inlined_call_operand.vmem [shape: f32[1,512], index: 4, kind: input, shape index: {}]   ;;  %s16050_s5 = inlined_call_operand.vmem [shape: bf16[512,256], index: 5, kind: input, shape index: {}]   ;;  %s16051_s6 = inlined_call_operand.vmem [shape: f32[1,256], index: 6, kind: input, shape index: {}]   ;;  %s16052_s7 = inlined_call_operand.vmem [shape: f32[600,256], index: 7, kind: output, shape index: {}]  }
   0x1   :  { %v107_v0 = vld [vmem:[%s16046_s1] sm:$0x7]  ;;  %v8039_v3 = vld [vmem:[%s16045_s0 + $0x8] sm:$0xff]   ;;  %v8040_v4 = vld [vmem:[%s16045_s0 + $0x10] sm:$0xff]   ;;  %2119 = vmatprep.mubr.bf16.mxu1 %v16053_v49 }
   0x2   :  { %v8038_v1 = vld [vmem:[%s16045_s0] sm:$0xff]   ;;  %8036 = vmatprep.subr.msk.bf16.mxu0 %vm436_vm0, %v107_v0  ;;  %v438_v2 = vsel %vm436_vm0, %v107_v0, 0  ;;  %v8041_v5 = vld [vmem:[%s16045_s0 + $0x18] sm:$0xff]   ;;  %v8043_v7 = vld [vmem:[%s16045_s0 + $0x28] sm:$0xff]  }
   0x3   :  { %7637 = vmatpush3.bf16.msra.mxu0 %v438_v2  ;;  %7638 = vmatprep.mubr.msk.bf16.mxu0 %vm315_vm1, %v8038_v1  ;;  %v8042_v6 = vld [vmem:[%s16045_s0 + $0x20] sm:$0xff]   ;;  %v8044_v8 = vld [vmem:[%s16045_s0 + $0x30] sm:$0xff]   ;;  %v8045_v11 = vld [vmem:[%s16045_s0 + $0x38] sm:$0xff]  }
   0x4   :  { %v8060_v9 = vld [vmem:[%s16048_s3] ss:$16 sps:$4 sm:$0xff]   ;;  %v8062_v10 = vld [vmem:[%s16048_s3 + $0x4] ss:$16 sps:$4 sm:$0xff]   ;;  %v8047_v15 = vld [vmem:[%s16045_s0 + $0x48] sm:$0xff]  }
   0x5   :  { %1767 = vmatprep.subr.bf16.mxu0 %v8062_v10  ;;  %7718 = vmatprep.subr.bf16.mxu1 %v8062_v10  ;;  %v8046_v12 = vld [vmem:[%s16045_s0 + $0x40] sm:$0xff]   ;;  %v8048_v16 = vld [vmem:[%s16045_s0 + $0x50] sm:$0xff]   ;;  %v8049_v21 = vld [vmem:[%s16045_s0 + $0x58] sm:$0xff]  }
   0x6   :  { %7639 = vmatmul.mubr.msk.bf16.vlgmr.msra.gmra.mrb[0].mxu0 %vm315_vm1, %v8039_v3  ;;  %7726 = vmatpush1.bf16.msra.mxu1 %v8060_v9  ;;  %v8068_v13 = vld [vmem:[%s16048_s3 + $0x20] ss:$16 sps:$4 sm:$0xff]   ;;  %v8070_v14 = vld [vmem:[%s16048_s3 + $0x24] ss:$16 sps:$4 sm:$0xff]   ;;  %v8051_v25 = vld [vmem:[%s16045_s0 + $0x68] sm:$0xff]  }
   0x7   :  { %7642 = vmatprep.mubr.msk.bf16.mxu0 %vm315_vm1, %v8040_v4  ;;  %1768 = vmatpush1.bf16.msra.mxu0 %v8060_v9  ;;  %v8076_v17 = vld [vmem:[%s16048_s3 + $0x40] ss:$16 sps:$4 sm:$0xff]   ;;  %v8078_v18 = vld [vmem:[%s16048_s3 + $0x44] ss:$16 sps:$4 sm:$0xff]   ;;  %v8053_v31 = vld [vmem:[%s16045_s0 + $0x78] sm:$0xff]  }
   0x8   :  { %1769 = vmatprep.subr.bf16.mxu0 %v8070_v14  ;;  %7719 = vmatprep.subr.bf16.mxu1 %v8070_v14  ;;  %v8082_v19 = vld [vmem:[%s16048_s3 + $0x60] ss:$16 sps:$4 sm:$0xff]   ;;  %v8084_v20 = vld [vmem:[%s16048_s3 + $0x64] ss:$16 sps:$4 sm:$0xff]   ;;  %v8055_v33 = vld [vmem:[%s16045_s0 + $0x88] sm:$0xff]  }
   0x9   :  { %v8050_v22 = vld [vmem:[%s16045_s0 + $0x60] sm:$0xff]   ;;  %v8052_v28 = vld [vmem:[%s16045_s0 + $0x70] sm:$0xff]   ;;  %v8057_v35 = vld [vmem:[%s16045_s0 + $0x98] sm:$0xff]  }
   0xa   :  { %7727 = vmatpush1.bf16.msra.mxu1 %v8068_v13  ;;  %v8088_v23 = vld [vmem:[%s16048_s3 + $0x80] ss:$16 sps:$4 sm:$0xff]   ;;  %v8090_v24 = vld [vmem:[%s16048_s3 + $0x84] ss:$16 sps:$4 sm:$0xff]   ;;  %v8059_v37 = vld [vmem:[%s16045_s0 + $0xa8] sm:$0xff]  }
   0xb   :  { %1770 = vmatpush1.bf16.msra.mxu0 %v8068_v13  ;;  %7720 = vmatprep.subr.bf16.mxu1 %v8078_v18  ;;  %v8093_v26 = vld [vmem:[%s16048_s3 + $0xa0] ss:$16 sps:$4 sm:$0xff]   ;;  %v8095_v27 = vld [vmem:[%s16048_s3 + $0xa4] ss:$16 sps:$4 sm:$0xff]   ;;  %v8064_v39 = vld [vmem:[%s16045_s0 + $0xb8] sm:$0xff]  }
   0xc   :  { %1771 = vmatprep.subr.bf16.mxu0 %v8078_v18  ;;  %v8098_v29 = vld [vmem:[%s16048_s3 + $0xc4] ss:$16 sps:$4 sm:$0xff]   ;;  %v8096_v30 = vld [vmem:[%s16048_s3 + $0xc0] ss:$16 sps:$4 sm:$0xff]   ;;  %v8066_v41 = vld [vmem:[%s16045_s0 + $0xc8] sm:$0xff]  }
   0xd   :  { %v8054_v32 = vld [vmem:[%s16045_s0 + $0x80] sm:$0xff]   ;;  %v8056_v34 = vld [vmem:[%s16045_s0 + $0x90] sm:$0xff]   ;;  %v8071_v45 = vld [vmem:[%s16045_s0 + $0xd8] sm:$0xff]  }
   0xe   :  { %7643 = vmatmul.mubr.msk.bf16.gmra.mrb[4].mxu0 %vm315_vm1, %v8041_v5  ;;  %7728 = vmatpush1.bf16.msra.mxu1 %v8076_v17  ;;  %v8058_v36 = vld [vmem:[%s16045_s0 + $0xa0] sm:$0xff]   ;;  %v8063_v38 = vld [vmem:[%s16045_s0 + $0xb0] sm:$0xff]   ;;  %v8073_v47 = vld [vmem:[%s16045_s0 + $0xe8] sm:$0xff]  }
   0xf   :  { %7646 = vmatprep.mubr.msk.bf16.mxu0 %vm315_vm1, %v8042_v6  ;;  %1772 = vmatpush1.bf16.msra.mxu0 %v8076_v17  ;;  %v8065_v40 = vld [vmem:[%s16045_s0 + $0xc0] sm:$0xff]   ;;  %v8067_v42 = vld [vmem:[%s16045_s0 + $0xd0] sm:$0xff]   ;;  %v8075_v50 = vld [vmem:[%s16045_s0 + $0xf8] sm:$0xff]  }
  0x10   :  { %1773 = vmatprep.subr.bf16.mxu0 %v8084_v20  ;;  %7721 = vmatprep.subr.bf16.mxu1 %v8084_v20  ;;  %v8099_v43 = vld [vmem:[%s16048_s3 + $0xe0] ss:$16 sps:$4 sm:$0xff]   ;;  %v8101_v44 = vld [vmem:[%s16048_s3 + $0xe4] ss:$16 sps:$4 sm:$0xff]   ;;  %v8080_v52 = vld [vmem:[%s16045_s0 + $0x108] sm:$0xff]  }
  0x11   :  { %v8072_v46 = vld [vmem:[%s16045_s0 + $0xe0] sm:$0xff]   ;;  %v8074_v48 = vld [vmem:[%s16045_s0 + $0xf0] sm:$0xff]   ;;  %v8085_v54 = vld [vmem:[%s16045_s0 + $0x118] sm:$0xff]  }
  0x12   :  { %7729 = vmatpush1.bf16.msra.mxu1 %v8082_v19  ;;  %v8079_v51 = vld [vmem:[%s16045_s0 + $0x100] sm:$0xff]   ;;  %v8081_v53 = vld [vmem:[%s16045_s0 + $0x110] sm:$0xff]   ;;  %v8087_v56 = vld [vmem:[%s16045_s0 + $0x128] sm:$0xff]  }
  0x13   :  { %1774 = vmatpush1.bf16.msra.mxu0 %v8082_v19  ;;  %7722 = vmatprep.subr.bf16.mxu1 %v8090_v24  ;;  %v8086_v55 = vld [vmem:[%s16045_s0 + $0x120] sm:$0xff]   ;;  %v8091_v57 = vld [vmem:[%s16045_s0 + $0x130] sm:$0xff]   ;;  %v8092_v58 = vld [vmem:[%s16045_s0 + $0x138] sm:$0xff]  }
  0x14   :  { %1775 = vmatprep.subr.bf16.mxu0 %v8090_v24  ;;  %v8104_v59 = vld [vmem:[%s16048_s3 + $0xc] ss:$16 sps:$4 sm:$0xff]   ;;  %v9284_v60 = vld [vmem:[%s16047_s2] ss:$0 sm:$0xff] }
  0x16   :  { %7647 = vmatmul.mubr.msk.bf16.gmra.mrb[8].mxu0 %vm315_vm1, %v8043_v7  ;;  %7730 = vmatpush1.bf16.msra.mxu1 %v8088_v23 }
  0x17   :  { %7650 = vmatprep.mubr.msk.bf16.mxu0 %vm315_vm1, %v8044_v8  ;;  %1776 = vmatpush1.bf16.msra.mxu0 %v8088_v23 }
  0x18   :  { %1777 = vmatprep.subr.bf16.mxu0 %v8095_v27  ;;  %7723 = vmatprep.subr.bf16.mxu1 %v8095_v27 }
  0x1a   :  { %7731 = vmatpush1.bf16.msra.mxu1 %v8093_v26 }
  0x1b   :  { %1778 = vmatpush1.bf16.msra.mxu0 %v8093_v26  ;;  %7724 = vmatprep.subr.bf16.mxu1 %v8098_v29 }
  0x1c   :  { %1779 = vmatprep.subr.bf16.mxu0 %v8098_v29 }
  0x1e   :  { %7651 = vmatmul.mubr.msk.bf16.gmra.mrb[12].mxu0 %vm315_vm1, %v8045_v11  ;;  %7732 = vmatpush1.bf16.msra.mxu1 %v8096_v30 }
  0x1f   :  { %7654 = vmatprep.mubr.msk.bf16.mxu0 %vm315_vm1, %v8046_v12  ;;  %1780 = vmatpush1.bf16.msra.mxu0 %v8096_v30 }
  0x20   :  { %1781 = vmatprep.subr.bf16.mxu0 %v8101_v44  ;;  %7725 = vmatprep.subr.bf16.mxu1 %v8101_v44 }
  0x22   :  { %7733 = vmatpush1.bf16.msra.mxu1 %v8099_v43 }
  0x23   :  { %1782 = vmatpush1.bf16.msra.mxu0 %v8099_v43 }
  0x24   :  { %2200 = vmatprep.subr.bf16.mxu0 %v8104_v59 }
  0x26   :  { %7655 = vmatmul.mubr.msk.bf16.gmra.mrb[16].mxu0 %vm315_vm1, %v8047_v15 }
  0x27   :  { %7658 = vmatprep.mubr.msk.bf16.mxu0 %vm315_vm1, %v8048_v16 }
  0x2e   :  { %7659 = vmatmul.mubr.msk.bf16.gmra.mrb[20].mxu0 %vm315_vm1, %v8049_v21 }
  0x2f   :  { %7662 = vmatprep.mubr.msk.bf16.mxu0 %vm315_vm1, %v8050_v22 }
  0x36   :  { %7663 = vmatmul.mubr.msk.bf16.gmra.mrb[24].mxu0 %vm315_vm1, %v8051_v25 }
  0x37   :  { %7666 = vmatprep.mubr.msk.bf16.mxu0 %vm315_vm1, %v8052_v28 }
  0x3e   :  { %7667 = vmatmul.mubr.msk.bf16.gmra.mrb[28].mxu0 %vm315_vm1, %v8053_v31 }
  0x3f   :  { %7670 = vmatprep.mubr.msk.bf16.mxu0 %vm315_vm1, %v8054_v32 }
  0x46   :  { %7671 = vmatmul.mubr.msk.bf16.gmra.mrb[32].mxu0 %vm315_vm1, %v8055_v33 }
  0x47   :  { %7674 = vmatprep.mubr.msk.bf16.mxu0 %vm315_vm1, %v8056_v34 }
  0x4e   :  { %7675 = vmatmul.mubr.msk.bf16.gmra.mrb[36].mxu0 %vm315_vm1, %v8057_v35 }
  0x4f   :  { %7678 = vmatprep.mubr.msk.bf16.mxu0 %vm315_vm1, %v8058_v36 }
  0x56   :  { %7679 = vmatmul.mubr.msk.bf16.gmra.mrb[40].mxu0 %vm315_vm1, %v8059_v37 }
  0x57   :  { %7682 = vmatprep.mubr.msk.bf16.mxu0 %vm315_vm1, %v8063_v38 }
  0x5e   :  { %7683 = vmatmul.mubr.msk.bf16.gmra.mrb[44].mxu0 %vm315_vm1, %v8064_v39 }
  0x5f   :  { %7686 = vmatprep.mubr.msk.bf16.mxu0 %vm315_vm1, %v8065_v40 }
  0x66   :  { %7687 = vmatmul.mubr.msk.bf16.gmra.mrb[48].mxu0 %vm315_vm1, %v8066_v41 }
  0x67   :  { %7690 = vmatprep.mubr.msk.bf16.mxu0 %vm315_vm1, %v8067_v42 }
  0x6e   :  { %7691 = vmatmul.mubr.msk.bf16.gmra.mrb[52].mxu0 %vm315_vm1, %v8071_v45 }
  0x6f   :  { %7694 = vmatprep.mubr.msk.bf16.mxu0 %vm315_vm1, %v8072_v46 }
  0x76   :  { %7695 = vmatmul.mubr.msk.bf16.gmra.mrb[56].mxu0 %vm315_vm1, %v8073_v47 }
  0x77   :  { %7698 = vmatprep.mubr.msk.bf16.mxu0 %vm315_vm1, %v8074_v48 }
  0x7e   :  { %7699 = vmatmul.mubr.msk.bf16.gmra.mrb[60].mxu0 %vm315_vm1, %v8075_v50 }
  0x7f   :  { %7702 = vmatprep.mubr.msk.bf16.mxu0 %vm315_vm1, %v8079_v51 }
  0x86   :  { %7703 = vmatmul.mubr.msk.bf16.gmra.mrb[64].mxu0 %vm315_vm1, %v8080_v52 }
  0x87   :  { %7706 = vmatprep.mubr.msk.bf16.mxu0 %vm315_vm1, %v8081_v53 }
  0x8e   :  { %7707 = vmatmul.mubr.msk.bf16.gmra.mrb[68].mxu0 %vm315_vm1, %v8085_v54 }
  0x8f   :  { %7710 = vmatprep.mubr.msk.bf16.mxu0 %vm315_vm1, %v8086_v55 }
  0x96   :  { %7711 = vmatmul.mubr.msk.bf16.gmra.mrb[72].mxu0 %vm315_vm1, %v8087_v56 }
  0x97   :  { %7714 = vmatprep.mubr.msk.bf16.mxu0 %vm315_vm1, %v8091_v57 }
  0x9e   :  { %7715 = vmatmul.mubr.msk.bf16.gmra.mrb[76].mxu0 %vm315_vm1, %v8092_v58 }
  0x9f   :  { %1799 = vmatprep.mubr.bf16.mxu0 %v16053_v49 }
  0xd9   :  { %v7640_v61 = vpop.f32.mrb[0].mxu0 }
  0xda   :  { %v9287_v62 = vadd.f32 %v7640_v61, %v9284_v60  ;;  %v474_v63 = vpop.f32.mrb[1].mxu0 }
  0xdb   :  { %v9290_v0 = vadd.f32 %v9284_v60, %v474_v63  ;;  %v7641_v1 = vpop.f32.mrb[2].mxu0 }
  0xdc   :  { %v875_v2 = vmul.f32 0.044715, %v9287_v62  ;;  %v9294_v3 = vadd.f32 %v7641_v1, %v9284_v60  ;;  %v477_v4 = vpop.f32.mrb[3].mxu0 }
  0xdd   :  { %v873_v5 = vmul.f32 0.044715, %v9290_v0  ;;  %v9298_v6 = vadd.f32 %v9284_v60, %v477_v4 }
  0xde   :  { %v876_v7 = vmul.f32 0.044715, %v9294_v3  ;;  %v955_v8 = vmul.f32 %v875_v2, %v9287_v62 }
  0xdf   :  { %v953_v9 = vmul.f32 %v873_v5, %v9290_v0  ;;  %v874_v10 = vmul.f32 0.044715, %v9298_v6 }
  0xe0   :  { %v956_v11 = vmul.f32 %v876_v7, %v9294_v3  ;;  %v1035_v12 = vmul.f32 %v955_v8, %v9287_v62  ;;  %v795_v7 = vmul.f32 0.5, %v9287_v62 }
  0xe1   :  { %v1033_v13 = vmul.f32 %v953_v9, %v9290_v0  ;;  %v954_v14 = vmul.f32 %v874_v10, %v9298_v6  ;;  %v7644_v15 = vpop.f32.mrb[4].mxu0 }
  0xe2   :  { %v9309_v16 = vadd.f32 %v7644_v15, %v9284_v60  ;;  %v490_v17 = vpop.f32.mrb[5].mxu0  ;;  %v1036_v18 = vmul.f32 %v956_v11, %v9294_v3  ;;  %v1115_v19 = vadd.f32 %v1035_v12, %v9287_v62  ;;  %v796_v11 = vmul.f32 0.5, %v9294_v3 }
  0xe3   :  { %v1113_v20 = vadd.f32 %v1033_v13, %v9290_v0  ;;  %v1034_v21 = vmul.f32 %v954_v14, %v9298_v6  ;;  %v9316_v22 = vadd.f32 %v9284_v60, %v490_v17  ;;  %v7645_v23 = vpop.f32.mrb[6].mxu0 }
  0xe4   :  { %v879_v24 = vmul.f32 0.044715, %v9309_v16  ;;  %v9320_v25 = vadd.f32 %v7645_v23, %v9284_v60  ;;  %v493_v26 = vpop.f32.mrb[7].mxu0  ;;  %v1116_v27 = vadd.f32 %v1036_v18, %v9294_v3  ;;  %v1195_v28 = vmul.f32 0.7978846, %v1115_v19 }
  0xe5   :  { %v1193_v29 = vmul.f32 0.7978846, %v1113_v20  ;;  %v1114_v30 = vadd.f32 %v1034_v21, %v9298_v6  ;;  %v877_v31 = vmul.f32 0.044715, %v9316_v22  ;;  %v9326_v32 = vadd.f32 %v9284_v60, %v493_v26 }
  0xe6   :  { %v880_v33 = vmul.f32 0.044715, %v9320_v25  ;;  %v1196_v34 = vmul.f32 0.7978846, %v1116_v27  ;;  %8222 = vtanh.f32 %v1195_v28  ;;  %v959_v40 = vmul.f32 %v879_v24, %v9309_v16 }
  0xe7   :  { %8224 = vtanh.f32 %v1193_v29  ;;  %v1194_v35 = vmul.f32 0.7978846, %v1114_v30  ;;  %v878_v36 = vmul.f32 0.044715, %v9326_v32  ;;  %v957_v37 = vmul.f32 %v877_v31, %v9316_v22 }
  0xe8   :  { %8226 = vtanh.f32 %v1196_v34  ;;  %v960_v41 = vmul.f32 %v880_v33, %v9320_v25  ;;  %v1039_v48 = vmul.f32 %v959_v40, %v9309_v16  ;;  %v793_v26 = vmul.f32 0.5, %v9290_v0  ;;  %v8102_v40 = vld [vmem:[%s16048_s3 + $0x8] ss:$16 sps:$4 sm:$0xff]  }
  0xe9   :  { %8228 = vtanh.f32 %v1194_v35  ;;  %v7648_v38 = vpop.f32.mrb[8].mxu0  ;;  %v958_v39 = vmul.f32 %v878_v36, %v9326_v32  ;;  %v1037_v44 = vmul.f32 %v957_v37, %v9316_v22  ;;  %v794_v27 = vmul.f32 0.5, %v9298_v6 }
  0xea   :  { %v9335_v42 = vadd.f32 %v7648_v38, %v9284_v60  ;;  %v506_v43 = vpop.f32.mrb[9].mxu0  ;;  %v1040_v50 = vmul.f32 %v960_v41, %v9320_v25  ;;  %v1119_v56 = vadd.f32 %v1039_v48, %v9309_v16  ;;  %v797_v29 = vmul.f32 0.5, %v9316_v22 }
  0xeb   :  { %v9339_v45 = vadd.f32 %v9284_v60, %v506_v43  ;;  %v7649_v46 = vpop.f32.mrb[10].mxu0  ;;  %v1038_v47 = vmul.f32 %v958_v39, %v9326_v32  ;;  %v1117_v52 = vadd.f32 %v1037_v44, %v9316_v22 }
  0xec   :  { %v509_v51 = vpop.f32.mrb[11].mxu0  ;;  %v883_v57 = vmul.f32 0.044715, %v9335_v42  ;;  %v9353_v58 = vadd.f32 %v7649_v46, %v9284_v60  ;;  %v1120_v61 = vadd.f32 %v1040_v50, %v9320_v25  ;;  %v1199_v2 = vmul.f32 0.7978846, %v1119_v56 }
  0xed   :  { %v881_v53 = vmul.f32 0.044715, %v9339_v45  ;;  %v9347_v54 = vadd.f32 %v9284_v60, %v509_v51  ;;  %v1118_v55 = vadd.f32 %v1038_v47, %v9326_v32  ;;  %v1197_v59 = vmul.f32 0.7978846, %v1117_v52  ;;  %v8107_v47 = vld [vmem:[%s16048_s3 + $0x2c] ss:$16 sps:$4 sm:$0xff]  }
  0xee   :  { %v1200_v8 = vmul.f32 0.7978846, %v1120_v61  ;;  %v884_v15 = vmul.f32 0.044715, %v9353_v58  ;;  %v963_v3 = vmul.f32 %v883_v57, %v9335_v42  ;;  %v798_v57 = vmul.f32 0.5, %v9326_v32 }
  0xef   :  { %v882_v63 = vmul.f32 0.044715, %v9347_v54  ;;  %v1198_v1 = vmul.f32 0.7978846, %v1118_v55  ;;  %v961_v4 = vmul.f32 %v881_v53, %v9339_v45  ;;  %8230 = vtanh.f32 %v1197_v59 }
  0xf0   :  { %v8223_v5 = vpop.eup %8222  ;;  %v964_v38 = vmul.f32 %v884_v15, %v9353_v58  ;;  %v1043_v22 = vmul.f32 %v963_v3, %v9335_v42  ;;  %v799_v59 = vmul.f32 0.5, %v9309_v16  ;;  %v800_v15 = vmul.f32 0.5, %v9320_v25 }
  0xf1   :  { %v8225_v9 = vpop.eup %8224  ;;  %v7652_v10 = vpop.f32.mrb[12].mxu0  ;;  %v1355_v12 = vadd.f32 1.0, %v8223_v5  ;;  %8232 = vtanh.f32 %v1198_v1  ;;  %v962_v13 = vmul.f32 %v882_v63, %v9347_v54  ;;  %v1041_v19 = vmul.f32 %v961_v4, %v9339_v45 }
  0xf2   :  { %v8227_v14 = vpop.eup %8226  ;;  %v522_v17 = vpop.f32.mrb[13].mxu0  ;;  %v1353_v18 = vadd.f32 1.0, %v8225_v9  ;;  %8234 = vtanh.f32 %v1199_v2  ;;  %v1044_v46 = vmul.f32 %v964_v38, %v9353_v58  ;;  %v9392_v48 = vadd.f32 %v7652_v10, %v9284_v60 }
  0xf3   :  { %v8229_v20 = vpop.eup %8228  ;;  %v9364_v62 = vadd.f32 %v9284_v60, %v522_v17  ;;  %v7653_v21 = vpop.f32.mrb[14].mxu0  ;;  %v1356_v23 = vadd.f32 1.0, %v8227_v14  ;;  %8236 = vtanh.f32 %v1200_v8  ;;  %v1435_v31 = vmul.f32 %v1355_v12, %v795_v7  ;;  %v8105_v7 = vld [vmem:[%s16048_s3 + $0x28] ss:$16 sps:$4 sm:$0xff]  }
  0xf4   :  { %v525_v24 = vpop.f32.mrb[15].mxu0  ;;  %v1354_v28 = vadd.f32 1.0, %v8229_v20  ;;  %v1042_v34 = vmul.f32 %v962_v13, %v9347_v54  ;;  %v1433_v35 = vmul.f32 %v1353_v18, %v793_v26  ;;  %v1121_v37 = vadd.f32 %v1041_v19, %v9339_v45 }
  0xf5   :  { %v9371_v30 = vadd.f32 %v9284_v60, %v525_v24  ;;  %v1436_v33 = vmul.f32 %v1356_v23, %v796_v11  ;;  %v885_v0 = vmul.f32 0.044715, %v9364_v62  ;;  %v9395_v50 = vadd.f32 %v7653_v21, %v9284_v60  ;;  %v8110_v11 = vld [vmem:[%s16048_s3 + $0x4c] ss:$16 sps:$4 sm:$0xff]   ;;  %v8108_v24 = vld [vmem:[%s16048_s3 + $0x48] ss:$16 sps:$4 sm:$0xff]  }
  0xf6   :  { %v1434_v36 = vmul.f32 %v1354_v28, %v794_v27  ;;  %v1122_v6 = vadd.f32 %v1042_v34, %v9347_v54  ;;  %v1201_v44 = vmul.f32 0.7978846, %v1121_v37  ;;  %v1123_v53 = vadd.f32 %v1043_v22, %v9335_v42 }
  0xf7   :  { %v9377_v39 = vpack.c.bf16 %v1436_v33, %v1435_v31  ;;  %v886_v41 = vmul.f32 0.044715, %v9371_v30  ;;  %v1124_v61 = vadd.f32 %v1044_v46, %v9353_v58  ;;  %v965_v5 = vmul.f32 %v885_v0, %v9364_v62 }
  0xf8   :  { %v9385_v43 = vpack.c.bf16 %v1434_v36, %v1433_v35  ;;  %v1202_v52 = vmul.f32 0.7978846, %v1122_v6  ;;  %8238 = vtanh.f32 %v1201_v44  ;;  %v1203_v4 = vmul.f32 0.7978846, %v1123_v53 }
  0xf9   :  { %16447 = vst [vmem:[#allocation3_spill] sm:$0xff] %v9377_v39  ;;  %v7656_v51 = vpop.f32.mrb[16].mxu0  ;;  %v8231_v55 = vpop.eup %8230  ;;  %v1204_v9 = vmul.f32 0.7978846, %v1124_v61  ;;  %v966_v10 = vmul.f32 %v886_v41, %v9371_v30  ;;  %v887_v13 = vmul.f32 0.044715, %v9392_v48  ;;  %v1045_v3 = vmul.f32 %v965_v5, %v9364_v62 }
  0xfa   :  { %16448 = vst [vmem:[#allocation4_spill] sm:$0xff] %v9385_v43  ;;  %1800 = vmatmul.mubr.bf16.vlgmr.msra.gmra.mrb[80].mxu0 %v9385_v43  ;;  %v538_v56 = vpop.f32.mrb[17].mxu0  ;;  %v1357_v2 = vadd.f32 1.0, %v8231_v55  ;;  %8240 = vtanh.f32 %v1202_v52  ;;  %v888_v14 = vmul.f32 0.044715, %v9395_v50  ;;  %v803_v31 = vmul.f32 0.5, %v9335_v42 }
  0xfb   :  { %v8233_v63 = vpop.eup %8232  ;;  %1809 = vmatprep.mubr.bf16.mxu0 %v16053_v49  ;;  %v7657_v1 = vpop.f32.mrb[18].mxu0  ;;  %2201 = vmatpush1.bf16.msra.mxu0 %v8102_v40  ;;  %8242 = vtanh.f32 %v1203_v4  ;;  %v9415_v21 = vadd.f32 %v9284_v60, %v538_v56  ;;  %v1046_v28 = vmul.f32 %v966_v10, %v9371_v30  ;;  %v1125_v33 = vadd.f32 %v1045_v3, %v9364_v62 }
  0xfc   :  { %v8235_v32 = vpop.eup %8234  ;;  %v541_v8 = vpop.f32.mrb[19].mxu0  ;;  %v1358_v16 = vadd.f32 1.0, %v8233_v63  ;;  %2202 = vmatprep.subr.bf16.mxu0 %v8107_v47  ;;  %v1437_v18 = vmul.f32 %v1357_v2, %v797_v29  ;;  %8244 = vtanh.f32 %v1204_v9  ;;  %v967_v34 = vmul.f32 %v887_v13, %v9392_v48 }
  0xfd   :  { %v8237_v12 = vpop.eup %8236  ;;  %v1359_v17 = vadd.f32 1.0, %v8235_v32  ;;  %v9418_v23 = vadd.f32 %v9284_v60, %v541_v8  ;;  %v968_v35 = vmul.f32 %v888_v14, %v9395_v50  ;;  %v9432_v36 = vadd.f32 %v7656_v51, %v9284_v60 }
  0xfe   :  { %v1438_v19 = vmul.f32 %v1358_v16, %v798_v57  ;;  %v1360_v20 = vadd.f32 1.0, %v8237_v12  ;;  %v9436_v37 = vadd.f32 %v7657_v1, %v9284_v60  ;;  %v1126_v6 = vadd.f32 %v1046_v28, %v9371_v30 }
  0xff   :  { %2203 = vmatpush1.bf16.msra.mxu0 %v8105_v7  ;;  %v1439_v26 = vmul.f32 %v1359_v17, %v799_v59  ;;  %v889_v42 = vmul.f32 0.044715, %v9415_v21  ;;  %v1205_v40 = vmul.f32 0.7978846, %v1125_v33  ;;  %v1047_v41 = vmul.f32 %v967_v34, %v9392_v48 }
 0x100   :  { %v9424_v25 = vpack.c.bf16 %v1438_v19, %v1437_v18  ;;  %v1440_v27 = vmul.f32 %v1360_v20, %v800_v15  ;;  %2204 = vmatprep.subr.bf16.mxu0 %v8110_v11  ;;  %v1048_v44 = vmul.f32 %v968_v35, %v9395_v50  ;;  %v890_v47 = vmul.f32 0.044715, %v9418_v23 }
 0x101   :  { %v7660_v29 = vpop.f32.mrb[20].mxu0  ;;  %v801_v52 = vmul.f32 0.5, %v9339_v45  ;;  %v1206_v53 = vmul.f32 0.7978846, %v1126_v6  ;;  %v802_v56 = vmul.f32 0.5, %v9347_v54  ;;  %v804_v59 = vmul.f32 0.5, %v9353_v58 }
 0x102   :  { %16449 = vst [vmem:[#allocation5_spill] sm:$0xff] %v9424_v25  ;;  %1810 = vmatmul.mubr.bf16.gmra.mrb[84].mxu0 %v9377_v39  ;;  %v554_v38 = vpop.f32.mrb[21].mxu0  ;;  %v9438_v0 = vpack.c.bf16 %v1440_v27, %v1439_v26  ;;  %v8239_v46 = vpop.eup %8238  ;;  %8246 = vtanh.f32 %v1205_v40  ;;  %v805_v63 = vmul.f32 0.5, %v9364_v62  ;;  %v1127_v1 = vadd.f32 %v1047_v41, %v9392_v48 }
 0x103   :  { %1819 = vmatprep.mubr.bf16.mxu0 %v16053_v49  ;;  %v7661_v22 = vpop.f32.mrb[22].mxu0  ;;  %2205 = vmatpush1.bf16.msra.mxu0 %v8108_v24  ;;  %v1361_v57 = vadd.f32 1.0, %v8239_v46  ;;  %8248 = vtanh.f32 %v1206_v53  ;;  %v891_v2 = vmul.f32 0.044715, %v9432_v36  ;;  %v892_v4 = vmul.f32 0.044715, %v9436_v37 }
 0x104   :  { %16450 = vst [vmem:[#allocation6_spill] sm:$0xff] %v9438_v0  ;;  %v557_v51 = vpop.f32.mrb[23].mxu0  ;;  %v8241_v55 = vpop.eup %8240  ;;  %v1128_v45 = vadd.f32 %v1048_v44, %v9395_v50  ;;  %v969_v5 = vmul.f32 %v889_v42, %v9415_v21  ;;  %v1207_v8 = vmul.f32 0.7978846, %v1127_v1  ;;  %v970_v58 = vmul.f32 %v890_v47, %v9418_v23 }
 0x105   :  { %v1362_v61 = vadd.f32 1.0, %v8241_v55  ;;  %v8243_v7 = vpop.eup %8242  ;;  %v1441_v54 = vmul.f32 %v1361_v57, %v801_v52  ;;  %v9457_v62 = vadd.f32 %v9284_v60, %v554_v38  ;;  %v9462_v13 = vadd.f32 %v9284_v60, %v557_v51 }
 0x106   :  { %v8245_v16 = vpop.eup %8244  ;;  %v1363_v10 = vadd.f32 1.0, %v8243_v7  ;;  %v1208_v11 = vmul.f32 0.7978846, %v1128_v45  ;;  %v1049_v12 = vmul.f32 %v969_v5, %v9415_v21  ;;  %8250 = vtanh.f32 %v1207_v8 }
 0x107   :  { %v1442_v32 = vmul.f32 %v1362_v61, %v802_v56  ;;  %v1364_v17 = vadd.f32 1.0, %v8245_v16  ;;  %v806_v19 = vmul.f32 0.5, %v9371_v30  ;;  %v807_v20 = vmul.f32 0.5, %v9392_v48 }
 0x108   :  { %8252 = vtanh.f32 %v1208_v11  ;;  %v1050_v3 = vmul.f32 %v970_v58, %v9418_v23  ;;  %v9473_v24 = vadd.f32 %v7660_v29, %v9284_v60  ;;  %v1443_v26 = vmul.f32 %v1363_v10, %v803_v31 }
 0x109   :  { %v7664_v9 = vpop.f32.mrb[24].mxu0  ;;  %v9464_v14 = vpack.c.bf16 %v1442_v32, %v1441_v54  ;;  %v1444_v27 = vmul.f32 %v1364_v17, %v804_v59  ;;  %v1129_v33 = vadd.f32 %v1049_v12, %v9415_v21  ;;  %v893_v34 = vmul.f32 0.044715, %v9457_v62 }
 0x10a   :  { %1820 = vmatmul.mubr.bf16.gmra.mrb[88].mxu0 %v9424_v25  ;;  %v570_v15 = vpop.f32.mrb[25].mxu0  ;;  %v9478_v35 = vadd.f32 %v7661_v22, %v9284_v60  ;;  %v1130_v30 = vadd.f32 %v1050_v3, %v9418_v23  ;;  %v971_v48 = vmul.f32 %v891_v2, %v9432_v36  ;;  %v894_v38 = vmul.f32 0.044715, %v9462_v13 }
 0x10b   :  { %16451 = vst [vmem:[#allocation7_spill] sm:$0xff] %v9464_v14  ;;  %1829 = vmatprep.mubr.bf16.mxu0 %v16053_v49  ;;  %v9467_v18 = vpop.f32.mrb[26].mxu0  ;;  %v9483_v6 = vpack.c.bf16 %v1444_v27, %v1443_v26  ;;  %v1209_v29 = vmul.f32 0.7978846, %v1129_v33  ;;  %v972_v31 = vmul.f32 %v892_v4, %v9436_v37  ;;  %v808_v40 = vmul.f32 0.5, %v9395_v50 }
 0x10c   :  { %v573_v28 = vpop.f32.mrb[27].mxu0  ;;  %v8247_v42 = vpop.eup %8246  ;;  %v9488_v41 = vmul.f32 0.5, %v9415_v21  ;;  %v1210_v44 = vmul.f32 0.7978846, %v1130_v30  ;;  %v1051_v22 = vmul.f32 %v971_v48, %v9432_v36  ;;  %v895_v47 = vmul.f32 0.044715, %v9473_v24 }
 0x10d   :  { %16452 = vst [vmem:[#allocation8_spill] sm:$0xff] %v9483_v6  ;;  %v8249_v46 = vpop.eup %8248  ;;  %v1365_v51 = vadd.f32 1.0, %v8247_v42  ;;  %8254 = vtanh.f32 %v1209_v29  ;;  %v1052_v52 = vmul.f32 %v972_v31, %v9436_v37  ;;  %v973_v50 = vmul.f32 %v893_v34, %v9457_v62 }
 0x10e   :  { %v1366_v53 = vadd.f32 1.0, %v8249_v46  ;;  %8256 = vtanh.f32 %v1210_v44  ;;  %v1131_v56 = vadd.f32 %v1051_v22, %v9432_v36  ;;  %v896_v21 = vmul.f32 0.044715, %v9478_v35 }
 0x10f   :  { %v1445_v57 = vmul.f32 %v1365_v51, %v805_v63  ;;  %v1132_v61 = vadd.f32 %v1052_v52, %v9436_v37  ;;  %v974_v1 = vmul.f32 %v894_v38, %v9462_v13  ;;  %v9501_v2 = vadd.f32 %v7664_v9, %v9284_v60  ;;  %v8111_v9 = vld [vmem:[%s16048_s3 + $0x68] ss:$16 sps:$4 sm:$0xff]  }
 0x110   :  { %v1446_v4 = vmul.f32 %v1366_v53, %v806_v19  ;;  %v1211_v5 = vmul.f32 0.7978846, %v1131_v56  ;;  %v1053_v7 = vmul.f32 %v973_v50, %v9457_v62  ;;  %v8251_v54 = vpop.eup %8250  ;;  %v9505_v32 = vadd.f32 %v9284_v60, %v570_v15 }
 0x111   :  { %v7668_v55 = vpop.f32.mrb[28].mxu0  ;;  %v810_v8 = vmul.f32 0.5, %v9418_v23  ;;  %v1212_v58 = vmul.f32 0.7978846, %v1132_v61  ;;  %v1054_v16 = vmul.f32 %v974_v1, %v9462_v13  ;;  %v9513_v11 = vadd.f32 %v9284_v60, %v573_v28  ;;  %v8113_v23 = vld [vmem:[%s16048_s3 + $0x6c] ss:$16 sps:$4 sm:$0xff]  }
 0x112   :  { %1830 = vmatmul.mubr.bf16.gmra.mrb[92].mxu0 %v9438_v0  ;;  %v586_v59 = vpop.f32.mrb[29].mxu0  ;;  %v8253_v10 = vpop.eup %8252  ;;  %v9515_v12 = vpack.c.bf16 %v1446_v4, %v1445_v57  ;;  %v1367_v17 = vadd.f32 1.0, %v8251_v54  ;;  %v9518_v15 = vmul.f32 0.5, %v9432_v36  ;;  %v9524_v3 = vmul.f32 0.5, %v9436_v37  ;;  %2206 = vmatprep.subr.bf16.mxu0 %v8113_v23 }
 0x113   :  { %1839 = vmatprep.mubr.bf16.mxu0 %v16053_v49  ;;  %v7669_v45 = vpop.f32.mrb[30].mxu0  ;;  %v1368_v19 = vadd.f32 1.0, %v8253_v10  ;;  %8258 = vtanh.f32 %v1211_v5  ;;  %v1133_v26 = vadd.f32 %v1053_v7, %v9457_v62  ;;  %v9528_v27 = vmul.f32 0.044715, %v9501_v2  ;;  %2207 = vmatpush1.bf16.msra.mxu0 %v8111_v9 }
 0x114   :  { %v589_v63 = vpop.f32.mrb[31].mxu0  ;;  %16453 = vst [vmem:[#allocation9_spill] sm:$0xff] %v9515_v12  ;;  %v1447_v28 = vmul.f32 %v1367_v17, %v807_v20  ;;  %8260 = vtanh.f32 %v1212_v58  ;;  %v1134_v33 = vadd.f32 %v1054_v16, %v9462_v13  ;;  %v897_v36 = vmul.f32 0.044715, %v9505_v32 }
 0x115   :  { %v9534_v34 = vadd.f32 %v9467_v18, %v9284_v60  ;;  %v1448_v30 = vmul.f32 %v1368_v19, %v808_v40  ;;  %v1213_v37 = vmul.f32 0.7978846, %v1133_v26  ;;  %v898_v48 = vmul.f32 0.044715, %v9513_v11 }
 0x116   :  { %v1214_v29 = vmul.f32 0.7978846, %v1134_v33  ;;  %v975_v31 = vmul.f32 %v895_v47, %v9473_v24  ;;  %v976_v20 = vmul.f32 %v896_v21, %v9478_v35  ;;  %v9541_v44 = vadd.f32 %v7668_v55, %v9284_v60 }
 0x117   :  { %v8255_v42 = vpop.eup %8254  ;;  %v9544_v18 = vadd.f32 %v9284_v60, %v586_v59  ;;  %v9546_v40 = vpack.c.bf16 %v1448_v30, %v1447_v28  ;;  %8262 = vtanh.f32 %v1213_v37  ;;  %v9550_v47 = vadd.f32 %v7669_v45, %v9284_v60 }
 0x118   :  { %v8257_v46 = vpop.eup %8256  ;;  %v1369_v52 = vadd.f32 1.0, %v8255_v42  ;;  %8264 = vtanh.f32 %v1214_v29  ;;  %v1055_v53 = vmul.f32 %v975_v31, %v9473_v24  ;;  %v900_v55 = vmul.f32 0.044715, %v9534_v34 }
 0x119   :  { %v7672_v38 = vpop.f32.mrb[32].mxu0  ;;  %16454 = vst [vmem:[#allocation10_spill] sm:$0xff] %v9546_v40  ;;  %v9555_v56 = vadd.f32 %v9284_v60, %v589_v63  ;;  %v1370_v21 = vadd.f32 1.0, %v8257_v46  ;;  %v1056_v57 = vmul.f32 %v976_v20, %v9478_v35  ;;  %v813_v61 = vmul.f32 0.5, %v9457_v62 }
 0x11a   :  { %1840 = vmatmul.mubr.bf16.gmra.mrb[96].mxu0 %v9464_v14  ;;  %v602_v22 = vpop.f32.mrb[33].mxu0  ;;  %v1449_v59 = vmul.f32 %v1369_v52, %v9488_v41  ;;  %v814_v1 = vmul.f32 0.5, %v9462_v13  ;;  %v1135_v4 = vadd.f32 %v1055_v53, %v9473_v24  ;;  %v9563_v45 = vmul.f32 0.044715, %v9541_v44 }
 0x11b   :  { %1849 = vmatprep.mubr.bf16.mxu0 %v16053_v49  ;;  %v7673_v51 = vpop.f32.mrb[34].mxu0  ;;  %v1450_v5 = vmul.f32 %v1370_v21, %v810_v8  ;;  %v1136_v7 = vadd.f32 %v1056_v57, %v9478_v35  ;;  %v977_v54 = vmul.f32 %v897_v36, %v9505_v32  ;;  %v901_v63 = vmul.f32 0.044715, %v9544_v18 }
 0x11c   :  { %v605_v50 = vpop.f32.mrb[35].mxu0  ;;  %v9569_v58 = vmul.f32 0.044715, %v9550_v47  ;;  %v1215_v41 = vmul.f32 0.7978846, %v1135_v4  ;;  %v978_v62 = vmul.f32 %v898_v48, %v9513_v11  ;;  %v9577_v26 = vmul.f32 0.5, %v9473_v24 }
 0x11d   :  { %v8259_v16 = vpop.eup %8258  ;;  %v902_v13 = vmul.f32 0.044715, %v9555_v56  ;;  %v9573_v9 = vpack.c.bf16 %v1450_v5, %v1449_v59  ;;  %v1216_v10 = vmul.f32 0.7978846, %v1136_v7  ;;  %v1057_v8 = vmul.f32 %v977_v54, %v9505_v32 }
 0x11e   :  { %v8261_v17 = vpop.eup %8260  ;;  %v1371_v19 = vadd.f32 1.0, %v8259_v16  ;;  %8266 = vtanh.f32 %v1215_v41  ;;  %v1058_v28 = vmul.f32 %v978_v62, %v9513_v11  ;;  %v9582_v30 = vmul.f32 0.5, %v9478_v35 }
 0x11f   :  { %16455 = vst [vmem:[#allocation11_spill] sm:$0xff] %v9573_v9  ;;  %v1372_v36 = vadd.f32 1.0, %v8261_v17  ;;  %8268 = vtanh.f32 %v1216_v10  ;;  %v1137_v37 = vadd.f32 %v1057_v8, %v9505_v32  ;;  %v9587_v48 = vadd.f32 %v7672_v38, %v9284_v60 }
 0x120   :  { %v1451_v29 = vmul.f32 %v1371_v19, %v9518_v15  ;;  %v1138_v31 = vadd.f32 %v1058_v28, %v9513_v11  ;;  %v979_v20 = vmul.f32 %v9528_v27, %v9501_v2  ;;  %v9594_v35 = vadd.f32 %v9284_v60, %v602_v22  ;;  %v8116_v28 = vld [vmem:[%s16050_s5 + $0x4] ss:$8 sps:$4 sm:$0xff]  }
 0x121   :  { %v7676_v23 = vpop.f32.mrb[36].mxu0  ;;  %v8263_v42 = vpop.eup %8262  ;;  %v1452_v52 = vmul.f32 %v1372_v36, %v9524_v3  ;;  %v1217_v53 = vmul.f32 0.7978846, %v1137_v37  ;;  %v980_v21 = vmul.f32 %v900_v55, %v9534_v34  ;;  %v9599_v57 = vadd.f32 %v7673_v51, %v9284_v60  ;;  %6069 = vmatprep.subr.bf16.mxu1 %v8116_v28 }
 0x122   :  { %1850 = vmatmul.mubr.bf16.gmra.mrb[100].mxu0 %v9483_v6  ;;  %v618_v33 = vpop.f32.mrb[37].mxu0  ;;  %v8265_v38 = vpop.eup %8264  ;;  %v1373_v15 = vadd.f32 1.0, %v8263_v42  ;;  %v9602_v59 = vmul.f32 0.5, %v9505_v32  ;;  %v1218_v4 = vmul.f32 0.7978846, %v1138_v31  ;;  %v9605_v27 = vadd.f32 %v9284_v60, %v605_v50 }
 0x123   :  { %1859 = vmatprep.mubr.bf16.mxu0 %v16053_v49  ;;  %v7677_v24 = vpop.f32.mrb[38].mxu0  ;;  %v9607_v22 = vpack.c.bf16 %v1452_v52, %v1451_v29  ;;  %v1374_v5 = vadd.f32 1.0, %v8265_v38  ;;  %8270 = vtanh.f32 %v1217_v53  ;;  %v9610_v7 = vmul.f32 0.5, %v9513_v11 }
 0x124   :  { %v621_v46 = vpop.f32.mrb[39].mxu0  ;;  %v1453_v3 = vmul.f32 %v1373_v15, %v813_v61  ;;  %8272 = vtanh.f32 %v1218_v4  ;;  %v1059_v51 = vmul.f32 %v979_v20, %v9501_v2  ;;  %v9614_v55 = vmul.f32 0.044715, %v9587_v48 }
 0x125   :  { %16456 = vst [vmem:[#allocation12_spill] sm:$0xff] %v9607_v22  ;;  %v9617_v32 = vmul.f32 0.044715, %v9594_v35  ;;  %v1454_v54 = vmul.f32 %v1374_v5, %v814_v1  ;;  %v1060_v50 = vmul.f32 %v980_v21, %v9534_v34  ;;  %v9621_v41 = vmul.f32 0.044715, %v9599_v57 }
 0x126   :  { %v1139_v61 = vadd.f32 %v1059_v51, %v9501_v2  ;;  %v981_v11 = vmul.f32 %v901_v63, %v9544_v18  ;;  %v982_v16 = vmul.f32 %v902_v13, %v9555_v56  ;;  %v9628_v10 = vmul.f32 0.044715, %v9605_v27 }
 0x127   :  { %v9631_v8 = vadd.f32 %v7676_v23, %v9284_v60  ;;  %v9633_v17 = vpack.c.bf16 %v1454_v54, %v1453_v3  ;;  %v1140_v19 = vadd.f32 %v1060_v50, %v9534_v34  ;;  %v9641_v13 = vadd.f32 %v9284_v60, %v618_v33 }
 0x128   :  { %v8267_v63 = vpop.eup %8266  ;;  %v1219_v37 = vmul.f32 0.7978846, %v1139_v61  ;;  %v1061_v23 = vmul.f32 %v981_v11, %v9544_v18  ;;  %v1062_v29 = vmul.f32 %v982_v16, %v9555_v56  ;;  %v9646_v20 = vadd.f32 %v7677_v24, %v9284_v60 }
 0x129   :  { %v7680_v62 = vpop.f32.mrb[40].mxu0  ;;  %16457 = vst [vmem:[#allocation13_spill] sm:$0xff] %v9633_v17  ;;  %v8269_v31 = vpop.eup %8268  ;;  %v9649_v42 = vadd.f32 %v9284_v60, %v621_v46  ;;  %v1375_v53 = vadd.f32 1.0, %v8267_v63  ;;  %v1220_v21 = vmul.f32 0.7978846, %v1140_v19  ;;  %v9652_v33 = vmul.f32 0.5, %v9501_v2 }
 0x12a   :  { %1860 = vmatmul.mubr.bf16.gmra.mrb[104].mxu0 %v9515_v12  ;;  %v634_v1 = vpop.f32.mrb[41].mxu0  ;;  %v1376_v38 = vadd.f32 1.0, %v8269_v31  ;;  %v9655_v15 = vmul.f32 0.5, %v9534_v34  ;;  %8274 = vtanh.f32 %v1219_v37  ;;  %v9658_v4 = vmul.f32 0.044715, %v9631_v8 }
 0x12b   :  { %1869 = vmatprep.mubr.bf16.mxu0 %v16053_v49  ;;  %v7681_v36 = vpop.f32.mrb[42].mxu0  ;;  %v1455_v24 = vmul.f32 %v1375_v53, %v9577_v26  ;;  %8276 = vtanh.f32 %v1220_v21  ;;  %v1141_v46 = vadd.f32 %v1061_v23, %v9544_v18  ;;  %v9663_v5 = vmul.f32 0.044715, %v9641_v13 }
 0x12c   :  { %v637_v52 = vpop.f32.mrb[43].mxu0  ;;  %v1456_v3 = vmul.f32 %v1376_v38, %v9582_v30  ;;  %v1142_v2 = vadd.f32 %v1062_v29, %v9555_v56  ;;  %v983_v34 = vmul.f32 %v9563_v45, %v9541_v44  ;;  %v9670_v54 = vmul.f32 0.044715, %v9646_v20 }
 0x12d   :  { %v8271_v51 = vpop.eup %8270  ;;  %v9673_v50 = vmul.f32 0.044715, %v9649_v42  ;;  %v1221_v26 = vmul.f32 0.7978846, %v1141_v46  ;;  %v984_v61 = vmul.f32 %v9569_v58, %v9550_v47  ;;  %v9682_v45 = vadd.f32 %v7680_v62, %v9284_v60 }
 0x12e   :  { %v8273_v11 = vpop.eup %8272  ;;  %v9677_v19 = vpack.c.bf16 %v1456_v3, %v1455_v24  ;;  %v1377_v30 = vadd.f32 1.0, %v8271_v51  ;;  %v1222_v28 = vmul.f32 0.7978846, %v1142_v2  ;;  %v1063_v63 = vmul.f32 %v983_v34, %v9541_v44 }
 0x12f   :  { %v1378_v23 = vadd.f32 1.0, %v8273_v11  ;;  %8278 = vtanh.f32 %v1221_v26  ;;  %v1064_v29 = vmul.f32 %v984_v61, %v9550_v47  ;;  %v9687_v58 = vadd.f32 %v9284_v60, %v634_v1  ;;  %v8123_v1 = vld [vmem:[%s16048_s3 + $0x88] ss:$16 sps:$4 sm:$0xff]  }
 0x130   :  { %16458 = vst [vmem:[#allocation14_spill] sm:$0xff] %v9677_v19  ;;  %v1457_v53 = vmul.f32 %v1377_v30, %v9602_v59  ;;  %8280 = vtanh.f32 %v1222_v28  ;;  %v1143_v21 = vadd.f32 %v1063_v63, %v9541_v44  ;;  %v821_v24 = vmul.f32 0.5, %v9544_v18  ;;  %v8125_v18 = vld [vmem:[%s16048_s3 + $0x8c] ss:$16 sps:$4 sm:$0xff]  }
 0x131   :  { %v7684_v16 = vpop.f32.mrb[44].mxu0  ;;  %v1458_v62 = vmul.f32 %v1378_v23, %v9610_v7  ;;  %v822_v46 = vmul.f32 0.5, %v9555_v56  ;;  %v1144_v3 = vadd.f32 %v1064_v29, %v9550_v47  ;;  %v9699_v2 = vmul.f32 0.5, %v9541_v44  ;;  %2208 = vmatprep.subr.bf16.mxu0 %v8125_v18 }
 0x132   :  { %1870 = vmatmul.mubr.bf16.gmra.mrb[108].mxu0 %v9546_v40  ;;  %v650_v37 = vpop.f32.mrb[45].mxu0  ;;  %v9702_v59 = vmul.f32 0.5, %v9550_v47  ;;  %v1223_v34 = vmul.f32 0.7978846, %v1143_v21  ;;  %v985_v7 = vmul.f32 %v9617_v32, %v9594_v35  ;;  %v9710_v56 = vadd.f32 %v7681_v36, %v9284_v60 }
 0x133   :  { %1879 = vmatprep.mubr.bf16.mxu0 %v16053_v49  ;;  %v7685_v31 = vpop.f32.mrb[46].mxu0  ;;  %v9712_v51 = vpack.c.bf16 %v1458_v62, %v1457_v53  ;;  %v1224_v26 = vmul.f32 0.7978846, %v1144_v3  ;;  %v986_v44 = vmul.f32 %v9628_v10, %v9605_v27  ;;  %v9717_v47 = vmul.f32 0.044715, %v9682_v45  ;;  %2209 = vmatpush1.bf16.msra.mxu0 %v8123_v1 }
 0x134   :  { %v653_v38 = vpop.f32.mrb[47].mxu0  ;;  %v8275_v61 = vpop.eup %8274  ;;  %v9720_v11 = vmul.f32 0.044715, %v9687_v58  ;;  %8282 = vtanh.f32 %v1223_v34  ;;  %v1065_v32 = vmul.f32 %v985_v7, %v9594_v35  ;;  %v9724_v36 = vadd.f32 %v9284_v60, %v637_v52 }
 0x135   :  { %16459 = vst [vmem:[#allocation15_spill] sm:$0xff] %v9712_v51  ;;  %v8277_v30 = vpop.eup %8276  ;;  %v1379_v28 = vadd.f32 1.0, %v8275_v61  ;;  %8284 = vtanh.f32 %v1224_v26  ;;  %v1066_v63 = vmul.f32 %v986_v44, %v9605_v27  ;;  %v987_v53 = vmul.f32 %v9614_v55, %v9587_v48 }
 0x136   :  { %v1380_v23 = vadd.f32 1.0, %v8277_v30  ;;  %v1145_v29 = vadd.f32 %v1065_v32, %v9594_v35  ;;  %v988_v21 = vmul.f32 %v9621_v41, %v9599_v57  ;;  %v9734_v52 = vmul.f32 0.044715, %v9710_v56 }
 0x137   :  { %v9737_v62 = vadd.f32 %v7684_v16, %v9284_v60  ;;  %v1459_v1 = vmul.f32 %v1379_v28, %v9652_v33  ;;  %v1146_v34 = vadd.f32 %v1066_v63, %v9605_v27  ;;  %v9743_v55 = vadd.f32 %v9284_v60, %v650_v37 }
 0x138   :  { %v1460_v41 = vmul.f32 %v1380_v23, %v9655_v15  ;;  %v1225_v18 = vmul.f32 0.7978846, %v1145_v29  ;;  %v1067_v26 = vmul.f32 %v987_v53, %v9587_v48  ;;  %v9748_v16 = vmul.f32 0.044715, %v9724_v36 }
 0x139   :  { %v7688_v10 = vpop.f32.mrb[48].mxu0  ;;  %v8279_v44 = vpop.eup %8278  ;;  %v9751_v61 = vadd.f32 %v7685_v31, %v9284_v60  ;;  %v1226_v32 = vmul.f32 0.7978846, %v1146_v34  ;;  %v1068_v30 = vmul.f32 %v988_v21, %v9599_v57  ;;  %v9755_v37 = vadd.f32 %v9284_v60, %v653_v38 }
 0x13a   :  { %1880 = vmatmul.mubr.bf16.gmra.mrb[112].mxu0 %v9573_v9  ;;  %v666_v3 = vpop.f32.mrb[49].mxu0  ;;  %v8281_v28 = vpop.eup %8280  ;;  %v9757_v63 = vpack.c.bf16 %v1460_v41, %v1459_v1  ;;  %v1381_v15 = vadd.f32 1.0, %v8279_v44  ;;  %v9760_v23 = vmul.f32 0.5, %v9594_v35  ;;  %v9763_v29 = vmul.f32 0.044715, %v9737_v62 }
 0x13b   :  { %1889 = vmatprep.mubr.bf16.mxu0 %v16053_v49  ;;  %v7689_v7 = vpop.f32.mrb[50].mxu0  ;;  %v1382_v53 = vadd.f32 1.0, %v8281_v28  ;;  %8286 = vtanh.f32 %v1225_v18  ;;  %v1147_v31 = vadd.f32 %v1067_v26, %v9587_v48  ;;  %v9767_v34 = vmul.f32 0.044715, %v9743_v55 }
 0x13c   :  { %v669_v33 = vpop.f32.mrb[51].mxu0  ;;  %16460 = vst [vmem:[#allocation16_spill] sm:$0xff] %v9757_v63  ;;  %v1461_v21 = vmul.f32 %v1381_v15, %v821_v24  ;;  %8288 = vtanh.f32 %v1226_v32  ;;  %v1148_v38 = vadd.f32 %v1068_v30, %v9599_v57  ;;  %v9771_v1 = vmul.f32 0.044715, %v9751_v61 }
 0x13d   :  { %v1462_v41 = vmul.f32 %v1382_v53, %v822_v46  ;;  %v1227_v35 = vmul.f32 0.7978846, %v1147_v31  ;;  %v989_v44 = vmul.f32 %v9663_v5, %v9641_v13  ;;  %v9776_v18 = vmul.f32 0.044715, %v9755_v37 }
 0x13e   :  { %v8283_v49 = vpop.eup %8282  ;;  %v826_v28 = vmul.f32 0.5, %v9605_v27  ;;  %v1228_v9 = vmul.f32 0.7978846, %v1148_v38  ;;  %v990_v24 = vmul.f32 %v9673_v50, %v9649_v42  ;;  %v9783_v46 = vadd.f32 %v7688_v10, %v9284_v60  ;;  %v9791_v27 = vld [vmem:[%s16047_s2] ss:$0 sm:$0xff] }
 0x13f   :  { %v8285_v32 = vpop.eup %8284  ;;  %v9785_v15 = vpack.c.bf16 %v1462_v41, %v1461_v21  ;;  %v1383_v5 = vadd.f32 1.0, %v8283_v49  ;;  %8290 = vtanh.f32 %v1227_v35  ;;  %v16462_v53 = vmov 0  }
 0x140   :  { %v9794_v50 = vadd.f32 %v9791_v27, %v666_v3  ;;  %v1384_v38 = vadd.f32 1.0, %v8285_v32  ;;  %8292 = vtanh.f32 %v1228_v9  ;;  %v1069_v60 = vmul.f32 %v989_v44, %v9641_v13 }
 0x141   :  { %v7692_v26 = vpop.f32.mrb[52].mxu0  ;;  %16461 = vst [vmem:[#allocation17_spill] sm:$0xff] %v9785_v15  ;;  %v9798_v10 = vadd.f32 %v9791_v27, %v7689_v7  ;;  %v1463_v21 = vmul.f32 %v1383_v5, %v9699_v2  ;;  %v827_v41 = vmul.f32 0.5, %v9587_v48  ;;  %v1070_v35 = vmul.f32 %v990_v24, %v9649_v42 }
 0x142   :  { %1890 = vmatmul.mubr.bf16.gmra.mrb[116].mxu0 %v9607_v22  ;;  %v682_v30 = vpop.f32.mrb[53].mxu0  ;;  %v9804_v22 = vadd.f32 %v9791_v27, %v669_v33  ;;  %v1464_v3 = vmul.f32 %v1384_v38, %v9702_v59  ;;  %v828_v32 = vmul.f32 0.5, %v9599_v57  ;;  %v1149_v9 = vadd.f32 %v1069_v60, %v9641_v13 }
 0x143   :  { %1899 = vmatprep.mubr.bf16.mxu0 %v16462_v53  ;;  %v7693_v31 = vpop.f32.mrb[54].mxu0  ;;  %v9810_v44 = vmul.f32 0.5, %v9641_v13  ;;  %v1150_v7 = vadd.f32 %v1070_v35, %v9649_v42  ;;  %v991_v2 = vmul.f32 %v9658_v4, %v9631_v8  ;;  %v992_v48 = vmul.f32 %v9670_v54, %v9646_v20 }
 0x144   :  { %v685_v49 = vpop.f32.mrb[55].mxu0  ;;  %v9818_v33 = vmul.f32 0.044715, %v9783_v46  ;;  %v9821_v59 = vmul.f32 0.044715, %v9794_v50  ;;  %v9823_v57 = vpack.c.bf16 %v1464_v3, %v1463_v21  ;;  %v993_v21 = vmul.f32 %v9720_v11, %v9687_v58 }
 0x145   :  { %v1229_v24 = vmul.f32 0.7978846, %v1149_v9  ;;  %v8287_v5 = vpop.eup %8286  ;;  %v9826_v13 = vmul.f32 0.044715, %v9798_v10  ;;  %v1230_v38 = vmul.f32 0.7978846, %v1150_v7  ;;  %v1071_v60 = vmul.f32 %v991_v2, %v9631_v8 }
 0x146   :  { %16463 = vst [vmem:[#allocation18_spill] sm:$0xff] %v9823_v57  ;;  %v1072_v4 = vmul.f32 %v992_v48, %v9646_v20  ;;  %v8289_v35 = vpop.eup %8288  ;;  %v9831_v54 = vmul.f32 0.044715, %v9804_v22  ;;  %v1385_v12 = vadd.f32 1.0, %v8287_v5  ;;  %v9837_v3 = vadd.f32 %v9791_v27, %v7692_v26 }
 0x147   :  { %8294 = vtanh.f32 %v1229_v24  ;;  %v1386_v7 = vadd.f32 1.0, %v8289_v35  ;;  %v1151_v2 = vadd.f32 %v1071_v60, %v9631_v8  ;;  %v830_v24 = vmul.f32 0.5, %v9649_v42 }
 0x148   :  { %8296 = vtanh.f32 %v1230_v38  ;;  %v1465_v6 = vmul.f32 %v1385_v12, %v9760_v23  ;;  %v1152_v5 = vadd.f32 %v1072_v4, %v9646_v20  ;;  %v994_v11 = vmul.f32 %v9748_v16, %v9724_v36 }
 0x149   :  { %v7696_v40 = vpop.f32.mrb[56].mxu0  ;;  %v9847_v26 = vadd.f32 %v9791_v27, %v682_v30  ;;  %v1466_v38 = vmul.f32 %v1386_v7, %v826_v28  ;;  %v1231_v14 = vmul.f32 0.7978846, %v1151_v2  ;;  %v1073_v60 = vmul.f32 %v993_v21, %v9687_v58 }
 0x14a   :  { %1900 = vmatmul.mubr.bf16.gmra.mrb[120].mxu0 %v9633_v17  ;;  %v698_v9 = vpop.f32.mrb[57].mxu0  ;;  %v8291_v17 = vpop.eup %8290  ;;  %v9851_v12 = vmul.f32 0.5, %v9631_v8  ;;  %v9854_v42 = vmul.f32 0.5, %v9646_v20  ;;  %v1232_v23 = vmul.f32 0.7978846, %v1152_v5  ;;  %v9862_v28 = vadd.f32 %v9791_v27, %v7693_v31 }
 0x14b   :  { %1909 = vmatprep.mubr.bf16.mxu0 %v16462_v53  ;;  %v7697_v48 = vpop.f32.mrb[58].mxu0  ;;  %v8293_v0 = vpop.eup %8292  ;;  %v1387_v25 = vadd.f32 1.0, %v8291_v17  ;;  %v9857_v16 = vmul.f32 0.044715, %v9837_v3  ;;  %v9859_v4 = vpack.c.bf16 %v1466_v38, %v1465_v6  ;;  %8298 = vtanh.f32 %v1231_v14 }
 0x14c   :  { %v701_v35 = vpop.f32.mrb[59].mxu0  ;;  %v1388_v30 = vadd.f32 1.0, %v8293_v0  ;;  %16466 = vst [vmem:[#allocation21_spill] sm:$0xff] %v9862_v28  ;;  %8300 = vtanh.f32 %v1232_v23  ;;  %v1074_v17 = vmul.f32 %v994_v11, %v9724_v36  ;;  %v9866_v8 = vmul.f32 0.044715, %v9847_v26 }
 0x14d   :  { %16464 = vst [vmem:[#allocation19_spill] sm:$0xff] %v9857_v16  ;;  %16465 = vst [vmem:[#allocation20_spill] sm:$0xff] %v9859_v4  ;;  %v1467_v21 = vmul.f32 %v1387_v25, %v827_v41  ;;  %v9869_v20 = vadd.f32 %v9791_v27, %v685_v49  ;;  %v1153_v2 = vadd.f32 %v1073_v60, %v9687_v58  ;;  %v9930_v39 = vmul.f32 0.5, %v9710_v56 }
 0x14e   :  { %v1468_v7 = vmul.f32 %v1388_v30, %v828_v32  ;;  %v9873_v6 = vadd.f32 %v9791_v27, %v7696_v40  ;;  %v1154_v14 = vadd.f32 %v1074_v17, %v9724_v36  ;;  %v995_v25 = vmul.f32 %v9717_v47, %v9682_v45 }
 0x14f   :  { %v996_v31 = vmul.f32 %v9734_v52, %v9710_v56  ;;  %v9881_v41 = vadd.f32 %v9791_v27, %v698_v9  ;;  %v9885_v49 = vadd.f32 %v9791_v27, %v7697_v48  ;;  %v1233_v5 = vmul.f32 0.7978846, %v1153_v2 }
 0x150   :  { %16467 = vst [vmem:[#allocation22_spill] sm:$0xff] %v9873_v6  ;;  %v9887_v40 = vpack.c.bf16 %v1468_v7, %v1467_v21  ;;  %v9890_v38 = vadd.f32 %v9791_v27, %v701_v35  ;;  %v1234_v52 = vmul.f32 0.7978846, %v1154_v14  ;;  %v1075_v9 = vmul.f32 %v995_v25, %v9682_v45 }
 0x151   :  { %v7700_v0 = vpop.f32.mrb[60].mxu0  ;;  %16468 = vst [vmem:[#allocation23_spill] sm:$0xff] %v9881_v41  ;;  %16469 = vst [vmem:[#allocation24_spill] sm:$0xff] %v9885_v49  ;;  %v8295_v11 = vpop.eup %8294  ;;  %v1076_v60 = vmul.f32 %v996_v31, %v9710_v56  ;;  %v9898_v48 = vmul.f32 0.044715, %v9862_v28  ;;  %8302 = vtanh.f32 %v1233_v5  ;;  %v9906_v7 = vmul.f32 0.5, %v9687_v58 }
 0x152   :  { %1910 = vmatmul.mubr.bf16.gmra.mrb[124].mxu0 %v9677_v19  ;;  %v714_v32 = vpop.f32.mrb[61].mxu0  ;;  %16470 = vst [vmem:[#allocation25_spill] sm:$0xff] %v9887_v40  ;;  %16471 = vst [vmem:[#allocation26_spill] sm:$0xff] %v9890_v38  ;;  %v8297_v23 = vpop.eup %8296  ;;  %v9901_v30 = vmul.f32 0.044715, %v9869_v20  ;;  %v1389_v35 = vadd.f32 1.0, %v8295_v11  ;;  %8304 = vtanh.f32 %v1234_v52  ;;  %v1155_v19 = vadd.f32 %v1075_v9, %v9682_v45 }
 0x153   :  { %v9892_v47 = vpop.f32.mrb[62].mxu0  ;;  %1919 = vmatprep.mubr.bf16.mxu0 %v16462_v53  ;;  %16472 = vst [vmem:[#allocation27_spill] sm:$0xff] %v9898_v48  ;;  %v1390_v17 = vadd.f32 1.0, %v8297_v23  ;;  %v9909_v2 = vmul.f32 0.5, %v9724_v36  ;;  %v9912_v14 = vmul.f32 0.044715, %v9873_v6  ;;  %v1156_v36 = vadd.f32 %v1076_v60, %v9710_v56 }
 0x154   :  { %v9903_v21 = vpop.f32.mrb[63].mxu0  ;;  %v9915_v25 = vmul.f32 0.044715, %v9881_v41  ;;  %v1469_v31 = vmul.f32 %v1389_v35, %v9810_v44  ;;  %v9920_v5 = vmul.f32 0.044715, %v9885_v49  ;;  %v9927_v23 = vmul.f32 0.5, %v9682_v45 }
 0x155   :  { %16473 = vst [vmem:[#allocation28_spill] sm:$0xff] %v9903_v21  ;;  %16474 = vst [vmem:[#allocation29_spill] sm:$0xff] %v9912_v14  ;;  %v9923_v58 = vmul.f32 0.044715, %v9890_v38  ;;  %v1470_v11 = vmul.f32 %v1390_v17, %v830_v24  ;;  %v8299_v52 = vpop.eup %8298  ;;  %v9933_v44 = vmul.f32 0.5, %v9743_v55  ;;  %v997_v9 = vmul.f32 %v9767_v34, %v9743_v55 }
 0x156   :  { %16475 = vst [vmem:[#allocation30_spill] sm:$0xff] %v9915_v25  ;;  %16476 = vst [vmem:[#allocation31_spill] sm:$0xff] %v9920_v5  ;;  %v8301_v35 = vpop.eup %8300  ;;  %v9938_v43 = vadd.f32 %v9791_v27, %v7700_v0  ;;  %v1391_v60 = vadd.f32 1.0, %v8299_v52  ;;  %v998_v45 = vmul.f32 %v9776_v18, %v9755_v37  ;;  %v1235_v14 = vmul.f32 0.7978846, %v1155_v19 }
 0x157   :  { %16477 = vst [vmem:[#allocation32_spill] sm:$0xff] %v9923_v58  ;;  %v9940_v17 = vpack.c.bf16 %v1470_v11, %v1469_v31  ;;  %v1392_v49 = vadd.f32 1.0, %v8301_v35  ;;  %v9947_v34 = vmul.f32 0.5, %v9755_v37  ;;  %v9950_v0 = vadd.f32 %v9791_v27, %v714_v32 }
 0x158   :  { %v1471_v18 = vmul.f32 %v1391_v60, %v9851_v12  ;;  %v1236_v52 = vmul.f32 0.7978846, %v1156_v36  ;;  %v1077_v35 = vmul.f32 %v997_v9, %v9743_v55  ;;  %v9963_v38 = vmul.f32 0.5, %v9737_v62 }
 0x159   :  { %v7704_v24 = vpop.f32.mrb[64].mxu0  ;;  %16478 = vst [vmem:[#allocation33_spill] sm:$0xff] %v9940_v17  ;;  %16479 = vst [vmem:[#allocation34_spill] sm:$0xff] %v9950_v0  ;;  %v1472_v19 = vmul.f32 %v1392_v49, %v9854_v42  ;;  %8306 = vtanh.f32 %v1235_v14 }
 0x15a   :  { %v739_v56 = vadd.f32 %v9791_v27, %v7704_v24  ;;  %v730_v5 = vpop.f32.mrb[65].mxu0  ;;  %1920 = vmatmul.mubr.bf16.gmra.mrb[128].mxu0 %v9712_v51  ;;  %8308 = vtanh.f32 %v1236_v52  ;;  %v1157_v21 = vadd.f32 %v1077_v35, %v9743_v55 }
 0x15b   :  { %v731_v31 = vadd.f32 %v9791_v27, %v730_v5  ;;  %v7705_v11 = vpop.f32.mrb[66].mxu0  ;;  %1929 = vmatprep.mubr.bf16.mxu0 %v16462_v53  ;;  %v1078_v5 = vmul.f32 %v998_v45, %v9755_v37  ;;  %v8303_v25 = vpop.eup %8302  ;;  %v9965_v60 = vpack.c.bf16 %v1472_v19, %v1471_v18  ;;  %v8150_v18 = vld [vmem:[%s16048_s3 + $0xa8] ss:$16 sps:$4 sm:$0xff]  }
 0x15c   :  { %v939_v24 = vmul.f32 0.044715, %v739_v56  ;;  %v742_v6 = vadd.f32 %v9791_v27, %v7705_v11  ;;  %v733_v51 = vpop.f32.mrb[67].mxu0  ;;  %v8305_v11 = vpop.eup %8304  ;;  %v1393_v9 = vadd.f32 1.0, %v8303_v25 }
 0x15d   :  { %v937_v58 = vmul.f32 0.044715, %v731_v31  ;;  %v9959_v32 = vadd.f32 %v9791_v27, %v733_v51  ;;  %16480 = vst [vmem:[#allocation35_spill] sm:$0xff] %v9965_v60  ;;  %v9970_v51 = vmul.f32 %v9763_v29, %v9737_v62  ;;  %v1394_v0 = vadd.f32 1.0, %v8305_v11  ;;  %v8152_v29 = vld [vmem:[%s16048_s3 + $0xac] ss:$16 sps:$4 sm:$0xff]  }
 0x15e   :  { %v940_v12 = vmul.f32 0.044715, %v742_v6  ;;  %v1019_v36 = vmul.f32 %v939_v24, %v739_v56  ;;  %v1158_v25 = vadd.f32 %v1078_v5, %v9755_v37  ;;  %2210 = vmatprep.subr.bf16.mxu0 %v8152_v29  ;;  %v9999_v28 = vmul.f32 0.5, %v731_v31 }
 0x15f   :  { %v938_v42 = vmul.f32 0.044715, %v9959_v32  ;;  %v1017_v49 = vmul.f32 %v937_v58, %v731_v31  ;;  %2211 = vmatpush1.bf16.msra.mxu0 %v8150_v18 }
 0x160   :  { %v1020_v41 = vmul.f32 %v940_v12, %v742_v6  ;;  %v1099_v45 = vmul.f32 %v1019_v36, %v739_v56  ;;  %v1473_v12 = vmul.f32 %v1393_v9, %v9906_v7 }
 0x161   :  { %v7708_v24 = vpop.f32.mrb[68].mxu0  ;;  %v1018_v14 = vmul.f32 %v938_v42, %v9959_v32  ;;  %v1097_v19 = vmul.f32 %v1017_v49, %v731_v31  ;;  %v9989_v42 = vmul.f32 0.5, %v739_v56 }
 0x162   :  { %1930 = vmatmul.mubr.bf16.gmra.mrb[132].mxu0 %v9757_v63  ;;  %v9983_v58 = vadd.f32 %v9791_v27, %v7708_v24  ;;  %v746_v55 = vpop.f32.mrb[69].mxu0  ;;  %v1100_v52 = vmul.f32 %v1020_v41, %v742_v6  ;;  %v1179_v35 = vadd.f32 %v1099_v45, %v739_v56 }
 0x163   :  { %1939 = vmatprep.mubr.bf16.mxu0 %v16462_v53  ;;  %v747_v36 = vadd.f32 %v9791_v27, %v746_v55  ;;  %v7709_v11 = vpop.f32.mrb[70].mxu0  ;;  %v1098_v37 = vmul.f32 %v1018_v14, %v9959_v32  ;;  %v1177_v5 = vadd.f32 %v1097_v19, %v731_v31  ;;  %v1474_v19 = vmul.f32 %v1394_v0, %v9909_v2 }
 0x164   :  { %v943_v49 = vmul.f32 0.044715, %v9983_v58  ;;  %v9993_v24 = vadd.f32 %v9791_v27, %v7709_v11  ;;  %v749_v41 = vpop.f32.mrb[71].mxu0  ;;  %v1180_v45 = vadd.f32 %v1100_v52, %v742_v6  ;;  %v1259_v63 = vmul.f32 0.7978846, %v1179_v35  ;;  %v8307_v52 = vpop.eup %8306 }
 0x165   :  { %v941_v7 = vmul.f32 0.044715, %v747_v36  ;;  %v750_v9 = vadd.f32 %v9791_v27, %v749_v41  ;;  %v1178_v55 = vadd.f32 %v1098_v37, %v9959_v32  ;;  %v1257_v48 = vmul.f32 0.7978846, %v1177_v5 }
 0x166   :  { %v944_v14 = vmul.f32 0.044715, %v9993_v24  ;;  %v1260_v56 = vmul.f32 0.7978846, %v1180_v45  ;;  %8310 = vtanh.f32 %v1259_v63  ;;  %v10001_v35 = vmul.f32 0.5, %v742_v6  ;;  %v8309_v45 = vpop.eup %8308 }
 0x167   :  { %v942_v29 = vmul.f32 0.044715, %v750_v9  ;;  %v1258_v11 = vmul.f32 0.7978846, %v1178_v55  ;;  %8312 = vtanh.f32 %v1257_v48  ;;  %v1021_v18 = vmul.f32 %v941_v7, %v747_v36 }
 0x168   :  { %8314 = vtanh.f32 %v1260_v56  ;;  %v1237_v41 = vmul.f32 0.7978846, %v1157_v21  ;;  %v1023_v5 = vmul.f32 %v943_v49, %v9983_v58  ;;  %v1024_v63 = vmul.f32 %v944_v14, %v9993_v24 }
 0x169   :  { %v7712_v16 = vpop.f32.mrb[72].mxu0  ;;  %8316 = vtanh.f32 %v1258_v11  ;;  %v1022_v37 = vmul.f32 %v942_v29, %v750_v9  ;;  %v10007_v0 = vmul.f32 0.5, %v9959_v32  ;;  %v1101_v48 = vmul.f32 %v1021_v18, %v747_v36 }
 0x16a   :  { %1940 = vmatmul.mubr.bf16.gmra.mrb[136].mxu0 %v9785_v15  ;;  %v762_v2 = vpop.f32.mrb[73].mxu0  ;;  %v10009_v6 = vpack.c.bf16 %v1474_v19, %v1473_v12  ;;  %v10011_v31 = vmul.f32 0.7978846, %v1158_v25  ;;  %v1103_v55 = vmul.f32 %v1023_v5, %v9983_v58  ;;  %v1104_v14 = vmul.f32 %v1024_v63, %v9993_v24 }
 0x16b   :  { %1949 = vmatprep.mubr.bf16.mxu0 %v16462_v53  ;;  %v10015_v21 = vadd.f32 %v9791_v27, %v762_v2  ;;  %v7713_v49 = vpop.f32.mrb[74].mxu0  ;;  %v1102_v7 = vmul.f32 %v1022_v37, %v750_v9  ;;  %v10019_v29 = vmul.f32 0.5, %v747_v36  ;;  %v1181_v32 = vadd.f32 %v1101_v48, %v747_v36 }
 0x16c   :  { %16481 = vst [vmem:[#allocation36_spill] sm:$0xff] %v10009_v6  ;;  %v765_v56 = vpop.f32.mrb[75].mxu0  ;;  %v1395_v11 = vadd.f32 1.0, %v8307_v52  ;;  %8318 = vtanh.f32 %v1237_v41  ;;  %v1183_v18 = vadd.f32 %v1103_v55, %v9983_v58  ;;  %v10026_v2 = vmul.f32 0.5, %v750_v9 }
 0x16d   :  { %v945_v25 = vmul.f32 0.044715, %v10015_v21  ;;  %v10023_v12 = vadd.f32 %v9791_v27, %v765_v56  ;;  %v1182_v19 = vadd.f32 %v1102_v7, %v750_v9  ;;  %v1261_v37 = vmul.f32 0.7978846, %v1181_v32 }
 0x16e   :  { %v1184_v5 = vadd.f32 %v1104_v14, %v9993_v24  ;;  %v1396_v63 = vadd.f32 1.0, %v8309_v45  ;;  %v1263_v36 = vmul.f32 0.7978846, %v1183_v18  ;;  %v10032_v48 = vadd.f32 %v9791_v27, %v7712_v16 }
 0x16f   :  { %v946_v15 = vmul.f32 0.044715, %v10023_v12  ;;  %v1262_v6 = vmul.f32 0.7978846, %v1182_v19  ;;  %v1025_v52 = vmul.f32 %v945_v25, %v10015_v21  ;;  %v10035_v7 = vadd.f32 %v9791_v27, %v7713_v49 }
 0x170   :  { %v8311_v41 = vpop.eup %8310  ;;  %8320 = vtanh.f32 %v1261_v37  ;;  %v1264_v9 = vmul.f32 0.7978846, %v1184_v5  ;;  %v1475_v14 = vmul.f32 %v1395_v11, %v9927_v23  ;;  %v1476_v49 = vmul.f32 %v1396_v63, %v9930_v39  ;;  %v8171_v11 = vld [vmem:[%s16048_s3 + $0xc8] ss:$16 sps:$4 sm:$0xff]  }
 0x171   :  { %v8313_v55 = vpop.eup %8312  ;;  %v1419_v56 = vadd.f32 1.0, %v8311_v41  ;;  %v7716_v32 = vpop.f32.mrb[76].mxu0  ;;  %8322 = vtanh.f32 %v1262_v6  ;;  %v1026_v45 = vmul.f32 %v946_v15, %v10023_v12  ;;  %v1105_v16 = vmul.f32 %v1025_v52, %v10015_v21 }
 0x172   :  { %v8315_v19 = vpop.eup %8314  ;;  %1950 = vmatmul.mubr.bf16.gmra.mrb[140].mxu0 %v9823_v57  ;;  %v1417_v25 = vadd.f32 1.0, %v8313_v55  ;;  %v778_v18 = vpop.f32.mrb[77].mxu0  ;;  %8324 = vtanh.f32 %v1263_v36  ;;  %v8173_v36 = vld [vmem:[%s16048_s3 + $0xcc] ss:$16 sps:$4 sm:$0xff]   ;;  %v947_v39 = vmul.f32 0.044715, %v10032_v48 }
 0x173   :  { %v8317_v37 = vpop.eup %8316  ;;  %1959 = vmatprep.mubr.bf16.mxu0 %v16462_v53  ;;  %v1420_v5 = vadd.f32 1.0, %v8315_v19  ;;  %v1499_v6 = vmul.f32 %v1419_v56, %v9989_v42  ;;  %v10045_v15 = vadd.f32 %v9791_v27, %v778_v18  ;;  %v7717_v23 = vpop.f32.mrb[78].mxu0  ;;  %8326 = vtanh.f32 %v1264_v9  ;;  %2212 = vmatprep.subr.bf16.mxu0 %v8173_v36 }
 0x174   :  { %v1418_v63 = vadd.f32 1.0, %v8317_v37  ;;  %v1497_v52 = vmul.f32 %v1417_v25, %v9999_v28  ;;  %v948_v42 = vmul.f32 0.044715, %v10035_v7  ;;  %v781_v41 = vpop.f32.mrb[79].mxu0  ;;  %v10058_v9 = vadd.f32 %v9791_v27, %v7716_v32  ;;  %2213 = vmatpush1.bf16.msra.mxu0 %v8171_v11 }
 0x175   :  { %v1500_v55 = vmul.f32 %v1420_v5, %v10001_v35  ;;  %v10061_v56 = vadd.f32 %v9791_v27, %v781_v41  ;;  %v1106_v19 = vmul.f32 %v1026_v45, %v10023_v12  ;;  %v10066_v37 = vadd.f32 %v9791_v27, %v7717_v23 }
 0x176   :  { %v8319_v18 = vpop.eup %8318  ;;  %v1498_v57 = vmul.f32 %v1418_v63, %v10007_v0  ;;  %v1185_v28 = vadd.f32 %v1105_v16, %v10015_v21  ;;  %v10069_v25 = vpack.c.bf16 %v1476_v49, %v1475_v14  ;;  %v949_v32 = vmul.f32 0.044715, %v10045_v15  ;;  %v8114_v0 = vld [vmem:[%s16050_s5] ss:$8 sps:$4 sm:$0xff]   ;;  %v8119_v49 = vld [vmem:[%s16050_s5 + $0x14] ss:$8 sps:$4 sm:$0xff]  }
 0x177   :  { %v10071_v35 = vpack.c.bf16 %v1500_v55, %v1499_v6  ;;  %v863_v5 = vmul.f32 0.5, %v9983_v58  ;;  %v1186_v45 = vadd.f32 %v1106_v19, %v10023_v12  ;;  %v950_v23 = vmul.f32 0.044715, %v10061_v56 }
 0x178   :  { %16482 = vst [vmem:[#allocation37_spill] sm:$0xff] %v10069_v25  ;;  %v10079_v36 = vpack.c.bf16 %v1498_v57, %v1497_v52  ;;  %v1265_v16 = vmul.f32 0.7978846, %v1185_v28  ;;  %v1027_v14 = vmul.f32 %v947_v39, %v10032_v48  ;;  %v864_v6 = vmul.f32 0.5, %v9993_v24  ;;  %v8174_v57 = vld [vmem:[%s16048_s3 + $0xe8] ss:$16 sps:$4 sm:$0xff]  }
 0x179   :  { %16483 = vst [vmem:[#allocation38_spill] sm:$0xff] %v10071_v35  ;;  %v1266_v58 = vmul.f32 0.7978846, %v1186_v45  ;;  %v1028_v11 = vmul.f32 %v948_v42, %v10035_v7  ;;  %8328 = vtanh.f32 %v10011_v31  ;;  %v951_v39 = vmul.f32 0.044715, %v10058_v9 }
 0x17a   :  { %16484 = vst [vmem:[#allocation39_spill] sm:$0xff] %v10079_v36  ;;  %v8321_v63 = vpop.eup %8320  ;;  %1960 = vmatmul.mubr.bf16.gmra.mrb[144].mxu0 %v9859_v4  ;;  %2120 = vmatmul.mubr.bf16.vlgmr.msra.gmra.mrb[0].mxu1 %v10079_v36  ;;  %v10096_v52 = vmul.f32 0.044715, %v10066_v37  ;;  %8330 = vtanh.f32 %v1265_v16  ;;  %v1107_v24 = vmul.f32 %v1027_v14, %v10032_v48  ;;  %v8176_v31 = vld [vmem:[%s16048_s3 + $0xec] ss:$16 sps:$4 sm:$0xff]   ;;  %v1397_v19 = vadd.f32 1.0, %v8319_v18 }
 0x17b   :  { %v8323_v42 = vpop.eup %8322  ;;  %1969 = vmatprep.mubr.bf16.mxu0 %v16462_v53  ;;  %2129 = vmatprep.mubr.bf16.mxu1 %v16462_v53  ;;  %v1421_v41 = vadd.f32 1.0, %v8321_v63  ;;  %8332 = vtanh.f32 %v1266_v58  ;;  %v1108_v55 = vmul.f32 %v1028_v11, %v10035_v7  ;;  %v1029_v14 = vmul.f32 %v949_v32, %v10045_v15  ;;  %v8117_v4 = vld [vmem:[%s16050_s5 + $0x10] ss:$8 sps:$4 sm:$0xff]   ;;  %v8122_v32 = vld [vmem:[%s16050_s5 + $0x24] ss:$8 sps:$4 sm:$0xff]  }
 0x17c   :  { %v8325_v28 = vpop.eup %8324  ;;  %v1422_v45 = vadd.f32 1.0, %v8323_v42  ;;  %v1187_v16 = vadd.f32 %v1107_v24, %v10032_v48  ;;  %v1030_v36 = vmul.f32 %v950_v23, %v10061_v56  ;;  %6070 = vmatpush1.bf16.msra.mxu1 %v8114_v0  ;;  %2214 = vmatprep.subr.bf16.mxu0 %v8176_v31  ;;  %v1000_v11 = vmul.f32 %v9771_v1, %v9751_v61 }
 0x17d   :  { %v8327_v25 = vpop.eup %8326  ;;  %v1501_v58 = vmul.f32 %v1421_v41, %v10019_v29  ;;  %v1423_v63 = vadd.f32 1.0, %v8325_v28  ;;  %v1188_v18 = vadd.f32 %v1108_v55, %v10035_v7  ;;  %6071 = vmatprep.subr.bf16.mxu1 %v8119_v49  ;;  %2215 = vmatpush1.bf16.msra.mxu0 %v8174_v57  ;;  %v1109_v31 = vmul.f32 %v1029_v14, %v10045_v15 }
 0x17e   :  { %v1502_v0 = vmul.f32 %v1422_v45, %v10026_v2  ;;  %v1424_v23 = vadd.f32 1.0, %v8327_v25  ;;  %v1267_v24 = vmul.f32 0.7978846, %v1187_v16  ;;  %v1110_v41 = vmul.f32 %v1030_v36, %v10061_v56  ;;  %v8120_v2 = vld [vmem:[%s16050_s5 + $0x20] ss:$8 sps:$4 sm:$0xff]  }
 0x17f   :  { %v1503_v42 = vmul.f32 %v1423_v63, %v863_v5  ;;  %v1268_v29 = vmul.f32 0.7978846, %v1188_v18  ;;  %v1079_v55 = vmul.f32 %v9970_v51, %v9737_v62  ;;  %v1189_v28 = vadd.f32 %v1109_v31, %v10045_v15  ;;  %v8128_v51 = vld [vmem:[%s16050_s5 + $0x34] ss:$8 sps:$4 sm:$0xff]  }
 0x180   :  { %v10123_v1 = vpack.c.bf16 %v1502_v0, %v1501_v58  ;;  %v1504_v49 = vmul.f32 %v1424_v23, %v864_v6  ;;  %8334 = vtanh.f32 %v1267_v24  ;;  %6072 = vmatpush1.bf16.msra.mxu1 %v8117_v4  ;;  %v1190_v25 = vadd.f32 %v1110_v41, %v10061_v56 }
 0x181   :  { %8336 = vtanh.f32 %v1268_v29  ;;  %v1080_v5 = vmul.f32 %v1000_v11, %v9751_v61  ;;  %v1159_v36 = vadd.f32 %v1079_v55, %v9737_v62  ;;  %6073 = vmatprep.subr.bf16.mxu1 %v8122_v32  ;;  %v865_v6 = vmul.f32 0.5, %v10015_v21 }
 0x182   :  { %16485 = vst [vmem:[#allocation40_spill] sm:$0xff] %v10123_v1  ;;  %1970 = vmatmul.mubr.bf16.gmra.mrb[148].mxu0 %v9887_v40  ;;  %2130 = vmatmul.mubr.bf16.gmra.mrb[4].mxu1 %v10071_v35  ;;  %v10137_v4 = vpack.c.bf16 %v1504_v49, %v1503_v42  ;;  %v866_v57 = vmul.f32 0.5, %v10023_v12  ;;  %v1269_v45 = vmul.f32 0.7978846, %v1189_v28  ;;  %v1270_v62 = vmul.f32 0.7978846, %v1190_v25 }
 0x183   :  { %v8329_v16 = vpop.eup %8328  ;;  %1979 = vmatprep.mubr.bf16.mxu0 %v16462_v53  ;;  %2139 = vmatprep.mubr.bf16.mxu1 %v16462_v53  ;;  %v1160_v14 = vadd.f32 %v1080_v5, %v9751_v61  ;;  %v1239_v58 = vmul.f32 0.7978846, %v1159_v36  ;;  %v1031_v63 = vmul.f32 %v951_v39, %v10058_v9  ;;  %v1477_v32 = vmul.f32 %v1397_v19, %v9933_v44  ;;  %v8126_v12 = vld [vmem:[%s16050_s5 + $0x30] ss:$8 sps:$4 sm:$0xff]   ;;  %v8131_v44 = vld [vmem:[%s16050_s5 + $0x44] ss:$8 sps:$4 sm:$0xff]  }
 0x184   :  { %16486 = vst [vmem:[#allocation41_spill] sm:$0xff] %v10137_v4  ;;  %v8331_v18 = vpop.eup %8330  ;;  %v1398_v11 = vadd.f32 1.0, %v8329_v16  ;;  %8338 = vtanh.f32 %v1269_v45  ;;  %v1032_v21 = vmul.f32 %v10096_v52, %v10066_v37  ;;  %6074 = vmatpush1.bf16.msra.mxu1 %v8120_v2  ;;  %v10158_v29 = vmul.f32 0.5, %v9751_v61 }
 0x185   :  { %v8333_v0 = vpop.eup %8332  ;;  %v1425_v23 = vadd.f32 1.0, %v8331_v18  ;;  %8340 = vtanh.f32 %v1270_v62  ;;  %v1240_v24 = vmul.f32 0.7978846, %v1160_v14  ;;  %v1111_v31 = vmul.f32 %v1031_v63, %v10058_v9  ;;  %6075 = vmatprep.subr.bf16.mxu1 %v8128_v51  ;;  %v8134_v51 = vld [vmem:[%s16050_s5 + $0x54] ss:$8 sps:$4 sm:$0xff]  }
 0x186   :  { %v1426_v39 = vadd.f32 1.0, %v8333_v0  ;;  %v1478_v19 = vmul.f32 %v1398_v11, %v9947_v34  ;;  %8342 = vtanh.f32 %v1239_v58  ;;  %v1112_v52 = vmul.f32 %v1032_v21, %v10066_v37  ;;  %v8129_v34 = vld [vmem:[%s16050_s5 + $0x40] ss:$8 sps:$4 sm:$0xff]  }
 0x187   :  { %v1505_v42 = vmul.f32 %v1425_v23, %v865_v6  ;;  %8344 = vtanh.f32 %v1240_v24  ;;  %v1191_v41 = vadd.f32 %v1111_v31, %v10058_v9  ;;  %v1001_v2 = vmul.f32 %v9821_v59, %v9794_v50 }
 0x188   :  { %v1506_v55 = vmul.f32 %v1426_v39, %v866_v57  ;;  %v10161_v49 = vpack.c.bf16 %v1478_v19, %v1477_v32  ;;  %v1192_v28 = vadd.f32 %v1112_v52, %v10066_v37  ;;  %6076 = vmatpush1.bf16.msra.mxu1 %v8126_v12  ;;  %v867_v25 = vmul.f32 0.5, %v10032_v48 }
 0x189   :  { %v868_v61 = vmul.f32 0.5, %v10035_v7  ;;  %v1271_v5 = vmul.f32 0.7978846, %v1191_v41  ;;  %v1002_v36 = vmul.f32 %v9831_v54, %v9804_v22  ;;  %6077 = vmatprep.subr.bf16.mxu1 %v8131_v44  ;;  %v1081_v48 = vmul.f32 %v1001_v2, %v9794_v50 }
 0x18a   :  { %16487 = vst [vmem:[#allocation42_spill] sm:$0xff] %v10161_v49  ;;  %v8335_v6 = vpop.eup %8334  ;;  %1980 = vmatmul.mubr.bf16.gmra.mrb[152].mxu0 %v9940_v17  ;;  %2140 = vmatmul.mubr.bf16.gmra.mrb[8].mxu1 %v10123_v1  ;;  %v10178_v59 = vpack.c.bf16 %v1506_v55, %v1505_v42  ;;  %v1272_v57 = vmul.f32 0.7978846, %v1192_v28  ;;  %v1003_v7 = vmul.f32 %v9818_v33, %v9783_v46  ;;  %v8132_v33 = vld [vmem:[%s16050_s5 + $0x50] ss:$8 sps:$4 sm:$0xff]   ;;  %v869_v11 = vmul.f32 0.5, %v10045_v15 }
 0x18b   :  { %v8337_v45 = vpop.eup %8336  ;;  %1989 = vmatprep.mubr.bf16.mxu0 %v16462_v53  ;;  %2149 = vmatprep.mubr.bf16.mxu1 %v16462_v53  ;;  %v1427_v54 = vadd.f32 1.0, %v8335_v6  ;;  %8346 = vtanh.f32 %v1271_v5  ;;  %v1082_v16 = vmul.f32 %v1002_v36, %v9804_v22  ;;  %v1004_v62 = vmul.f32 %v9826_v13, %v9798_v10  ;;  %v8137_v13 = vld [vmem:[%s16050_s5 + $0x64] ss:$8 sps:$4 sm:$0xff]  }
 0x18c   :  { %16488 = vst [vmem:[#allocation43_spill] sm:$0xff] %v10178_v59  ;;  %v1428_v14 = vadd.f32 1.0, %v8337_v45  ;;  %8348 = vtanh.f32 %v1272_v57  ;;  %v1161_v58 = vadd.f32 %v1081_v48, %v9794_v50  ;;  %6078 = vmatpush1.bf16.msra.mxu1 %v8129_v34  ;;  %v1083_v63 = vmul.f32 %v1003_v7, %v9783_v46 }
 0x18d   :  { %v1507_v18 = vmul.f32 %v1427_v54, %v867_v25  ;;  %v1162_v32 = vadd.f32 %v1082_v16, %v9804_v22  ;;  %v1084_v21 = vmul.f32 %v1004_v62, %v9798_v10  ;;  %6079 = vmatprep.subr.bf16.mxu1 %v8134_v51  ;;  %v870_v23 = vmul.f32 0.5, %v10061_v56  ;;  %v8135_v56 = vld [vmem:[%s16050_s5 + $0x60] ss:$8 sps:$4 sm:$0xff]   ;;  %v8138_v16 = vld [vmem:[%s16050_s5 + $0x70] ss:$8 sps:$4 sm:$0xff]  }
 0x18e   :  { %v8339_v12 = vpop.eup %8338  ;;  %v1508_v0 = vmul.f32 %v1428_v14, %v868_v61  ;;  %v1241_v24 = vmul.f32 0.7978846, %v1161_v58  ;;  %v1163_v31 = vadd.f32 %v1083_v63, %v9783_v46  ;;  %v1005_v52 = vmul.f32 %v9866_v8, %v9847_v26  ;;  %v8140_v8 = vld [vmem:[%s16050_s5 + $0x74] ss:$8 sps:$4 sm:$0xff]  }
 0x18f   :  { %v8341_v44 = vpop.eup %8340  ;;  %v1429_v39 = vadd.f32 1.0, %v8339_v12  ;;  %v1242_v19 = vmul.f32 0.7978846, %v1162_v32  ;;  %v1164_v15 = vadd.f32 %v1084_v21, %v9798_v10  ;;  %v1006_v51 = vmul.f32 %v9901_v30, %v9869_v20  ;;  %v16494_v21 = vld [vmem:[#allocation27_spill] sm:$0xff] }
 0x190   :  { %v8343_v42 = vpop.eup %8342  ;;  %v10204_v41 = vpack.c.bf16 %v1508_v0, %v1507_v18  ;;  %v1430_v55 = vadd.f32 1.0, %v8341_v44  ;;  %8350 = vtanh.f32 %v1241_v24  ;;  %v1243_v28 = vmul.f32 0.7978846, %v1163_v31  ;;  %6080 = vmatpush1.bf16.msra.mxu1 %v8132_v33  ;;  %v16496_v0 = vld [vmem:[#allocation28_spill] sm:$0xff] }
 0x191   :  { %v8345_v2 = vpop.eup %8344  ;;  %v1509_v34 = vmul.f32 %v1429_v39, %v869_v11  ;;  %v1399_v25 = vadd.f32 1.0, %v8343_v42  ;;  %8352 = vtanh.f32 %v1242_v19  ;;  %v1244_v61 = vmul.f32 0.7978846, %v1164_v15  ;;  %6081 = vmatprep.subr.bf16.mxu1 %v8137_v13  ;;  %v8141_v19 = vld [vmem:[%s16050_s5 + $0x80] ss:$8 sps:$4 sm:$0xff]  }
 0x192   :  { %16489 = vst [vmem:[#allocation44_spill] sm:$0xff] %v10204_v41  ;;  %1990 = vmatmul.mubr.bf16.gmra.mrb[156].mxu0 %v9965_v60  ;;  %2150 = vmatmul.mubr.bf16.gmra.mrb[12].mxu1 %v10137_v4  ;;  %v1510_v5 = vmul.f32 %v1430_v55, %v870_v23  ;;  %v1400_v36 = vadd.f32 1.0, %v8345_v2  ;;  %8354 = vtanh.f32 %v1243_v28  ;;  %v10217_v6 = vmul.f32 0.044715, %v9938_v43  ;;  %v16497_v2 = vld [vmem:[#allocation36_spill] sm:$0xff] }
 0x193   :  { %1999 = vmatprep.mubr.bf16.mxu0 %v16462_v53  ;;  %2159 = vmatprep.mubr.bf16.mxu1 %v16462_v53  ;;  %v1479_v57 = vmul.f32 %v1399_v25, %v9963_v38  ;;  %8356 = vtanh.f32 %v1244_v61  ;;  %v1085_v48 = vmul.f32 %v1005_v52, %v9847_v26  ;;  %v871_v54 = vmul.f32 0.5, %v10058_v9  ;;  %v8143_v9 = vld [vmem:[%s16050_s5 + $0x84] ss:$8 sps:$4 sm:$0xff]  }
 0x194   :  { %v10223_v7 = vpack.c.bf16 %v1510_v5, %v1509_v34  ;;  %v1480_v45 = vmul.f32 %v1400_v36, %v10158_v29  ;;  %6082 = vmatpush1.bf16.msra.mxu1 %v8135_v56  ;;  %v1086_v30 = vmul.f32 %v1006_v51, %v9869_v20  ;;  %v10233_v38 = vadd.f32 %v9791_v27, %v9892_v47  ;;  %v16491_v29 = vld [vmem:[#allocation19_spill] sm:$0xff]  ;;  %v16493_v47 = vld [vmem:[#allocation21_spill] sm:$0xff]  ;;  %v16500_v51 = vld [vmem:[#allocation30_spill] sm:$0xff] }
 0x195   :  { %v8347_v62 = vpop.eup %8346  ;;  %v872_v14 = vmul.f32 0.5, %v10066_v37  ;;  %v1165_v58 = vadd.f32 %v1085_v48, %v9847_v26  ;;  %6083 = vmatprep.subr.bf16.mxu1 %v8140_v8  ;;  %v1007_v63 = vmul.f32 %v16491_v29, %v9837_v3  ;;  %v1008_v13 = vmul.f32 %v16494_v21, %v16493_v47  ;;  %v16495_v37 = vld [vmem:[#allocation34_spill] sm:$0xff] }
 0x196   :  { %16490 = vst [vmem:[#allocation45_spill] sm:$0xff] %v10223_v7  ;;  %v8349_v33 = vpop.eup %8348  ;;  %v10242_v18 = vpack.c.bf16 %v1480_v45, %v1479_v57  ;;  %v1431_v11 = vadd.f32 1.0, %v8347_v62  ;;  %v1166_v32 = vadd.f32 %v1086_v30, %v9869_v20  ;;  %v10248_v12 = vmul.f32 0.044715, %v16495_v37  ;;  %v8144_v36 = vld [vmem:[%s16050_s5 + $0x90] ss:$8 sps:$4 sm:$0xff]  }
 0x197   :  { %v10252_v23 = vadd.f32 %v9791_v27, %v16496_v0  ;;  %v1432_v24 = vadd.f32 1.0, %v8349_v33  ;;  %v1245_v31 = vmul.f32 0.7978846, %v1165_v58  ;;  %v1087_v15 = vmul.f32 %v1007_v63, %v9837_v3  ;;  %v8146_v27 = vld [vmem:[%s16050_s5 + $0x94] ss:$8 sps:$4 sm:$0xff]   ;;  %v16502_v62 = vld [vmem:[#allocation32_spill] sm:$0xff] }
 0x198   :  { %16492 = vst [vmem:[#allocation19_spill] sm:$0xff] %v10242_v18  ;;  %v1511_v44 = vmul.f32 %v1431_v11, %v871_v54  ;;  %v1246_v39 = vmul.f32 0.7978846, %v1166_v32  ;;  %6084 = vmatpush1.bf16.msra.mxu1 %v8138_v16  ;;  %v1088_v52 = vmul.f32 %v1008_v13, %v16493_v47  ;;  %v841_v55 = vmul.f32 0.5, %v9794_v50  ;;  %v16501_v16 = vld [vmem:[#allocation26_spill] sm:$0xff] }
 0x199   :  { %v1512_v42 = vmul.f32 %v1432_v24, %v872_v14  ;;  %v842_v28 = vmul.f32 0.5, %v9804_v22  ;;  %8358 = vtanh.f32 %v1245_v31  ;;  %6085 = vmatprep.subr.bf16.mxu1 %v8143_v9  ;;  %v843_v34 = vmul.f32 0.5, %v9783_v46  ;;  %v16499_v46 = vld [vmem:[#allocation23_spill] sm:$0xff] }
 0x19a   :  { %v8351_v56 = vpop.eup %8350  ;;  %2000 = vmatmul.mubr.bf16.gmra.mrb[160].mxu0 %v16497_v2  ;;  %2160 = vmatmul.mubr.bf16.gmra.mrb[16].mxu1 %v10178_v59  ;;  %8360 = vtanh.f32 %v1246_v39  ;;  %v1167_v25 = vadd.f32 %v1087_v15, %v9837_v3  ;;  %v1168_v50 = vadd.f32 %v1088_v52, %v16493_v47  ;;  %v844_v5 = vmul.f32 0.5, %v9798_v10  ;;  %v8149_v63 = vld [vmem:[%s16050_s5 + $0xa4] ss:$8 sps:$4 sm:$0xff]   ;;  %v8147_v39 = vld [vmem:[%s16050_s5 + $0xa0] ss:$8 sps:$4 sm:$0xff]   ;;  %v16504_v15 = vld [vmem:[#allocation22_spill] sm:$0xff] }
 0x19b   :  { %v8353_v61 = vpop.eup %8352  ;;  %2009 = vmatprep.mubr.bf16.mxu0 %v16462_v53  ;;  %2169 = vmatprep.mubr.bf16.mxu1 %v16462_v53  ;;  %v10271_v22 = vpack.c.bf16 %v1512_v42, %v1511_v44  ;;  %v1401_v8 = vadd.f32 1.0, %v8351_v56  ;;  %v1009_v57 = vmul.f32 %v16500_v51, %v16499_v46  ;;  %v1010_v14 = vmul.f32 %v16502_v62, %v16501_v16  ;;  %v16505_v52 = vld [vmem:[#allocation29_spill] sm:$0xff]  ;;  %v16506_v56 = vld [vmem:[#allocation24_spill] sm:$0xff] }
 0x19c   :  { %v8355_v48 = vpop.eup %8354  ;;  %v1402_v45 = vadd.f32 1.0, %v8353_v61  ;;  %6086 = vmatpush1.bf16.msra.mxu1 %v8141_v19  ;;  %v1247_v54 = vmul.f32 0.7978846, %v1167_v25  ;;  %v1248_v30 = vmul.f32 0.7978846, %v1168_v50  ;;  %v1011_v42 = vmul.f32 %v16505_v52, %v16504_v15  ;;  %v16508_v50 = vld [vmem:[#allocation37_spill] sm:$0xff] }
 0x19d   :  { %16498 = vst [vmem:[#allocation21_spill] sm:$0xff] %v10271_v22  ;;  %v8357_v58 = vpop.eup %8356  ;;  %v936_v9 = vmul.f32 0.044715, %v10233_v38  ;;  %v1481_v29 = vmul.f32 %v1401_v8, %v841_v55  ;;  %v1403_v10 = vadd.f32 1.0, %v8355_v48  ;;  %6087 = vmatprep.subr.bf16.mxu1 %v8146_v27  ;;  %v1089_v33 = vmul.f32 %v1009_v57, %v16499_v46  ;;  %v8155_v27 = vld [vmem:[%s16050_s5 + $0xb4] ss:$8 sps:$4 sm:$0xff]  }
 0x19e   :  { %v1482_v11 = vmul.f32 %v1402_v45, %v842_v28  ;;  %v1404_v32 = vadd.f32 1.0, %v8357_v58  ;;  %8362 = vtanh.f32 %v1247_v54  ;;  %v1090_v21 = vmul.f32 %v1010_v14, %v16501_v16  ;;  %v8158_v58 = vld [vmem:[%s16050_s5 + $0xc4] ss:$8 sps:$4 sm:$0xff]  }
 0x19f   :  { %v934_v13 = vmul.f32 0.044715, %v10252_v23  ;;  %v1483_v0 = vmul.f32 %v1403_v10, %v843_v34  ;;  %8364 = vtanh.f32 %v1248_v30  ;;  %v1169_v24 = vadd.f32 %v1089_v33, %v16499_v46  ;;  %v16507_v34 = vld [vmem:[#allocation31_spill] sm:$0xff] }
 0x1a0   :  { %v10289_v31 = vpack.c.bf16 %v1482_v11, %v1481_v29  ;;  %v1484_v44 = vmul.f32 %v1404_v32, %v844_v5  ;;  %6088 = vmatpush1.bf16.msra.mxu1 %v8144_v36  ;;  %v1170_v19 = vadd.f32 %v1090_v21, %v16501_v16  ;;  %v845_v55 = vmul.f32 0.5, %v9847_v26 }
 0x1a1   :  { %6089 = vmatprep.subr.bf16.mxu1 %v8149_v63  ;;  %v1249_v28 = vmul.f32 0.7978846, %v1169_v24  ;;  %v1012_v25 = vmul.f32 %v16507_v34, %v16506_v56  ;;  %v1091_v5 = vmul.f32 %v1011_v42, %v16504_v15  ;;  %v1013_v26 = vmul.f32 %v10248_v12, %v16495_v37  ;;  %v8153_v12 = vld [vmem:[%s16050_s5 + $0xb0] ss:$8 sps:$4 sm:$0xff]  }
 0x1a2   :  { %16503 = vst [vmem:[#allocation27_spill] sm:$0xff] %v10289_v31  ;;  %2010 = vmatmul.mubr.bf16.gmra.mrb[164].mxu0 %v16508_v50  ;;  %2170 = vmatmul.mubr.bf16.gmra.mrb[20].mxu1 %v10204_v41  ;;  %v10305_v61 = vpack.c.bf16 %v1484_v44, %v1483_v0  ;;  %v1250_v8 = vmul.f32 0.7978846, %v1170_v19  ;;  %v846_v51 = vmul.f32 0.5, %v9869_v20  ;;  %v1014_v48 = vmul.f32 %v934_v13, %v10252_v23 }
 0x1a3   :  { %v8359_v36 = vpop.eup %8358  ;;  %2019 = vmatprep.mubr.bf16.mxu0 %v16462_v53  ;;  %2179 = vmatprep.mubr.bf16.mxu1 %v16462_v53  ;;  %8366 = vtanh.f32 %v1249_v28  ;;  %v1092_v57 = vmul.f32 %v1012_v25, %v16506_v56  ;;  %v1171_v30 = vadd.f32 %v1091_v5, %v16504_v15  ;;  %v1093_v62 = vmul.f32 %v1013_v26, %v16495_v37  ;;  %v8159_v26 = vld [vmem:[%s16050_s5 + $0xd0] ss:$8 sps:$4 sm:$0xff]  }
 0x1a4   :  { %16509 = vst [vmem:[#allocation34_spill] sm:$0xff] %v10305_v61  ;;  %v8361_v45 = vpop.eup %8360  ;;  %v1405_v54 = vadd.f32 1.0, %v8359_v36  ;;  %6090 = vmatpush1.bf16.msra.mxu1 %v8147_v39  ;;  %8368 = vtanh.f32 %v1250_v8  ;;  %v847_v20 = vmul.f32 0.5, %v9837_v3  ;;  %v1094_v10 = vmul.f32 %v1014_v48, %v10252_v23  ;;  %v8156_v39 = vld [vmem:[%s16050_s5 + $0xc0] ss:$8 sps:$4 sm:$0xff]  }
 0x1a5   :  { %v1406_v14 = vadd.f32 1.0, %v8361_v45  ;;  %6091 = vmatprep.subr.bf16.mxu1 %v8155_v27  ;;  %v1172_v29 = vadd.f32 %v1092_v57, %v16506_v56  ;;  %v1251_v33 = vmul.f32 0.7978846, %v1171_v30  ;;  %v1173_v11 = vadd.f32 %v1093_v62, %v16495_v37  ;;  %v8164_v45 = vld [vmem:[%s16050_s5 + $0xe4] ss:$8 sps:$4 sm:$0xff]  }
 0x1a6   :  { %v1485_v63 = vmul.f32 %v1405_v54, %v845_v55  ;;  %v1015_v32 = vmul.f32 %v10217_v6, %v9938_v43  ;;  %v1174_v3 = vadd.f32 %v1094_v10, %v10252_v23  ;;  %v1016_v0 = vmul.f32 %v936_v9, %v10233_v38  ;;  %v8161_v9 = vld [vmem:[%s16050_s5 + $0xd4] ss:$8 sps:$4 sm:$0xff]  }
 0x1a7   :  { %v1486_v21 = vmul.f32 %v1406_v14, %v846_v51  ;;  %v1252_v13 = vmul.f32 0.7978846, %v1172_v29  ;;  %v848_v44 = vmul.f32 0.5, %v16493_v47  ;;  %8370 = vtanh.f32 %v1251_v33  ;;  %v8167_v29 = vld [vmem:[%s16050_s5 + $0xf4] ss:$8 sps:$4 sm:$0xff]  }
 0x1a8   :  { %v8363_v24 = vpop.eup %8362  ;;  %6092 = vmatpush1.bf16.msra.mxu1 %v8153_v12  ;;  %v1253_v19 = vmul.f32 0.7978846, %v1173_v11  ;;  %v1095_v52 = vmul.f32 %v1015_v32, %v9938_v43  ;;  %v1254_v47 = vmul.f32 0.7978846, %v1174_v3  ;;  %v1096_v27 = vmul.f32 %v1016_v0, %v10233_v38  ;;  %v8165_v0 = vld [vmem:[%s16050_s5 + $0xf0] ss:$8 sps:$4 sm:$0xff]  }
 0x1a9   :  { %v8365_v42 = vpop.eup %8364  ;;  %v10336_v6 = vpack.c.bf16 %v1486_v21, %v1485_v63  ;;  %v1407_v55 = vadd.f32 1.0, %v8363_v24  ;;  %6093 = vmatprep.subr.bf16.mxu1 %v8158_v58  ;;  %8372 = vtanh.f32 %v1252_v13  ;;  %v849_v5 = vmul.f32 0.5, %v16499_v46 }
 0x1aa   :  { %2020 = vmatmul.mubr.bf16.gmra.mrb[168].mxu0 %v10161_v49  ;;  %2180 = vmatmul.mubr.bf16.gmra.mrb[24].mxu1 %v10223_v7  ;;  %v1408_v28 = vadd.f32 1.0, %v8365_v42  ;;  %8374 = vtanh.f32 %v1253_v19  ;;  %v1175_v34 = vadd.f32 %v1095_v52, %v9938_v43  ;;  %v1176_v36 = vadd.f32 %v1096_v27, %v10233_v38 }
 0x1ab   :  { %16510 = vst [vmem:[#allocation28_spill] sm:$0xff] %v10336_v6  ;;  %2029 = vmatprep.mubr.bf16.mxu0 %v16462_v53  ;;  %2189 = vmatprep.mubr.bf16.mxu1 %v16462_v53  ;;  %v1487_v25 = vmul.f32 %v1407_v55, %v847_v20  ;;  %8376 = vtanh.f32 %v1254_v47  ;;  %v850_v48 = vmul.f32 0.5, %v16501_v16  ;;  %v8162_v20 = vld [vmem:[%s16050_s5 + $0xe0] ss:$8 sps:$4 sm:$0xff]   ;;  %v851_v58 = vmul.f32 0.5, %v16504_v15 }
 0x1ac   :  { %v1488_v8 = vmul.f32 %v1408_v28, %v848_v44  ;;  %6094 = vmatpush1.bf16.msra.mxu1 %v8156_v39  ;;  %v1255_v51 = vmul.f32 0.7978846, %v1175_v34  ;;  %v1256_v30 = vmul.f32 0.7978846, %v1176_v36  ;;  %v852_v63 = vmul.f32 0.5, %v16506_v56 }
 0x1ad   :  { %v8367_v57 = vpop.eup %8366  ;;  %6095 = vmatprep.subr.bf16.mxu1 %v8161_v9  ;;  %v853_v15 = vmul.f32 0.5, %v16495_v37  ;;  %v854_v3 = vmul.f32 0.5, %v10252_v23  ;;  %v8170_v39 = vld [vmem:[%s16050_s5 + $0x104] ss:$8 sps:$4 sm:$0xff]   ;;  %v855_v42 = vmul.f32 0.5, %v9938_v43  ;;  %v856_v47 = vmul.f32 0.5, %v10233_v38 }
 0x1ae   :  { %v8369_v54 = vpop.eup %8368  ;;  %v10356_v12 = vpack.c.bf16 %v1488_v8, %v1487_v25  ;;  %v1409_v46 = vadd.f32 1.0, %v8367_v57  ;;  %8378 = vtanh.f32 %v1255_v51  ;;  %v1587_v43 = vlaneseq  ;;  %v1585_v51 = vld [vmem:[%s16049_s4] sm:$0xf] }
 0x1af   :  { %v1410_v62 = vadd.f32 1.0, %v8369_v54  ;;  %8380 = vtanh.f32 %v1256_v30 }
 0x1b0   :  { %16511 = vst [vmem:[#allocation23_spill] sm:$0xff] %v10356_v12  ;;  %v1489_v14 = vmul.f32 %v1409_v46, %v849_v5  ;;  %6096 = vmatpush1.bf16.msra.mxu1 %v8159_v26  ;;  %v10390_v36 = vshrl.u32 %v1587_v43, 7 }
 0x1b1   :  { %v1490_v16 = vmul.f32 %v1410_v62, %v850_v48  ;;  %6097 = vmatprep.subr.bf16.mxu1 %v8164_v45  ;;  %v8371_v10 = vpop.eup %8370 }
 0x1b2   :  { %2030 = vmatmul.mubr.bf16.gmra.mrb[172].mxu0 %v10242_v18  ;;  %2190 = vmatmul.mubr.bf16.gmra.mrb[28].mxu1 %v10271_v22  ;;  %v1411_v32 = vadd.f32 1.0, %v8371_v10  ;;  %16516 = vst [vmem:[#allocation29_spill] sm:$0xff] %v10390_v36  ;;  %v16087_v38 = vsub.s32 0, %v10390_v36  ;;  %v16086_v57 = vsub.s32 1, %v10390_v36 }
 0x1b3   :  { %v8373_v33 = vpop.eup %8372  ;;  %2039 = vmatprep.mubr.bf16.mxu0 %v16462_v53  ;;  %v10369_v11 = vpack.c.bf16 %v1490_v16, %v1489_v14 }
 0x1b4   :  { %v8375_v21 = vpop.eup %8374  ;;  %v1412_v13 = vadd.f32 1.0, %v8373_v33  ;;  %6098 = vmatpush1.bf16.msra.mxu1 %v8162_v20  ;;  %v1491_v44 = vmul.f32 %v1411_v32, %v851_v58  ;;  %v10401_v48 = vrot.slane %v1585_v51, %v16087_v38  ;;  %v10405_v45 = vrot.slane %v1585_v51, %v16086_v57 }
 0x1b5   :  { %16512 = vst [vmem:[#allocation30_spill] sm:$0xff] %v10369_v11  ;;  %v8377_v24 = vpop.eup %8376  ;;  %v1413_v56 = vadd.f32 1.0, %v8375_v21  ;;  %6099 = vmatprep.subr.bf16.mxu1 %v8167_v29 }
 0x1b6   :  { %v1492_v19 = vmul.f32 %v1412_v13, %v852_v63  ;;  %v1414_v52 = vadd.f32 1.0, %v8377_v24 }
 0x1b7   :  { %v1493_v37 = vmul.f32 %v1413_v56, %v853_v15 }
 0x1b8   :  { %v8379_v55 = vpop.eup %8378  ;;  %v10380_v9 = vpack.c.bf16 %v1492_v19, %v1491_v44  ;;  %v1494_v23 = vmul.f32 %v1414_v52, %v854_v3  ;;  %6100 = vmatpush1.bf16.msra.mxu1 %v8165_v0 }
 0x1b9   :  { %6502 = vmatprep.subr.bf16.mxu1 %v8170_v39  ;;  %v1415_v28 = vadd.f32 1.0, %v8379_v55  ;;  %v8381_v27 = vpop.eup %8380 }
 0x1ba   :  { %16513 = vst [vmem:[#allocation26_spill] sm:$0xff] %v10380_v9  ;;  %2040 = vmatmul.mubr.bf16.gmra.mrb[176].mxu0 %v10289_v31  ;;  %v10384_v34 = vpack.c.bf16 %v1494_v23, %v1493_v37  ;;  %v1416_v25 = vadd.f32 1.0, %v8381_v27 }
 0x1bb   :  { %2049 = vmatprep.mubr.bf16.mxu0 %v16462_v53  ;;  %v1495_v8 = vmul.f32 %v1415_v28, %v855_v42 }
 0x1bc   :  { %16514 = vst [vmem:[#allocation32_spill] sm:$0xff] %v10384_v34  ;;  %v1496_v5 = vmul.f32 %v1416_v25, %v856_v47 }
 0x1be   :  { %v10387_v26 = vpack.c.bf16 %v1496_v5, %v1495_v8 }
 0x1c0   :  { %16515 = vst [vmem:[#allocation22_spill] sm:$0xff] %v10387_v26 }
 0x1c2   :  { %2050 = vmatmul.mubr.bf16.gmra.mrb[180].mxu0 %v10305_v61  ;;  %v16523_v61 = vld [vmem:[#allocation9_spill] sm:$0xff] }
 0x1c3   :  { %2059 = vmatprep.mubr.bf16.mxu0 %v16462_v53 }
 0x1ca   :  { %2060 = vmatmul.mubr.bf16.gmra.mrb[184].mxu0 %v10336_v6 }
 0x1cb   :  { %2069 = vmatprep.mubr.bf16.mxu0 %v16462_v53 }
 0x1cd   :  { %v1801_v54 = vpop.f32.mrb[80].mxu0 }
 0x1ce   :  { %v1802_v46 = vadd.f32 %v1801_v54, %v10401_v48  ;;  %v1803_v30 = vpop.f32.mrb[81].mxu0 }
 0x1cf   :  { %v1804_v62 = vadd.f32 %v1803_v30, %v10405_v45  ;;  %v1805_v14 = vpop.f32.mrb[82].mxu0 }
 0x1d0   :  { %v2953_v20 = vmul.f32 0.044715, %v1802_v46  ;;  %v1806_v16 = vadd.f32 %v1805_v14, %v10401_v48  ;;  %v1807_v58 = vpop.f32.mrb[83].mxu0 }
 0x1d1   :  { %v2954_v29 = vmul.f32 0.044715, %v1804_v62  ;;  %v1808_v10 = vadd.f32 %v1807_v58, %v10405_v45  ;;  %v2633_v58 = vmul.f32 0.5, %v1802_v46 }
 0x1d2   :  { %v3273_v63 = vmul.f32 %v2953_v20, %v1802_v46  ;;  %v2957_v33 = vmul.f32 0.044715, %v1806_v16  ;;  %2070 = vmatmul.mubr.bf16.gmra.mrb[188].mxu0 %v10356_v12 }
 0x1d3   :  { %v2958_v32 = vmul.f32 0.044715, %v1808_v10  ;;  %2079 = vmatprep.mubr.bf16.mxu0 %v16462_v53  ;;  %v3274_v15 = vmul.f32 %v2954_v29, %v1804_v62 }
 0x1d4   :  { %v3593_v21 = vmul.f32 %v3273_v63, %v1802_v46  ;;  %v3277_v13 = vmul.f32 %v2957_v33, %v1806_v16 }
 0x1d5   :  { %v1811_v3 = vpop.f32.mrb[84].mxu0  ;;  %v3278_v0 = vmul.f32 %v2958_v32, %v1808_v10  ;;  %v3594_v24 = vmul.f32 %v3274_v15, %v1804_v62 }
 0x1d6   :  { %v3913_v44 = vadd.f32 %v3593_v21, %v1802_v46  ;;  %v3597_v56 = vmul.f32 %v3277_v13, %v1806_v16  ;;  %v1812_v39 = vadd.f32 %v1811_v3, %v10401_v48  ;;  %v1813_v19 = vpop.f32.mrb[85].mxu0  ;;  %v2634_v3 = vmul.f32 0.5, %v1804_v62 }
 0x1d7   :  { %v1814_v52 = vadd.f32 %v1813_v19, %v10405_v45  ;;  %v1815_v37 = vpop.f32.mrb[86].mxu0  ;;  %v3598_v42 = vmul.f32 %v3278_v0, %v1808_v10  ;;  %v3914_v55 = vadd.f32 %v3594_v24, %v1804_v62  ;;  %v2637_v0 = vmul.f32 0.5, %v1806_v16 }
 0x1d8   :  { %v4233_v23 = vmul.f32 0.7978846, %v3913_v44  ;;  %v3917_v47 = vadd.f32 %v3597_v56, %v1806_v16  ;;  %v2961_v28 = vmul.f32 0.044715, %v1812_v39  ;;  %v1816_v27 = vadd.f32 %v1815_v37, %v10401_v48  ;;  %v1817_v25 = vpop.f32.mrb[87].mxu0 }
 0x1d9   :  { %v2962_v8 = vmul.f32 0.044715, %v1814_v52  ;;  %v1818_v5 = vadd.f32 %v1817_v25, %v10405_v45  ;;  %v3918_v43 = vadd.f32 %v3598_v42, %v1808_v10  ;;  %v4234_v51 = vmul.f32 0.7978846, %v3914_v55 }
 0x1da   :  { %8382 = vtanh.f32 %v4233_v23  ;;  %v4237_v54 = vmul.f32 0.7978846, %v3917_v47  ;;  %v2965_v30 = vmul.f32 0.044715, %v1816_v27  ;;  %2080 = vmatmul.mubr.bf16.gmra.mrb[192].mxu0 %v10369_v11  ;;  %v3281_v32 = vmul.f32 %v2961_v28, %v1812_v39 }
 0x1db   :  { %v2966_v14 = vmul.f32 0.044715, %v1818_v5  ;;  %2089 = vmatprep.mubr.bf16.mxu0 %v16462_v53  ;;  %v4238_v20 = vmul.f32 0.7978846, %v3918_v43  ;;  %8384 = vtanh.f32 %v4234_v51  ;;  %v3282_v29 = vmul.f32 %v2962_v8, %v1814_v52 }
 0x1dc   :  { %8386 = vtanh.f32 %v4237_v54  ;;  %v3285_v15 = vmul.f32 %v2965_v30, %v1816_v27  ;;  %v3601_v37 = vmul.f32 %v3281_v32, %v1812_v39  ;;  %v2638_v55 = vmul.f32 0.5, %v1808_v10 }
 0x1dd   :  { %v1821_v63 = vpop.f32.mrb[88].mxu0  ;;  %8388 = vtanh.f32 %v4238_v20  ;;  %v3286_v33 = vmul.f32 %v2966_v14, %v1818_v5  ;;  %v3602_v24 = vmul.f32 %v3282_v29, %v1814_v52  ;;  %v10424_v23 = vmul.f32 0.5, %v1814_v52 }
 0x1de   :  { %v10421_v21 = vadd.f32 %v1821_v63, %v10401_v48  ;;  %v1823_v13 = vpop.f32.mrb[89].mxu0  ;;  %v3605_v42 = vmul.f32 %v3285_v15, %v1816_v27  ;;  %v10426_v47 = vmul.f32 0.5, %v1818_v5  ;;  %v3921_v62 = vadd.f32 %v3601_v37, %v1812_v39 }
 0x1df   :  { %v1824_v44 = vadd.f32 %v1823_v13, %v10405_v45  ;;  %v1825_v56 = vpop.f32.mrb[90].mxu0  ;;  %v3606_v19 = vmul.f32 %v3286_v33, %v1818_v5  ;;  %v3922_v28 = vadd.f32 %v3602_v24, %v1814_v52  ;;  %v10435_v63 = vmul.f32 0.5, %v1812_v39 }
 0x1e0   :  { %v1827_v46 = vpop.f32.mrb[91].mxu0  ;;  %v2969_v16 = vmul.f32 0.044715, %v10421_v21  ;;  %v10431_v51 = vadd.f32 %v1825_v56, %v10401_v48  ;;  %v3925_v30 = vadd.f32 %v3605_v42, %v1816_v27  ;;  %v4241_v20 = vmul.f32 0.7978846, %v3921_v62 }
 0x1e1   :  { %v2970_v25 = vmul.f32 0.044715, %v1824_v44  ;;  %v1828_v8 = vadd.f32 %v1827_v46, %v10405_v45  ;;  %v3926_v43 = vadd.f32 %v3606_v19, %v1818_v5  ;;  %v4242_v54 = vmul.f32 0.7978846, %v3922_v28 }
 0x1e2   :  { %2090 = vmatmul.mubr.bf16.gmra.mrb[196].mxu0 %v10380_v9  ;;  %v10437_v5 = vmul.f32 0.5, %v1816_v27  ;;  %v4245_v33 = vmul.f32 0.7978846, %v3925_v30  ;;  %v10440_v56 = vmul.f32 0.5, %v10421_v21  ;;  %v2973_v37 = vmul.f32 0.044715, %v10431_v51 }
 0x1e3   :  { %v2974_v10 = vmul.f32 0.044715, %v1828_v8  ;;  %2099 = vmatprep.mubr.bf16.mxu0 %v16462_v53  ;;  %v4246_v14 = vmul.f32 0.7978846, %v3926_v43  ;;  %v3290_v52 = vmul.f32 %v2970_v25, %v1824_v44  ;;  %8390 = vtanh.f32 %v4242_v54 }
 0x1e4   :  { %v8383_v29 = vpop.eup %8382  ;;  %v3289_v62 = vmul.f32 %v2969_v16, %v10421_v21 }
 0x1e5   :  { %v8385_v32 = vpop.eup %8384  ;;  %v1831_v15 = vpop.f32.mrb[92].mxu0  ;;  %v4873_v13 = vadd.f32 1.0, %v8383_v29  ;;  %8392 = vtanh.f32 %v4246_v14  ;;  %v3294_v24 = vmul.f32 %v2974_v10, %v1828_v8  ;;  %v3610_v28 = vmul.f32 %v3290_v52, %v1824_v44 }
 0x1e6   :  { %v8387_v19 = vpop.eup %8386  ;;  %v1833_v42 = vpop.f32.mrb[93].mxu0  ;;  %v4874_v46 = vadd.f32 1.0, %v8385_v32  ;;  %8394 = vtanh.f32 %v4241_v20  ;;  %v10448_v54 = vadd.f32 %v1831_v15, %v10401_v48  ;;  %v10450_v29 = vmul.f32 0.5, %v1824_v44 }
 0x1e7   :  { %v8389_v39 = vpop.eup %8388  ;;  %v10444_v27 = vadd.f32 %v1833_v42, %v10405_v45  ;;  %v1835_v25 = vpop.f32.mrb[94].mxu0  ;;  %v4877_v43 = vadd.f32 1.0, %v8387_v19  ;;  %8396 = vtanh.f32 %v4245_v33  ;;  %v5193_v14 = vmul.f32 %v4873_v13, %v2633_v58  ;;  %v8168_v58 = vld [vmem:[%s16050_s5 + $0x100] ss:$8 sps:$4 sm:$0xff]  }
 0x1e8   :  { %v1837_v30 = vpop.f32.mrb[95].mxu0  ;;  %v4878_v10 = vadd.f32 1.0, %v8389_v39  ;;  %v10453_v20 = vadd.f32 %v1835_v25, %v10401_v48  ;;  %v3614_v42 = vmul.f32 %v3294_v24, %v1828_v8  ;;  %v5194_v33 = vmul.f32 %v4874_v46, %v2634_v3 }
 0x1e9   :  { %v10456_v52 = vadd.f32 %v1837_v30, %v10405_v45  ;;  %v5197_v32 = vmul.f32 %v4877_v43, %v2637_v0  ;;  %v3930_v19 = vadd.f32 %v3610_v28, %v1824_v44  ;;  %v3293_v15 = vmul.f32 %v2973_v37, %v10431_v51 }
 0x1ea   :  { %2100 = vmatmul.mubr.bf16.gmra.mrb[200].mxu0 %v10384_v34  ;;  %v5198_v16 = vmul.f32 %v4878_v10, %v2638_v55  ;;  %v2978_v39 = vmul.f32 0.044715, %v10444_v27  ;;  %v3934_v25 = vadd.f32 %v3614_v42, %v1828_v8  ;;  %v3609_v0 = vmul.f32 %v3289_v62, %v10421_v21  ;;  %v8179_v55 = vld [vmem:[%s16050_s5 + $0x114] ss:$8 sps:$4 sm:$0xff]  }
 0x1eb   :  { %v5513_v13 = vpack.c.bf16 %v5197_v32, %v5193_v14  ;;  %2109 = vmatprep.mubr.bf16.mxu0 %v16462_v53  ;;  %v2982_v24 = vmul.f32 0.044715, %v10456_v52  ;;  %v4250_v3 = vmul.f32 0.7978846, %v3930_v19  ;;  %v3613_v44 = vmul.f32 %v3293_v15, %v10431_v51 }
 0x1ec   :  { %v5514_v43 = vpack.c.bf16 %v5198_v16, %v5194_v33  ;;  %v10471_v46 = vmul.f32 0.5, %v1828_v8  ;;  %v4254_v28 = vmul.f32 0.7978846, %v3934_v25  ;;  %v10474_v30 = vmul.f32 0.5, %v10431_v51 }
 0x1ed   :  { %v1841_v37 = vpop.f32.mrb[96].mxu0  ;;  %v3929_v10 = vadd.f32 %v3609_v0, %v10421_v21  ;;  %v8391_v62 = vpop.eup %8390  ;;  %v2977_v14 = vmul.f32 0.044715, %v10448_v54  ;;  %v2981_v32 = vmul.f32 0.044715, %v10453_v20  ;;  %8398 = vtanh.f32 %v4250_v3 }
 0x1ee   :  { %v1843_v42 = vpop.f32.mrb[97].mxu0  ;;  %6101 = vmatprep.mubr.bf16.mxu1 %v5514_v43  ;;  %v3933_v33 = vadd.f32 %v3613_v44, %v10431_v51  ;;  %v4882_v8 = vadd.f32 1.0, %v8391_v62  ;;  %8400 = vtanh.f32 %v4254_v28  ;;  %v8177_v21 = vld [vmem:[%s16050_s5 + $0x110] ss:$8 sps:$4 sm:$0xff]   ;;  %v3298_v25 = vmul.f32 %v2978_v39, %v10444_v27 }
 0x1ef   :  { %v8393_v16 = vpop.eup %8392  ;;  %v1845_v19 = vpop.f32.mrb[98].mxu0  ;;  %6102 = vmatmul.mubr.bf16.vlgmr.msra.gmra.mrb[32].mxu1 %v5513_v13  ;;  %v4249_v15 = vmul.f32 0.7978846, %v3929_v10  ;;  %v10485_v3 = vmul.f32 0.5, %v10444_v27  ;;  %v3302_v51 = vmul.f32 %v2982_v24, %v10456_v52  ;;  %v10489_v44 = vadd.f32 %v1841_v37, %v10401_v48 }
 0x1f0   :  { %v8395_v0 = vpop.eup %8394  ;;  %6503 = vmatpush1.bf16.msra.mxu1 %v8168_v58  ;;  %v1847_v57 = vpop.f32.mrb[99].mxu0  ;;  %v4886_v38 = vadd.f32 1.0, %v8393_v16  ;;  %v4253_v43 = vmul.f32 0.7978846, %v3933_v33  ;;  %v10492_v28 = vadd.f32 %v1843_v42, %v10405_v45  ;;  %v10495_v10 = vadd.f32 %v1845_v19, %v10401_v48  ;;  %v8182_v58 = vld [vmem:[%s16050_s5 + $0x124] ss:$8 sps:$4 sm:$0xff]  }
 0x1f1   :  { %v8397_v13 = vpop.eup %8396  ;;  %v4881_v39 = vadd.f32 1.0, %v8395_v0  ;;  %6504 = vmatprep.subr.bf16.mxu1 %v8179_v55  ;;  %v5202_v24 = vmul.f32 %v4882_v8, %v10424_v23  ;;  %8402 = vtanh.f32 %v4249_v15  ;;  %v10504_v42 = vadd.f32 %v1847_v57, %v10405_v45  ;;  %v8180_v57 = vld [vmem:[%s16050_s5 + $0x120] ss:$8 sps:$4 sm:$0xff]  }
 0x1f2   :  { %2110 = vmatmul.mubr.bf16.gmra.mrb[204].mxu0 %v10387_v26  ;;  %v5206_v62 = vmul.f32 %v4886_v38, %v10426_v47  ;;  %v4885_v37 = vadd.f32 1.0, %v8397_v13  ;;  %8404 = vtanh.f32 %v4253_v43  ;;  %v10508_v55 = vmul.f32 0.5, %v10456_v52 }
 0x1f3   :  { %2232 = vmatprep.mubr.bf16.mxu0 %v16462_v53  ;;  %v3618_v33 = vmul.f32 %v3298_v25, %v10444_v27  ;;  %v5201_v19 = vmul.f32 %v4881_v39, %v10435_v63  ;;  %v3622_v38 = vmul.f32 %v3302_v51, %v10456_v52  ;;  %v10518_v47 = vmul.f32 0.044715, %v10489_v44  ;;  %v8185_v63 = vld [vmem:[%s16050_s5 + $0x134] ss:$8 sps:$4 sm:$0xff]  }
 0x1f4   :  { %v5518_v16 = vpack.c.bf16 %v5206_v62, %v5202_v24  ;;  %v5205_v23 = vmul.f32 %v4885_v37, %v10437_v5  ;;  %6505 = vmatpush1.bf16.msra.mxu1 %v8177_v21  ;;  %v3297_v25 = vmul.f32 %v2977_v14, %v10448_v54  ;;  %v3301_v0 = vmul.f32 %v2981_v32, %v10453_v20 }
 0x1f5   :  { %v1851_v8 = vpop.f32.mrb[100].mxu0  ;;  %v3938_v15 = vadd.f32 %v3618_v33, %v10444_v27  ;;  %6506 = vmatprep.subr.bf16.mxu1 %v8182_v58  ;;  %v2986_v5 = vmul.f32 0.044715, %v10492_v28  ;;  %v10528_v21 = vmul.f32 0.044715, %v10495_v10  ;;  %v3942_v13 = vadd.f32 %v3622_v38, %v10456_v52 }
 0x1f6   :  { %v1853_v43 = vpop.f32.mrb[101].mxu0  ;;  %6111 = vmatprep.mubr.bf16.mxu1 %v5518_v16  ;;  %v5517_v51 = vpack.c.bf16 %v5205_v23, %v5201_v19  ;;  %v10532_v27 = vadd.f32 %v1851_v8, %v10401_v48  ;;  %v3617_v39 = vmul.f32 %v3297_v25, %v10448_v54  ;;  %v3621_v58 = vmul.f32 %v3301_v0, %v10453_v20  ;;  %v8183_v8 = vld [vmem:[%s16050_s5 + $0x130] ss:$8 sps:$4 sm:$0xff]   ;;  %v16517_v25 = vld [vmem:[#allocation4_spill] sm:$0xff] }
 0x1f7   :  { %v1855_v14 = vpop.f32.mrb[102].mxu0  ;;  %v4258_v32 = vmul.f32 0.7978846, %v3938_v15  ;;  %v8399_v24 = vpop.eup %8398  ;;  %v2990_v62 = vmul.f32 0.044715, %v10504_v42  ;;  %v10538_v16 = vmul.f32 0.5, %v10448_v54  ;;  %v10550_v15 = vadd.f32 %v1853_v43, %v10405_v45 }
 0x1f8   :  { %6112 = vmatmul.mubr.bf16.gmra.mrb[36].mxu1 %v5517_v51  ;;  %v1857_v37 = vpop.f32.mrb[103].mxu0  ;;  %v4262_v33 = vmul.f32 0.7978846, %v3942_v13  ;;  %v8401_v19 = vpop.eup %8400  ;;  %v4890_v52 = vadd.f32 1.0, %v8399_v24  ;;  %v10541_v23 = vmul.f32 0.5, %v10453_v20  ;;  %v10544_v38 = vmul.f32 0.5, %v10492_v28 }
 0x1f9   :  { %8406 = vtanh.f32 %v4258_v32  ;;  %6507 = vmatpush1.bf16.msra.mxu1 %v8180_v57  ;;  %v4894_v0 = vadd.f32 1.0, %v8401_v19  ;;  %v3937_v51 = vadd.f32 %v3617_v39, %v10448_v54  ;;  %v8188_v13 = vld [vmem:[%s16050_s5 + $0x144] ss:$8 sps:$4 sm:$0xff]   ;;  %v10558_v57 = vmul.f32 0.044715, %v10532_v27 }
 0x1fa   :  { %2233 = vmatmul.mubr.bf16.vlgmr.msra.gmra.mrb[208].mxu0 %v16517_v25  ;;  %8408 = vtanh.f32 %v4262_v33  ;;  %6508 = vmatprep.subr.bf16.mxu1 %v8185_v63  ;;  %v10561_v32 = vadd.f32 %v1855_v14, %v10401_v48  ;;  %v3941_v43 = vadd.f32 %v3621_v58, %v10453_v20  ;;  %v3306_v24 = vmul.f32 %v2986_v5, %v10492_v28  ;;  %v8186_v20 = vld [vmem:[%s16050_s5 + $0x140] ss:$8 sps:$4 sm:$0xff]  }
 0x1fb   :  { %2242 = vmatprep.mubr.bf16.mxu0 %v16462_v53  ;;  %v8403_v33 = vpop.eup %8402  ;;  %v5210_v54 = vmul.f32 %v4890_v52, %v10450_v29  ;;  %v5214_v63 = vmul.f32 %v4894_v0, %v10471_v46  ;;  %v4257_v39 = vmul.f32 0.7978846, %v3937_v51  ;;  %v3310_v19 = vmul.f32 %v2990_v62, %v10504_v42  ;;  %v8191_v62 = vld [vmem:[%s16050_s5 + $0x154] ss:$8 sps:$4 sm:$0xff]  }
 0x1fc   :  { %v8405_v25 = vpop.eup %8404  ;;  %v10570_v22 = vadd.f32 %v1857_v37, %v10405_v45  ;;  %v4889_v7 = vadd.f32 1.0, %v8403_v33  ;;  %v4261_v41 = vmul.f32 0.7978846, %v3941_v43  ;;  %v3626_v36 = vmul.f32 %v3306_v24, %v10492_v28 }
 0x1fd   :  { %v1861_v14 = vpop.f32.mrb[104].mxu0  ;;  %6509 = vmatpush1.bf16.msra.mxu1 %v8183_v8  ;;  %v5522_v5 = vpack.c.bf16 %v5214_v63, %v5210_v54  ;;  %v4893_v46 = vadd.f32 1.0, %v8405_v25  ;;  %8410 = vtanh.f32 %v4257_v39  ;;  %v10577_v58 = vmul.f32 0.5, %v10504_v42 }
 0x1fe   :  { %v1863_v29 = vpop.f32.mrb[105].mxu0  ;;  %6510 = vmatprep.subr.bf16.mxu1 %v8188_v13  ;;  %v2994_v37 = vmul.f32 0.044715, %v10550_v15  ;;  %v10584_v52 = vadd.f32 %v1861_v14, %v10401_v48  ;;  %8412 = vtanh.f32 %v4261_v41  ;;  %v3630_v0 = vmul.f32 %v3310_v19, %v10504_v42 }
 0x1ff   :  { %v1865_v8 = vpop.f32.mrb[106].mxu0  ;;  %v10588_v51 = vmul.f32 0.044715, %v10561_v32  ;;  %6121 = vmatprep.mubr.bf16.mxu1 %v5522_v5  ;;  %v5209_v43 = vmul.f32 %v4889_v7, %v10440_v56  ;;  %v5213_v13 = vmul.f32 %v4893_v46, %v10474_v30  ;;  %v3946_v33 = vadd.f32 %v3626_v36, %v10492_v28  ;;  %v8189_v7 = vld [vmem:[%s16050_s5 + $0x150] ss:$8 sps:$4 sm:$0xff]   ;;  %v16518_v36 = vld [vmem:[#allocation3_spill] sm:$0xff] }
 0x200   :  { %v1867_v24 = vpop.f32.mrb[107].mxu0  ;;  %v2998_v54 = vmul.f32 0.044715, %v10570_v22  ;;  %v3950_v63 = vadd.f32 %v3630_v0, %v10504_v42  ;;  %v10596_v39 = vmul.f32 0.5, %v10489_v44  ;;  %v3305_v41 = vmul.f32 %v10518_v47, %v10489_v44 }
 0x201   :  { %6511 = vmatpush1.bf16.msra.mxu1 %v8186_v20  ;;  %v10604_v56 = vadd.f32 %v1863_v29, %v10405_v45  ;;  %v5521_v30 = vpack.c.bf16 %v5213_v13, %v5209_v43  ;;  %v4266_v28 = vmul.f32 0.7978846, %v3946_v33  ;;  %v3309_v42 = vmul.f32 %v10528_v21, %v10495_v10 }
 0x202   :  { %2243 = vmatmul.mubr.bf16.gmra.mrb[212].mxu0 %v16518_v36  ;;  %6512 = vmatprep.subr.bf16.mxu1 %v8191_v62  ;;  %v10610_v25 = vmul.f32 0.044715, %v10584_v52  ;;  %v10613_v47 = vadd.f32 %v1865_v8, %v10401_v48  ;;  %v4270_v14 = vmul.f32 0.7978846, %v3950_v63  ;;  %v3625_v20 = vmul.f32 %v3305_v41, %v10489_v44 }
 0x203   :  { %v8407_v19 = vpop.eup %8406  ;;  %2252 = vmatprep.mubr.bf16.mxu0 %v16462_v53  ;;  %6122 = vmatmul.mubr.bf16.gmra.mrb[40].mxu1 %v5521_v30  ;;  %v10618_v5 = vadd.f32 %v1867_v24, %v10405_v45  ;;  %8414 = vtanh.f32 %v4266_v28  ;;  %v3629_v21 = vmul.f32 %v3309_v42, %v10495_v10  ;;  %v3314_v43 = vmul.f32 %v2994_v37, %v10550_v15 }
 0x204   :  { %v8409_v29 = vpop.eup %8408  ;;  %v4898_v46 = vadd.f32 1.0, %v8407_v19  ;;  %8416 = vtanh.f32 %v4270_v14  ;;  %v3945_v8 = vadd.f32 %v3625_v20, %v10489_v44  ;;  %v10624_v13 = vmul.f32 0.044715, %v10604_v56 }
 0x205   :  { %v1871_v62 = vpop.f32.mrb[108].mxu0  ;;  %v4902_v0 = vadd.f32 1.0, %v8409_v29  ;;  %6513 = vmatpush1.bf16.msra.mxu1 %v8189_v7  ;;  %v3949_v63 = vadd.f32 %v3629_v21, %v10495_v10  ;;  %v3318_v41 = vmul.f32 %v2998_v54, %v10570_v22  ;;  %v3634_v37 = vmul.f32 %v3314_v43, %v10550_v15 }
 0x206   :  { %v10627_v33 = vadd.f32 %v1871_v62, %v10401_v48  ;;  %v1873_v24 = vpop.f32.mrb[109].mxu0  ;;  %v5218_v30 = vmul.f32 %v4898_v46, %v10485_v3  ;;  %v4265_v44 = vmul.f32 0.7978846, %v3945_v8  ;;  %v10635_v42 = vmul.f32 0.044715, %v10613_v47  ;;  %v16519_v8 = vld [vmem:[#allocation5_spill] sm:$0xff] }
 0x207   :  { %v5222_v36 = vmul.f32 %v4902_v0, %v10508_v55  ;;  %v1875_v28 = vpop.f32.mrb[110].mxu0  ;;  %v8411_v7 = vpop.eup %8410  ;;  %v10638_v14 = vmul.f32 0.5, %v10495_v10  ;;  %v4269_v20 = vmul.f32 0.7978846, %v3949_v63  ;;  %v3638_v29 = vmul.f32 %v3318_v41, %v10570_v22 }
 0x208   :  { %v1877_v19 = vpop.f32.mrb[111].mxu0  ;;  %v8413_v54 = vpop.eup %8412  ;;  %v10642_v3 = vmul.f32 0.044715, %v10618_v5  ;;  %v4897_v46 = vadd.f32 1.0, %v8411_v7  ;;  %v10645_v21 = vmul.f32 0.5, %v10550_v15  ;;  %v10648_v62 = vadd.f32 %v1873_v24, %v10405_v45 }
 0x209   :  { %v5526_v55 = vpack.c.bf16 %v5222_v36, %v5218_v30  ;;  %v4901_v0 = vadd.f32 1.0, %v8413_v54  ;;  %8418 = vtanh.f32 %v4265_v44  ;;  %v3954_v10 = vadd.f32 %v3634_v37, %v10550_v15 }
 0x20a   :  { %2253 = vmatmul.mubr.bf16.gmra.mrb[216].mxu0 %v16519_v8  ;;  %v10653_v43 = vmul.f32 0.044715, %v10627_v33  ;;  %8420 = vtanh.f32 %v4269_v20  ;;  %v10657_v63 = vmul.f32 0.5, %v10570_v22  ;;  %v3958_v41 = vadd.f32 %v3638_v29, %v10570_v22 }
 0x20b   :  { %6131 = vmatprep.mubr.bf16.mxu1 %v5526_v55  ;;  %2262 = vmatprep.mubr.bf16.mxu0 %v16462_v53  ;;  %v10661_v24 = vadd.f32 %v1875_v28, %v10401_v48  ;;  %v5217_v30 = vmul.f32 %v4897_v46, %v10538_v16  ;;  %v5221_v36 = vmul.f32 %v4901_v0, %v10541_v23  ;;  %v4274_v15 = vmul.f32 0.7978846, %v3954_v10 }
 0x20c   :  { %v10666_v44 = vadd.f32 %v1877_v19, %v10405_v45  ;;  %v4278_v7 = vmul.f32 0.7978846, %v3958_v41  ;;  %v3313_v20 = vmul.f32 %v10558_v57, %v10532_v27  ;;  %v3317_v54 = vmul.f32 %v10588_v51, %v10561_v32 }
 0x20d   :  { %v1881_v37 = vpop.f32.mrb[112].mxu0  ;;  %v8415_v22 = vpop.eup %8414  ;;  %v10673_v28 = vmul.f32 0.044715, %v10648_v62  ;;  %v5525_v29 = vpack.c.bf16 %v5221_v36, %v5217_v30  ;;  %8422 = vtanh.f32 %v4274_v15  ;;  %v10683_v51 = vmul.f32 0.044715, %v10661_v24 }
 0x20e   :  { %v10676_v16 = vadd.f32 %v1881_v37, %v10401_v48  ;;  %v1883_v23 = vpop.f32.mrb[113].mxu0  ;;  %v8417_v19 = vpop.eup %8416  ;;  %v4906_v46 = vadd.f32 1.0, %v8415_v22  ;;  %8424 = vtanh.f32 %v4278_v7  ;;  %v3633_v57 = vmul.f32 %v3313_v20, %v10532_v27 }
 0x20f   :  { %v10679_v55 = vadd.f32 %v1883_v23, %v10405_v45  ;;  %v1885_v0 = vpop.f32.mrb[114].mxu0  ;;  %6132 = vmatmul.mubr.bf16.gmra.mrb[44].mxu1 %v5525_v29  ;;  %v4910_v8 = vadd.f32 1.0, %v8417_v19  ;;  %v3637_v30 = vmul.f32 %v3317_v54, %v10561_v32  ;;  %v10690_v36 = vmul.f32 0.044715, %v10666_v44  ;;  %v16520_v23 = vld [vmem:[#allocation6_spill] sm:$0xff] }
 0x210   :  { %v10686_v10 = vadd.f32 %v1885_v0, %v10401_v48  ;;  %v1887_v41 = vpop.f32.mrb[115].mxu0  ;;  %v10696_v37 = vmul.f32 0.5, %v10532_v27  ;;  %v3953_v7 = vadd.f32 %v3633_v57, %v10532_v27  ;;  %v3017_v20 = vmul.f32 0.044715, %v10676_v16 }
 0x211   :  { %v10693_v15 = vadd.f32 %v1887_v41, %v10405_v45  ;;  %v5226_v22 = vmul.f32 %v4906_v46, %v10544_v38  ;;  %v5230_v29 = vmul.f32 %v4910_v8, %v10577_v58  ;;  %v3957_v54 = vadd.f32 %v3637_v30, %v10561_v32 }
 0x212   :  { %2263 = vmatmul.mubr.bf16.gmra.mrb[220].mxu0 %v16520_v23  ;;  %v3018_v19 = vmul.f32 0.044715, %v10679_v55  ;;  %v3021_v0 = vmul.f32 0.044715, %v10686_v10  ;;  %v4273_v41 = vmul.f32 0.7978846, %v3953_v7  ;;  %v3322_v38 = vmul.f32 %v10624_v13, %v10604_v56 }
 0x213   :  { %2272 = vmatprep.mubr.bf16.mxu0 %v16462_v53  ;;  %v8419_v59 = vpop.eup %8418  ;;  %v5530_v4 = vpack.c.bf16 %v5230_v29, %v5226_v22  ;;  %v10708_v27 = vmul.f32 0.5, %v10561_v32  ;;  %v4277_v57 = vmul.f32 0.7978846, %v3957_v54  ;;  %v3022_v8 = vmul.f32 0.044715, %v10693_v15 }
 0x214   :  { %v8421_v58 = vpop.eup %8420  ;;  %v4905_v46 = vadd.f32 1.0, %v8419_v59  ;;  %8426 = vtanh.f32 %v4273_v41  ;;  %v10714_v23 = vmul.f32 0.5, %v10604_v56  ;;  %v3337_v7 = vmul.f32 %v3017_v20, %v10676_v16 }
 0x215   :  { %v1891_v30 = vpop.f32.mrb[116].mxu0  ;;  %6141 = vmatprep.mubr.bf16.mxu1 %v5530_v4  ;;  %v4909_v22 = vadd.f32 1.0, %v8421_v58  ;;  %8428 = vtanh.f32 %v4277_v57  ;;  %v3338_v13 = vmul.f32 %v3018_v19, %v10679_v55  ;;  %v3341_v59 = vmul.f32 %v3021_v0, %v10686_v10 }
 0x216   :  { %v10718_v32 = vadd.f32 %v1891_v30, %v10401_v48  ;;  %v1893_v29 = vpop.f32.mrb[117].mxu0  ;;  %v3326_v1 = vmul.f32 %v10642_v3, %v10618_v5  ;;  %v5225_v4 = vmul.f32 %v4905_v46, %v10596_v39  ;;  %v3642_v19 = vmul.f32 %v3322_v38, %v10604_v56 }
 0x217   :  { %v10723_v54 = vadd.f32 %v1893_v29, %v10405_v45  ;;  %v1895_v41 = vpop.f32.mrb[118].mxu0  ;;  %v8423_v35 = vpop.eup %8422  ;;  %v5229_v20 = vmul.f32 %v4909_v22, %v10638_v14  ;;  %v3342_v0 = vmul.f32 %v3022_v8, %v10693_v15  ;;  %v16521_v14 = vld [vmem:[#allocation7_spill] sm:$0xff]  ;;  %v10741_v22 = vmul.f32 0.5, %v10618_v5 }
 0x218   :  { %v10730_v58 = vadd.f32 %v1895_v41, %v10401_v48  ;;  %v1897_v57 = vpop.f32.mrb[119].mxu0  ;;  %v8425_v30 = vpop.eup %8424  ;;  %v4914_v29 = vadd.f32 1.0, %v8423_v35  ;;  %v3646_v3 = vmul.f32 %v3326_v1, %v10618_v5  ;;  %v3025_v39 = vmul.f32 0.044715, %v10718_v32 }
 0x219   :  { %v10735_v26 = vadd.f32 %v1897_v57, %v10405_v45  ;;  %v5529_v34 = vpack.c.bf16 %v5229_v20, %v5225_v4  ;;  %v4918_v46 = vadd.f32 1.0, %v8425_v30  ;;  %v10744_v38 = vmul.f32 %v3337_v7, %v10676_v16 }
 0x21a   :  { %2273 = vmatmul.mubr.bf16.gmra.mrb[224].mxu0 %v16521_v14  ;;  %v3026_v8 = vmul.f32 0.044715, %v10723_v54  ;;  %v3029_v35 = vmul.f32 0.044715, %v10730_v58  ;;  %v3962_v41 = vadd.f32 %v3642_v19, %v10604_v56  ;;  %v10751_v1 = vmul.f32 %v3338_v13, %v10679_v55 }
 0x21b   :  { %2282 = vmatprep.mubr.bf16.mxu0 %v16462_v53  ;;  %6142 = vmatmul.mubr.bf16.gmra.mrb[48].mxu1 %v5529_v34  ;;  %v5234_v4 = vmul.f32 %v4914_v29, %v10645_v21  ;;  %v5238_v20 = vmul.f32 %v4918_v46, %v10657_v63  ;;  %v3966_v57 = vadd.f32 %v3646_v3, %v10618_v5  ;;  %v3030_v56 = vmul.f32 0.044715, %v10735_v26 }
 0x21c   :  { %v10757_v7 = vmul.f32 %v3341_v59, %v10686_v10  ;;  %v10760_v30 = vmul.f32 %v3342_v0, %v10693_v15  ;;  %v4282_v14 = vmul.f32 0.7978846, %v3962_v41  ;;  %v3345_v13 = vmul.f32 %v3025_v39, %v10718_v32 }
 0x21d   :  { %v1901_v19 = vpop.f32.mrb[120].mxu0  ;;  %v5534_v9 = vpack.c.bf16 %v5238_v20, %v5234_v4  ;;  %v4286_v63 = vmul.f32 0.7978846, %v3966_v57  ;;  %v3346_v5 = vmul.f32 %v3026_v8, %v10723_v54  ;;  %v3349_v59 = vmul.f32 %v3029_v35, %v10730_v58 }
 0x21e   :  { %v10765_v34 = vadd.f32 %v1901_v19, %v10401_v48  ;;  %v1903_v21 = vpop.f32.mrb[121].mxu0  ;;  %v8427_v29 = vpop.eup %8426  ;;  %8430 = vtanh.f32 %v4282_v14  ;;  %v3350_v8 = vmul.f32 %v3030_v56, %v10735_v26  ;;  %v3321_v35 = vmul.f32 %v10610_v25, %v10584_v52 }
 0x21f   :  { %v10770_v0 = vadd.f32 %v1903_v21, %v10405_v45  ;;  %v1905_v3 = vpop.f32.mrb[122].mxu0  ;;  %v8429_v46 = vpop.eup %8428  ;;  %6151 = vmatprep.mubr.bf16.mxu1 %v5534_v9  ;;  %v4913_v41 = vadd.f32 1.0, %v8427_v29  ;;  %8432 = vtanh.f32 %v4286_v63  ;;  %v3325_v19 = vmul.f32 %v10635_v42, %v10613_v47  ;;  %v16522_v29 = vld [vmem:[#allocation8_spill] sm:$0xff] }
 0x220   :  { %v3033_v39 = vmul.f32 0.044715, %v10765_v34  ;;  %v10774_v4 = vadd.f32 %v1905_v3, %v10401_v48  ;;  %v1907_v20 = vpop.f32.mrb[123].mxu0  ;;  %v4917_v57 = vadd.f32 1.0, %v8429_v46  ;;  %v10782_v14 = vmul.f32 %v3345_v13, %v10718_v32 }
 0x221   :  { %v5233_v9 = vmul.f32 %v4913_v41, %v10696_v37  ;;  %v3034_v21 = vmul.f32 0.044715, %v10770_v0  ;;  %v10787_v63 = vadd.f32 %v1907_v20, %v10405_v45  ;;  %v3641_v25 = vmul.f32 %v3321_v35, %v10584_v52 }
 0x222   :  { %2283 = vmatmul.mubr.bf16.gmra.mrb[228].mxu0 %v16522_v29  ;;  %v5237_v56 = vmul.f32 %v4917_v57, %v10708_v27  ;;  %v3037_v3 = vmul.f32 0.044715, %v10774_v4  ;;  %v3645_v42 = vmul.f32 %v3325_v19, %v10613_v47  ;;  %v10796_v13 = vmul.f32 %v3346_v5, %v10723_v54  ;;  %v8192_v5 = vld [vmem:[%s16050_s5 + $0x160] ss:$8 sps:$4 sm:$0xff]  }
 0x223   :  { %2292 = vmatprep.mubr.bf16.mxu0 %v16462_v53  ;;  %v10799_v37 = vmul.f32 %v3349_v59, %v10730_v58  ;;  %v3353_v46 = vmul.f32 %v3033_v39, %v10765_v34  ;;  %v10803_v41 = vmul.f32 0.5, %v10584_v52  ;;  %v10806_v20 = vmul.f32 %v3350_v8, %v10735_v26  ;;  %v8194_v59 = vld [vmem:[%s16050_s5 + $0x164] ss:$8 sps:$4 sm:$0xff]  }
 0x224   :  { %v5533_v27 = vpack.c.bf16 %v5237_v56, %v5233_v9  ;;  %v3961_v57 = vadd.f32 %v3641_v25, %v10584_v52  ;;  %v3965_v35 = vadd.f32 %v3645_v42, %v10613_v47  ;;  %v3354_v39 = vmul.f32 %v3034_v21, %v10770_v0  ;;  %6514 = vmatprep.subr.bf16.mxu1 %v8194_v59 }
 0x225   :  { %v1911_v19 = vpop.f32.mrb[124].mxu0  ;;  %v10818_v9 = vmul.f32 0.5, %v10613_v47  ;;  %v3038_v8 = vmul.f32 0.044715, %v10787_v63  ;;  %v3357_v56 = vmul.f32 %v3037_v3, %v10774_v4  ;;  %v3330_v11 = vmul.f32 %v10673_v28, %v10648_v62  ;;  %6515 = vmatpush1.bf16.msra.mxu1 %v8192_v5 }
 0x226   :  { %v10822_v52 = vadd.f32 %v1911_v19, %v10401_v48  ;;  %v1913_v29 = vpop.f32.mrb[125].mxu0  ;;  %6152 = vmatmul.mubr.bf16.gmra.mrb[52].mxu1 %v5533_v27  ;;  %v4281_v25 = vmul.f32 0.7978846, %v3961_v57  ;;  %v4285_v42 = vmul.f32 0.7978846, %v3965_v35  ;;  %v10828_v21 = vmul.f32 %v3353_v46, %v10765_v34 }
 0x227   :  { %v1915_v12 = vpop.f32.mrb[126].mxu0  ;;  %v10832_v6 = vadd.f32 %v1913_v29, %v10405_v45  ;;  %v3334_v27 = vmul.f32 %v10690_v36, %v10666_v44  ;;  %v10837_v57 = vmul.f32 0.5, %v10648_v62  ;;  %v3650_v28 = vmul.f32 %v3330_v11, %v10648_v62 }
 0x228   :  { %v3041_v47 = vmul.f32 0.044715, %v10822_v52  ;;  %v1917_v19 = vpop.f32.mrb[127].mxu0  ;;  %v8431_v3 = vpop.eup %8430  ;;  %8434 = vtanh.f32 %v4281_v25  ;;  %v10841_v46 = vadd.f32 %v1915_v12, %v10401_v48  ;;  %v10844_v59 = vmul.f32 %v3354_v39, %v10770_v0 }
 0x229   :  { %v8433_v35 = vpop.eup %8432  ;;  %v4922_v29 = vadd.f32 1.0, %v8431_v3  ;;  %8436 = vtanh.f32 %v4285_v42  ;;  %v3654_v36 = vmul.f32 %v3334_v27, %v10666_v44  ;;  %v10849_v25 = vmul.f32 %v3357_v56, %v10774_v4 }
 0x22a   :  { %2293 = vmatmul.mubr.bf16.gmra.mrb[232].mxu0 %v16523_v61  ;;  %v4926_v5 = vadd.f32 1.0, %v8433_v35  ;;  %v3358_v31 = vmul.f32 %v3038_v8, %v10787_v63  ;;  %v3970_v11 = vadd.f32 %v3650_v28, %v10648_v62  ;;  %v3361_v12 = vmul.f32 %v3041_v47, %v10822_v52 }
 0x22b   :  { %2302 = vmatprep.mubr.bf16.mxu0 %v16462_v53  ;;  %v3042_v39 = vmul.f32 0.044715, %v10832_v6  ;;  %v10857_v42 = vmul.f32 0.5, %v10666_v44  ;;  %v3974_v27 = vadd.f32 %v3654_v36, %v10666_v44  ;;  %v5242_v61 = vmul.f32 %v4922_v29, %v10714_v23 }
 0x22c   :  { %v5246_v56 = vmul.f32 %v4926_v5, %v10741_v22  ;;  %v4290_v3 = vmul.f32 0.7978846, %v3970_v11  ;;  %v3045_v8 = vmul.f32 0.044715, %v10841_v46  ;;  %v3329_v28 = vmul.f32 %v10653_v43, %v10627_v33 }
 0x22d   :  { %v1921_v35 = vpop.f32.mrb[128].mxu0  ;;  %v4294_v62 = vmul.f32 0.7978846, %v3974_v27  ;;  %v3333_v47 = vmul.f32 %v10683_v51, %v10661_v24  ;;  %v10868_v18 = vadd.f32 %v1917_v19, %v10405_v45  ;;  %v10871_v23 = vmul.f32 %v3358_v31, %v10787_v63 }
 0x22e   :  { %v1923_v49 = vpop.f32.mrb[129].mxu0  ;;  %v5538_v44 = vpack.c.bf16 %v5246_v56, %v5242_v61  ;;  %8438 = vtanh.f32 %v4290_v3  ;;  %v10874_v22 = vadd.f32 %v1921_v35, %v10401_v48  ;;  %v3362_v36 = vmul.f32 %v3042_v39, %v10832_v6  ;;  %v16524_v35 = vld [vmem:[#allocation10_spill] sm:$0xff] }
 0x22f   :  { %v1925_v29 = vpop.f32.mrb[130].mxu0  ;;  %8440 = vtanh.f32 %v4294_v62  ;;  %v3649_v43 = vmul.f32 %v3329_v28, %v10627_v33  ;;  %v3653_v51 = vmul.f32 %v3333_v47, %v10661_v24  ;;  %v10880_v19 = vmul.f32 %v3361_v12, %v10822_v52 }
 0x230   :  { %v1927_v5 = vpop.f32.mrb[131].mxu0  ;;  %6161 = vmatprep.mubr.bf16.mxu1 %v5538_v44  ;;  %v3365_v31 = vmul.f32 %v3045_v8, %v10841_v46  ;;  %v10884_v11 = vmul.f32 0.5, %v10627_v33  ;;  %v3046_v27 = vmul.f32 0.044715, %v10868_v18  ;;  %v10890_v56 = vadd.f32 %v1923_v49, %v10405_v45 }
 0x231   :  { %v3969_v61 = vadd.f32 %v3649_v43, %v10627_v33  ;;  %v3973_v39 = vadd.f32 %v3653_v51, %v10661_v24  ;;  %v3978_v3 = vadd.f32 %v10751_v1, %v10679_v55  ;;  %v10896_v8 = vmul.f32 0.5, %v10661_v24 }
 0x232   :  { %2303 = vmatmul.mubr.bf16.gmra.mrb[236].mxu0 %v16524_v35  ;;  %v8435_v12 = vpop.eup %8434  ;;  %v3049_v62 = vmul.f32 0.044715, %v10874_v22  ;;  %v3982_v28 = vadd.f32 %v10760_v30, %v10693_v15  ;;  %v10902_v33 = vadd.f32 %v1925_v29, %v10401_v48  ;;  %v10906_v1 = vmul.f32 %v3362_v36, %v10832_v6 }
 0x233   :  { %2312 = vmatprep.mubr.bf16.mxu0 %v16462_v53  ;;  %v8437_v49 = vpop.eup %8436  ;;  %v4921_v47 = vadd.f32 1.0, %v8435_v12  ;;  %v4289_v44 = vmul.f32 0.7978846, %v3969_v61  ;;  %v4293_v43 = vmul.f32 0.7978846, %v3973_v39  ;;  %v10909_v24 = vmul.f32 %v3365_v31, %v10841_v46 }
 0x234   :  { %v4925_v51 = vadd.f32 1.0, %v8437_v49  ;;  %v10912_v35 = vmul.f32 0.5, %v10679_v55  ;;  %v4298_v30 = vmul.f32 0.7978846, %v3978_v3  ;;  %v3366_v29 = vmul.f32 %v3046_v27, %v10868_v18 }
 0x235   :  { %v1931_v50 = vpop.f32.mrb[132].mxu0  ;;  %8442 = vtanh.f32 %v4289_v44  ;;  %v3050_v2 = vmul.f32 0.044715, %v10890_v56  ;;  %v4302_v12 = vmul.f32 0.7978846, %v3982_v28  ;;  %v5241_v36 = vmul.f32 %v4921_v47, %v10803_v41 }
 0x236   :  { %v1933_v60 = vpop.f32.mrb[133].mxu0  ;;  %v5245_v61 = vmul.f32 %v4925_v51, %v10818_v9  ;;  %8444 = vtanh.f32 %v4293_v43  ;;  %v3053_v31 = vmul.f32 0.044715, %v10902_v33  ;;  %v3369_v55 = vmul.f32 %v3049_v62, %v10874_v22 }
 0x237   :  { %v1935_v39 = vpop.f32.mrb[134].mxu0  ;;  %v10921_v3 = vmul.f32 0.5, %v10693_v15  ;;  %8446 = vtanh.f32 %v4298_v30  ;;  %v3977_v27 = vadd.f32 %v10744_v38, %v10676_v16  ;;  %v3981_v41 = vadd.f32 %v10757_v7, %v10686_v10  ;;  %v16525_v38 = vld [vmem:[#allocation11_spill] sm:$0xff] }
 0x238   :  { %v10925_v49 = vpop.f32.mrb[135].mxu0  ;;  %v8439_v28 = vpop.eup %8438  ;;  %v5537_v44 = vpack.c.bf16 %v5245_v61, %v5241_v36  ;;  %8448 = vtanh.f32 %v4302_v12  ;;  %v10930_v9 = vadd.f32 %v1927_v5, %v10405_v45  ;;  %v3370_v15 = vmul.f32 %v3050_v2, %v10890_v56 }
 0x239   :  { %v8441_v47 = vpop.eup %8440  ;;  %v4930_v62 = vadd.f32 1.0, %v8439_v28  ;;  %v4297_v43 = vmul.f32 0.7978846, %v3977_v27  ;;  %v10934_v51 = vadd.f32 %v1931_v50, %v10401_v48  ;;  %v10938_v12 = vmul.f32 %v3366_v29, %v10868_v18 }
 0x23a   :  { %2313 = vmatmul.mubr.bf16.gmra.mrb[240].mxu0 %v16525_v38  ;;  %6162 = vmatmul.mubr.bf16.gmra.mrb[56].mxu1 %v5537_v44  ;;  %v4934_v30 = vadd.f32 1.0, %v8441_v47  ;;  %v3373_v7 = vmul.f32 %v3053_v31, %v10902_v33  ;;  %v4301_v36 = vmul.f32 0.7978846, %v3981_v41  ;;  %v10943_v5 = vmul.f32 %v3369_v55, %v10874_v22 }
 0x23b   :  { %2322 = vmatprep.mubr.bf16.mxu0 %v16462_v53  ;;  %8450 = vtanh.f32 %v4297_v43  ;;  %v3054_v2 = vmul.f32 0.044715, %v10930_v9  ;;  %v10947_v50 = vadd.f32 %v1933_v60, %v10405_v45  ;;  %v5250_v61 = vmul.f32 %v4930_v62, %v10837_v57 }
 0x23c   :  { %v5254_v27 = vmul.f32 %v4934_v30, %v10857_v42  ;;  %8452 = vtanh.f32 %v4301_v36  ;;  %v3057_v29 = vmul.f32 0.044715, %v10934_v51  ;;  %v10953_v28 = vmul.f32 %v3370_v15, %v10890_v56 }
 0x23d   :  { %v1941_v31 = vpop.f32.mrb[136].mxu0  ;;  %v10956_v55 = vmul.f32 0.5, %v10676_v16  ;;  %v3986_v44 = vadd.f32 %v10796_v13, %v10723_v54  ;;  %v3990_v60 = vadd.f32 %v10806_v20, %v10735_v26  ;;  %v10963_v42 = vmul.f32 %v3373_v7, %v10902_v33 }
 0x23e   :  { %v1943_v41 = vpop.f32.mrb[137].mxu0  ;;  %v5542_v57 = vpack.c.bf16 %v5254_v27, %v5250_v61  ;;  %v10966_v47 = vmul.f32 0.5, %v10686_v10  ;;  %v10969_v62 = vadd.f32 %v1935_v39, %v10401_v48  ;;  %v3374_v43 = vmul.f32 %v3054_v2, %v10930_v9 }
 0x23f   :  { %16526 = vst [vmem:[#allocation24_spill] sm:$0xff] %v10963_v42  ;;  %v10971_v15 = vpop.f32.mrb[138].mxu0  ;;  %v8443_v16 = vpop.eup %8442  ;;  %v10975_v13 = vmul.f32 0.5, %v10723_v54  ;;  %v4306_v20 = vmul.f32 0.7978846, %v3986_v44  ;;  %v3377_v10 = vmul.f32 %v3057_v29, %v10934_v51  ;;  %v10982_v61 = vmul.f32 0.5, %v10735_v26 }
 0x240   :  { %16527 = vst [vmem:[#allocation31_spill] sm:$0xff] %v10969_v62  ;;  %v4310_v38 = vmul.f32 0.7978846, %v3990_v60  ;;  %v10977_v30 = vpop.f32.mrb[139].mxu0  ;;  %v8445_v7 = vpop.eup %8444  ;;  %6171 = vmatprep.mubr.bf16.mxu1 %v5542_v57  ;;  %v4929_v36 = vadd.f32 1.0, %v8443_v16  ;;  %v3985_v54 = vadd.f32 %v10782_v14, %v10718_v32  ;;  %v3989_v2 = vadd.f32 %v10799_v37, %v10730_v58  ;;  %v16528_v44 = vld [vmem:[#allocation12_spill] sm:$0xff] }
 0x241   :  { %v3058_v39 = vmul.f32 0.044715, %v10947_v50  ;;  %v8447_v27 = vpop.eup %8446  ;;  %v4933_v17 = vadd.f32 1.0, %v8445_v7  ;;  %8454 = vtanh.f32 %v4306_v20  ;;  %v3061_v16 = vmul.f32 0.044715, %v10969_v62 }
 0x242   :  { %2323 = vmatmul.mubr.bf16.gmra.mrb[244].mxu0 %v16528_v44  ;;  %v8449_v60 = vpop.eup %8448  ;;  %v5249_v57 = vmul.f32 %v4929_v36, %v10884_v11  ;;  %v4938_v29 = vadd.f32 1.0, %v8447_v27  ;;  %8456 = vtanh.f32 %v4310_v38  ;;  %v4305_v7 = vmul.f32 0.7978846, %v3985_v54 }
 0x243   :  { %2332 = vmatprep.mubr.bf16.mxu0 %v16462_v53  ;;  %v5253_v26 = vmul.f32 %v4933_v17, %v10896_v8  ;;  %v4942_v20 = vadd.f32 1.0, %v8449_v60  ;;  %v4309_v40 = vmul.f32 0.7978846, %v3989_v2  ;;  %v10994_v14 = vmul.f32 %v3374_v43, %v10930_v9  ;;  %v8195_v17 = vld [vmem:[%s16050_s5 + $0x170] ss:$8 sps:$4 sm:$0xff]  }
 0x244   :  { %v3378_v37 = vmul.f32 %v3058_v39, %v10947_v50  ;;  %v10999_v44 = vadd.f32 %v10925_v49, %v10405_v45  ;;  %v11002_v11 = vadd.f32 %v1941_v31, %v10401_v48  ;;  %v8197_v8 = vld [vmem:[%s16050_s5 + $0x174] ss:$8 sps:$4 sm:$0xff]   ;;  %v5258_v39 = vmul.f32 %v4938_v29, %v10912_v35 }
 0x245   :  { %v11004_v38 = vpop.f32.mrb[140].mxu0  ;;  %v8451_v43 = vpop.eup %8450  ;;  %v5541_v36 = vpack.c.bf16 %v5253_v26, %v5249_v57  ;;  %v5262_v49 = vmul.f32 %v4942_v20, %v10921_v3  ;;  %8458 = vtanh.f32 %v4305_v7  ;;  %v3381_v2 = vmul.f32 %v3061_v16, %v10969_v62  ;;  %6516 = vmatprep.subr.bf16.mxu1 %v8197_v8 }
 0x246   :  { %16529 = vst [vmem:[#allocation4_spill] sm:$0xff] %v11002_v11  ;;  %v11014_v27 = vpop.f32.mrb[141].mxu0  ;;  %v8453_v31 = vpop.eup %8452  ;;  %v4937_v54 = vadd.f32 1.0, %v8451_v43  ;;  %8460 = vtanh.f32 %v4309_v40  ;;  %v11018_v60 = vadd.f32 %v1943_v41, %v10405_v45  ;;  %v11023_v35 = vmul.f32 %v3377_v10, %v10934_v51  ;;  %6517 = vmatpush1.bf16.msra.mxu1 %v8195_v17 }
 0x247   :  { %v11020_v42 = vpop.f32.mrb[142].mxu0  ;;  %6172 = vmatmul.mubr.bf16.gmra.mrb[60].mxu1 %v5541_v36  ;;  %v5546_v57 = vpack.c.bf16 %v5262_v49, %v5258_v39  ;;  %v4941_v26 = vadd.f32 1.0, %v8453_v31  ;;  %v3062_v3 = vmul.f32 0.044715, %v10999_v44  ;;  %v11029_v20 = vmul.f32 %v3378_v37, %v10947_v50 }
 0x248   :  { %v11026_v29 = vpop.f32.mrb[143].mxu0  ;;  %v2705_v40 = vmul.f32 0.5, %v10718_v32  ;;  %v2709_v41 = vmul.f32 0.5, %v10730_v58  ;;  %v3065_v16 = vmul.f32 0.044715, %v11002_v11  ;;  %v5257_v7 = vmul.f32 %v4937_v54, %v10956_v55  ;;  %v16532_v55 = vld [vmem:[#allocation13_spill] sm:$0xff] }
 0x249   :  { %6181 = vmatprep.mubr.bf16.mxu1 %v5546_v57  ;;  %v5261_v10 = vmul.f32 %v4941_v26, %v10966_v47  ;;  %v3994_v8 = vadd.f32 %v10844_v59, %v10770_v0  ;;  %v3998_v43 = vadd.f32 %v10871_v23, %v10787_v63  ;;  %v11041_v37 = vmul.f32 %v3381_v2, %v10969_v62 }
 0x24a   :  { %v3066_v32 = vmul.f32 0.044715, %v11018_v60  ;;  %v11045_v58 = vmul.f32 0.5, %v10770_v0  ;;  %v11049_v17 = vadd.f32 %v10971_v15, %v10401_v48  ;;  %2333 = vmatmul.mubr.bf16.gmra.mrb[248].mxu0 %v16532_v55  ;;  %v3382_v59 = vmul.f32 %v3062_v3, %v10999_v44 }
 0x24b   :  { %16530 = vst [vmem:[#allocation3_spill] sm:$0xff] %v11041_v37  ;;  %v8455_v47 = vpop.eup %8454  ;;  %v5545_v36 = vpack.c.bf16 %v5261_v10, %v5257_v7  ;;  %v4314_v39 = vmul.f32 0.7978846, %v3994_v8  ;;  %v4318_v23 = vmul.f32 0.7978846, %v3998_v43  ;;  %2342 = vmatprep.mubr.bf16.mxu0 %v16462_v53  ;;  %v3385_v54 = vmul.f32 %v3065_v16, %v11002_v11 }
 0x24c   :  { %16531 = vst [vmem:[#allocation5_spill] sm:$0xff] %v11049_v17  ;;  %v8457_v49 = vpop.eup %8456  ;;  %v4946_v31 = vadd.f32 1.0, %v8455_v47  ;;  %v11056_v0 = vmul.f32 0.5, %v10787_v63  ;;  %v3993_v15 = vadd.f32 %v10828_v21, %v10765_v34  ;;  %v3997_v3 = vadd.f32 %v10849_v25, %v10774_v4 }
 0x24d   :  { %v11060_v2 = vpop.f32.mrb[144].mxu0  ;;  %v11062_v57 = vpop.f32.mrb[0].mxu1  ;;  %v4950_v26 = vadd.f32 1.0, %v8457_v49  ;;  %8462 = vtanh.f32 %v4314_v39  ;;  %v11068_v7 = vadd.f32 %v10977_v30, %v10405_v45  ;;  %v3386_v10 = vmul.f32 %v3066_v32, %v11018_v60 }
 0x24e   :  { %v11070_v16 = vpop.f32.mrb[145].mxu0  ;;  %v11072_v63 = vpop.f32.mrb[1].mxu1  ;;  %8464 = vtanh.f32 %v4318_v23  ;;  %v3069_v21 = vmul.f32 0.044715, %v11049_v17  ;;  %v4313_v8 = vmul.f32 0.7978846, %v3993_v15  ;;  %v5266_v25 = vmul.f32 %v4946_v31, %v10975_v13 }
 0x24f   :  { %16533 = vst [vmem:[#allocation6_spill] sm:$0xff] %v11068_v7  ;;  %v11076_v43 = vpop.f32.mrb[146].mxu0  ;;  %v11078_v55 = vpop.f32.mrb[2].mxu1  ;;  %6182 = vmatmul.mubr.bf16.gmra.mrb[64].mxu1 %v5545_v36  ;;  %v5270_v30 = vmul.f32 %v4950_v26, %v10982_v61  ;;  %v4317_v39 = vmul.f32 0.7978846, %v3997_v3  ;;  %v11089_v15 = vadd.f32 %v11004_v38, %v10401_v48  ;;  %v11093_v36 = vadd.f32 %v11014_v27, %v10405_v45 }
 0x250   :  { %v8459_v47 = vpop.eup %8458  ;;  %v3070_v49 = vmul.f32 0.044715, %v11068_v7  ;;  %v11083_v37 = vpop.f32.mrb[147].mxu0  ;;  %8466 = vtanh.f32 %v4313_v8  ;;  %v11096_v31 = vmul.f32 %v3382_v59, %v10999_v44  ;;  %v11099_v26 = vmul.f32 %v3385_v54, %v11002_v11 }
 0x251   :  { %v11085_v32 = vpop.f32.mrb[3].mxu1  ;;  %v8461_v23 = vpop.eup %8460  ;;  %v4945_v62 = vadd.f32 1.0, %v8459_v47  ;;  %16534 = vst [vmem:[#allocation7_spill] sm:$0xff] %v11089_v15  ;;  %16535 = vst [vmem:[#allocation8_spill] sm:$0xff] %v11093_v36  ;;  %v5550_v13 = vpack.c.bf16 %v5270_v30, %v5266_v25  ;;  %8468 = vtanh.f32 %v4317_v39  ;;  %v11102_v3 = vmul.f32 %v3386_v10, %v11018_v60  ;;  %v16538_v47 = vld [vmem:[#allocation14_spill] sm:$0xff] }
 0x252   :  { %v4949_v61 = vadd.f32 1.0, %v8461_v23  ;;  %16536 = vst [vmem:[#allocation9_spill] sm:$0xff] %v11099_v26  ;;  %v3389_v8 = vmul.f32 %v3069_v21, %v11049_v17  ;;  %v3390_v38 = vmul.f32 %v3070_v49, %v11068_v7  ;;  %2343 = vmatmul.mubr.bf16.gmra.mrb[252].mxu0 %v16538_v47  ;;  %v2713_v30 = vmul.f32 0.5, %v10765_v34 }
 0x253   :  { %16537 = vst [vmem:[#allocation10_spill] sm:$0xff] %v11102_v3  ;;  %6191 = vmatprep.mubr.bf16.mxu1 %v5550_v13  ;;  %v5265_v27 = vmul.f32 %v4945_v62, %v2705_v40  ;;  %v4002_v59 = vadd.f32 %v10906_v1, %v10832_v6  ;;  %2352 = vmatprep.mubr.bf16.mxu0 %v16462_v53  ;;  %v3073_v54 = vmul.f32 0.044715, %v11089_v15  ;;  %v3074_v10 = vmul.f32 0.044715, %v11093_v36 }
 0x254   :  { %v5269_v25 = vmul.f32 %v4949_v61, %v2709_v41  ;;  %v4006_v21 = vadd.f32 %v10938_v12, %v10868_v18  ;;  %v11117_v39 = vadd.f32 %v11020_v42, %v10401_v48  ;;  %v2717_v1 = vmul.f32 0.5, %v10774_v4 }
 0x255   :  { %v11119_v62 = vpop.f32.mrb[148].mxu0  ;;  %v11121_v40 = vpop.f32.mrb[4].mxu1  ;;  %v11125_v41 = vmul.f32 0.5, %v10832_v6  ;;  %v4322_v49 = vmul.f32 0.7978846, %v4002_v59  ;;  %v11132_v12 = vmul.f32 %v3389_v8, %v11049_v17  ;;  %v11135_v42 = vmul.f32 %v3390_v38, %v11068_v7 }
 0x256   :  { %16539 = vst [vmem:[#allocation11_spill] sm:$0xff] %v11117_v39  ;;  %v5549_v34 = vpack.c.bf16 %v5269_v25, %v5265_v27  ;;  %v11127_v23 = vpop.f32.mrb[149].mxu0  ;;  %v11129_v13 = vpop.f32.mrb[5].mxu1  ;;  %v4326_v61 = vmul.f32 0.7978846, %v4006_v21  ;;  %v4001_v25 = vadd.f32 %v10880_v19, %v10822_v52  ;;  %v4005_v8 = vadd.f32 %v10909_v24, %v10841_v46 }
 0x257   :  { %16540 = vst [vmem:[#allocation12_spill] sm:$0xff] %v11132_v12  ;;  %16541 = vst [vmem:[#allocation13_spill] sm:$0xff] %v11135_v42  ;;  %v3077_v47 = vmul.f32 0.044715, %v11117_v39  ;;  %v11138_v27 = vpop.f32.mrb[150].mxu0  ;;  %v11140_v4 = vpop.f32.mrb[6].mxu1  ;;  %8470 = vtanh.f32 %v4322_v49  ;;  %v11148_v38 = vadd.f32 %v11026_v29, %v10405_v45  ;;  %v3393_v26 = vmul.f32 %v3073_v54, %v11089_v15 }
 0x258   :  { %v8463_v6 = vpop.eup %8462  ;;  %6192 = vmatmul.mubr.bf16.gmra.mrb[68].mxu1 %v5549_v34  ;;  %v11150_v59 = vpop.f32.mrb[151].mxu0  ;;  %8472 = vtanh.f32 %v4326_v61  ;;  %v11157_v34 = vadd.f32 %v11060_v2, %v10401_v48  ;;  %v4321_v49 = vmul.f32 0.7978846, %v4001_v25  ;;  %v4325_v24 = vmul.f32 0.7978846, %v4005_v8  ;;  %v16544_v61 = vld [vmem:[#allocation15_spill] sm:$0xff] }
 0x259   :  { %16542 = vst [vmem:[#allocation14_spill] sm:$0xff] %v11148_v38  ;;  %v11152_v21 = vpop.f32.mrb[7].mxu1  ;;  %v8465_v12 = vpop.eup %8464  ;;  %v4954_v17 = vadd.f32 1.0, %v8463_v6  ;;  %v11161_v29 = vadd.f32 %v11070_v16, %v10405_v45  ;;  %v3394_v7 = vmul.f32 %v3074_v10, %v11093_v36  ;;  %v3397_v6 = vmul.f32 %v3077_v47, %v11117_v39 }
 0x25a   :  { %16543 = vst [vmem:[#allocation46_spill] sm:$0xff] %v11157_v34  ;;  %v4958_v19 = vadd.f32 1.0, %v8465_v12  ;;  %v8467_v11 = vpop.eup %8466  ;;  %v3078_v54 = vmul.f32 0.044715, %v11148_v38  ;;  %2353 = vmatmul.mubr.bf16.gmra.mrb[0].mxu0 %v16544_v61  ;;  %8474 = vtanh.f32 %v4321_v49  ;;  %v3081_v8 = vmul.f32 0.044715, %v11157_v34 }
 0x25b   :  { %v5274_v42 = vmul.f32 %v4954_v17, %v11045_v58  ;;  %v8469_v2 = vpop.eup %8468  ;;  %v4953_v25 = vadd.f32 1.0, %v8467_v11  ;;  %2362 = vmatprep.mubr.bf16.mxu0 %v16462_v53  ;;  %v2726_v58 = vmul.f32 0.5, %v10868_v18  ;;  %8476 = vtanh.f32 %v4325_v24 }
 0x25c   :  { %v5278_v12 = vmul.f32 %v4958_v19, %v11056_v0  ;;  %v4957_v16 = vadd.f32 1.0, %v8469_v2  ;;  %v3082_v17 = vmul.f32 0.044715, %v11161_v29  ;;  %v11178_v3 = vmul.f32 %v3393_v26, %v11089_v15 }
 0x25d   :  { %v11173_v10 = vpop.f32.mrb[152].mxu0  ;;  %v11175_v47 = vpop.f32.mrb[8].mxu1  ;;  %v11181_v11 = vmul.f32 0.5, %v10822_v52  ;;  %v11184_v0 = vmul.f32 0.5, %v10841_v46  ;;  %v5273_v49 = vmul.f32 %v4953_v25, %v2713_v30  ;;  %v11191_v2 = vmul.f32 %v3394_v7, %v11093_v36 }
 0x25e   :  { %v5554_v61 = vpack.c.bf16 %v5278_v12, %v5274_v42  ;;  %16545 = vst [vmem:[#allocation15_spill] sm:$0xff] %v11178_v3  ;;  %v11186_v19 = vpop.f32.mrb[153].mxu0  ;;  %v11188_v18 = vpop.f32.mrb[9].mxu1  ;;  %v5277_v24 = vmul.f32 %v4957_v16, %v2717_v1  ;;  %v11194_v42 = vmul.f32 %v3397_v6, %v11117_v39  ;;  %v3398_v52 = vmul.f32 %v3078_v54, %v11148_v38 }
 0x25f   :  { %16546 = vst [vmem:[#allocation47_spill] sm:$0xff] %v11191_v2  ;;  %v11196_v26 = vpop.f32.mrb[154].mxu0  ;;  %v11198_v12 = vpop.f32.mrb[10].mxu1  ;;  %v4010_v46 = vadd.f32 %v10953_v28, %v10890_v56  ;;  %v4014_v30 = vadd.f32 %v10994_v14, %v10930_v9  ;;  %v11207_v7 = vadd.f32 %v11076_v43, %v10401_v48  ;;  %v3401_v16 = vmul.f32 %v3081_v8, %v11157_v34  ;;  %v16549_v43 = vld [vmem:[#allocation24_spill] sm:$0xff] }
 0x260   :  { %16547 = vst [vmem:[#allocation48_spill] sm:$0xff] %v11194_v42  ;;  %6201 = vmatprep.mubr.bf16.mxu1 %v5554_v61  ;;  %v11209_v1 = vpop.f32.mrb[155].mxu0  ;;  %v11211_v6 = vpop.f32.mrb[11].mxu1  ;;  %v5553_v25 = vpack.c.bf16 %v5277_v24, %v5273_v49  ;;  %v11215_v61 = vmul.f32 %v3082_v17, %v11161_v29  ;;  %v4009_v28 = vadd.f32 %v10943_v5, %v10874_v22  ;;  %v16551_v5 = vld [vmem:[#allocation16_spill] sm:$0xff] }
 0x261   :  { %16548 = vst [vmem:[#allocation49_spill] sm:$0xff] %v11207_v7  ;;  %v8471_v54 = vpop.eup %8470  ;;  %v4330_v42 = vmul.f32 0.7978846, %v4010_v46  ;;  %v4334_v14 = vmul.f32 0.7978846, %v4014_v30  ;;  %v4013_v3 = vadd.f32 %v16549_v43, %v10902_v33  ;;  %v11224_v8 = vadd.f32 %v11083_v37, %v10405_v45 }
 0x262   :  { %v3085_v39 = vmul.f32 0.044715, %v11207_v7  ;;  %v8473_v15 = vpop.eup %8472  ;;  %6202 = vmatmul.mubr.bf16.gmra.mrb[72].mxu1 %v5553_v25  ;;  %v4962_v2 = vadd.f32 1.0, %v8471_v54  ;;  %v4329_v49 = vmul.f32 0.7978846, %v4009_v28  ;;  %v11228_v17 = vadd.f32 %v11062_v57, %v10401_v48  ;;  %2363 = vmatmul.mubr.bf16.gmra.mrb[4].mxu0 %v16551_v5 }
 0x263   :  { %v4966_v24 = vadd.f32 1.0, %v8473_v15  ;;  %v11232_v46 = vmul.f32 0.5, %v10890_v56  ;;  %8478 = vtanh.f32 %v4330_v42  ;;  %v4333_v30 = vmul.f32 0.7978846, %v4013_v3  ;;  %2372 = vmatprep.mubr.bf16.mxu0 %v16462_v53 }
 0x264   :  { %16550 = vst [vmem:[#allocation24_spill] sm:$0xff] %v11228_v17  ;;  %v11236_v25 = vmul.f32 %v3398_v52, %v11148_v38  ;;  %8480 = vtanh.f32 %v4334_v14  ;;  %v3086_v37 = vmul.f32 0.044715, %v11224_v8  ;;  %v3209_v28 = vmul.f32 0.044715, %v11228_v17  ;;  %v8475_v15 = vpop.eup %8474 }
 0x265   :  { %v11240_v57 = vpop.f32.mrb[156].mxu0  ;;  %v11242_v54 = vpop.f32.mrb[12].mxu1  ;;  %v5282_v56 = vmul.f32 %v4962_v2, %v11125_v41  ;;  %v5286_v43 = vmul.f32 %v4966_v24, %v2726_v58  ;;  %8482 = vtanh.f32 %v4329_v49  ;;  %v11247_v3 = vadd.f32 %v11072_v63, %v10405_v45 }
 0x266   :  { %16552 = vst [vmem:[#allocation16_spill] sm:$0xff] %v11236_v25  ;;  %v11249_v42 = vpop.f32.mrb[157].mxu0  ;;  %v11251_v52 = vpop.f32.mrb[13].mxu1  ;;  %v4961_v5 = vadd.f32 1.0, %v8475_v15  ;;  %v11254_v25 = vmul.f32 %v3401_v16, %v11157_v34  ;;  %v3405_v38 = vmul.f32 %v3085_v39, %v11207_v7  ;;  %8484 = vtanh.f32 %v4333_v30 }
 0x267   :  { %16553 = vst [vmem:[#allocation50_spill] sm:$0xff] %v11247_v3  ;;  %v8477_v14 = vpop.eup %8476  ;;  %v11257_v36 = vpop.f32.mrb[158].mxu0  ;;  %v5558_v58 = vpack.c.bf16 %v5286_v43, %v5282_v56  ;;  %v3210_v63 = vmul.f32 0.044715, %v11247_v3  ;;  %v11264_v49 = vadd.f32 %v11078_v55, %v10401_v48  ;;  %v3406_v39 = vmul.f32 %v3086_v37, %v11224_v8  ;;  %v8198_v43 = vld [vmem:[%s16050_s5 + $0x180] ss:$8 sps:$4 sm:$0xff]  }
 0x268   :  { %16554 = vst [vmem:[#allocation51_spill] sm:$0xff] %v11254_v25  ;;  %v11259_v41 = vpop.f32.mrb[14].mxu1  ;;  %v4965_v2 = vadd.f32 1.0, %v8477_v14  ;;  %v11266_v24 = vpop.f32.mrb[159].mxu0  ;;  %v5281_v16 = vmul.f32 %v4961_v5, %v11181_v11  ;;  %v3529_v30 = vmul.f32 %v3209_v28, %v11228_v17  ;;  %v11275_v56 = vadd.f32 %v11085_v32, %v10405_v45  ;;  %v8200_v55 = vld [vmem:[%s16050_s5 + $0x184] ss:$8 sps:$4 sm:$0xff]  }
 0x269   :  { %16555 = vst [vmem:[#allocation52_spill] sm:$0xff] %v11264_v49  ;;  %v11268_v15 = vpop.f32.mrb[15].mxu1  ;;  %6211 = vmatprep.mubr.bf16.mxu1 %v5558_v58  ;;  %v3530_v11 = vmul.f32 %v3210_v63, %v11247_v3  ;;  %v3213_v37 = vmul.f32 0.044715, %v11264_v49  ;;  %v11288_v28 = vadd.f32 %v11119_v62, %v10401_v48  ;;  %v11293_v5 = vadd.f32 %v11121_v40, %v10401_v48  ;;  %v16559_v58 = vld [vmem:[#allocation17_spill] sm:$0xff] }
 0x26a   :  { %16556 = vst [vmem:[#allocation53_spill] sm:$0xff] %v11275_v56  ;;  %v5285_v14 = vmul.f32 %v4965_v2, %v11184_v0  ;;  %v3214_v32 = vmul.f32 0.044715, %v11275_v56  ;;  %v11297_v25 = vadd.f32 %v11127_v23, %v10405_v45  ;;  %v11301_v0 = vadd.f32 %v11129_v13, %v10405_v45  ;;  %2373 = vmatmul.mubr.bf16.gmra.mrb[8].mxu0 %v16559_v58 }
 0x26b   :  { %16557 = vst [vmem:[#allocation54_spill] sm:$0xff] %v11293_v5  ;;  %6518 = vmatprep.subr.bf16.mxu1 %v8200_v55  ;;  %v2734_v62 = vmul.f32 0.5, %v10930_v9  ;;  %v3533_v63 = vmul.f32 %v3213_v37, %v11264_v49  ;;  %v3089_v34 = vmul.f32 0.044715, %v11288_v28  ;;  %2382 = vmatprep.mubr.bf16.mxu0 %v16462_v53  ;;  %v11310_v40 = vmul.f32 %v11215_v61, %v11161_v29 }
 0x26c   :  { %16558 = vst [vmem:[#allocation55_spill] sm:$0xff] %v11301_v0  ;;  %v5557_v2 = vpack.c.bf16 %v5285_v14, %v5281_v16  ;;  %6519 = vmatpush1.bf16.msra.mxu1 %v8198_v43  ;;  %v2729_v23 = vmul.f32 0.5, %v10874_v22  ;;  %v2733_v13 = vmul.f32 0.5, %v10902_v33  ;;  %v3217_v55 = vmul.f32 0.044715, %v11293_v5 }
 0x26d   :  { %16560 = vst [vmem:[#allocation17_spill] sm:$0xff] %v11310_v40  ;;  %v8479_v16 = vpop.eup %8478  ;;  %v11316_v9 = vmul.f32 %v3405_v38, %v11207_v7  ;;  %v11319_v14 = vmul.f32 %v3406_v39, %v11224_v8  ;;  %v11322_v43 = vmul.f32 %v3529_v30, %v11228_v17  ;;  %v3090_v61 = vmul.f32 0.044715, %v11297_v25  ;;  %v11325_v37 = vpop.f32.mrb[160].mxu0 }
 0x26e   :  { %6212 = vmatmul.mubr.bf16.gmra.mrb[76].mxu1 %v5557_v2  ;;  %v11327_v22 = vpop.f32.mrb[16].mxu1  ;;  %v8481_v33 = vpop.eup %8480  ;;  %v4970_v58 = vadd.f32 1.0, %v8479_v16  ;;  %v11330_v40 = vmul.f32 %v3530_v11, %v11247_v3  ;;  %v3534_v38 = vmul.f32 %v3214_v32, %v11275_v56  ;;  %v3218_v2 = vmul.f32 0.044715, %v11301_v0 }
 0x26f   :  { %16561 = vst [vmem:[#allocation56_spill] sm:$0xff] %v11316_v9  ;;  %16562 = vst [vmem:[#allocation57_spill] sm:$0xff] %v11322_v43  ;;  %v11334_v39 = vpop.f32.mrb[161].mxu0  ;;  %v11336_v9 = vpop.f32.mrb[17].mxu1  ;;  %v4974_v43 = vadd.f32 1.0, %v8481_v33  ;;  %v11339_v17 = vmul.f32 %v3533_v63, %v11264_v49  ;;  %v4018_v16 = vadd.f32 %v11029_v20, %v10947_v50  ;;  %v3537_v7 = vmul.f32 %v3217_v55, %v11293_v5 }
 0x270   :  { %16563 = vst [vmem:[#allocation58_spill] sm:$0xff] %v11327_v22  ;;  %16564 = vst [vmem:[#allocation59_spill] sm:$0xff] %v11330_v40  ;;  %v8483_v30 = vpop.eup %8482  ;;  %v3409_v22 = vmul.f32 %v3089_v34, %v11288_v28  ;;  %v11344_v11 = vpop.f32.mrb[162].mxu0  ;;  %v11353_v33 = vmul.f32 0.5, %v10999_v44  ;;  %v5290_v20 = vmul.f32 %v4970_v58, %v11232_v46  ;;  %v11387_v58 = vmul.f32 %v3534_v38, %v11275_v56  ;;  %v16591_v56 = vld [vmem:[#allocation4_spill] sm:$0xff] }
 0x271   :  { %16565 = vst [vmem:[#allocation60_spill] sm:$0xff] %v11336_v9  ;;  %16566 = vst [vmem:[#allocation61_spill] sm:$0xff] %v11339_v17  ;;  %v11346_v40 = vpop.f32.mrb[18].mxu1  ;;  %v8485_v32 = vpop.eup %8484  ;;  %v4969_v3 = vadd.f32 1.0, %v8483_v30  ;;  %v11350_v9 = vmul.f32 0.5, %v10947_v50  ;;  %v5294_v17 = vmul.f32 %v4974_v43, %v2734_v62  ;;  %v3410_v30 = vmul.f32 %v3090_v61, %v11297_v25 }
 0x272   :  { %16567 = vst [vmem:[#allocation62_spill] sm:$0xff] %v11344_v11  ;;  %16568 = vst [vmem:[#allocation63_spill] sm:$0xff] %v11346_v40  ;;  %v11355_v63 = vpop.f32.mrb[163].mxu0  ;;  %v11357_v34 = vpop.f32.mrb[19].mxu1  ;;  %v4973_v49 = vadd.f32 1.0, %v8485_v32  ;;  %v4022_v40 = vadd.f32 %v11096_v31, %v10999_v44  ;;  %v11365_v50 = vadd.f32 %v11138_v27, %v10401_v48  ;;  %v11369_v11 = vadd.f32 %v11140_v4, %v10401_v48 }
 0x273   :  { %16569 = vst [vmem:[#allocation64_spill] sm:$0xff] %v11355_v63  ;;  %16570 = vst [vmem:[#allocation65_spill] sm:$0xff] %v11357_v34  ;;  %v4338_v55 = vmul.f32 0.7978846, %v4018_v16  ;;  %v16572_v63 = vld [vmem:[#allocation18_spill] sm:$0xff]  ;;  %v5562_v34 = vpack.c.bf16 %v5294_v17, %v5290_v20  ;;  %v5289_v46 = vmul.f32 %v4969_v3, %v2729_v23  ;;  %v3538_v44 = vmul.f32 %v3218_v2, %v11301_v0  ;;  %v16573_v3 = vld [vmem:[#allocation31_spill] sm:$0xff] }
 0x274   :  { %16571 = vst [vmem:[#allocation66_spill] sm:$0xff] %v11369_v11  ;;  %2383 = vmatmul.mubr.bf16.gmra.mrb[12].mxu0 %v16572_v63  ;;  %v5293_v62 = vmul.f32 %v4973_v49, %v2733_v13  ;;  %v4342_v43 = vmul.f32 0.7978846, %v4022_v40  ;;  %v3093_v31 = vmul.f32 0.044715, %v11365_v50  ;;  %v4017_v17 = vadd.f32 %v11023_v35, %v10934_v51  ;;  %v16574_v49 = vld [vmem:[#allocation3_spill] sm:$0xff] }
 0x275   :  { %2392 = vmatprep.mubr.bf16.mxu0 %v16462_v53  ;;  %8486 = vtanh.f32 %v4338_v55  ;;  %v3221_v27 = vmul.f32 0.044715, %v11369_v11  ;;  %v11376_v61 = vpop.f32.mrb[164].mxu0  ;;  %6221 = vmatprep.mubr.bf16.mxu1 %v5562_v34  ;;  %v4021_v40 = vadd.f32 %v16574_v49, %v16573_v3  ;;  %v11382_v23 = vpop.f32.mrb[20].mxu1  ;;  %16575 = vst [vmem:[#allocation18_spill] sm:$0xff] %v11387_v58  ;;  %v11392_v16 = vadd.f32 %v11150_v59, %v10405_v45  ;;  %v16581_v49 = vld [vmem:[#allocation20_spill] sm:$0xff] }
 0x276   :  { %v5561_v4 = vpack.c.bf16 %v5293_v62, %v5289_v46  ;;  %8488 = vtanh.f32 %v4342_v43  ;;  %v11384_v13 = vpop.f32.mrb[165].mxu0  ;;  %v3413_v2 = vmul.f32 %v3093_v31, %v11365_v50  ;;  %v11396_v32 = vadd.f32 %v11152_v21, %v10405_v45  ;;  %v11398_v35 = vpop.f32.mrb[21].mxu1 }
 0x277   :  { %v11400_v63 = vpop.f32.mrb[166].mxu0  ;;  %v4337_v34 = vmul.f32 0.7978846, %v4017_v17  ;;  %v4341_v20 = vmul.f32 0.7978846, %v4021_v40  ;;  %v11404_v38 = vadd.f32 %v11173_v10, %v10401_v48  ;;  %v11408_v55 = vadd.f32 %v11186_v19, %v10405_v45  ;;  %v11410_v59 = vpop.f32.mrb[22].mxu1 }
 0x278   :  { %16576 = vst [vmem:[#allocation31_spill] sm:$0xff] %v11396_v32  ;;  %6222 = vmatmul.mubr.bf16.gmra.mrb[80].mxu1 %v5561_v4  ;;  %v11412_v46 = vpop.f32.mrb[167].mxu0  ;;  %v11415_v21 = vmul.f32 %v3409_v22, %v11288_v28  ;;  %v11418_v62 = vmul.f32 %v3537_v7, %v11293_v5  ;;  %v11421_v43 = vmul.f32 %v3410_v30, %v11297_v25  ;;  %v11424_v31 = vpop.f32.mrb[23].mxu1  ;;  %v3094_v4 = vmul.f32 0.044715, %v11392_v16  ;;  %v16583_v40 = vld [vmem:[#allocation10_spill] sm:$0xff] }
 0x279   :  { %16577 = vst [vmem:[#allocation3_spill] sm:$0xff] %v11412_v46  ;;  %v3541_v10 = vmul.f32 %v3221_v27, %v11369_v11  ;;  %16579 = vst [vmem:[#allocation68_spill] sm:$0xff] %v11424_v31  ;;  %v11427_v19 = vmul.f32 %v3538_v44, %v11301_v0  ;;  %8490 = vtanh.f32 %v4337_v34  ;;  %v3222_v17 = vmul.f32 0.044715, %v11396_v32  ;;  %v16585_v5 = vld [vmem:[#allocation13_spill] sm:$0xff] }
 0x27a   :  { %16578 = vst [vmem:[#allocation67_spill] sm:$0xff] %v11418_v62  ;;  %v11432_v22 = vmul.f32 0.5, %v10934_v51  ;;  %8492 = vtanh.f32 %v4341_v20  ;;  %v3097_v7 = vmul.f32 0.044715, %v11404_v38  ;;  %v3098_v30 = vmul.f32 0.044715, %v11408_v55 }
 0x27b   :  { %16580 = vst [vmem:[#allocation69_spill] sm:$0xff] %v11427_v19  ;;  %v11438_v27 = vmul.f32 %v3413_v2, %v11365_v50  ;;  %v11441_v44 = vmul.f32 0.5, %v16573_v3  ;;  %v4026_v34 = vadd.f32 %v16583_v40, %v11018_v60  ;;  %v16584_v62 = vld [vmem:[#allocation6_spill] sm:$0xff]  ;;  %v11449_v20 = vmul.f32 %v3541_v10, %v11369_v11  ;;  %v16593_v31 = vld [vmem:[#allocation5_spill] sm:$0xff] }
 0x27c   :  { %2393 = vmatmul.mubr.bf16.gmra.mrb[16].mxu0 %v16581_v49  ;;  %v4030_v51 = vadd.f32 %v16585_v5, %v16584_v62  ;;  %v11452_v19 = vmul.f32 0.5, %v11018_v60  ;;  %v11455_v2 = vmul.f32 0.5, %v16584_v62  ;;  %v11459_v3 = vadd.f32 %v11196_v26, %v10401_v48 }
 0x27d   :  { %16582 = vst [vmem:[#allocation20_spill] sm:$0xff] %v11438_v27  ;;  %2402 = vmatprep.mubr.bf16.mxu0 %v16462_v53  ;;  %16586 = vst [vmem:[#allocation10_spill] sm:$0xff] %v11449_v20  ;;  %v11461_v49 = vpop.f32.mrb[168].mxu0  ;;  %v11463_v40 = vpop.f32.mrb[24].mxu1  ;;  %v3414_v5 = vmul.f32 %v3094_v4, %v11392_v16  ;;  %v3542_v0 = vmul.f32 %v3222_v17, %v11396_v32  ;;  %v4346_v10 = vmul.f32 0.7978846, %v4026_v34 }
 0x27e   :  { %16587 = vst [vmem:[#allocation6_spill] sm:$0xff] %v11461_v49  ;;  %16588 = vst [vmem:[#allocation13_spill] sm:$0xff] %v11463_v40  ;;  %v4350_v20 = vmul.f32 0.7978846, %v4030_v51  ;;  %v11467_v11 = vpop.f32.mrb[169].mxu0  ;;  %v11469_v60 = vpop.f32.mrb[25].mxu1  ;;  %v11472_v58 = vmul.f32 %v3097_v7, %v11404_v38  ;;  %v11475_v26 = vmul.f32 %v3098_v30, %v11408_v55  ;;  %v11487_v7 = vadd.f32 %v11209_v1, %v10405_v45 }
 0x27f   :  { %16589 = vst [vmem:[#allocation70_spill] sm:$0xff] %v11467_v11  ;;  %16590 = vst [vmem:[#allocation71_spill] sm:$0xff] %v11469_v60  ;;  %v8487_v62 = vpop.eup %8486  ;;  %v16592_v49 = vld [vmem:[#allocation9_spill] sm:$0xff]  ;;  %v16594_v4 = vld [vmem:[#allocation12_spill] sm:$0xff]  ;;  %v11481_v17 = vpop.f32.mrb[170].mxu0  ;;  %8494 = vtanh.f32 %v4346_v10  ;;  %v11491_v30 = vadd.f32 %v11175_v47, %v10401_v48  ;;  %v11500_v10 = vmul.f32 %v3414_v5, %v11392_v16  ;;  %v11517_v5 = vmul.f32 %v3542_v0, %v11396_v32 }
 0x280   :  { %v4025_v40 = vadd.f32 %v16592_v49, %v16591_v56  ;;  %v4029_v46 = vadd.f32 %v16594_v4, %v16593_v31  ;;  %16595 = vst [vmem:[#allocation4_spill] sm:$0xff] %v11481_v17  ;;  %v11483_v34 = vpop.f32.mrb[26].mxu1  ;;  %v8489_v51 = vpop.eup %8488  ;;  %v4978_v11 = vadd.f32 1.0, %v8487_v62  ;;  %8496 = vtanh.f32 %v4350_v20  ;;  %v8201_v47 = vld [vmem:[%s16050_s5 + $0x190] ss:$8 sps:$4 sm:$0xff]  }
 0x281   :  { %16596 = vst [vmem:[#allocation9_spill] sm:$0xff] %v11483_v34  ;;  %16597 = vst [vmem:[#allocation5_spill] sm:$0xff] %v11491_v30  ;;  %v11493_v60 = vpop.f32.mrb[171].mxu0  ;;  %v11495_v49 = vpop.f32.mrb[27].mxu1  ;;  %v4982_v4 = vadd.f32 1.0, %v8489_v51  ;;  %v11520_v51 = vmul.f32 0.5, %v16591_v56 }
 0x282   :  { %16598 = vst [vmem:[#allocation12_spill] sm:$0xff] %v11493_v60  ;;  %16599 = vst [vmem:[#allocation72_spill] sm:$0xff] %v11495_v49  ;;  %v3101_v17 = vmul.f32 0.044715, %v11459_v3  ;;  %v4345_v34 = vmul.f32 0.7978846, %v4025_v40  ;;  %v5298_v62 = vmul.f32 %v4978_v11, %v11350_v9  ;;  %v11510_v40 = vadd.f32 %v11188_v18, %v10405_v45 }
 0x283   :  { %v4349_v1 = vmul.f32 0.7978846, %v4029_v46  ;;  %v3102_v27 = vmul.f32 0.044715, %v11487_v7  ;;  %v5302_v60 = vmul.f32 %v4982_v4, %v11353_v33  ;;  %v3225_v20 = vmul.f32 0.044715, %v11491_v30  ;;  %v8491_v46 = vpop.eup %8490 }
 0x284   :  { %8498 = vtanh.f32 %v4345_v34  ;;  %16600 = vst [vmem:[#allocation73_spill] sm:$0xff] %v11510_v40  ;;  %v16601_v9 = vld [vmem:[#allocation25_spill] sm:$0xff]  ;;  %v11524_v33 = vadd.f32 %v11198_v12, %v10401_v48  ;;  %v8493_v18 = vpop.eup %8492  ;;  %v4977_v4 = vadd.f32 1.0, %v8491_v46  ;;  %v11530_v49 = vadd.f32 %v11211_v6, %v10405_v45 }
 0x285   :  { %2403 = vmatmul.mubr.bf16.gmra.mrb[20].mxu0 %v16601_v9  ;;  %v8203_v11 = vld [vmem:[%s16050_s5 + $0x194] ss:$8 sps:$4 sm:$0xff]   ;;  %16602 = vst [vmem:[#allocation25_spill] sm:$0xff] %v11517_v5  ;;  %8500 = vtanh.f32 %v4349_v1  ;;  %v5566_v34 = vpack.c.bf16 %v5302_v60, %v5298_v62  ;;  %v3226_v9 = vmul.f32 0.044715, %v11510_v40  ;;  %v11532_v0 = vpop.f32.mrb[172].mxu0  ;;  %v3421_v12 = vmul.f32 %v3101_v17, %v11459_v3 }
 0x286   :  { %16603 = vst [vmem:[#allocation74_spill] sm:$0xff] %v11524_v33  ;;  %2412 = vmatprep.mubr.bf16.mxu0 %v16462_v53  ;;  %16604 = vst [vmem:[#allocation75_spill] sm:$0xff] %v11530_v49  ;;  %v11534_v56 = vpop.f32.mrb[28].mxu1  ;;  %6520 = vmatprep.subr.bf16.mxu1 %v8203_v11  ;;  %v4981_v1 = vadd.f32 1.0, %v8493_v18  ;;  %v3422_v5 = vmul.f32 %v3102_v27, %v11487_v7  ;;  %v3229_v32 = vmul.f32 0.044715, %v11524_v33 }
 0x287   :  { %16605 = vst [vmem:[#allocation76_spill] sm:$0xff] %v11532_v0  ;;  %16606 = vst [vmem:[#allocation77_spill] sm:$0xff] %v11534_v56  ;;  %v11539_v60 = vpop.f32.mrb[173].mxu0  ;;  %v11541_v62 = vpop.f32.mrb[29].mxu1  ;;  %6521 = vmatpush1.bf16.msra.mxu1 %v8201_v47  ;;  %6231 = vmatprep.mubr.bf16.mxu1 %v5566_v34  ;;  %v5297_v6 = vmul.f32 %v4977_v4, %v11432_v22  ;;  %v3545_v46 = vmul.f32 %v3225_v20, %v11491_v30  ;;  %v3230_v56 = vmul.f32 0.044715, %v11530_v49 }
 0x288   :  { %16607 = vst [vmem:[#allocation78_spill] sm:$0xff] %v11539_v60  ;;  %16608 = vst [vmem:[#allocation79_spill] sm:$0xff] %v11541_v62  ;;  %v11548_v11 = vadd.f32 %v11240_v57, %v10401_v48  ;;  %v11550_v17 = vpop.f32.mrb[174].mxu0  ;;  %v11552_v27 = vpop.f32.mrb[30].mxu1  ;;  %v5301_v18 = vmul.f32 %v4981_v1, %v11441_v44  ;;  %v3546_v62 = vmul.f32 %v3226_v9, %v11510_v40 }
 0x289   :  { %16610 = vst [vmem:[#allocation81_spill] sm:$0xff] %v11550_v17  ;;  %16611 = vst [vmem:[#allocation82_spill] sm:$0xff] %v11552_v27  ;;  %v11558_v47 = vadd.f32 %v11242_v54, %v10401_v48  ;;  %v11562_v22 = vadd.f32 %v11249_v42, %v10405_v45  ;;  %v11564_v20 = vpop.f32.mrb[175].mxu0  ;;  %v11566_v57 = vpop.f32.mrb[31].mxu1  ;;  %v3549_v34 = vmul.f32 %v3229_v32, %v11524_v33 }
 0x28a   :  { %16609 = vst [vmem:[#allocation80_spill] sm:$0xff] %v11548_v11  ;;  %16613 = vst [vmem:[#allocation84_spill] sm:$0xff] %v11564_v20  ;;  %v3550_v4 = vmul.f32 %v3230_v56, %v11530_v49  ;;  %v3105_v44 = vmul.f32 0.044715, %v11548_v11  ;;  %v11573_v9 = vadd.f32 %v11251_v52, %v10405_v45  ;;  %v8495_v54 = vpop.eup %8494  ;;  %v5565_v1 = vpack.c.bf16 %v5301_v18, %v5297_v6  ;;  %v16616_v6 = vld [vmem:[#allocation33_spill] sm:$0xff] }
 0x28b   :  { %16612 = vst [vmem:[#allocation83_spill] sm:$0xff] %v11558_v47  ;;  %16614 = vst [vmem:[#allocation85_spill] sm:$0xff] %v11566_v57  ;;  %v11577_v42 = vmul.f32 %v11472_v58, %v11404_v38  ;;  %v11581_v20 = vmul.f32 %v11475_v26, %v11408_v55  ;;  %v3233_v32 = vmul.f32 0.044715, %v11558_v47  ;;  %v8497_v57 = vpop.eup %8496  ;;  %v4986_v56 = vadd.f32 1.0, %v8495_v54 }
 0x28c   :  { %16615 = vst [vmem:[#allocation86_spill] sm:$0xff] %v11573_v9  ;;  %v11585_v27 = vmul.f32 %v3421_v12, %v11459_v3  ;;  %v2749_v52 = vmul.f32 0.5, %v16593_v31  ;;  %v3106_v17 = vmul.f32 0.044715, %v11562_v22  ;;  %6232 = vmatmul.mubr.bf16.gmra.mrb[84].mxu1 %v5565_v1  ;;  %v4990_v58 = vadd.f32 1.0, %v8497_v57 }
 0x28d   :  { %2413 = vmatmul.mubr.bf16.gmra.mrb[24].mxu0 %v16616_v6  ;;  %v11591_v18 = vmul.f32 %v3422_v5, %v11487_v7  ;;  %v11594_v26 = vmul.f32 %v3545_v46, %v11491_v30  ;;  %v11597_v60 = vmul.f32 %v3546_v62, %v11510_v40  ;;  %v11601_v31 = vmul.f32 %v3549_v34, %v11524_v33  ;;  %v11608_v1 = vpop.f32.mrb[176].mxu0  ;;  %v16624_v33 = vld [vmem:[#allocation47_spill] sm:$0xff] }
 0x28e   :  { %2422 = vmatprep.mubr.bf16.mxu0 %v16462_v53  ;;  %v8499_v12 = vpop.eup %8498  ;;  %v11604_v54 = vmul.f32 %v3550_v4, %v11530_v49  ;;  %v3425_v57 = vmul.f32 %v3105_v44, %v11548_v11  ;;  %v3234_v5 = vmul.f32 0.044715, %v11573_v9  ;;  %16621 = vst [vmem:[#allocation90_spill] sm:$0xff] %v11608_v1  ;;  %v5306_v6 = vmul.f32 %v4986_v56, %v11452_v19  ;;  %v16626_v49 = vld [vmem:[#allocation16_spill] sm:$0xff] }
 0x28f   :  { %16617 = vst [vmem:[#allocation33_spill] sm:$0xff] %v11594_v26  ;;  %16618 = vst [vmem:[#allocation87_spill] sm:$0xff] %v11597_v60  ;;  %v8501_v46 = vpop.eup %8500  ;;  %v5310_v62 = vmul.f32 %v4990_v58, %v11455_v2  ;;  %v4985_v26 = vadd.f32 1.0, %v8499_v12  ;;  %v3553_v30 = vmul.f32 %v3233_v32, %v11558_v47  ;;  %v11613_v60 = vpop.f32.mrb[177].mxu0  ;;  %v3426_v4 = vmul.f32 %v3106_v17, %v11562_v22 }
 0x290   :  { %16619 = vst [vmem:[#allocation88_spill] sm:$0xff] %v11601_v31  ;;  %16620 = vst [vmem:[#allocation89_spill] sm:$0xff] %v11604_v54  ;;  %v4989_v34 = vadd.f32 1.0, %v8501_v46  ;;  %v16623_v31 = vld [vmem:[#allocation8_spill] sm:$0xff]  ;;  %v16625_v54 = vld [vmem:[#allocation14_spill] sm:$0xff]  ;;  %v11620_v1 = vpop.f32.mrb[178].mxu0  ;;  %v11627_v2 = vadd.f32 %v11257_v36, %v10401_v48  ;;  %v11631_v32 = vadd.f32 %v11259_v41, %v10401_v48  ;;  %v11637_v12 = vmul.f32 %v3425_v57, %v11548_v11 }
 0x291   :  { %16622 = vst [vmem:[#allocation91_spill] sm:$0xff] %v11613_v60  ;;  %v4034_v44 = vadd.f32 %v16624_v33, %v16623_v31  ;;  %v4038_v40 = vadd.f32 %v16626_v49, %v16625_v54  ;;  %16627 = vst [vmem:[#allocation8_spill] sm:$0xff] %v11620_v1  ;;  %v5570_v0 = vpack.c.bf16 %v5310_v62, %v5306_v6  ;;  %v11623_v19 = vmul.f32 0.5, %v16623_v31  ;;  %v11633_v17 = vpop.f32.mrb[179].mxu0  ;;  %v16632_v46 = vld [vmem:[#allocation7_spill] sm:$0xff] }
 0x292   :  { %16628 = vst [vmem:[#allocation47_spill] sm:$0xff] %v11627_v2  ;;  %16629 = vst [vmem:[#allocation14_spill] sm:$0xff] %v11631_v32  ;;  %v5305_v33 = vmul.f32 %v4985_v26, %v11520_v51  ;;  %v5309_v56 = vmul.f32 %v4989_v34, %v2749_v52  ;;  %v3109_v31 = vmul.f32 0.044715, %v11627_v2  ;;  %v3237_v36 = vmul.f32 0.044715, %v11631_v32 }
 0x293   :  { %16630 = vst [vmem:[#allocation16_spill] sm:$0xff] %v11633_v17  ;;  %v4354_v49 = vmul.f32 0.7978846, %v4034_v44  ;;  %v4358_v58 = vmul.f32 0.7978846, %v4038_v40  ;;  %6241 = vmatprep.mubr.bf16.mxu1 %v5570_v0  ;;  %16631 = vst [vmem:[#allocation92_spill] sm:$0xff] %v11637_v12  ;;  %v11647_v51 = vadd.f32 %v11266_v24, %v10405_v45  ;;  %v3554_v0 = vmul.f32 %v3234_v5, %v11573_v9 }
 0x294   :  { %v16633_v6 = vld [vmem:[#allocation15_spill] sm:$0xff]  ;;  %v5569_v41 = vpack.c.bf16 %v5309_v56, %v5305_v33  ;;  %v16635_v17 = vld [vmem:[#allocation48_spill] sm:$0xff]  ;;  %v3429_v52 = vmul.f32 %v3109_v31, %v11627_v2  ;;  %v11656_v44 = vadd.f32 %v11268_v15, %v10405_v45  ;;  %v11660_v24 = vadd.f32 %v11325_v37, %v10401_v48 }
 0x295   :  { %v4033_v62 = vadd.f32 %v16633_v6, %v16632_v46  ;;  %8502 = vtanh.f32 %v4354_v49  ;;  %v16634_v1 = vld [vmem:[#allocation11_spill] sm:$0xff]  ;;  %16636 = vst [vmem:[#allocation7_spill] sm:$0xff] %v11647_v51  ;;  %v3110_v34 = vmul.f32 0.044715, %v11647_v51  ;;  %v2758_v5 = vmul.f32 0.5, %v16625_v54 }
 0x296   :  { %v4037_v60 = vadd.f32 %v16635_v17, %v16634_v1  ;;  %v16637_v40 = vld [vmem:[#allocation35_spill] sm:$0xff]  ;;  %8504 = vtanh.f32 %v4358_v58  ;;  %6242 = vmatmul.mubr.bf16.gmra.mrb[88].mxu1 %v5569_v41  ;;  %16638 = vst [vmem:[#allocation15_spill] sm:$0xff] %v11656_v44  ;;  %v11662_v17 = vpop.f32.mrb[180].mxu0  ;;  %v3557_v33 = vmul.f32 %v3237_v36, %v11631_v32  ;;  %v11673_v15 = vmul.f32 %v3553_v30, %v11558_v47  ;;  %v16644_v36 = vld [vmem:[#allocation17_spill] sm:$0xff]  ;;  %v16654_v47 = vld [vmem:[#allocation56_spill] sm:$0xff] }
 0x297   :  { %2423 = vmatmul.mubr.bf16.gmra.mrb[28].mxu0 %v16637_v40  ;;  %v4353_v26 = vmul.f32 0.7978846, %v4033_v62  ;;  %16639 = vst [vmem:[#allocation11_spill] sm:$0xff] %v11662_v17  ;;  %v11670_v56 = vpop.f32.mrb[181].mxu0  ;;  %v11676_v49 = vmul.f32 %v3426_v4, %v11562_v22  ;;  %v3430_v37 = vmul.f32 %v3110_v34, %v11647_v51  ;;  %v11682_v54 = vmul.f32 %v3554_v0, %v11573_v9  ;;  %v16648_v34 = vld [vmem:[#allocation62_spill] sm:$0xff] }
 0x298   :  { %2432 = vmatprep.mubr.bf16.mxu0 %v16462_v53  ;;  %v4357_v57 = vmul.f32 0.7978846, %v4037_v60  ;;  %v11668_v60 = vadd.f32 %v11334_v39, %v10405_v45  ;;  %16640 = vst [vmem:[#allocation48_spill] sm:$0xff] %v11670_v56  ;;  %16641 = vst [vmem:[#allocation35_spill] sm:$0xff] %v11673_v15  ;;  %v11679_v58 = vpop.f32.mrb[182].mxu0  ;;  %v4042_v6 = vadd.f32 %v16644_v36, %v11161_v29  ;;  %v2753_v62 = vmul.f32 0.5, %v16632_v46 }
 0x299   :  { %8506 = vtanh.f32 %v4353_v26  ;;  %16642 = vst [vmem:[#allocation93_spill] sm:$0xff] %v11679_v58  ;;  %16643 = vst [vmem:[#allocation94_spill] sm:$0xff] %v11682_v54  ;;  %v3238_v31 = vmul.f32 0.044715, %v11656_v44  ;;  %v3113_v39 = vmul.f32 0.044715, %v11660_v24  ;;  %v11691_v4 = vmul.f32 %v3429_v52, %v11627_v2 }
 0x29a   :  { %8508 = vtanh.f32 %v4357_v57  ;;  %v11688_v30 = vpop.f32.mrb[183].mxu0  ;;  %v2757_v41 = vmul.f32 0.5, %v16634_v1  ;;  %v4046_v40 = vadd.f32 %v11319_v14, %v11224_v8  ;;  %v11698_v0 = vmul.f32 %v3557_v33, %v11631_v32  ;;  %v16650_v15 = vld [vmem:[#allocation36_spill] sm:$0xff] }
 0x29b   :  { %16645 = vst [vmem:[#allocation17_spill] sm:$0xff] %v11688_v30  ;;  %16646 = vst [vmem:[#allocation95_spill] sm:$0xff] %v11691_v4  ;;  %v3114_v26 = vmul.f32 0.044715, %v11668_v60  ;;  %v4362_v57 = vmul.f32 0.7978846, %v4042_v6  ;;  %v11703_v36 = vadd.f32 %v16648_v34, %v10401_v48  ;;  %v11706_v52 = vmul.f32 %v3430_v37, %v11647_v51 }
 0x29c   :  { %16647 = vst [vmem:[#allocation96_spill] sm:$0xff] %v11698_v0  ;;  %v11709_v46 = vmul.f32 0.5, %v11161_v29  ;;  %v11712_v1 = vmul.f32 0.5, %v11224_v8  ;;  %v4366_v14 = vmul.f32 0.7978846, %v4046_v40  ;;  %v3558_v33 = vmul.f32 %v3238_v31, %v11656_v44  ;;  %v16651_v0 = vld [vmem:[#allocation46_spill] sm:$0xff] }
 0x29d   :  { %16649 = vst [vmem:[#allocation62_spill] sm:$0xff] %v11706_v52  ;;  %v3433_v6 = vmul.f32 %v3113_v39, %v11660_v24  ;;  %8510 = vtanh.f32 %v4362_v57  ;;  %v16652_v34 = vld [vmem:[#allocation51_spill] sm:$0xff]  ;;  %v16653_v29 = vld [vmem:[#allocation49_spill] sm:$0xff]  ;;  %v16655_v8 = vld [vmem:[#allocation64_spill] sm:$0xff]  ;;  %v11730_v39 = vpop.f32.mrb[184].mxu0  ;;  %v3434_v2 = vmul.f32 %v3114_v26, %v11668_v60 }
 0x29e   :  { %v4041_v32 = vadd.f32 %v16652_v34, %v16651_v0  ;;  %8512 = vtanh.f32 %v4366_v14  ;;  %v4045_v54 = vadd.f32 %v16654_v47, %v16653_v29  ;;  %v11724_v40 = vadd.f32 %v16655_v8, %v10405_v45  ;;  %16658 = vst [vmem:[#allocation46_spill] sm:$0xff] %v11730_v39  ;;  %v16659_v14 = vld [vmem:[#allocation60_spill] sm:$0xff]  ;;  %v11737_v47 = vpop.f32.mrb[185].mxu0 }
 0x29f   :  { %2433 = vmatmul.mubr.bf16.gmra.mrb[32].mxu0 %v16650_v15  ;;  %v8503_v37 = vpop.eup %8502  ;;  %v16656_v15 = vld [vmem:[#allocation58_spill] sm:$0xff]  ;;  %v3117_v34 = vmul.f32 0.044715, %v11703_v36  ;;  %v11735_v58 = vadd.f32 %v16659_v14, %v10405_v45  ;;  %16661 = vst [vmem:[#allocation49_spill] sm:$0xff] %v11737_v47  ;;  %v11744_v39 = vpop.f32.mrb[186].mxu0 }
 0x2a0   :  { %2442 = vmatprep.mubr.bf16.mxu0 %v16462_v53  ;;  %v11728_v31 = vadd.f32 %v16656_v15, %v10401_v48  ;;  %v8505_v57 = vpop.eup %8504  ;;  %v4994_v9 = vadd.f32 1.0, %v8503_v37  ;;  %v4361_v30 = vmul.f32 0.7978846, %v4041_v32  ;;  %v4365_v8 = vmul.f32 0.7978846, %v4045_v54  ;;  %v16662_v15 = vld [vmem:[#allocation63_spill] sm:$0xff] }
 0x2a1   :  { %16660 = vst [vmem:[#allocation51_spill] sm:$0xff] %v11735_v58  ;;  %v4998_v56 = vadd.f32 1.0, %v8505_v57  ;;  %v3118_v17 = vmul.f32 0.044715, %v11724_v40  ;;  %v11742_v4 = vadd.f32 %v16662_v15, %v10401_v48  ;;  %16664 = vst [vmem:[#allocation64_spill] sm:$0xff] %v11744_v39  ;;  %v11748_v32 = vmul.f32 0.5, %v16651_v0 }
 0x2a2   :  { %16657 = vst [vmem:[#allocation36_spill] sm:$0xff] %v11728_v31  ;;  %8514 = vtanh.f32 %v4361_v30  ;;  %v3241_v14 = vmul.f32 0.044715, %v11728_v31  ;;  %v11751_v47 = vpop.f32.mrb[187].mxu0  ;;  %v8206_v54 = vld [vmem:[%s16050_s5 + $0x1a4] ss:$8 sps:$4 sm:$0xff]   ;;  %v5314_v15 = vmul.f32 %v4994_v9, %v11623_v19  ;;  %v11761_v30 = vmul.f32 %v3558_v33, %v11656_v44 }
 0x2a3   :  { %16663 = vst [vmem:[#allocation56_spill] sm:$0xff] %v11742_v4  ;;  %v8507_v37 = vpop.eup %8506  ;;  %16665 = vst [vmem:[#allocation58_spill] sm:$0xff] %v11751_v47  ;;  %v5318_v12 = vmul.f32 %v4998_v56, %v2758_v5  ;;  %8516 = vtanh.f32 %v4365_v8  ;;  %v8204_v0 = vld [vmem:[%s16050_s5 + $0x1a0] ss:$8 sps:$4 sm:$0xff]   ;;  %v3242_v47 = vmul.f32 0.044715, %v11735_v58  ;;  %6522 = vmatprep.subr.bf16.mxu1 %v8206_v54  ;;  %v3437_v51 = vmul.f32 %v3117_v34, %v11703_v36 }
 0x2a4   :  { %v8509_v57 = vpop.eup %8508  ;;  %v4993_v39 = vadd.f32 1.0, %v8507_v37  ;;  %16666 = vst [vmem:[#allocation60_spill] sm:$0xff] %v11761_v30  ;;  %v3245_v11 = vmul.f32 0.044715, %v11742_v4  ;;  %v3438_v9 = vmul.f32 %v3118_v17, %v11724_v40  ;;  %v16667_v19 = vld [vmem:[#allocation65_spill] sm:$0xff]  ;;  %v3561_v33 = vmul.f32 %v3241_v14, %v11728_v31  ;;  %6523 = vmatpush1.bf16.msra.mxu1 %v8204_v0 }
 0x2a5   :  { %v4997_v26 = vadd.f32 1.0, %v8509_v57  ;;  %v5574_v52 = vpack.c.bf16 %v5318_v12, %v5314_v15  ;;  %v11769_v5 = vadd.f32 %v16667_v19, %v10405_v45  ;;  %v16669_v56 = vld [vmem:[#allocation37_spill] sm:$0xff]  ;;  %v3562_v57 = vmul.f32 %v3242_v47, %v11735_v58 }
 0x2a6   :  { %v5313_v8 = vmul.f32 %v4993_v39, %v2753_v62  ;;  %v11778_v17 = vadd.f32 %v11376_v61, %v10401_v48  ;;  %v11782_v34 = vadd.f32 %v11382_v23, %v10401_v48  ;;  %v11786_v62 = vadd.f32 %v11384_v13, %v10405_v45 }
 0x2a7   :  { %16668 = vst [vmem:[#allocation63_spill] sm:$0xff] %v11769_v5  ;;  %2443 = vmatmul.mubr.bf16.gmra.mrb[36].mxu0 %v16669_v56  ;;  %v5317_v37 = vmul.f32 %v4997_v26, %v2757_v41  ;;  %6251 = vmatprep.mubr.bf16.mxu1 %v5574_v52  ;;  %v3246_v12 = vmul.f32 0.044715, %v11769_v5  ;;  %v11788_v41 = vpop.f32.mrb[188].mxu0  ;;  %v8511_v39 = vpop.eup %8510  ;;  %v11791_v52 = vmul.f32 %v3433_v6, %v11660_v24  ;;  %v2765_v0 = vmul.f32 0.5, %v16653_v29 }
 0x2a8   :  { %2452 = vmatprep.mubr.bf16.mxu0 %v16462_v53  ;;  %16670 = vst [vmem:[#allocation65_spill] sm:$0xff] %v11782_v34  ;;  %v3565_v14 = vmul.f32 %v3245_v11, %v11742_v4  ;;  %v11796_v61 = vadd.f32 %v11398_v35, %v10405_v45  ;;  %v11798_v23 = vpop.f32.mrb[189].mxu0  ;;  %v8513_v54 = vpop.eup %8512  ;;  %v11801_v13 = vmul.f32 %v3434_v2, %v11668_v60  ;;  %v5002_v15 = vadd.f32 1.0, %v8511_v39 }
 0x2a9   :  { %v5573_v47 = vpack.c.bf16 %v5317_v37, %v5313_v8  ;;  %v3566_v26 = vmul.f32 %v3246_v12, %v11769_v5  ;;  %v11805_v19 = vpop.f32.mrb[190].mxu0  ;;  %v5006_v6 = vadd.f32 1.0, %v8513_v54  ;;  %v11808_v11 = vmul.f32 %v3437_v51, %v11703_v36 }
 0x2aa   :  { %16671 = vst [vmem:[#allocation37_spill] sm:$0xff] %v11796_v61  ;;  %v3121_v35 = vmul.f32 0.044715, %v11778_v17  ;;  %v3249_v56 = vmul.f32 0.044715, %v11782_v34  ;;  %v11813_v8 = vmul.f32 %v3438_v9, %v11724_v40  ;;  %v11816_v2 = vmul.f32 %v3561_v33, %v11728_v31  ;;  %v11822_v12 = vpop.f32.mrb[191].mxu0 }
 0x2ab   :  { %6252 = vmatmul.mubr.bf16.gmra.mrb[92].mxu1 %v5573_v47  ;;  %v11819_v29 = vmul.f32 %v3562_v57, %v11735_v58  ;;  %v3122_v37 = vmul.f32 0.044715, %v11786_v62  ;;  %16674 = vst [vmem:[#allocation99_spill] sm:$0xff] %v11822_v12  ;;  %v5322_v51 = vmul.f32 %v5002_v15, %v11709_v46  ;;  %v5326_v47 = vmul.f32 %v5006_v6, %v11712_v1 }
 0x2ac   :  { %16672 = vst [vmem:[#allocation97_spill] sm:$0xff] %v11816_v2  ;;  %v8515_v39 = vpop.eup %8514  ;;  %v11827_v54 = vmul.f32 %v3565_v14, %v11742_v4  ;;  %v3250_v9 = vmul.f32 0.044715, %v11796_v61  ;;  %v11831_v2 = vmul.f32 %v3566_v26, %v11769_v5  ;;  %v11834_v57 = vmul.f32 0.5, %v11297_v25 }
 0x2ad   :  { %16673 = vst [vmem:[#allocation98_spill] sm:$0xff] %v11819_v29  ;;  %v8517_v30 = vpop.eup %8516  ;;  %v5001_v33 = vadd.f32 1.0, %v8515_v39  ;;  %v4050_v31 = vadd.f32 %v11421_v43, %v11297_v25  ;;  %v16677_v29 = vld [vmem:[#allocation42_spill] sm:$0xff]  ;;  %v5578_v46 = vpack.c.bf16 %v5326_v47, %v5322_v51  ;;  %v3441_v14 = vmul.f32 %v3121_v35, %v11778_v17  ;;  %v11849_v25 = vpop.f32.mrb[192].mxu0 }
 0x2ae   :  { %16675 = vst [vmem:[#allocation100_spill] sm:$0xff] %v11827_v54  ;;  %16676 = vst [vmem:[#allocation101_spill] sm:$0xff] %v11831_v2  ;;  %v5005_v1 = vadd.f32 1.0, %v8517_v30  ;;  %v3569_v15 = vmul.f32 %v3249_v56, %v11782_v34  ;;  %v3442_v6 = vmul.f32 %v3122_v37, %v11786_v62  ;;  %v4054_v26 = vadd.f32 %v11500_v10, %v11392_v16  ;;  %v16696_v2 = vld [vmem:[#allocation4_spill] sm:$0xff] }
 0x2af   :  { %2453 = vmatmul.mubr.bf16.gmra.mrb[40].mxu0 %v16677_v29  ;;  %v4370_v39 = vmul.f32 0.7978846, %v4050_v31  ;;  %v11847_v54 = vadd.f32 %v11400_v63, %v10401_v48  ;;  %16678 = vst [vmem:[#allocation42_spill] sm:$0xff] %v11849_v25  ;;  %6261 = vmatprep.mubr.bf16.mxu1 %v5578_v46  ;;  %v5321_v43 = vmul.f32 %v5001_v33, %v11748_v32  ;;  %v11857_v29 = vpop.f32.mrb[193].mxu0  ;;  %v11874_v46 = vmul.f32 0.5, %v11392_v16 }
 0x2b0   :  { %2462 = vmatprep.mubr.bf16.mxu0 %v16462_v53  ;;  %v5325_v30 = vmul.f32 %v5005_v1, %v2765_v0  ;;  %v3570_v35 = vmul.f32 %v3250_v9, %v11796_v61  ;;  %v11855_v56 = vadd.f32 %v11410_v59, %v10401_v48  ;;  %16680 = vst [vmem:[#allocation103_spill] sm:$0xff] %v11857_v29  ;;  %v4374_v10 = vmul.f32 0.7978846, %v4054_v26  ;;  %v11862_v37 = vpop.f32.mrb[194].mxu0  ;;  %v16682_v0 = vld [vmem:[#allocation20_spill] sm:$0xff]  ;;  %v16683_v59 = vld [vmem:[#allocation3_spill] sm:$0xff] }
 0x2b1   :  { %8518 = vtanh.f32 %v4370_v39  ;;  %v3125_v31 = vmul.f32 0.044715, %v11847_v54  ;;  %v4049_v63 = vadd.f32 %v11415_v21, %v11288_v28  ;;  %16681 = vst [vmem:[#allocation104_spill] sm:$0xff] %v11862_v37  ;;  %v4053_v47 = vadd.f32 %v16682_v0, %v11365_v50  ;;  %v11871_v33 = vpop.f32.mrb[195].mxu0  ;;  %v16685_v21 = vld [vmem:[#allocation68_spill] sm:$0xff]  ;;  %v16687_v0 = vld [vmem:[#allocation6_spill] sm:$0xff] }
 0x2b2   :  { %16679 = vst [vmem:[#allocation102_spill] sm:$0xff] %v11855_v56  ;;  %v5577_v51 = vpack.c.bf16 %v5325_v30, %v5321_v43  ;;  %v3253_v32 = vmul.f32 0.044715, %v11855_v56  ;;  %v11869_v9 = vadd.f32 %v16683_v59, %v10405_v45  ;;  %16684 = vst [vmem:[#allocation20_spill] sm:$0xff] %v11871_v33  ;;  %8520 = vtanh.f32 %v4374_v10  ;;  %v16688_v10 = vld [vmem:[#allocation70_spill] sm:$0xff] }
 0x2b3   :  { %v4369_v1 = vmul.f32 0.7978846, %v4049_v63  ;;  %v11878_v26 = vadd.f32 %v16685_v21, %v10405_v45  ;;  %v3445_v39 = vmul.f32 %v3125_v31, %v11847_v54  ;;  %v4373_v43 = vmul.f32 0.7978846, %v4053_v47  ;;  %v16689_v21 = vld [vmem:[#allocation19_spill] sm:$0xff] }
 0x2b4   :  { %6262 = vmatmul.mubr.bf16.gmra.mrb[96].mxu1 %v5577_v51  ;;  %v3126_v30 = vmul.f32 0.044715, %v11869_v9  ;;  %v11884_v59 = vadd.f32 %v16687_v0, %v10401_v48  ;;  %v3573_v4 = vmul.f32 %v3253_v32, %v11855_v56  ;;  %v11890_v63 = vadd.f32 %v16688_v10, %v10405_v45 }
 0x2b5   :  { %16686 = vst [vmem:[#allocation3_spill] sm:$0xff] %v11878_v26  ;;  %8522 = vtanh.f32 %v4369_v1  ;;  %v3254_v16 = vmul.f32 0.044715, %v11878_v26  ;;  %v11894_v31 = vmul.f32 %v3441_v14, %v11778_v17  ;;  %v11897_v51 = vmul.f32 %v3569_v15, %v11782_v34  ;;  %v11911_v10 = vpop.f32.mrb[196].mxu0 }
 0x2b6   :  { %v11900_v47 = vmul.f32 %v3442_v6, %v11786_v62  ;;  %8524 = vtanh.f32 %v4373_v43  ;;  %v11904_v32 = vmul.f32 %v3570_v35, %v11796_v61  ;;  %v11907_v1 = vmul.f32 0.5, %v11288_v28  ;;  %16692 = vst [vmem:[#allocation70_spill] sm:$0xff] %v11911_v10  ;;  %v8207_v28 = vld [vmem:[%s16050_s5 + $0x1b0] ss:$8 sps:$4 sm:$0xff]  }
 0x2b7   :  { %2463 = vmatmul.mubr.bf16.gmra.mrb[44].mxu0 %v16689_v21  ;;  %16690 = vst [vmem:[#allocation68_spill] sm:$0xff] %v11897_v51  ;;  %v3446_v0 = vmul.f32 %v3126_v30, %v11869_v9  ;;  %v3129_v14 = vmul.f32 0.044715, %v11884_v59  ;;  %v11914_v15 = vmul.f32 %v3445_v39, %v11847_v54  ;;  %v2773_v6 = vmul.f32 0.5, %v11365_v50  ;;  %v11921_v21 = vpop.f32.mrb[197].mxu0 }
 0x2b8   :  { %2472 = vmatprep.mubr.bf16.mxu0 %v16462_v53  ;;  %16691 = vst [vmem:[#allocation6_spill] sm:$0xff] %v11904_v32  ;;  %v4058_v43 = vadd.f32 %v11581_v20, %v11408_v55  ;;  %v4062_v35 = vadd.f32 %v11591_v18, %v11487_v7  ;;  %16693 = vst [vmem:[#allocation19_spill] sm:$0xff] %v11921_v21  ;;  %v8209_v30 = vld [vmem:[%s16050_s5 + $0x1b4] ss:$8 sps:$4 sm:$0xff]   ;;  %v11930_v39 = vmul.f32 %v3573_v4, %v11855_v56  ;;  %v11937_v18 = vpop.f32.mrb[198].mxu0 }
 0x2b9   :  { %v3574_v50 = vmul.f32 %v3254_v16, %v11878_v26  ;;  %v3130_v20 = vmul.f32 0.044715, %v11890_v63  ;;  %v11935_v51 = vmul.f32 0.5, %v11408_v55  ;;  %16695 = vst [vmem:[#allocation106_spill] sm:$0xff] %v11937_v18  ;;  %v11940_v34 = vmul.f32 0.5, %v11487_v7  ;;  %v11946_v4 = vpop.f32.mrb[199].mxu0  ;;  %6524 = vmatprep.subr.bf16.mxu1 %v8209_v30 }
 0x2ba   :  { %16694 = vst [vmem:[#allocation105_spill] sm:$0xff] %v11930_v39  ;;  %v4378_v32 = vmul.f32 0.7978846, %v4058_v43  ;;  %v4382_v61 = vmul.f32 0.7978846, %v4062_v35  ;;  %v11944_v5 = vadd.f32 %v16696_v2, %v10401_v48  ;;  %16697 = vst [vmem:[#allocation4_spill] sm:$0xff] %v11946_v4  ;;  %v11949_v39 = vmul.f32 %v3446_v0, %v11869_v9  ;;  %6525 = vmatpush1.bf16.msra.mxu1 %v8207_v28 }
 0x2bb   :  { %v8519_v16 = vpop.eup %8518  ;;  %v3449_v55 = vmul.f32 %v3129_v14, %v11884_v59  ;;  %v4057_v56 = vadd.f32 %v11577_v42, %v11404_v38  ;;  %v4061_v7 = vadd.f32 %v11585_v27, %v11459_v3  ;;  %v16698_v2 = vld [vmem:[#allocation12_spill] sm:$0xff]  ;;  %v16699_v30 = vld [vmem:[#allocation13_spill] sm:$0xff]  ;;  %v11965_v14 = vmul.f32 %v3574_v50, %v11878_v26  ;;  %v16702_v4 = vld [vmem:[#allocation27_spill] sm:$0xff] }
 0x2bc   :  { %v5010_v43 = vadd.f32 1.0, %v8519_v16  ;;  %8526 = vtanh.f32 %v4378_v32  ;;  %v11958_v35 = vadd.f32 %v16698_v2, %v10405_v45  ;;  %v11962_v58 = vadd.f32 %v16699_v30, %v10401_v48  ;;  %v8521_v0 = vpop.eup %8520 }
 0x2bd   :  { %16701 = vst [vmem:[#allocation13_spill] sm:$0xff] %v11965_v14  ;;  %8528 = vtanh.f32 %v4382_v61  ;;  %v4377_v42 = vmul.f32 0.7978846, %v4057_v56  ;;  %v4381_v44 = vmul.f32 0.7978846, %v4061_v7  ;;  %v5014_v27 = vadd.f32 1.0, %v8521_v0 }
 0x2be   :  { %16700 = vst [vmem:[#allocation12_spill] sm:$0xff] %v11962_v58  ;;  %v3133_v32 = vmul.f32 0.044715, %v11944_v5  ;;  %v11970_v28 = vmul.f32 0.5, %v11404_v38  ;;  %v3134_v16 = vmul.f32 0.044715, %v11958_v35  ;;  %v5330_v0 = vmul.f32 %v5010_v43, %v11834_v57 }
 0x2bf   :  { %2473 = vmatmul.mubr.bf16.gmra.mrb[48].mxu0 %v16702_v4  ;;  %v8523_v2 = vpop.eup %8522  ;;  %8530 = vtanh.f32 %v4377_v42  ;;  %v3257_v50 = vmul.f32 0.044715, %v11962_v58  ;;  %v16703_v61 = vld [vmem:[#allocation71_spill] sm:$0xff]  ;;  %v16705_v4 = vld [vmem:[#allocation9_spill] sm:$0xff]  ;;  %v11983_v30 = vpop.f32.mrb[200].mxu0  ;;  %v5334_v14 = vmul.f32 %v5014_v27, %v11874_v46  ;;  %v3450_v21 = vmul.f32 %v3130_v20, %v11890_v63  ;;  %v16710_v46 = vld [vmem:[#allocation72_spill] sm:$0xff] }
 0x2c0   :  { %2482 = vmatprep.mubr.bf16.mxu0 %v16462_v53  ;;  %v11977_v56 = vadd.f32 %v16703_v61, %v10405_v45  ;;  %v11981_v7 = vadd.f32 %v16705_v4, %v10401_v48  ;;  %16707 = vst [vmem:[#allocation9_spill] sm:$0xff] %v11983_v30  ;;  %v8525_v38 = vpop.eup %8524  ;;  %v5009_v26 = vadd.f32 1.0, %v8523_v2  ;;  %8532 = vtanh.f32 %v4381_v44  ;;  %v11987_v42 = vpop.f32.mrb[201].mxu0 }
 0x2c1   :  { %16708 = vst [vmem:[#allocation107_spill] sm:$0xff] %v11987_v42  ;;  %v5013_v18 = vadd.f32 1.0, %v8525_v38  ;;  %v11992_v4 = vpop.f32.mrb[202].mxu0  ;;  %v5582_v33 = vpack.c.bf16 %v5334_v14, %v5330_v0  ;;  %v3453_v30 = vmul.f32 %v3133_v32, %v11944_v5  ;;  %v3454_v57 = vmul.f32 %v3134_v16, %v11958_v35  ;;  %v16713_v16 = vld [vmem:[#allocation76_spill] sm:$0xff] }
 0x2c2   :  { %16704 = vst [vmem:[#allocation27_spill] sm:$0xff] %v11977_v56  ;;  %16706 = vst [vmem:[#allocation71_spill] sm:$0xff] %v11981_v7  ;;  %v3258_v61 = vmul.f32 0.044715, %v11977_v56  ;;  %v3261_v10 = vmul.f32 0.044715, %v11981_v7  ;;  %v11998_v43 = vadd.f32 %v16710_v46, %v10405_v45  ;;  %v5329_v27 = vmul.f32 %v5009_v26, %v11907_v1 }
 0x2c3   :  { %16709 = vst [vmem:[#allocation108_spill] sm:$0xff] %v11992_v4  ;;  %v12000_v44 = vpop.f32.mrb[203].mxu0  ;;  %v5333_v20 = vmul.f32 %v5013_v18, %v2773_v6  ;;  %v3577_v2 = vmul.f32 %v3257_v50, %v11962_v58  ;;  %6271 = vmatprep.mubr.bf16.mxu1 %v5582_v33  ;;  %v12009_v0 = vadd.f32 %v16713_v16, %v10401_v48  ;;  %v16714_v46 = vld [vmem:[#allocation77_spill] sm:$0xff]  ;;  %v16716_v1 = vld [vmem:[#allocation78_spill] sm:$0xff]  ;;  %v16717_v33 = vld [vmem:[#allocation79_spill] sm:$0xff] }
 0x2c4   :  { %16711 = vst [vmem:[#allocation72_spill] sm:$0xff] %v11998_v43  ;;  %16712 = vst [vmem:[#allocation109_spill] sm:$0xff] %v12000_v44  ;;  %v3578_v38 = vmul.f32 %v3258_v61, %v11977_v56  ;;  %v3581_v14 = vmul.f32 %v3261_v10, %v11981_v7  ;;  %v3262_v32 = vmul.f32 0.044715, %v11998_v43  ;;  %v12013_v4 = vadd.f32 %v16714_v46, %v10401_v48  ;;  %v16719_v18 = vld [vmem:[#allocation34_spill] sm:$0xff] }
 0x2c5   :  { %v5581_v44 = vpack.c.bf16 %v5333_v20, %v5329_v27  ;;  %v12016_v26 = vmul.f32 %v3449_v55, %v11884_v59  ;;  %v12020_v6 = vadd.f32 %v16716_v1, %v10405_v45  ;;  %v12024_v10 = vadd.f32 %v16717_v33, %v10405_v45 }
 0x2c6   :  { %16715 = vst [vmem:[#allocation76_spill] sm:$0xff] %v12013_v4  ;;  %v8527_v50 = vpop.eup %8526  ;;  %v12028_v61 = vmul.f32 %v3450_v21, %v11890_v63  ;;  %v12031_v16 = vmul.f32 %v3453_v30, %v11944_v5  ;;  %v2781_v55 = vmul.f32 0.5, %v11459_v3  ;;  %v12035_v27 = vmul.f32 %v3454_v57, %v11958_v35 }
 0x2c7   :  { %16718 = vst [vmem:[#allocation77_spill] sm:$0xff] %v12024_v10  ;;  %2483 = vmatmul.mubr.bf16.gmra.mrb[52].mxu0 %v16719_v18  ;;  %v8529_v20 = vpop.eup %8528  ;;  %6272 = vmatmul.mubr.bf16.gmra.mrb[100].mxu1 %v5581_v44  ;;  %v5018_v46 = vadd.f32 1.0, %v8527_v50  ;;  %v12039_v1 = vmul.f32 %v3577_v2, %v11962_v58  ;;  %v3582_v33 = vmul.f32 %v3262_v32, %v11998_v43  ;;  %v3137_v21 = vmul.f32 0.044715, %v12009_v0  ;;  %v12043_v18 = vpop.f32.mrb[204].mxu0 }
 0x2c8   :  { %2492 = vmatprep.mubr.bf16.mxu0 %v16462_v53  ;;  %16721 = vst [vmem:[#allocation79_spill] sm:$0xff] %v12043_v18  ;;  %v5022_v30 = vadd.f32 1.0, %v8529_v20  ;;  %v12046_v3 = vmul.f32 %v3578_v38, %v11977_v56  ;;  %v12049_v57 = vmul.f32 %v3581_v14, %v11981_v7  ;;  %v3265_v42 = vmul.f32 0.044715, %v12013_v4  ;;  %v12052_v44 = vpop.f32.mrb[205].mxu0 }
 0x2c9   :  { %16720 = vst [vmem:[#allocation78_spill] sm:$0xff] %v12039_v1  ;;  %16724 = vst [vmem:[#allocation111_spill] sm:$0xff] %v12052_v44  ;;  %v8531_v50 = vpop.eup %8530  ;;  %v3138_v2 = vmul.f32 0.044715, %v12020_v6  ;;  %v3266_v32 = vmul.f32 0.044715, %v12024_v10  ;;  %v4066_v20 = vadd.f32 %v11676_v49, %v11562_v22  ;;  %v5338_v14 = vmul.f32 %v5018_v46, %v11935_v51 }
 0x2ca   :  { %16722 = vst [vmem:[#allocation34_spill] sm:$0xff] %v12046_v3  ;;  %16723 = vst [vmem:[#allocation110_spill] sm:$0xff] %v12049_v57  ;;  %v12057_v1 = vmul.f32 0.5, %v11562_v22  ;;  %v12061_v38 = vpop.f32.mrb[206].mxu0  ;;  %v8533_v58 = vpop.eup %8532  ;;  %v5342_v57 = vmul.f32 %v5022_v30, %v11940_v34  ;;  %v5017_v7 = vadd.f32 1.0, %v8531_v50  ;;  %v16726_v3 = vld [vmem:[#allocation7_spill] sm:$0xff]  ;;  %v12071_v37 = vmul.f32 %v3582_v33, %v11998_v43 }
 0x2cb   :  { %16725 = vst [vmem:[#allocation112_spill] sm:$0xff] %v12061_v38  ;;  %v12066_v56 = vmul.f32 0.5, %v16726_v3  ;;  %v12068_v44 = vpop.f32.mrb[207].mxu0  ;;  %v5021_v18 = vadd.f32 1.0, %v8533_v58  ;;  %v3457_v29 = vmul.f32 %v3137_v21, %v12009_v0  ;;  %v16729_v22 = vld [vmem:[#allocation62_spill] sm:$0xff]  ;;  %v3585_v51 = vmul.f32 %v3265_v42, %v12013_v4  ;;  %v16730_v34 = vld [vmem:[#allocation81_spill] sm:$0xff] }
 0x2cc   :  { %16727 = vst [vmem:[#allocation7_spill] sm:$0xff] %v12068_v44  ;;  %16728 = vst [vmem:[#allocation113_spill] sm:$0xff] %v12071_v37  ;;  %v4070_v49 = vadd.f32 %v16729_v22, %v16726_v3  ;;  %v5586_v38 = vpack.c.bf16 %v5342_v57, %v5338_v14  ;;  %v4386_v46 = vmul.f32 0.7978846, %v4066_v20  ;;  %v12079_v30 = vadd.f32 %v16730_v34, %v10401_v48  ;;  %v16731_v33 = vld [vmem:[#allocation82_spill] sm:$0xff]  ;;  %v16733_v21 = vld [vmem:[#allocation28_spill] sm:$0xff] }
 0x2cd   :  { %v5337_v50 = vmul.f32 %v5017_v7, %v11970_v28  ;;  %v5341_v44 = vmul.f32 %v5021_v18, %v2781_v55  ;;  %v12084_v37 = vadd.f32 %v16731_v33, %v10401_v48  ;;  %v3458_v3 = vmul.f32 %v3138_v2, %v12020_v6  ;;  %v16734_v57 = vld [vmem:[#allocation80_spill] sm:$0xff]  ;;  %v16736_v55 = vld [vmem:[#allocation47_spill] sm:$0xff]  ;;  %v16740_v33 = vld [vmem:[#allocation85_spill] sm:$0xff] }
 0x2ce   :  { %v4390_v58 = vmul.f32 0.7978846, %v4070_v49  ;;  %6281 = vmatprep.mubr.bf16.mxu1 %v5586_v38  ;;  %8534 = vtanh.f32 %v4386_v46  ;;  %v3141_v42 = vmul.f32 0.044715, %v12079_v30  ;;  %v16735_v20 = vld [vmem:[#allocation92_spill] sm:$0xff]  ;;  %v16737_v18 = vld [vmem:[#allocation95_spill] sm:$0xff]  ;;  %v3586_v38 = vmul.f32 %v3266_v32, %v12024_v10 }
 0x2cf   :  { %16732 = vst [vmem:[#allocation62_spill] sm:$0xff] %v12084_v37  ;;  %2493 = vmatmul.mubr.bf16.gmra.mrb[56].mxu0 %v16733_v21  ;;  %v4065_v14 = vadd.f32 %v16735_v20, %v16734_v57  ;;  %v5585_v28 = vpack.c.bf16 %v5341_v44, %v5337_v50  ;;  %v3269_v7 = vmul.f32 0.044715, %v12084_v37  ;;  %v4069_v22 = vadd.f32 %v16737_v18, %v16736_v55  ;;  %v12095_v49 = vpop.f32.mrb[208].mxu0  ;;  %v16739_v46 = vld [vmem:[#allocation84_spill] sm:$0xff]  ;;  %v16743_v18 = vld [vmem:[#allocation90_spill] sm:$0xff] }
 0x2d0   :  { %2502 = vmatprep.mubr.bf16.mxu0 %v16462_v53  ;;  %8536 = vtanh.f32 %v4390_v58  ;;  %16738 = vst [vmem:[#allocation81_spill] sm:$0xff] %v12095_v49  ;;  %v12100_v34 = vadd.f32 %v16739_v46, %v10405_v45  ;;  %v12104_v21 = vadd.f32 %v16740_v33, %v10405_v45  ;;  %v12106_v44 = vpop.f32.mrb[209].mxu0  ;;  %v3461_v50 = vmul.f32 %v3141_v42, %v12079_v30  ;;  %v16745_v43 = vld [vmem:[#allocation91_spill] sm:$0xff] }
 0x2d1   :  { %v4385_v2 = vmul.f32 0.7978846, %v4065_v14  ;;  %16742 = vst [vmem:[#allocation28_spill] sm:$0xff] %v12106_v44  ;;  %6282 = vmatmul.mubr.bf16.gmra.mrb[104].mxu1 %v5585_v28  ;;  %v3589_v58 = vmul.f32 %v3269_v7, %v12084_v37  ;;  %v4389_v20 = vmul.f32 0.7978846, %v4069_v22  ;;  %v12112_v32 = vadd.f32 %v16743_v18, %v10401_v48  ;;  %v12114_v14 = vpop.f32.mrb[210].mxu0 }
 0x2d2   :  { %16741 = vst [vmem:[#allocation82_spill] sm:$0xff] %v12104_v21  ;;  %16744 = vst [vmem:[#allocation80_spill] sm:$0xff] %v12114_v14  ;;  %v12117_v46 = vmul.f32 %v3457_v29, %v12009_v0  ;;  %v3142_v33 = vmul.f32 0.044715, %v12100_v34  ;;  %v12122_v28 = vadd.f32 %v16745_v43, %v10405_v45  ;;  %v12124_v42 = vpop.f32.mrb[211].mxu0  ;;  %v12127_v7 = vmul.f32 %v3585_v51, %v12013_v4 }
 0x2d3   :  { %8538 = vtanh.f32 %v4385_v2  ;;  %16746 = vst [vmem:[#allocation92_spill] sm:$0xff] %v12124_v42  ;;  %v12130_v22 = vmul.f32 %v3458_v3, %v12020_v6  ;;  %v3270_v18 = vmul.f32 0.044715, %v12104_v21  ;;  %v12134_v29 = vmul.f32 %v3586_v38, %v12024_v10 }
 0x2d4   :  { %16747 = vst [vmem:[#allocation47_spill] sm:$0xff] %v12127_v7  ;;  %8540 = vtanh.f32 %v4389_v20  ;;  %v12137_v2 = vmul.f32 0.5, %v16734_v57  ;;  %v12140_v43 = vmul.f32 0.5, %v16736_v55  ;;  %v3145_v42 = vmul.f32 0.044715, %v12112_v32  ;;  %v16751_v7 = vld [vmem:[#allocation23_spill] sm:$0xff] }
 0x2d5   :  { %16748 = vst [vmem:[#allocation95_spill] sm:$0xff] %v12134_v29  ;;  %v12144_v51 = vmul.f32 %v3461_v50, %v12079_v30  ;;  %v12147_v3 = vmul.f32 %v3589_v58, %v12084_v37  ;;  %v4074_v20 = vadd.f32 %v11801_v13, %v11668_v60  ;;  %v4078_v38 = vadd.f32 %v11813_v8, %v11724_v40  ;;  %v16752_v50 = vld [vmem:[#allocation8_spill] sm:$0xff] }
 0x2d6   :  { %v3462_v57 = vmul.f32 %v3142_v33, %v12100_v34  ;;  %v3146_v55 = vmul.f32 0.044715, %v12122_v28  ;;  %v12157_v4 = vmul.f32 0.5, %v11668_v60  ;;  %v12161_v29 = vadd.f32 %v16752_v50, %v10401_v48 }
 0x2d7   :  { %16749 = vst [vmem:[#allocation84_spill] sm:$0xff] %v12144_v51  ;;  %16750 = vst [vmem:[#allocation85_spill] sm:$0xff] %v12147_v3  ;;  %2503 = vmatmul.mubr.bf16.gmra.mrb[60].mxu0 %v16751_v7  ;;  %v3590_v13 = vmul.f32 %v3270_v18, %v12104_v21  ;;  %v12166_v58 = vmul.f32 0.5, %v11724_v40  ;;  %v4394_v8 = vmul.f32 0.7978846, %v4074_v20  ;;  %v12168_v3 = vpop.f32.mrb[212].mxu0  ;;  %v3465_v37 = vmul.f32 %v3145_v42, %v12112_v32 }
 0x2d8   :  { %2512 = vmatprep.mubr.bf16.mxu0 %v16462_v53  ;;  %v4398_v7 = vmul.f32 0.7978846, %v4078_v38  ;;  %16753 = vst [vmem:[#allocation90_spill] sm:$0xff] %v12168_v3  ;;  %v8535_v33 = vpop.eup %8534  ;;  %v3149_v60 = vmul.f32 0.044715, %v12161_v29  ;;  %v4073_v50 = vadd.f32 %v11791_v52, %v11660_v24  ;;  %v4077_v10 = vadd.f32 %v11808_v11, %v11703_v36  ;;  %v12176_v14 = vpop.f32.mrb[213].mxu0 }
 0x2d9   :  { %16754 = vst [vmem:[#allocation91_spill] sm:$0xff] %v12176_v14  ;;  %v8210_v40 = vld [vmem:[%s16050_s5 + $0x1c0] ss:$8 sps:$4 sm:$0xff]   ;;  %v5026_v20 = vadd.f32 1.0, %v8535_v33  ;;  %8542 = vtanh.f32 %v4394_v8  ;;  %v12189_v52 = vpop.f32.mrb[214].mxu0  ;;  %v3466_v49 = vmul.f32 %v3146_v55, %v12122_v28  ;;  %v12205_v55 = vmul.f32 %v3590_v13, %v12104_v21 }
 0x2da   :  { %v8537_v18 = vpop.eup %8536  ;;  %v16755_v38 = vld [vmem:[#allocation16_spill] sm:$0xff]  ;;  %v16756_v3 = vld [vmem:[#allocation11_spill] sm:$0xff]  ;;  %16757 = vst [vmem:[#allocation23_spill] sm:$0xff] %v12189_v52  ;;  %8544 = vtanh.f32 %v4398_v7  ;;  %v4393_v33 = vmul.f32 0.7978846, %v4073_v50  ;;  %v12195_v8 = vpop.f32.mrb[215].mxu0  ;;  %v3469_v25 = vmul.f32 %v3149_v60, %v12161_v29 }
 0x2db   :  { %v12183_v42 = vadd.f32 %v16755_v38, %v10405_v45  ;;  %v12187_v44 = vadd.f32 %v16756_v3, %v10401_v48  ;;  %v8212_v11 = vld [vmem:[%s16050_s5 + $0x1c4] ss:$8 sps:$4 sm:$0xff]   ;;  %v5030_v14 = vadd.f32 1.0, %v8537_v18  ;;  %16758 = vst [vmem:[#allocation8_spill] sm:$0xff] %v12195_v8  ;;  %v12198_v38 = vmul.f32 %v3462_v57, %v12100_v34  ;;  %16759 = vst [vmem:[#allocation16_spill] sm:$0xff] %v12205_v55 }
 0x2dc   :  { %v4397_v3 = vmul.f32 0.7978846, %v4077_v10  ;;  %6526 = vmatprep.subr.bf16.mxu1 %v8212_v11  ;;  %v5346_v51 = vmul.f32 %v5026_v20, %v12057_v1  ;;  %8546 = vtanh.f32 %v4393_v33  ;;  %v16760_v10 = vld [vmem:[#allocation48_spill] sm:$0xff]  ;;  %v16761_v11 = vld [vmem:[#allocation30_spill] sm:$0xff]  ;;  %v12219_v13 = vmul.f32 %v3466_v49, %v12122_v28 }
 0x2dd   :  { %v3150_v12 = vmul.f32 0.044715, %v12183_v42  ;;  %v8539_v52 = vpop.eup %8538  ;;  %v5350_v18 = vmul.f32 %v5030_v14, %v12066_v56  ;;  %6527 = vmatpush1.bf16.msra.mxu1 %v8210_v40  ;;  %v3153_v57 = vmul.f32 0.044715, %v12187_v44  ;;  %v12210_v60 = vadd.f32 %v16760_v10, %v10405_v45  ;;  %v12226_v33 = vpop.f32.mrb[216].mxu0 }
 0x2de   :  { %v8541_v7 = vpop.eup %8540  ;;  %v5025_v50 = vadd.f32 1.0, %v8539_v52  ;;  %8548 = vtanh.f32 %v4397_v3  ;;  %v12214_v56 = vmul.f32 %v3465_v37, %v12112_v32  ;;  %v2793_v14 = vmul.f32 0.5, %v11660_v24  ;;  %v12234_v3 = vpop.f32.mrb[217].mxu0 }
 0x2df   :  { %2513 = vmatmul.mubr.bf16.gmra.mrb[64].mxu0 %v16761_v11  ;;  %v5590_v8 = vpack.c.bf16 %v5350_v18, %v5346_v51  ;;  %v5029_v1 = vadd.f32 1.0, %v8541_v7  ;;  %v12222_v40 = vmul.f32 %v3469_v25, %v12161_v29  ;;  %v2797_v20 = vmul.f32 0.5, %v11703_v36  ;;  %16762 = vst [vmem:[#allocation11_spill] sm:$0xff] %v12234_v3 }
 0x2e0   :  { %2522 = vmatprep.mubr.bf16.mxu0 %v16462_v53  ;;  %v3470_v52 = vmul.f32 %v3150_v12, %v12183_v42  ;;  %v5345_v37 = vmul.f32 %v5025_v50, %v12137_v2  ;;  %v4082_v24 = vadd.f32 %v11900_v47, %v11786_v62  ;;  %v4086_v49 = vadd.f32 %v11949_v39, %v11869_v9  ;;  %v16763_v12 = vld [vmem:[#allocation93_spill] sm:$0xff] }
 0x2e1   :  { %6291 = vmatprep.mubr.bf16.mxu1 %v5590_v8  ;;  %v5349_v51 = vmul.f32 %v5029_v1, %v12140_v43  ;;  %v3473_v25 = vmul.f32 %v3153_v57, %v12187_v44  ;;  %v3154_v36 = vmul.f32 0.044715, %v12210_v60  ;;  %v12240_v18 = vadd.f32 %v16763_v12, %v10401_v48  ;;  %v12244_v43 = vpop.f32.mrb[218].mxu0  ;;  %v16766_v12 = vld [vmem:[#allocation17_spill] sm:$0xff] }
 0x2e2   :  { %v4081_v2 = vadd.f32 %v11894_v31, %v11778_v17  ;;  %16764 = vst [vmem:[#allocation48_spill] sm:$0xff] %v12244_v43  ;;  %v12247_v47 = vmul.f32 0.5, %v11786_v62  ;;  %v4402_v39 = vmul.f32 0.7978846, %v4082_v24  ;;  %v4406_v7 = vmul.f32 0.7978846, %v4086_v49 }
 0x2e3   :  { %v5589_v8 = vpack.c.bf16 %v5349_v51, %v5345_v37  ;;  %v12249_v50 = vpop.f32.mrb[219].mxu0  ;;  %v8543_v57 = vpop.eup %8542  ;;  %v3157_v10 = vmul.f32 0.044715, %v12240_v18  ;;  %v4085_v11 = vadd.f32 %v11914_v15, %v11847_v54  ;;  %v12256_v31 = vadd.f32 %v16766_v12, %v10405_v45  ;;  %v16767_v51 = vld [vmem:[#allocation46_spill] sm:$0xff] }
 0x2e4   :  { %16765 = vst [vmem:[#allocation30_spill] sm:$0xff] %v12249_v50  ;;  %v4401_v1 = vmul.f32 0.7978846, %v4081_v2  ;;  %v8545_v55 = vpop.eup %8544  ;;  %v5034_v37 = vadd.f32 1.0, %v8543_v57  ;;  %v12259_v62 = vmul.f32 %v3470_v52, %v12183_v42  ;;  %8550 = vtanh.f32 %v4402_v39  ;;  %v16768_v2 = vld [vmem:[#allocation26_spill] sm:$0xff]  ;;  %v16769_v52 = vld [vmem:[#allocation49_spill] sm:$0xff] }
 0x2e5   :  { %6292 = vmatmul.mubr.bf16.gmra.mrb[108].mxu1 %v5589_v8  ;;  %v12263_v24 = vadd.f32 %v16767_v51, %v10401_v48  ;;  %v5038_v49 = vadd.f32 1.0, %v8545_v55  ;;  %v3474_v21 = vmul.f32 %v3154_v36, %v12210_v60  ;;  %8552 = vtanh.f32 %v4406_v7 }
 0x2e6   :  { %v4405_v15 = vmul.f32 0.7978846, %v4085_v11  ;;  %v8547_v12 = vpop.eup %8546  ;;  %v3477_v50 = vmul.f32 %v3157_v10, %v12240_v18  ;;  %8554 = vtanh.f32 %v4401_v1  ;;  %v3158_v8 = vmul.f32 0.044715, %v12256_v31  ;;  %v12276_v11 = vpop.f32.mrb[220].mxu0 }
 0x2e7   :  { %2523 = vmatmul.mubr.bf16.gmra.mrb[68].mxu0 %v16768_v2  ;;  %v12271_v39 = vadd.f32 %v16769_v52, %v10405_v45  ;;  %v5354_v55 = vmul.f32 %v5034_v37, %v12157_v4  ;;  %v5358_v36 = vmul.f32 %v5038_v49, %v12166_v58  ;;  %v5033_v7 = vadd.f32 1.0, %v8547_v12  ;;  %v12283_v52 = vpop.f32.mrb[221].mxu0 }
 0x2e8   :  { %2532 = vmatprep.mubr.bf16.mxu0 %v16462_v53  ;;  %v8549_v57 = vpop.eup %8548  ;;  %8556 = vtanh.f32 %v4405_v15  ;;  %v12279_v10 = vmul.f32 %v3473_v25, %v12187_v44  ;;  %v2806_v1 = vmul.f32 0.5, %v11869_v9  ;;  %v3161_v2 = vmul.f32 0.044715, %v12263_v24  ;;  %v12290_v37 = vpop.f32.mrb[222].mxu0 }
 0x2e9   :  { %v5037_v51 = vadd.f32 1.0, %v8549_v57  ;;  %v5594_v43 = vpack.c.bf16 %v5358_v36, %v5354_v55  ;;  %v12286_v3 = vmul.f32 %v3474_v21, %v12210_v60  ;;  %v2801_v4 = vmul.f32 0.5, %v11778_v17  ;;  %16770 = vst [vmem:[#allocation93_spill] sm:$0xff] %v12290_v37  ;;  %v12296_v12 = vpop.f32.mrb[223].mxu0 }
 0x2ea   :  { %v2805_v58 = vmul.f32 0.5, %v11847_v54  ;;  %v5353_v49 = vmul.f32 %v5033_v7, %v2793_v14  ;;  %v12293_v25 = vmul.f32 %v3477_v50, %v12240_v18  ;;  %v3478_v9 = vmul.f32 %v3158_v8, %v12256_v31  ;;  %16771 = vst [vmem:[#allocation17_spill] sm:$0xff] %v12296_v12  ;;  %v16772_v54 = vld [vmem:[#allocation64_spill] sm:$0xff] }
 0x2eb   :  { %v5357_v15 = vmul.f32 %v5037_v51, %v2797_v20  ;;  %6301 = vmatprep.mubr.bf16.mxu1 %v5594_v43  ;;  %v3162_v57 = vmul.f32 0.044715, %v12271_v39  ;;  %v4090_v21 = vadd.f32 %v12028_v61, %v11890_v63  ;;  %v4094_v17 = vadd.f32 %v12035_v27, %v11958_v35  ;;  %v16773_v7 = vld [vmem:[#allocation32_spill] sm:$0xff] }
 0x2ec   :  { %v12305_v14 = vadd.f32 %v16772_v54, %v10401_v48  ;;  %v3481_v50 = vmul.f32 %v3161_v2, %v12263_v24  ;;  %v12309_v8 = vmul.f32 0.5, %v11890_v63  ;;  %v4089_v43 = vadd.f32 %v12016_v26, %v11884_v59  ;;  %v16774_v63 = vld [vmem:[#allocation58_spill] sm:$0xff] }
 0x2ed   :  { %v5593_v20 = vpack.c.bf16 %v5357_v15, %v5353_v49  ;;  %v4410_v55 = vmul.f32 0.7978846, %v4090_v21  ;;  %v4414_v36 = vmul.f32 0.7978846, %v4094_v17  ;;  %v4093_v27 = vadd.f32 %v12031_v16, %v11944_v5 }
 0x2ee   :  { %v3165_v61 = vmul.f32 0.044715, %v12305_v14  ;;  %v8551_v51 = vpop.eup %8550  ;;  %v12318_v49 = vmul.f32 0.5, %v11958_v35  ;;  %v4409_v2 = vmul.f32 0.7978846, %v4089_v43  ;;  %v12322_v15 = vadd.f32 %v16774_v63, %v10405_v45 }
 0x2ef   :  { %2533 = vmatmul.mubr.bf16.gmra.mrb[72].mxu0 %v16773_v7  ;;  %6302 = vmatmul.mubr.bf16.gmra.mrb[112].mxu1 %v5593_v20  ;;  %v12326_v26 = vadd.f32 %v11788_v41, %v10401_v48  ;;  %v8553_v21 = vpop.eup %8552  ;;  %v5042_v16 = vadd.f32 1.0, %v8551_v51  ;;  %v3482_v17 = vmul.f32 %v3162_v57, %v12271_v39  ;;  %8558 = vtanh.f32 %v4410_v55  ;;  %v12330_v20 = vpop.f32.mrb[224].mxu0 }
 0x2f0   :  { %2542 = vmatprep.mubr.bf16.mxu0 %v16462_v53  ;;  %v4413_v54 = vmul.f32 0.7978846, %v4093_v27  ;;  %16775 = vst [vmem:[#allocation46_spill] sm:$0xff] %v12330_v20  ;;  %v8555_v35 = vpop.eup %8554  ;;  %v5046_v43 = vadd.f32 1.0, %v8553_v21  ;;  %8560 = vtanh.f32 %v4414_v36  ;;  %v3166_v7 = vmul.f32 0.044715, %v12322_v15 }
 0x2f1   :  { %v12335_v63 = vadd.f32 %v11798_v23, %v10405_v45  ;;  %v12337_v41 = vpop.f32.mrb[225].mxu0  ;;  %v5041_v37 = vadd.f32 1.0, %v8555_v35  ;;  %v3485_v51 = vmul.f32 %v3165_v61, %v12305_v14  ;;  %8562 = vtanh.f32 %v4409_v2 }
 0x2f2   :  { %16776 = vst [vmem:[#allocation26_spill] sm:$0xff] %v12337_v41  ;;  %v8557_v12 = vpop.eup %8556  ;;  %v3169_v57 = vmul.f32 0.044715, %v12326_v26  ;;  %v12341_v55 = vpop.f32.mrb[226].mxu0  ;;  %v5362_v27 = vmul.f32 %v5042_v16, %v12247_v47  ;;  %v5366_v36 = vmul.f32 %v5046_v43, %v2806_v1  ;;  %8564 = vtanh.f32 %v4413_v54 }
 0x2f3   :  { %16777 = vst [vmem:[#allocation49_spill] sm:$0xff] %v12341_v55  ;;  %v5045_v21 = vadd.f32 1.0, %v8557_v12  ;;  %v12344_v20 = vpop.f32.mrb[227].mxu0  ;;  %v12347_v23 = vmul.f32 %v3478_v9, %v12256_v31  ;;  %v12350_v41 = vmul.f32 %v3481_v50, %v12263_v24  ;;  %v12353_v61 = vmul.f32 %v3482_v17, %v12271_v39  ;;  %v8213_v12 = vld [vmem:[%s16050_s5 + $0x1d0] ss:$8 sps:$4 sm:$0xff]  }
 0x2f4   :  { %16778 = vst [vmem:[#allocation64_spill] sm:$0xff] %v12344_v20  ;;  %v12356_v2 = vmul.f32 0.5, %v11884_v59  ;;  %v5598_v35 = vpack.c.bf16 %v5366_v36, %v5362_v27  ;;  %v5361_v55 = vmul.f32 %v5041_v37, %v2801_v4  ;;  %v3486_v1 = vmul.f32 %v3166_v7, %v12322_v15  ;;  %v8215_v9 = vld [vmem:[%s16050_s5 + $0x1d4] ss:$8 sps:$4 sm:$0xff]  }
 0x2f5   :  { %v5365_v47 = vmul.f32 %v5045_v21, %v2805_v58  ;;  %v12366_v50 = vmul.f32 %v3485_v51, %v12305_v14  ;;  %v3170_v16 = vmul.f32 0.044715, %v12335_v63  ;;  %v4098_v59 = vadd.f32 %v12130_v22, %v12020_v6  ;;  %v16779_v58 = vld [vmem:[#allocation22_spill] sm:$0xff]  ;;  %6528 = vmatprep.subr.bf16.mxu1 %v8215_v9  ;;  %v12385_v27 = vpop.f32.mrb[228].mxu0 }
 0x2f6   :  { %v4102_v4 = vadd.f32 %v12198_v38, %v12100_v34  ;;  %6311 = vmatprep.mubr.bf16.mxu1 %v5598_v35  ;;  %v2813_v17 = vmul.f32 0.5, %v11944_v5  ;;  %v3489_v54 = vmul.f32 %v3169_v57, %v12326_v26  ;;  %v12378_v43 = vadd.f32 %v11805_v19, %v10401_v48  ;;  %6529 = vmatpush1.bf16.msra.mxu1 %v8213_v12  ;;  %v16781_v57 = vld [vmem:[#allocation84_spill] sm:$0xff]  ;;  %v12397_v36 = vpop.f32.mrb[229].mxu0 }
 0x2f7   :  { %2543 = vmatmul.mubr.bf16.gmra.mrb[76].mxu0 %v16779_v58  ;;  %v5597_v37 = vpack.c.bf16 %v5365_v47, %v5361_v55  ;;  %v12381_v7 = vmul.f32 0.5, %v12020_v6  ;;  %v4418_v22 = vmul.f32 0.7978846, %v4098_v59  ;;  %v4097_v38 = vadd.f32 %v12117_v46, %v12009_v0  ;;  %16780 = vst [vmem:[#allocation32_spill] sm:$0xff] %v12385_v27  ;;  %16782 = vst [vmem:[#allocation58_spill] sm:$0xff] %v12397_v36  ;;  %v16783_v47 = vld [vmem:[#allocation99_spill] sm:$0xff] }
 0x2f8   :  { %v4422_v51 = vmul.f32 0.7978846, %v4102_v4  ;;  %2552 = vmatprep.mubr.bf16.mxu0 %v16462_v53  ;;  %v12389_v5 = vmul.f32 %v3486_v1, %v12322_v15  ;;  %v12392_v19 = vmul.f32 0.5, %v12100_v34  ;;  %v3173_v6 = vmul.f32 0.044715, %v12378_v43  ;;  %v12404_v1 = vpop.f32.mrb[230].mxu0 }
 0x2f9   :  { %6312 = vmatmul.mubr.bf16.gmra.mrb[116].mxu1 %v5597_v37  ;;  %v4101_v55 = vadd.f32 %v16781_v57, %v12079_v30  ;;  %v8559_v46 = vpop.eup %8558  ;;  %v3490_v21 = vmul.f32 %v3170_v16, %v12335_v63  ;;  %8566 = vtanh.f32 %v4418_v22  ;;  %v4417_v35 = vmul.f32 0.7978846, %v4097_v38  ;;  %16784 = vst [vmem:[#allocation22_spill] sm:$0xff] %v12404_v1  ;;  %v16785_v4 = vld [vmem:[#allocation42_spill] sm:$0xff]  ;;  %v12410_v37 = vpop.f32.mrb[231].mxu0  ;;  %v16788_v36 = vld [vmem:[#allocation39_spill] sm:$0xff] }
 0x2fa   :  { %v12402_v12 = vadd.f32 %v16783_v47, %v10405_v45  ;;  %v8561_v34 = vpop.eup %8560  ;;  %v5050_v9 = vadd.f32 1.0, %v8559_v46  ;;  %8568 = vtanh.f32 %v4422_v51  ;;  %v12408_v58 = vadd.f32 %v16785_v4, %v10401_v48  ;;  %16786 = vst [vmem:[#allocation84_spill] sm:$0xff] %v12410_v37 }
 0x2fb   :  { %v4421_v59 = vmul.f32 0.7978846, %v4101_v55  ;;  %v8563_v57 = vpop.eup %8562  ;;  %v5054_v16 = vadd.f32 1.0, %v8561_v34  ;;  %v12413_v22 = vmul.f32 %v3489_v54, %v12326_v26  ;;  %v12416_v38 = vmul.f32 0.5, %v12009_v0  ;;  %v16787_v55 = vld [vmem:[#allocation103_spill] sm:$0xff] }
 0x2fc   :  { %8570 = vtanh.f32 %v4417_v35  ;;  %v8565_v47 = vpop.eup %8564  ;;  %v5049_v1 = vadd.f32 1.0, %v8563_v57  ;;  %v3493_v51 = vmul.f32 %v3173_v6, %v12378_v43  ;;  %v12421_v46 = vadd.f32 %v16787_v55, %v10405_v45 }
 0x2fd   :  { %8572 = vtanh.f32 %v4421_v59  ;;  %v5370_v4 = vmul.f32 %v5050_v9, %v12309_v8  ;;  %v5374_v34 = vmul.f32 %v5054_v16, %v12318_v49  ;;  %v5053_v37 = vadd.f32 1.0, %v8565_v47  ;;  %v16790_v47 = vld [vmem:[#allocation104_spill] sm:$0xff] }
 0x2fe   :  { %v3174_v54 = vmul.f32 0.044715, %v12402_v12  ;;  %v12428_v0 = vmul.f32 %v3490_v21, %v12335_v63  ;;  %v2821_v35 = vmul.f32 0.5, %v12079_v30  ;;  %v3177_v6 = vmul.f32 0.044715, %v12408_v58 }
 0x2ff   :  { %2553 = vmatmul.mubr.bf16.gmra.mrb[80].mxu0 %v16788_v36  ;;  %v4106_v59 = vadd.f32 %v12219_v13, %v12122_v28  ;;  %v5602_v8 = vpack.c.bf16 %v5374_v34, %v5370_v4  ;;  %v5369_v49 = vmul.f32 %v5049_v1, %v12356_v2  ;;  %v5373_v9 = vmul.f32 %v5053_v37, %v2813_v17  ;;  %v12439_v36 = vpop.f32.mrb[232].mxu0 }
 0x300   :  { %2562 = vmatprep.mubr.bf16.mxu0 %v16462_v53  ;;  %v12437_v57 = vmul.f32 0.5, %v12122_v28  ;;  %16789 = vst [vmem:[#allocation99_spill] sm:$0xff] %v12439_v36  ;;  %v3178_v21 = vmul.f32 0.044715, %v12421_v46  ;;  %v4110_v30 = vadd.f32 %v12259_v62, %v12183_v42  ;;  %v12446_v13 = vadd.f32 %v16790_v47, %v10401_v48  ;;  %v12448_v55 = vpop.f32.mrb[233].mxu0 }
 0x301   :  { %v4426_v16 = vmul.f32 0.7978846, %v4106_v59  ;;  %16791 = vst [vmem:[#allocation42_spill] sm:$0xff] %v12448_v55  ;;  %6321 = vmatprep.mubr.bf16.mxu1 %v5602_v8  ;;  %v5601_v2 = vpack.c.bf16 %v5373_v9, %v5369_v49  ;;  %v12451_v17 = vmul.f32 %v3493_v51, %v12378_v43  ;;  %v3494_v28 = vmul.f32 %v3174_v54, %v12402_v12  ;;  %v12456_v37 = vpop.f32.mrb[234].mxu0  ;;  %v16793_v49 = vld [vmem:[#allocation20_spill] sm:$0xff]  ;;  %v16796_v55 = vld [vmem:[#allocation38_spill] sm:$0xff] }
 0x302   :  { %v4105_v1 = vadd.f32 %v12214_v56, %v12112_v32  ;;  %16792 = vst [vmem:[#allocation103_spill] sm:$0xff] %v12456_v37  ;;  %v3497_v62 = vmul.f32 %v3177_v6, %v12408_v58  ;;  %v4430_v4 = vmul.f32 0.7978846, %v4110_v30  ;;  %v3181_v34 = vmul.f32 0.044715, %v12446_v13  ;;  %v16794_v56 = vld [vmem:[#allocation70_spill] sm:$0xff] }
 0x303   :  { %8574 = vtanh.f32 %v4426_v16  ;;  %v8567_v59 = vpop.eup %8566  ;;  %6322 = vmatmul.mubr.bf16.gmra.mrb[120].mxu1 %v5601_v2  ;;  %v4109_v8 = vadd.f32 %v12222_v40, %v12161_v29  ;;  %v12464_v54 = vadd.f32 %v16793_v49, %v10405_v45  ;;  %v12468_v9 = vadd.f32 %v16794_v56, %v10401_v48  ;;  %v12475_v49 = vpop.f32.mrb[235].mxu0 }
 0x304   :  { %v4425_v51 = vmul.f32 0.7978846, %v4105_v1  ;;  %v8569_v47 = vpop.eup %8568  ;;  %v5058_v6 = vadd.f32 1.0, %v8567_v59  ;;  %v3498_v30 = vmul.f32 %v3178_v21, %v12421_v46  ;;  %v12472_v16 = vmul.f32 0.5, %v12183_v42  ;;  %16795 = vst [vmem:[#allocation39_spill] sm:$0xff] %v12475_v49  ;;  %v16797_v42 = vld [vmem:[#allocation19_spill] sm:$0xff] }
 0x305   :  { %8576 = vtanh.f32 %v4430_v4  ;;  %v5062_v37 = vadd.f32 1.0, %v8569_v47  ;;  %v3501_v40 = vmul.f32 %v3181_v34, %v12446_v13  ;;  %v4429_v1 = vmul.f32 0.7978846, %v4109_v8 }
 0x306   :  { %v8571_v2 = vpop.eup %8570  ;;  %8578 = vtanh.f32 %v4425_v51  ;;  %v5378_v36 = vmul.f32 %v5058_v6, %v12381_v7  ;;  %v3182_v21 = vmul.f32 0.044715, %v12464_v54  ;;  %v12482_v27 = vadd.f32 %v16797_v42, %v10405_v45  ;;  %v12499_v6 = vpop.f32.mrb[236].mxu0 }
 0x307   :  { %2563 = vmatmul.mubr.bf16.gmra.mrb[84].mxu0 %v16796_v55  ;;  %v8573_v56 = vpop.eup %8572  ;;  %v5057_v59 = vadd.f32 1.0, %v8571_v2  ;;  %v5382_v4 = vmul.f32 %v5062_v37, %v12392_v19  ;;  %8580 = vtanh.f32 %v4429_v1  ;;  %v3185_v8 = vmul.f32 0.044715, %v12468_v9  ;;  %16798 = vst [vmem:[#allocation104_spill] sm:$0xff] %v12499_v6  ;;  %v8216_v19 = vld [vmem:[%s16050_s5 + $0x1e0] ss:$8 sps:$4 sm:$0xff]  }
 0x308   :  { %2572 = vmatprep.mubr.bf16.mxu0 %v16462_v53  ;;  %v5061_v34 = vadd.f32 1.0, %v8573_v56  ;;  %v12488_v55 = vmul.f32 %v3494_v28, %v12402_v12  ;;  %v12491_v7 = vmul.f32 %v3497_v62, %v12408_v58  ;;  %v12494_v51 = vmul.f32 0.5, %v12112_v32  ;;  %v12508_v62 = vpop.f32.mrb[237].mxu0  ;;  %v8218_v32 = vld [vmem:[%s16050_s5 + $0x1e4] ss:$8 sps:$4 sm:$0xff]  }
 0x309   :  { %v12497_v47 = vmul.f32 0.5, %v12161_v29  ;;  %v5606_v37 = vpack.c.bf16 %v5382_v4, %v5378_v36  ;;  %v5377_v2 = vmul.f32 %v5057_v59, %v12416_v38  ;;  %v12506_v1 = vmul.f32 %v3498_v30, %v12421_v46  ;;  %16799 = vst [vmem:[#allocation20_spill] sm:$0xff] %v12508_v62  ;;  %v16801_v4 = vld [vmem:[#allocation106_spill] sm:$0xff]  ;;  %6530 = vmatprep.subr.bf16.mxu1 %v8218_v32 }
 0x30a   :  { %v5381_v28 = vmul.f32 %v5061_v34, %v2821_v35  ;;  %v12514_v29 = vmul.f32 %v3501_v40, %v12446_v13  ;;  %v3502_v56 = vmul.f32 %v3182_v21, %v12464_v54  ;;  %v4114_v36 = vadd.f32 %v12286_v3, %v12210_v60  ;;  %v12521_v35 = vpop.f32.mrb[238].mxu0  ;;  %6531 = vmatpush1.bf16.msra.mxu1 %v8216_v19  ;;  %v16805_v19 = vld [vmem:[#allocation107_spill] sm:$0xff] }
 0x30b   :  { %v4118_v38 = vadd.f32 %v12347_v23, %v12256_v31  ;;  %16800 = vst [vmem:[#allocation70_spill] sm:$0xff] %v12521_v35  ;;  %6331 = vmatprep.mubr.bf16.mxu1 %v5606_v37  ;;  %v3505_v59 = vmul.f32 %v3185_v8, %v12468_v9  ;;  %v3186_v42 = vmul.f32 0.044715, %v12482_v27  ;;  %v12527_v40 = vadd.f32 %v16801_v4, %v10401_v48  ;;  %v16803_v4 = vld [vmem:[#allocation40_spill] sm:$0xff]  ;;  %v12558_v35 = vpop.f32.mrb[239].mxu0 }
 0x30c   :  { %v5605_v30 = vpack.c.bf16 %v5381_v28, %v5377_v2  ;;  %v12530_v34 = vmul.f32 0.5, %v12210_v60  ;;  %v4434_v3 = vmul.f32 0.7978846, %v4114_v36  ;;  %v4113_v23 = vadd.f32 %v12279_v10, %v12187_v44  ;;  %v16802_v28 = vld [vmem:[#allocation4_spill] sm:$0xff] }
 0x30d   :  { %v8575_v21 = vpop.eup %8574  ;;  %v4438_v62 = vmul.f32 0.7978846, %v4118_v38  ;;  %v3189_v8 = vmul.f32 0.044715, %v12527_v40  ;;  %v4117_v2 = vadd.f32 %v12293_v25, %v12240_v18  ;;  %v12539_v32 = vadd.f32 %v16802_v28, %v10405_v45  ;;  %v16804_v38 = vld [vmem:[#allocation9_spill] sm:$0xff] }
 0x30e   :  { %6332 = vmatmul.mubr.bf16.gmra.mrb[124].mxu1 %v5605_v30  ;;  %v5066_v37 = vadd.f32 1.0, %v8575_v21  ;;  %8582 = vtanh.f32 %v4434_v3  ;;  %v4433_v36 = vmul.f32 0.7978846, %v4113_v23  ;;  %v12544_v10 = vadd.f32 %v16804_v38, %v10401_v48 }
 0x30f   :  { %2573 = vmatmul.mubr.bf16.gmra.mrb[88].mxu0 %v16803_v4  ;;  %v8577_v60 = vpop.eup %8576  ;;  %v12548_v30 = vadd.f32 %v16805_v19, %v10405_v45  ;;  %v12552_v28 = vmul.f32 %v3502_v56, %v12464_v54  ;;  %v12555_v4 = vmul.f32 0.5, %v12256_v31  ;;  %8584 = vtanh.f32 %v4438_v62 }
 0x310   :  { %2582 = vmatprep.mubr.bf16.mxu0 %v16462_v53  ;;  %v8579_v25 = vpop.eup %8578  ;;  %v5070_v21 = vadd.f32 1.0, %v8577_v60  ;;  %v4437_v23 = vmul.f32 0.7978846, %v4117_v2  ;;  %8586 = vtanh.f32 %v4433_v36  ;;  %v3190_v38 = vmul.f32 0.044715, %v12539_v32 }
 0x311   :  { %v5065_v3 = vadd.f32 1.0, %v8579_v25  ;;  %v8581_v19 = vpop.eup %8580  ;;  %v5386_v6 = vmul.f32 %v5066_v37, %v12437_v57  ;;  %v3506_v60 = vmul.f32 %v3186_v42, %v12482_v27  ;;  %v3509_v56 = vmul.f32 %v3189_v8, %v12527_v40  ;;  %v12571_v37 = vpop.f32.mrb[240].mxu0 }
 0x312   :  { %v5390_v49 = vmul.f32 %v5070_v21, %v12472_v16  ;;  %v5069_v20 = vadd.f32 1.0, %v8581_v19  ;;  %8588 = vtanh.f32 %v4437_v23  ;;  %v3193_v31 = vmul.f32 0.044715, %v12544_v10  ;;  %v12578_v23 = vpop.f32.mrb[241].mxu0 }
 0x313   :  { %v3194_v62 = vmul.f32 0.044715, %v12548_v30  ;;  %v12567_v36 = vmul.f32 %v3505_v59, %v12468_v9  ;;  %v2833_v25 = vmul.f32 0.5, %v12187_v44  ;;  %v2837_v57 = vmul.f32 0.5, %v12240_v18  ;;  %16806 = vst [vmem:[#allocation38_spill] sm:$0xff] %v12578_v23 }
 0x314   :  { %v5610_v2 = vpack.c.bf16 %v5390_v49, %v5386_v6  ;;  %v5385_v16 = vmul.f32 %v5065_v3, %v12494_v51  ;;  %v5389_v42 = vmul.f32 %v5069_v20, %v12497_v47  ;;  %v3510_v8 = vmul.f32 %v3190_v38, %v12539_v32  ;;  %v16807_v51 = vld [vmem:[#allocation108_spill] sm:$0xff]  ;;  %v12592_v47 = vpop.f32.mrb[242].mxu0  ;;  %v16809_v38 = vld [vmem:[#allocation41_spill] sm:$0xff] }
 0x315   :  { %v4122_v21 = vadd.f32 %v12353_v61, %v12271_v39  ;;  %v12581_v49 = vmul.f32 %v3506_v60, %v12482_v27  ;;  %v12584_v44 = vmul.f32 %v3509_v56, %v12527_v40  ;;  %v4126_v18 = vadd.f32 %v12389_v5, %v12322_v15  ;;  %16808 = vst [vmem:[#allocation19_spill] sm:$0xff] %v12592_v47 }
 0x316   :  { %6341 = vmatprep.mubr.bf16.mxu1 %v5610_v2  ;;  %v12590_v20 = vadd.f32 %v16807_v51, %v10401_v48  ;;  %v5609_v6 = vpack.c.bf16 %v5389_v42, %v5385_v16  ;;  %v3513_v61 = vmul.f32 %v3193_v31, %v12544_v10  ;;  %v3514_v59 = vmul.f32 %v3194_v62, %v12548_v30  ;;  %v16810_v16 = vld [vmem:[#allocation109_spill] sm:$0xff] }
 0x317   :  { %v4442_v3 = vmul.f32 0.7978846, %v4122_v21  ;;  %2583 = vmatmul.mubr.bf16.gmra.mrb[92].mxu0 %v16809_v38  ;;  %v4446_v19 = vmul.f32 0.7978846, %v4126_v18  ;;  %v4121_v5 = vadd.f32 %v12350_v41, %v12263_v24  ;;  %v4125_v56 = vadd.f32 %v12366_v50, %v12305_v14  ;;  %v16811_v50 = vld [vmem:[#allocation79_spill] sm:$0xff] }
 0x318   :  { %v3197_v60 = vmul.f32 0.044715, %v12590_v20  ;;  %2592 = vmatprep.mubr.bf16.mxu0 %v16462_v53  ;;  %v8583_v2 = vpop.eup %8582  ;;  %6342 = vmatmul.mubr.bf16.gmra.mrb[128].mxu1 %v5609_v6  ;;  %v12604_v31 = vmul.f32 %v3510_v8, %v12539_v32  ;;  %v12607_v62 = vmul.f32 0.5, %v12271_v39  ;;  %v12611_v42 = vadd.f32 %v16810_v16, %v10405_v45 }
 0x319   :  { %8590 = vtanh.f32 %v4442_v3  ;;  %v8585_v21 = vpop.eup %8584  ;;  %v5074_v41 = vadd.f32 1.0, %v8583_v2  ;;  %v4441_v18 = vmul.f32 0.7978846, %v4121_v5  ;;  %v12615_v51 = vadd.f32 %v16811_v50, %v10401_v48  ;;  %v16812_v2 = vld [vmem:[#allocation111_spill] sm:$0xff]  ;;  %v12626_v5 = vpop.f32.mrb[243].mxu0 }
 0x31a   :  { %8592 = vtanh.f32 %v4446_v19  ;;  %v8587_v6 = vpop.eup %8586  ;;  %v5078_v38 = vadd.f32 1.0, %v8585_v21  ;;  %v12618_v8 = vmul.f32 %v3513_v61, %v12544_v10  ;;  %v2846_v39 = vmul.f32 0.5, %v12322_v15  ;;  %16813 = vst [vmem:[#allocation106_spill] sm:$0xff] %v12626_v5 }
 0x31b   :  { %v4445_v3 = vmul.f32 0.7978846, %v4125_v56  ;;  %v5073_v47 = vadd.f32 1.0, %v8587_v6  ;;  %v3517_v16 = vmul.f32 %v3197_v60, %v12590_v20  ;;  %8594 = vtanh.f32 %v4441_v18  ;;  %v12638_v6 = vpop.f32.mrb[244].mxu0 }
 0x31c   :  { %v12624_v19 = vadd.f32 %v16812_v2, %v10405_v45  ;;  %v8589_v50 = vpop.eup %8588  ;;  %v5394_v23 = vmul.f32 %v5074_v41, %v12530_v34  ;;  %v5398_v21 = vmul.f32 %v5078_v38, %v12555_v4  ;;  %v3198_v61 = vmul.f32 0.044715, %v12611_v42  ;;  %16814 = vst [vmem:[#allocation4_spill] sm:$0xff] %v12638_v6  ;;  %v12646_v41 = vpop.f32.mrb[245].mxu0 }
 0x31d   :  { %8596 = vtanh.f32 %v4445_v3  ;;  %v5077_v15 = vadd.f32 1.0, %v8589_v50  ;;  %v12632_v56 = vmul.f32 %v3514_v59, %v12548_v30  ;;  %v12635_v60 = vmul.f32 0.5, %v12263_v24  ;;  %16815 = vst [vmem:[#allocation40_spill] sm:$0xff] %v12646_v41  ;;  %v16816_v59 = vld [vmem:[#allocation43_spill] sm:$0xff]  ;;  %v16817_v50 = vld [vmem:[#allocation112_spill] sm:$0xff] }
 0x31e   :  { %v3201_v18 = vmul.f32 0.044715, %v12615_v51  ;;  %v5614_v2 = vpack.c.bf16 %v5398_v21, %v5394_v23  ;;  %v2845_v5 = vmul.f32 0.5, %v12305_v14  ;;  %v12642_v34 = vmul.f32 0.5, %v12335_v63  ;;  %v12655_v14 = vpop.f32.mrb[246].mxu0 }
 0x31f   :  { %v4130_v4 = vadd.f32 %v12428_v0, %v12335_v63  ;;  %2593 = vmatmul.mubr.bf16.gmra.mrb[96].mxu0 %v16816_v59  ;;  %v5393_v38 = vmul.f32 %v5073_v47, %v2833_v25  ;;  %v5397_v24 = vmul.f32 %v5077_v15, %v2837_v57  ;;  %v4134_v3 = vadd.f32 %v12488_v55, %v12402_v12 }
 0x320   :  { %v12653_v23 = vadd.f32 %v16817_v50, %v10401_v48  ;;  %16818 = vst [vmem:[#allocation9_spill] sm:$0xff] %v12655_v14  ;;  %2602 = vmatprep.mubr.bf16.mxu0 %v16462_v53  ;;  %6351 = vmatprep.mubr.bf16.mxu1 %v5614_v2  ;;  %v12659_v63 = vmul.f32 %v3517_v16, %v12590_v20  ;;  %v3202_v25 = vmul.f32 0.044715, %v12624_v19  ;;  %v12665_v21 = vmul.f32 0.5, %v12402_v12 }
 0x321   :  { %v3518_v0 = vmul.f32 %v3198_v61, %v12611_v42  ;;  %v4450_v57 = vmul.f32 0.7978846, %v4130_v4  ;;  %v5613_v47 = vpack.c.bf16 %v5397_v24, %v5393_v38  ;;  %v3521_v55 = vmul.f32 %v3201_v18, %v12615_v51  ;;  %v16819_v61 = vld [vmem:[#allocation7_spill] sm:$0xff]  ;;  %v16820_v18 = vld [vmem:[#allocation29_spill] sm:$0xff] }
 0x322   :  { %v4454_v48 = vmul.f32 0.7978846, %v4134_v3  ;;  %v4129_v2 = vadd.f32 %v12413_v22, %v12326_v26  ;;  %v4133_v16 = vadd.f32 %v12451_v17, %v12378_v43  ;;  %v12673_v59 = vadd.f32 %v16819_v61, %v10405_v45 }
 0x323   :  { %v8591_v15 = vpop.eup %8590  ;;  %8598 = vtanh.f32 %v4450_v57  ;;  %6352 = vmatmul.mubr.bf16.gmra.mrb[132].mxu1 %v5613_v47  ;;  %v3205_v12 = vmul.f32 0.044715, %v12653_v23  ;;  %v1597_v24 = vsub.s32 2, %v16820_v18  ;;  %v1601_v22 = vsub.s32 3, %v16820_v18  ;;  %v9023_v47 = vld [vmem:[%s16049_s4] sm:$0xf] }
 0x324   :  { %v8593_v4 = vpop.eup %8592  ;;  %v5082_v38 = vadd.f32 1.0, %v8591_v15  ;;  %8600 = vtanh.f32 %v4454_v48  ;;  %v4449_v50 = vmul.f32 0.7978846, %v4129_v2  ;;  %v4453_v57 = vmul.f32 0.7978846, %v4133_v16  ;;  %v12688_v15 = vpop.f32.mrb[247].mxu0 }
 0x325   :  { %v5086_v3 = vadd.f32 1.0, %v8593_v4  ;;  %v8595_v14 = vpop.eup %8594  ;;  %v12680_v41 = vmul.f32 %v3518_v0, %v12611_v42  ;;  %v3206_v45 = vmul.f32 0.044715, %v12673_v59  ;;  %v12686_v48 = vrot.slane %v9023_v47, %v1597_v24  ;;  %v16822_v18 = vld [vmem:[#allocation81_spill] sm:$0xff] }
 0x326   :  { %v5402_v17 = vmul.f32 %v5082_v38, %v12607_v62  ;;  %v5081_v61 = vadd.f32 1.0, %v8595_v14  ;;  %8602 = vtanh.f32 %v4449_v50  ;;  %v12690_v4 = vrot.slane %v9023_v47, %v1601_v22  ;;  %v16821_v62 = vld [vmem:[#allocation44_spill] sm:$0xff]  ;;  %v8219_v24 = vld [vmem:[%s16050_s5 + $0x1f0] ss:$8 sps:$4 sm:$0xff]   ;;  %v12704_v14 = vpop.f32.mrb[248].mxu0 }
 0x327   :  { %v8597_v2 = vpop.eup %8596  ;;  %v5406_v16 = vmul.f32 %v5086_v3, %v2846_v39  ;;  %2603 = vmatmul.mubr.bf16.gmra.mrb[100].mxu0 %v16821_v62  ;;  %v3522_v38 = vmul.f32 %v3202_v25, %v12624_v19  ;;  %8604 = vtanh.f32 %v4453_v57  ;;  %v12696_v6 = vadd.f32 %v16822_v18, %v12686_v48  ;;  %v8221_v39 = vld [vmem:[%s16050_s5 + $0x1f4] ss:$8 sps:$4 sm:$0xff]   ;;  %16823 = vst [vmem:[#allocation107_spill] sm:$0xff] %v12704_v14  ;;  %v12712_v57 = vpop.f32.mrb[249].mxu0  ;;  %v16825_v62 = vld [vmem:[#allocation28_spill] sm:$0xff] }
 0x328   :  { %v5085_v0 = vadd.f32 1.0, %v8597_v2  ;;  %2612 = vmatprep.mubr.bf16.mxu0 %v16462_v53  ;;  %v12708_v25 = vmul.f32 %v3521_v55, %v12615_v51  ;;  %v3525_v50 = vmul.f32 %v3205_v12, %v12653_v23  ;;  %v2849_v18 = vmul.f32 0.5, %v12326_v26  ;;  %16824 = vst [vmem:[#allocation108_spill] sm:$0xff] %v12712_v57  ;;  %6532 = vmatprep.subr.bf16.mxu1 %v8221_v39 }
 0x329   :  { %v5618_v3 = vpack.c.bf16 %v5406_v16, %v5402_v17  ;;  %v5401_v22 = vmul.f32 %v5081_v61, %v12635_v60  ;;  %v2955_v2 = vmul.f32 0.044715, %v12696_v6  ;;  %v12718_v14 = vadd.f32 %v16825_v62, %v12690_v4  ;;  %v12720_v17 = vpop.f32.mrb[250].mxu0  ;;  %6533 = vmatpush1.bf16.msra.mxu1 %v8219_v24 }
 0x32a   :  { %v5405_v47 = vmul.f32 %v5085_v0, %v2845_v5  ;;  %16826 = vst [vmem:[#allocation41_spill] sm:$0xff] %v12720_v17  ;;  %v2853_v55 = vmul.f32 0.5, %v12378_v43  ;;  %v3526_v12 = vmul.f32 %v3206_v45, %v12673_v59  ;;  %v4138_v26 = vadd.f32 %v12506_v1, %v12421_v46  ;;  %v16827_v0 = vld [vmem:[#allocation80_spill] sm:$0xff] }
 0x32b   :  { %6361 = vmatprep.mubr.bf16.mxu1 %v5618_v3  ;;  %v4142_v5 = vadd.f32 %v12552_v28, %v12464_v54  ;;  %v12729_v16 = vmul.f32 %v3522_v38, %v12624_v19  ;;  %v3275_v61 = vmul.f32 %v2955_v2, %v12696_v6  ;;  %v2239_v39 = vadd.f32 %v16827_v0, %v12686_v48 }
 0x32c   :  { %v5617_v60 = vpack.c.bf16 %v5405_v47, %v5401_v22  ;;  %v12735_v43 = vmul.f32 %v3525_v50, %v12653_v23  ;;  %v12738_v45 = vmul.f32 0.5, %v12421_v46  ;;  %v4458_v1 = vmul.f32 0.7978846, %v4138_v26  ;;  %v16828_v46 = vld [vmem:[#allocation45_spill] sm:$0xff] }
 0x32d   :  { %v8599_v3 = vpop.eup %8598  ;;  %v4462_v62 = vmul.f32 0.7978846, %v4142_v5  ;;  %v3595_v38 = vmul.f32 %v3275_v61, %v12696_v6  ;;  %v2956_v22 = vmul.f32 0.044715, %v12718_v14  ;;  %v2959_v47 = vmul.f32 0.044715, %v2239_v39 }
 0x32e   :  { %v8601_v28 = vpop.eup %8600  ;;  %6362 = vmatmul.mubr.bf16.gmra.mrb[136].mxu1 %v5617_v60  ;;  %v5090_v24 = vadd.f32 1.0, %v8599_v3  ;;  %v12743_v0 = vmul.f32 %v3526_v12, %v12673_v59  ;;  %8606 = vtanh.f32 %v4458_v1  ;;  %v4137_v50 = vadd.f32 %v12491_v7, %v12408_v58 }
 0x32f   :  { %v5094_v2 = vadd.f32 1.0, %v8601_v28  ;;  %2613 = vmatmul.mubr.bf16.gmra.mrb[104].mxu0 %v16828_v46  ;;  %v3915_v5 = vadd.f32 %v3595_v38, %v12696_v6  ;;  %8608 = vtanh.f32 %v4462_v62  ;;  %v3279_v60 = vmul.f32 %v2959_v47, %v2239_v39  ;;  %v16829_v28 = vld [vmem:[#allocation92_spill] sm:$0xff]  ;;  %v12758_v46 = vpop.f32.mrb[251].mxu0 }
 0x330   :  { %v5410_v26 = vmul.f32 %v5090_v24, %v12642_v34  ;;  %2622 = vmatprep.mubr.bf16.mxu0 %v16462_v53  ;;  %v8603_v61 = vpop.eup %8602  ;;  %v4141_v12 = vadd.f32 %v12514_v29, %v12446_v13  ;;  %v4457_v1 = vmul.f32 0.7978846, %v4137_v50  ;;  %v12756_v7 = vadd.f32 %v16829_v28, %v12690_v4  ;;  %16830 = vst [vmem:[#allocation109_spill] sm:$0xff] %v12758_v46  ;;  %v16831_v53 = vld [vmem:[#allocation90_spill] sm:$0xff]  ;;  %v12765_v29 = vpop.f32.mrb[252].mxu0 }
 0x331   :  { %v5414_v3 = vmul.f32 %v5094_v2, %v12665_v21  ;;  %v8605_v34 = vpop.eup %8604  ;;  %v5089_v24 = vadd.f32 1.0, %v8603_v61  ;;  %v3276_v62 = vmul.f32 %v2956_v22, %v12718_v14  ;;  %v3599_v38 = vmul.f32 %v3279_v60, %v2239_v39  ;;  %v12770_v61 = vpop.f32.mrb[253].mxu0 }
 0x332   :  { %v12763_v47 = vadd.f32 %v16831_v53, %v12686_v48  ;;  %v5093_v2 = vadd.f32 1.0, %v8605_v34  ;;  %v4461_v17 = vmul.f32 0.7978846, %v4141_v12  ;;  %8610 = vtanh.f32 %v4457_v1  ;;  %v12777_v12 = vpop.f32.mrb[254].mxu0 }
 0x333   :  { %v5622_v21 = vpack.c.bf16 %v5414_v3, %v5410_v26  ;;  %v5409_v50 = vmul.f32 %v5089_v24, %v2849_v18  ;;  %v12768_v28 = vmul.f32 0.5, %v12696_v6  ;;  %v4235_v46 = vmul.f32 0.7978846, %v3915_v5  ;;  %v16833_v26 = vld [vmem:[#allocation91_spill] sm:$0xff] }
 0x334   :  { %16832 = vst [vmem:[#allocation79_spill] sm:$0xff] %v12763_v47  ;;  %v3919_v57 = vadd.f32 %v3599_v38, %v2239_v39  ;;  %v5413_v22 = vmul.f32 %v5093_v2, %v2853_v55  ;;  %8612 = vtanh.f32 %v4461_v17  ;;  %v2960_v60 = vmul.f32 0.044715, %v12756_v7  ;;  %v16835_v38 = vld [vmem:[#allocation21_spill] sm:$0xff] }
 0x335   :  { %6371 = vmatprep.mubr.bf16.mxu1 %v5622_v21  ;;  %v12775_v3 = vadd.f32 %v16833_v26, %v12690_v4  ;;  %v2862_v18 = vmul.f32 0.5, %v12464_v54  ;;  %v12780_v1 = vmul.f32 0.5, %v2239_v39  ;;  %v2857_v6 = vmul.f32 0.5, %v12408_v58  ;;  %v16836_v58 = vld [vmem:[#allocation23_spill] sm:$0xff] }
 0x336   :  { %v2861_v5 = vmul.f32 0.5, %v12446_v13  ;;  %v5621_v34 = vpack.c.bf16 %v5413_v22, %v5409_v50  ;;  %v12785_v55 = vmul.f32 %v3276_v62, %v12718_v14  ;;  %v2963_v17 = vmul.f32 0.044715, %v12763_v47 }
 0x337   :  { %16834 = vst [vmem:[#allocation111_spill] sm:$0xff] %v12775_v3  ;;  %v4146_v24 = vadd.f32 %v12581_v49, %v12482_v27  ;;  %2623 = vmatmul.mubr.bf16.gmra.mrb[108].mxu0 %v16835_v38  ;;  %8614 = vtanh.f32 %v4235_v46  ;;  %v2964_v54 = vmul.f32 0.044715, %v12775_v3  ;;  %v4150_v39 = vadd.f32 %v12604_v31, %v12539_v32 }
 0x338   :  { %v12796_v13 = vadd.f32 %v16836_v58, %v12686_v48  ;;  %v8607_v53 = vpop.eup %8606  ;;  %6372 = vmatmul.mubr.bf16.gmra.mrb[140].mxu1 %v5621_v34  ;;  %v4239_v62 = vmul.f32 0.7978846, %v3919_v57  ;;  %v3280_v21 = vmul.f32 %v2960_v60, %v12756_v7  ;;  %v12800_v2 = vmul.f32 0.5, %v12482_v27  ;;  %v12809_v60 = vpop.f32.mrb[255].mxu0 }
 0x339   :  { %v4466_v49 = vmul.f32 0.7978846, %v4146_v24  ;;  %v8609_v50 = vpop.eup %8608  ;;  %v5098_v46 = vadd.f32 1.0, %v8607_v53  ;;  %v12803_v22 = vmul.f32 0.5, %v12539_v32  ;;  %v4470_v26 = vmul.f32 0.7978846, %v4150_v39 }
 0x33a   :  { %16837 = vst [vmem:[#allocation43_spill] sm:$0xff] %v12796_v13  ;;  %v2967_v31 = vmul.f32 0.044715, %v12796_v13  ;;  %v5102_v38 = vadd.f32 1.0, %v8609_v50  ;;  %v3283_v58 = vmul.f32 %v2963_v17, %v12763_v47  ;;  %v4145_v57 = vadd.f32 %v12567_v36, %v12468_v9  ;;  %v16838_v50 = vld [vmem:[#allocation8_spill] sm:$0xff] }
 0x33b   :  { %8616 = vtanh.f32 %v4466_v49  ;;  %v5418_v27 = vmul.f32 %v5098_v46, %v12738_v45  ;;  %v3284_v34 = vmul.f32 %v2964_v54, %v12775_v3  ;;  %v4149_v32 = vadd.f32 %v12584_v44, %v12527_v40  ;;  %v12824_v46 = vpop.f32.mrb[0].mxu0 }
 0x33c   :  { %8618 = vtanh.f32 %v4470_v26  ;;  %v8611_v24 = vpop.eup %8610  ;;  %v5422_v39 = vmul.f32 %v5102_v38, %v2862_v18  ;;  %v4465_v53 = vmul.f32 0.7978846, %v4145_v57  ;;  %v12817_v17 = vadd.f32 %v16838_v50, %v12690_v4  ;;  %v16840_v38 = vld [vmem:[#allocation11_spill] sm:$0xff]  ;;  %v12831_v50 = vpop.f32.mrb[1].mxu0 }
 0x33d   :  { %v12821_v36 = vadd.f32 %v12226_v33, %v12686_v48  ;;  %8620 = vtanh.f32 %v4239_v62  ;;  %v5097_v49 = vadd.f32 1.0, %v8611_v24  ;;  %v3287_v45 = vmul.f32 %v2967_v31, %v12796_v13 }
 0x33e   :  { %v4469_v54 = vmul.f32 0.7978846, %v4149_v32  ;;  %v8613_v26 = vpop.eup %8612  ;;  %v5626_v44 = vpack.c.bf16 %v5422_v39, %v5418_v27  ;;  %8622 = vtanh.f32 %v4465_v53  ;;  %v2968_v18 = vmul.f32 0.044715, %v12817_v17  ;;  %v12837_v32 = vpop.f32.mrb[2].mxu0 }
 0x33f   :  { %16839 = vst [vmem:[#allocation112_spill] sm:$0xff] %v12821_v36  ;;  %v12829_v57 = vadd.f32 %v16840_v38, %v12690_v4  ;;  %v5101_v33 = vadd.f32 1.0, %v8613_v26  ;;  %v12834_v62 = vmul.f32 %v3280_v21, %v12756_v7  ;;  %v2971_v31 = vmul.f32 0.044715, %v12821_v36 }
 0x340   :  { %8624 = vtanh.f32 %v4469_v54  ;;  %6381 = vmatprep.mubr.bf16.mxu1 %v5626_v44  ;;  %v12840_v27 = vmul.f32 %v3283_v58, %v12763_v47  ;;  %v12843_v24 = vmul.f32 %v3284_v34, %v12775_v3  ;;  %v2865_v39 = vmul.f32 0.5, %v12468_v9  ;;  %v16844_v9 = vld [vmem:[#allocation48_spill] sm:$0xff]  ;;  %v12862_v47 = vpop.f32.mrb[3].mxu0 }
 0x341   :  { %v2869_v53 = vmul.f32 0.5, %v12527_v40  ;;  %v12847_v26 = vpop.eup %8614  ;;  %v5417_v21 = vmul.f32 %v5097_v49, %v2857_v6  ;;  %v5421_v38 = vmul.f32 %v5101_v33, %v2861_v5  ;;  %v4154_v54 = vadd.f32 %v12632_v56, %v12548_v30 }
 0x342   :  { %16841 = vst [vmem:[#allocation7_spill] sm:$0xff] %v12840_v27  ;;  %16842 = vst [vmem:[#allocation44_spill] sm:$0xff] %v12843_v24  ;;  %v4158_v44 = vadd.f32 %v12680_v41, %v12611_v42  ;;  %v12854_v58 = vmul.f32 %v3287_v45, %v12796_v13  ;;  %v3288_v34 = vmul.f32 %v2968_v18, %v12817_v17  ;;  %v2972_v27 = vmul.f32 0.044715, %v12829_v57 }
 0x343   :  { %v12860_v40 = vadd.f32 %v16844_v9, %v12686_v48  ;;  %v5625_v6 = vpack.c.bf16 %v5421_v38, %v5417_v21  ;;  %v3291_v5 = vmul.f32 %v2971_v31, %v12821_v36  ;;  %v4474_v56 = vmul.f32 0.7978846, %v4154_v54  ;;  %v16846_v31 = vld [vmem:[#allocation30_spill] sm:$0xff] }
 0x344   :  { %16843 = vst [vmem:[#allocation81_spill] sm:$0xff] %v12854_v58  ;;  %v4478_v49 = vmul.f32 0.7978846, %v4158_v44  ;;  %v12866_v41 = vmul.f32 0.5, %v12548_v30  ;;  %v4153_v18 = vadd.f32 %v12618_v8, %v12544_v10  ;;  %v4157_v9 = vadd.f32 %v12659_v63, %v12590_v20  ;;  %v12884_v44 = vpop.f32.mrb[4].mxu0 }
 0x345   :  { %16845 = vst [vmem:[#allocation28_spill] sm:$0xff] %v12860_v40  ;;  %v8617_v33 = vpop.eup %8616  ;;  %v2975_v45 = vmul.f32 0.044715, %v12860_v40  ;;  %6382 = vmatmul.mubr.bf16.gmra.mrb[144].mxu1 %v5625_v6  ;;  %8626 = vtanh.f32 %v4474_v56  ;;  %v12875_v21 = vadd.f32 %v16846_v31, %v12690_v4  ;;  %v12879_v30 = vadd.f32 %v12276_v11, %v12686_v48  ;;  %16849 = vst [vmem:[#allocation92_spill] sm:$0xff] %v12884_v44 }
 0x346   :  { %v8619_v58 = vpop.eup %8618  ;;  %v5106_v13 = vadd.f32 1.0, %v8617_v33  ;;  %v12882_v54 = vmul.f32 0.5, %v12611_v42  ;;  %8628 = vtanh.f32 %v4478_v49  ;;  %v4473_v8 = vmul.f32 0.7978846, %v4153_v18  ;;  %v12896_v49 = vpop.f32.mrb[5].mxu0 }
 0x347   :  { %16847 = vst [vmem:[#allocation80_spill] sm:$0xff] %v12875_v21  ;;  %16848 = vst [vmem:[#allocation45_spill] sm:$0xff] %v12879_v30  ;;  %v5110_v38 = vadd.f32 1.0, %v8619_v58  ;;  %v12886_v63 = vpop.eup %8620  ;;  %v3292_v6 = vmul.f32 %v2972_v27, %v12829_v57  ;;  %v4477_v56 = vmul.f32 0.7978846, %v4157_v9  ;;  %v12894_v42 = vmul.f32 %v3288_v34, %v12817_v17  ;;  %v12903_v3 = vpop.f32.mrb[6].mxu0 }
 0x348   :  { %v2976_v33 = vmul.f32 0.044715, %v12875_v21  ;;  %v2979_v31 = vmul.f32 0.044715, %v12879_v30  ;;  %v8623_v24 = vpop.eup %8622  ;;  %v5426_v11 = vmul.f32 %v5106_v13, %v12800_v2  ;;  %8630 = vtanh.f32 %v4473_v8 }
 0x349   :  { %v5430_v58 = vmul.f32 %v5110_v38, %v12803_v22  ;;  %v5105_v44 = vadd.f32 1.0, %v8623_v24  ;;  %v3295_v27 = vmul.f32 %v2975_v45, %v12860_v40  ;;  %8632 = vtanh.f32 %v4477_v56 }
 0x34a   :  { %v8625_v18 = vpop.eup %8624  ;;  %v12901_v9 = vadd.f32 %v12283_v52, %v12690_v4  ;;  %v12906_v22 = vmul.f32 %v3291_v5, %v12821_v36  ;;  %v2873_v34 = vmul.f32 0.5, %v12544_v10  ;;  %v12910_v38 = vmul.f32 %v3292_v6, %v12829_v57 }
 0x34b   :  { %v5630_v13 = vpack.c.bf16 %v5430_v58, %v5426_v11  ;;  %v5109_v2 = vadd.f32 1.0, %v8625_v18  ;;  %v2877_v24 = vmul.f32 0.5, %v12590_v20  ;;  %v3296_v45 = vmul.f32 %v2976_v33, %v12875_v21  ;;  %v16854_v20 = vld [vmem:[#allocation93_spill] sm:$0xff] }
 0x34c   :  { %16850 = vst [vmem:[#allocation90_spill] sm:$0xff] %v12901_v9  ;;  %16851 = vst [vmem:[#allocation91_spill] sm:$0xff] %v12906_v22  ;;  %v3299_v8 = vmul.f32 %v2979_v31, %v12879_v30  ;;  %v5425_v52 = vmul.f32 %v5105_v44, %v2865_v39  ;;  %v4162_v11 = vadd.f32 %v12729_v16, %v12624_v19  ;;  %v2980_v6 = vmul.f32 0.044715, %v12901_v9  ;;  %v12932_v31 = vpop.f32.mrb[7].mxu0  ;;  %v16865_v22 = vld [vmem:[#allocation53_spill] sm:$0xff] }
 0x34d   :  { %16852 = vst [vmem:[#allocation21_spill] sm:$0xff] %v12910_v38  ;;  %6391 = vmatprep.mubr.bf16.mxu1 %v5630_v13  ;;  %v5429_v56 = vmul.f32 %v5109_v2, %v2869_v53  ;;  %v4166_v5 = vadd.f32 %v12743_v0, %v12673_v59  ;;  %v12920_v10 = vmul.f32 %v3295_v27, %v12860_v40  ;;  %v12930_v53 = vmul.f32 0.5, %v12624_v19  ;;  %v16857_v2 = vld [vmem:[#allocation17_spill] sm:$0xff] }
 0x34e   :  { %v12925_v58 = vadd.f32 %v16854_v20, %v12686_v48  ;;  %v4161_v33 = vadd.f32 %v12708_v25, %v12615_v51  ;;  %v4482_v16 = vmul.f32 0.7978846, %v4162_v11  ;;  %v12935_v18 = vmul.f32 %v3296_v45, %v12875_v21  ;;  %v12947_v11 = vpop.f32.mrb[8].mxu0 }
 0x34f   :  { %16853 = vst [vmem:[#allocation23_spill] sm:$0xff] %v12920_v10  ;;  %v5629_v39 = vpack.c.bf16 %v5429_v56, %v5425_v52  ;;  %v4486_v44 = vmul.f32 0.7978846, %v4166_v5  ;;  %v8627_v0 = vpop.eup %8626  ;;  %v4165_v27 = vadd.f32 %v12735_v43, %v12653_v23  ;;  %v12941_v20 = vadd.f32 %v16857_v2, %v12690_v4  ;;  %16860 = vst [vmem:[#allocation93_spill] sm:$0xff] %v12947_v11 }
 0x350   :  { %16855 = vst [vmem:[#allocation8_spill] sm:$0xff] %v12925_v58  ;;  %16856 = vst [vmem:[#allocation11_spill] sm:$0xff] %v12935_v18  ;;  %v4481_v13 = vmul.f32 0.7978846, %v4161_v33  ;;  %v8629_v25 = vpop.eup %8628  ;;  %v5114_v19 = vadd.f32 1.0, %v8627_v0  ;;  %v12944_v52 = vmul.f32 %v3299_v8, %v12879_v30  ;;  %8634 = vtanh.f32 %v4482_v16  ;;  %v12952_v33 = vpop.f32.mrb[9].mxu0 }
 0x351   :  { %16858 = vst [vmem:[#allocation48_spill] sm:$0xff] %v12941_v20  ;;  %6392 = vmatmul.mubr.bf16.gmra.mrb[148].mxu1 %v5629_v39  ;;  %v2983_v56 = vmul.f32 0.044715, %v12925_v58  ;;  %v5118_v45 = vadd.f32 1.0, %v8629_v25  ;;  %v12950_v5 = vmul.f32 0.5, %v12673_v59  ;;  %8636 = vtanh.f32 %v4486_v44  ;;  %16861 = vst [vmem:[#allocation17_spill] sm:$0xff] %v12952_v33 }
 0x352   :  { %16859 = vst [vmem:[#allocation30_spill] sm:$0xff] %v12944_v52  ;;  %v4485_v43 = vmul.f32 0.7978846, %v4165_v27  ;;  %v8631_v2 = vpop.eup %8630  ;;  %v3300_v39 = vmul.f32 %v2980_v6, %v12901_v9  ;;  %8638 = vtanh.f32 %v4481_v13  ;;  %v2984_v8 = vmul.f32 0.044715, %v12941_v20  ;;  %v16862_v0 = vld [vmem:[#allocation50_spill] sm:$0xff] }
 0x353   :  { %v16863_v16 = vld [vmem:[#allocation59_spill] sm:$0xff]  ;;  %v12958_v30 = vpop.f32.mrb[10].mxu0  ;;  %v8633_v10 = vpop.eup %8632  ;;  %v5434_v25 = vmul.f32 %v5114_v19, %v12866_v41  ;;  %v5438_v59 = vmul.f32 %v5118_v45, %v12882_v54  ;;  %v5113_v44 = vadd.f32 1.0, %v8631_v2  ;;  %v3303_v40 = vmul.f32 %v2983_v56, %v12925_v58  ;;  %v16866_v6 = vld [vmem:[#allocation18_spill] sm:$0xff] }
 0x354   :  { %v4170_v52 = vadd.f32 %v16863_v16, %v16862_v0  ;;  %16864 = vst [vmem:[#allocation50_spill] sm:$0xff] %v12958_v30  ;;  %8640 = vtanh.f32 %v4485_v43  ;;  %v5117_v27 = vadd.f32 1.0, %v8633_v10  ;;  %v4174_v13 = vadd.f32 %v16866_v6, %v16865_v22  ;;  %v16867_v16 = vld [vmem:[#allocation46_spill] sm:$0xff] }
 0x355   :  { %v5634_v33 = vpack.c.bf16 %v5438_v59, %v5434_v25  ;;  %v3304_v11 = vmul.f32 %v2984_v8, %v12941_v20  ;;  %v12968_v30 = vadd.f32 %v16867_v16, %v12686_v48  ;;  %v16869_v41 = vld [vmem:[#allocation26_spill] sm:$0xff]  ;;  %v5433_v54 = vmul.f32 %v5113_v44, %v2873_v34  ;;  %v12980_v8 = vpop.f32.mrb[11].mxu0  ;;  %v16872_v34 = vld [vmem:[#allocation24_spill] sm:$0xff] }
 0x356   :  { %v4490_v36 = vmul.f32 0.7978846, %v4170_v52  ;;  %v12972_v19 = vadd.f32 %v16869_v41, %v12690_v4  ;;  %v5437_v45 = vmul.f32 %v5117_v27, %v2877_v24  ;;  %v4494_v10 = vmul.f32 0.7978846, %v4174_v13  ;;  %16871 = vst [vmem:[#allocation18_spill] sm:$0xff] %v12980_v8  ;;  %v16873_v24 = vld [vmem:[#allocation57_spill] sm:$0xff] }
 0x357   :  { %16868 = vst [vmem:[#allocation59_spill] sm:$0xff] %v12968_v30  ;;  %6401 = vmatprep.mubr.bf16.mxu1 %v5634_v33  ;;  %v12975_v56 = vmul.f32 %v3300_v39, %v12901_v9  ;;  %v2881_v52 = vmul.f32 0.5, %v12615_v51  ;;  %v2885_v43 = vmul.f32 0.5, %v12653_v23  ;;  %v2987_v2 = vmul.f32 0.044715, %v12968_v30  ;;  %v16874_v39 = vld [vmem:[#allocation49_spill] sm:$0xff] }
 0x358   :  { %8642 = vtanh.f32 %v4490_v36  ;;  %v5633_v25 = vpack.c.bf16 %v5437_v45, %v5433_v54  ;;  %v2988_v59 = vmul.f32 0.044715, %v12972_v19  ;;  %v4169_v44 = vadd.f32 %v16873_v24, %v16872_v34  ;;  %v16876_v23 = vld [vmem:[#allocation52_spill] sm:$0xff]  ;;  %v16877_v27 = vld [vmem:[#allocation61_spill] sm:$0xff] }
 0x359   :  { %16870 = vst [vmem:[#allocation53_spill] sm:$0xff] %v12975_v56  ;;  %8644 = vtanh.f32 %v4494_v10  ;;  %v2890_v36 = vmul.f32 0.5, %v16862_v0  ;;  %v2894_v33 = vmul.f32 0.5, %v16865_v22  ;;  %v12989_v51 = vadd.f32 %v16874_v39, %v12686_v48  ;;  %v16880_v0 = vld [vmem:[#allocation64_spill] sm:$0xff]  ;;  %v13003_v22 = vpop.f32.mrb[12].mxu0 }
 0x35a   :  { %v4173_v6 = vadd.f32 %v16877_v27, %v16876_v23  ;;  %v8635_v13 = vpop.eup %8634  ;;  %6402 = vmatmul.mubr.bf16.gmra.mrb[152].mxu1 %v5633_v25  ;;  %v12994_v16 = vmul.f32 %v3303_v40, %v12925_v58  ;;  %v12997_v41 = vmul.f32 %v3304_v11, %v12941_v20  ;;  %v4489_v54 = vmul.f32 0.7978846, %v4169_v44  ;;  %16882 = vst [vmem:[#allocation49_spill] sm:$0xff] %v13003_v22  ;;  %v13012_v25 = vpop.f32.mrb[13].mxu0  ;;  %v16886_v20 = vld [vmem:[#allocation69_spill] sm:$0xff]  ;;  %v16889_v9 = vld [vmem:[#allocation32_spill] sm:$0xff] }
 0x35b   :  { %16875 = vst [vmem:[#allocation46_spill] sm:$0xff] %v12989_v51  ;;  %v13001_v45 = vadd.f32 %v16880_v0, %v12690_v4  ;;  %v8637_v10 = vpop.eup %8636  ;;  %v5122_v24 = vadd.f32 1.0, %v8635_v13  ;;  %v3307_v39 = vmul.f32 %v2987_v2, %v12968_v30  ;;  %v13007_v27 = vmul.f32 0.5, %v16872_v34  ;;  %16883 = vst [vmem:[#allocation52_spill] sm:$0xff] %v13012_v25  ;;  %v13015_v58 = vpop.f32.mrb[14].mxu0 }
 0x35c   :  { %16878 = vst [vmem:[#allocation26_spill] sm:$0xff] %v12994_v16  ;;  %16879 = vst [vmem:[#allocation24_spill] sm:$0xff] %v12997_v41  ;;  %v13010_v40 = vmul.f32 0.5, %v16876_v23  ;;  %v8639_v11 = vpop.eup %8638  ;;  %v5126_v44 = vadd.f32 1.0, %v8637_v10  ;;  %v3308_v16 = vmul.f32 %v2988_v59, %v12972_v19  ;;  %v4493_v0 = vmul.f32 0.7978846, %v4173_v6 }
 0x35d   :  { %16881 = vst [vmem:[#allocation57_spill] sm:$0xff] %v13001_v45  ;;  %8646 = vtanh.f32 %v4489_v54  ;;  %16884 = vst [vmem:[#allocation61_spill] sm:$0xff] %v13015_v58  ;;  %v5121_v13 = vadd.f32 1.0, %v8639_v11  ;;  %v2991_v2 = vmul.f32 0.044715, %v12989_v51  ;;  %v16885_v41 = vld [vmem:[#allocation55_spill] sm:$0xff]  ;;  %v5442_v56 = vmul.f32 %v5122_v24, %v12930_v53 }
 0x35e   :  { %v8641_v22 = vpop.eup %8640  ;;  %v2992_v34 = vmul.f32 0.044715, %v13001_v45  ;;  %v4178_v23 = vadd.f32 %v16886_v20, %v16885_v41  ;;  %v5446_v25 = vmul.f32 %v5126_v44, %v12950_v5  ;;  %8648 = vtanh.f32 %v4493_v0  ;;  %v16887_v6 = vld [vmem:[#allocation31_spill] sm:$0xff]  ;;  %v16888_v54 = vld [vmem:[#allocation25_spill] sm:$0xff]  ;;  %v16891_v53 = vld [vmem:[#allocation58_spill] sm:$0xff] }
 0x35f   :  { %v5125_v10 = vadd.f32 1.0, %v8641_v22  ;;  %v13024_v59 = vmul.f32 0.5, %v16885_v41  ;;  %v4182_v58 = vadd.f32 %v16888_v54, %v16887_v6  ;;  %v13030_v8 = vadd.f32 %v16889_v9, %v12686_v48 }
 0x360   :  { %v4498_v11 = vmul.f32 0.7978846, %v4178_v23  ;;  %v5638_v21 = vpack.c.bf16 %v5446_v25, %v5442_v56  ;;  %v5441_v20 = vmul.f32 %v5121_v13, %v2881_v52  ;;  %v13034_v5 = vadd.f32 %v16891_v53, %v12690_v4  ;;  %v16893_v56 = vld [vmem:[#allocation22_spill] sm:$0xff] }
 0x361   :  { %16890 = vst [vmem:[#allocation64_spill] sm:$0xff] %v13030_v8  ;;  %v5445_v38 = vmul.f32 %v5125_v10, %v2885_v43  ;;  %v3311_v41 = vmul.f32 %v2991_v2, %v12989_v51  ;;  %v4502_v24 = vmul.f32 0.7978846, %v4182_v58  ;;  %v3312_v23 = vmul.f32 %v2992_v34, %v13001_v45  ;;  %v13043_v43 = vpop.f32.mrb[15].mxu0  ;;  %v16896_v2 = vld [vmem:[#allocation54_spill] sm:$0xff]  ;;  %v16897_v34 = vld [vmem:[#allocation67_spill] sm:$0xff] }
 0x362   :  { %v8643_v18 = vpop.eup %8642  ;;  %16892 = vst [vmem:[#allocation55_spill] sm:$0xff] %v13034_v5  ;;  %8650 = vtanh.f32 %v4498_v11  ;;  %6411 = vmatprep.mubr.bf16.mxu1 %v5638_v21  ;;  %v2995_v9 = vmul.f32 0.044715, %v13030_v8  ;;  %v13041_v52 = vadd.f32 %v16893_v56, %v12686_v48  ;;  %v13049_v21 = vmul.f32 %v3307_v39, %v12968_v30  ;;  %v13057_v54 = vpop.f32.mrb[16].mxu0  ;;  %v16902_v39 = vld [vmem:[#allocation84_spill] sm:$0xff]  ;;  %v16908_v30 = vld [vmem:[#allocation87_spill] sm:$0xff] }
 0x363   :  { %v5130_v22 = vadd.f32 1.0, %v8643_v18  ;;  %v8645_v44 = vpop.eup %8644  ;;  %v5637_v0 = vpack.c.bf16 %v5445_v38, %v5441_v20  ;;  %v13046_v18 = vmul.f32 0.5, %v16887_v6  ;;  %8652 = vtanh.f32 %v4502_v24  ;;  %16898 = vst [vmem:[#allocation25_spill] sm:$0xff] %v13057_v54  ;;  %v16900_v6 = vld [vmem:[#allocation66_spill] sm:$0xff] }
 0x364   :  { %16894 = vst [vmem:[#allocation69_spill] sm:$0xff] %v13041_v52  ;;  %v5134_v25 = vadd.f32 1.0, %v8645_v44  ;;  %16895 = vst [vmem:[#allocation31_spill] sm:$0xff] %v13049_v21  ;;  %v13052_v38 = vmul.f32 %v3308_v16, %v12972_v19  ;;  %v2996_v58 = vmul.f32 0.044715, %v13034_v5  ;;  %v4177_v10 = vadd.f32 %v16897_v34, %v16896_v2  ;;  %v16901_v20 = vld [vmem:[#allocation10_spill] sm:$0xff] }
 0x365   :  { %v5450_v13 = vmul.f32 %v5130_v22, %v2890_v36  ;;  %6412 = vmatmul.mubr.bf16.gmra.mrb[156].mxu1 %v5637_v0  ;;  %v13060_v36 = vmul.f32 %v3311_v41, %v12989_v51  ;;  %v4181_v53 = vadd.f32 %v16901_v20, %v16900_v6  ;;  %v13066_v22 = vadd.f32 %v16902_v39, %v12690_v4  ;;  %v13068_v16 = vpop.f32.mrb[17].mxu0 }
 0x366   :  { %v5454_v11 = vmul.f32 %v5134_v25, %v2894_v33  ;;  %16904 = vst [vmem:[#allocation22_spill] sm:$0xff] %v13068_v16  ;;  %v13071_v44 = vmul.f32 %v3312_v23, %v13001_v45  ;;  %v3315_v0 = vmul.f32 %v2995_v9, %v13030_v8  ;;  %v2999_v33 = vmul.f32 0.044715, %v13041_v52  ;;  %v13075_v41 = vpop.f32.mrb[18].mxu0  ;;  %v16907_v23 = vld [vmem:[#allocation73_spill] sm:$0xff] }
 0x367   :  { %16899 = vst [vmem:[#allocation32_spill] sm:$0xff] %v13060_v36  ;;  %16903 = vst [vmem:[#allocation58_spill] sm:$0xff] %v13066_v22  ;;  %v8647_v24 = vpop.eup %8646  ;;  %v4497_v56 = vmul.f32 0.7978846, %v4177_v10  ;;  %v4501_v20 = vmul.f32 0.7978846, %v4181_v53  ;;  %v3316_v51 = vmul.f32 %v2996_v58, %v13034_v5  ;;  %v4186_v9 = vadd.f32 %v16908_v30, %v16907_v23 }
 0x368   :  { %16905 = vst [vmem:[#allocation54_spill] sm:$0xff] %v13071_v44  ;;  %16906 = vst [vmem:[#allocation67_spill] sm:$0xff] %v13075_v41  ;;  %v5642_v25 = vpack.c.bf16 %v5454_v11, %v5450_v13  ;;  %v5129_v34 = vadd.f32 1.0, %v8647_v24  ;;  %v3000_v36 = vmul.f32 0.044715, %v13066_v22  ;;  %v8649_v39 = vpop.eup %8648  ;;  %v13080_v21 = vmul.f32 0.5, %v16896_v2 }
 0x369   :  { %8654 = vtanh.f32 %v4497_v56  ;;  %v5133_v16 = vadd.f32 1.0, %v8649_v39  ;;  %v2901_v13 = vmul.f32 0.5, %v16900_v6  ;;  %v3319_v11 = vmul.f32 %v2999_v33, %v13041_v52  ;;  %v16909_v53 = vld [vmem:[#allocation75_spill] sm:$0xff]  ;;  %v16910_v24 = vld [vmem:[#allocation89_spill] sm:$0xff]  ;;  %v16914_v6 = vld [vmem:[#allocation42_spill] sm:$0xff] }
 0x36a   :  { %6421 = vmatprep.mubr.bf16.mxu1 %v5642_v25  ;;  %v5449_v10 = vmul.f32 %v5129_v34, %v13007_v27  ;;  %8656 = vtanh.f32 %v4501_v20  ;;  %v4190_v41 = vadd.f32 %v16910_v24, %v16909_v53  ;;  %v4506_v58 = vmul.f32 0.7978846, %v4186_v9  ;;  %v16911_v2 = vld [vmem:[#allocation99_spill] sm:$0xff] }
 0x36b   :  { %v13091_v54 = vadd.f32 %v16911_v2, %v12686_v48  ;;  %v5453_v30 = vmul.f32 %v5133_v16, %v13010_v40  ;;  %v13095_v25 = vmul.f32 %v3315_v0, %v13030_v8  ;;  %v3320_v27 = vmul.f32 %v3000_v36, %v13066_v22  ;;  %v16916_v39 = vld [vmem:[#allocation103_spill] sm:$0xff]  ;;  %v13111_v0 = vpop.f32.mrb[19].mxu0 }
 0x36c   :  { %v8651_v56 = vpop.eup %8650  ;;  %v13100_v34 = vadd.f32 %v16914_v6, %v12690_v4  ;;  %v4510_v20 = vmul.f32 0.7978846, %v4190_v41  ;;  %8658 = vtanh.f32 %v4506_v58  ;;  %v13104_v9 = vadd.f32 %v16916_v39, %v12686_v48  ;;  %16919 = vst [vmem:[#allocation75_spill] sm:$0xff] %v13111_v0  ;;  %v16922_v58 = vld [vmem:[#allocation5_spill] sm:$0xff]  ;;  %v16924_v39 = vld [vmem:[#allocation74_spill] sm:$0xff] }
 0x36d   :  { %16912 = vst [vmem:[#allocation66_spill] sm:$0xff] %v13091_v54  ;;  %16913 = vst [vmem:[#allocation10_spill] sm:$0xff] %v13095_v25  ;;  %v5138_v33 = vadd.f32 1.0, %v8651_v56  ;;  %v8653_v24 = vpop.eup %8652  ;;  %v5641_v2 = vpack.c.bf16 %v5453_v30, %v5449_v10  ;;  %v13107_v40 = vmul.f32 %v3316_v51, %v13034_v5  ;;  %v2906_v16 = vmul.f32 0.5, %v16907_v23  ;;  %v16923_v23 = vld [vmem:[#allocation33_spill] sm:$0xff]  ;;  %v16925_v25 = vld [vmem:[#allocation88_spill] sm:$0xff] }
 0x36e   :  { %16915 = vst [vmem:[#allocation84_spill] sm:$0xff] %v13100_v34  ;;  %16917 = vst [vmem:[#allocation73_spill] sm:$0xff] %v13104_v9  ;;  %v3003_v36 = vmul.f32 0.044715, %v13091_v54  ;;  %v5142_v6 = vadd.f32 1.0, %v8653_v24  ;;  %v13114_v56 = vmul.f32 %v3319_v11, %v13041_v52  ;;  %v13117_v41 = vmul.f32 0.5, %v16909_v53 }
 0x36f   :  { %16918 = vst [vmem:[#allocation87_spill] sm:$0xff] %v13107_v40  ;;  %8660 = vtanh.f32 %v4510_v20  ;;  %6422 = vmatmul.mubr.bf16.gmra.mrb[160].mxu1 %v5641_v2  ;;  %v13120_v10 = vmul.f32 %v3320_v27, %v13066_v22  ;;  %v3004_v51 = vmul.f32 0.044715, %v13100_v34  ;;  %v4185_v30 = vadd.f32 %v16923_v23, %v16922_v58  ;;  %v13127_v24 = vpop.f32.mrb[20].mxu0  ;;  %v16927_v2 = vld [vmem:[#allocation39_spill] sm:$0xff]  ;;  %v16932_v22 = vld [vmem:[#allocation94_spill] sm:$0xff] }
 0x370   :  { %16920 = vst [vmem:[#allocation89_spill] sm:$0xff] %v13114_v56  ;;  %v4189_v8 = vadd.f32 %v16925_v25, %v16924_v39  ;;  %16926 = vst [vmem:[#allocation42_spill] sm:$0xff] %v13127_v24  ;;  %v5458_v11 = vmul.f32 %v5138_v33, %v13024_v59  ;;  %v5462_v53 = vmul.f32 %v5142_v6, %v13046_v18  ;;  %v3007_v20 = vmul.f32 0.044715, %v13104_v9  ;;  %v13136_v56 = vpop.f32.mrb[21].mxu0 }
 0x371   :  { %16921 = vst [vmem:[#allocation99_spill] sm:$0xff] %v13120_v10  ;;  %v13134_v27 = vadd.f32 %v16927_v2, %v12690_v4  ;;  %16929 = vst [vmem:[#allocation5_spill] sm:$0xff] %v13136_v56  ;;  %v3323_v52 = vmul.f32 %v3003_v36, %v13091_v54  ;;  %v13140_v23 = vmul.f32 0.5, %v16922_v58  ;;  %v4505_v25 = vmul.f32 0.7978846, %v4185_v30  ;;  %v13142_v24 = vpop.f32.mrb[22].mxu0 }
 0x372   :  { %v4509_v10 = vmul.f32 0.7978846, %v4189_v8  ;;  %16930 = vst [vmem:[#allocation33_spill] sm:$0xff] %v13142_v24  ;;  %v5646_v33 = vpack.c.bf16 %v5462_v53, %v5458_v11  ;;  %v13145_v18 = vmul.f32 0.5, %v16924_v39  ;;  %v16931_v2 = vld [vmem:[#allocation86_spill] sm:$0xff]  ;;  %v16933_v36 = vld [vmem:[#allocation15_spill] sm:$0xff]  ;;  %v3324_v39 = vmul.f32 %v3004_v51, %v13100_v34 }
 0x373   :  { %16928 = vst [vmem:[#allocation103_spill] sm:$0xff] %v13134_v27  ;;  %v8655_v59 = vpop.eup %8654  ;;  %v3008_v6 = vmul.f32 0.044715, %v13134_v27  ;;  %v4194_v40 = vadd.f32 %v16932_v22, %v16931_v2  ;;  %8662 = vtanh.f32 %v4505_v25  ;;  %v16934_v58 = vld [vmem:[#allocation60_spill] sm:$0xff]  ;;  %v13158_v24 = vmul.f32 %v3323_v52, %v13091_v54  ;;  %v16940_v52 = vld [vmem:[#allocation70_spill] sm:$0xff] }
 0x374   :  { %v8657_v56 = vpop.eup %8656  ;;  %v5137_v5 = vadd.f32 1.0, %v8655_v59  ;;  %v4198_v0 = vadd.f32 %v16934_v58, %v16933_v36  ;;  %v16935_v8 = vld [vmem:[#allocation104_spill] sm:$0xff]  ;;  %6431 = vmatprep.mubr.bf16.mxu1 %v5646_v33  ;;  %8664 = vtanh.f32 %v4509_v10  ;;  %v3327_v22 = vmul.f32 %v3007_v20, %v13104_v9 }
 0x375   :  { %v13154_v30 = vadd.f32 %v16935_v8, %v12686_v48  ;;  %v5141_v11 = vadd.f32 1.0, %v8657_v56  ;;  %v4514_v53 = vmul.f32 0.7978846, %v4194_v40  ;;  %16937 = vst [vmem:[#allocation88_spill] sm:$0xff] %v13158_v24  ;;  %v16938_v25 = vld [vmem:[#allocation20_spill] sm:$0xff]  ;;  %v3328_v56 = vmul.f32 %v3008_v6, %v13134_v27 }
 0x376   :  { %v4518_v59 = vmul.f32 0.7978846, %v4198_v0  ;;  %v13163_v44 = vadd.f32 %v16938_v25, %v12690_v4  ;;  %v8659_v58 = vpop.eup %8658  ;;  %v5457_v8 = vmul.f32 %v5137_v5, %v13080_v21  ;;  %v13170_v10 = vadd.f32 %v16940_v52, %v12686_v48  ;;  %v13172_v0 = vpop.f32.mrb[23].mxu0  ;;  %v16948_v52 = vld [vmem:[#allocation14_spill] sm:$0xff] }
 0x377   :  { %16936 = vst [vmem:[#allocation74_spill] sm:$0xff] %v13154_v30  ;;  %v5461_v45 = vmul.f32 %v5141_v11, %v2901_v13  ;;  %8666 = vtanh.f32 %v4514_v53  ;;  %v5146_v51 = vadd.f32 1.0, %v8659_v58  ;;  %v3011_v40 = vmul.f32 0.044715, %v13154_v30 }
 0x378   :  { %16939 = vst [vmem:[#allocation39_spill] sm:$0xff] %v13163_v44  ;;  %8668 = vtanh.f32 %v4518_v59  ;;  %16941 = vst [vmem:[#allocation86_spill] sm:$0xff] %v13170_v10  ;;  %v13175_v25 = vmul.f32 %v3324_v39, %v13100_v34  ;;  %v2914_v5 = vmul.f32 0.5, %v16931_v2  ;;  %v3012_v21 = vmul.f32 0.044715, %v13163_v44  ;;  %v13183_v59 = vpop.f32.mrb[24].mxu0 }
 0x379   :  { %v8661_v20 = vpop.eup %8660  ;;  %v5645_v33 = vpack.c.bf16 %v5461_v45, %v5457_v8  ;;  %v5466_v6 = vmul.f32 %v5146_v51, %v2906_v16  ;;  %v13180_v11 = vmul.f32 %v3327_v22, %v13104_v9  ;;  %v2918_v53 = vmul.f32 0.5, %v16933_v36  ;;  %16944 = vst [vmem:[#allocation60_spill] sm:$0xff] %v13183_v59  ;;  %v16946_v45 = vld [vmem:[#allocation83_spill] sm:$0xff]  ;;  %v16949_v2 = vld [vmem:[#allocation96_spill] sm:$0xff]  ;;  %v13196_v22 = vpop.f32.mrb[25].mxu0  ;;  %v16956_v59 = vld [vmem:[#allocation101_spill] sm:$0xff] }
 0x37a   :  { %16942 = vst [vmem:[#allocation94_spill] sm:$0xff] %v13175_v25  ;;  %v5150_v13 = vadd.f32 1.0, %v8661_v20  ;;  %v13186_v58 = vmul.f32 %v3328_v56, %v13134_v27  ;;  %v16947_v39 = vld [vmem:[#allocation35_spill] sm:$0xff]  ;;  %v4197_v24 = vadd.f32 %v16949_v2, %v16948_v52  ;;  %v13194_v16 = vadd.f32 %v12558_v35, %v12690_v4  ;;  %16951 = vst [vmem:[#allocation70_spill] sm:$0xff] %v13196_v22 }
 0x37b   :  { %16943 = vst [vmem:[#allocation15_spill] sm:$0xff] %v13180_v11  ;;  %6432 = vmatmul.mubr.bf16.gmra.mrb[164].mxu1 %v5645_v33  ;;  %v4193_v8 = vadd.f32 %v16947_v39, %v16946_v45  ;;  %v3331_v51 = vmul.f32 %v3011_v40, %v13154_v30  ;;  %v3015_v20 = vmul.f32 0.044715, %v13170_v10  ;;  %v13202_v56 = vmul.f32 0.5, %v16946_v45  ;;  %v13204_v33 = vpop.f32.mrb[26].mxu0  ;;  %v16953_v22 = vld [vmem:[#allocation51_spill] sm:$0xff] }
 0x37c   :  { %16945 = vst [vmem:[#allocation104_spill] sm:$0xff] %v13186_v58  ;;  %16950 = vst [vmem:[#allocation20_spill] sm:$0xff] %v13194_v16  ;;  %v5470_v36 = vmul.f32 %v5150_v13, %v13117_v41  ;;  %v3332_v39 = vmul.f32 %v3012_v21, %v13163_v44  ;;  %v13208_v2 = vmul.f32 0.5, %v16948_v52  ;;  %v4517_v11 = vmul.f32 0.7978846, %v4197_v24  ;;  %v16954_v41 = vld [vmem:[#allocation98_spill] sm:$0xff] }
 0x37d   :  { %16952 = vst [vmem:[#allocation83_spill] sm:$0xff] %v13204_v33  ;;  %v4513_v35 = vmul.f32 0.7978846, %v4193_v8  ;;  %v8663_v9 = vpop.eup %8662  ;;  %v4202_v13 = vadd.f32 %v16954_v41, %v16953_v22  ;;  %v16955_v40 = vld [vmem:[#allocation63_spill] sm:$0xff]  ;;  %v13216_v45 = vadd.f32 %v12571_v37, %v12686_v48  ;;  %v3016_v21 = vmul.f32 0.044715, %v13194_v16 }
 0x37e   :  { %v5650_v54 = vpack.c.bf16 %v5470_v36, %v5466_v6  ;;  %v4206_v58 = vadd.f32 %v16956_v59, %v16955_v40  ;;  %v8665_v33 = vpop.eup %8664  ;;  %v5145_v27 = vadd.f32 1.0, %v8663_v9  ;;  %v16958_v8 = vld [vmem:[#allocation38_spill] sm:$0xff]  ;;  %v13225_v37 = vmul.f32 %v3331_v51, %v13154_v30 }
 0x37f   :  { %16957 = vst [vmem:[#allocation35_spill] sm:$0xff] %v13216_v45  ;;  %8670 = vtanh.f32 %v4513_v35  ;;  %v13221_v24 = vadd.f32 %v16958_v8, %v12690_v4  ;;  %v5149_v6 = vadd.f32 1.0, %v8665_v33  ;;  %v4522_v52 = vmul.f32 0.7978846, %v4202_v13 }
 0x380   :  { %6441 = vmatprep.mubr.bf16.mxu1 %v5650_v54  ;;  %8672 = vtanh.f32 %v4517_v11  ;;  %v4526_v36 = vmul.f32 0.7978846, %v4206_v58  ;;  %v5465_v59 = vmul.f32 %v5145_v27, %v13140_v23  ;;  %16959 = vst [vmem:[#allocation14_spill] sm:$0xff] %v13225_v37  ;;  %v3335_v9 = vmul.f32 %v3015_v20, %v13170_v10  ;;  %v16960_v54 = vld [vmem:[#allocation19_spill] sm:$0xff]  ;;  %v13238_v23 = vpop.f32.mrb[27].mxu0  ;;  %v16969_v37 = vld [vmem:[#allocation106_spill] sm:$0xff] }
 0x381   :  { %v8667_v41 = vpop.eup %8666  ;;  %v3019_v35 = vmul.f32 0.044715, %v13216_v45  ;;  %v5469_v34 = vmul.f32 %v5149_v6, %v13145_v18  ;;  %8674 = vtanh.f32 %v4522_v52  ;;  %v13232_v11 = vadd.f32 %v16960_v54, %v12686_v48  ;;  %v16968_v54 = vld [vmem:[#allocation100_spill] sm:$0xff] }
 0x382   :  { %v8669_v25 = vpop.eup %8668  ;;  %v5154_v8 = vadd.f32 1.0, %v8667_v41  ;;  %v13235_v33 = vmul.f32 %v3332_v39, %v13163_v44  ;;  %v3336_v27 = vmul.f32 %v3016_v21, %v13194_v16  ;;  %8676 = vtanh.f32 %v4526_v36  ;;  %v13247_v39 = vpop.f32.mrb[28].mxu0  ;;  %v16965_v36 = vld [vmem:[#allocation36_spill] sm:$0xff] }
 0x383   :  { %16961 = vst [vmem:[#allocation96_spill] sm:$0xff] %v13232_v11  ;;  %v5158_v58 = vadd.f32 1.0, %v8669_v25  ;;  %v5649_v51 = vpack.c.bf16 %v5469_v34, %v5465_v59  ;;  %v2922_v20 = vmul.f32 0.5, %v16953_v22  ;;  %v2926_v18 = vmul.f32 0.5, %v16955_v40  ;;  %16964 = vst [vmem:[#allocation63_spill] sm:$0xff] %v13247_v39  ;;  %v16966_v34 = vld [vmem:[#allocation97_spill] sm:$0xff] }
 0x384   :  { %16962 = vst [vmem:[#allocation51_spill] sm:$0xff] %v13235_v33  ;;  %v3020_v13 = vmul.f32 0.044715, %v13221_v24  ;;  %v5474_v6 = vmul.f32 %v5154_v8, %v2914_v5  ;;  %v13244_v41 = vmul.f32 %v3335_v9, %v13170_v10  ;;  %v3339_v25 = vmul.f32 %v3019_v35, %v13216_v45  ;;  %v16967_v22 = vld [vmem:[#allocation56_spill] sm:$0xff] }
 0x385   :  { %v5478_v52 = vmul.f32 %v5158_v58, %v2918_v53  ;;  %6442 = vmatmul.mubr.bf16.gmra.mrb[168].mxu1 %v5649_v51  ;;  %v3023_v21 = vmul.f32 0.044715, %v13232_v11  ;;  %v4201_v59 = vadd.f32 %v16966_v34, %v16965_v36  ;;  %v4205_v40 = vadd.f32 %v16968_v54, %v16967_v22  ;;  %v13258_v53 = vpop.f32.mrb[29].mxu0  ;;  %v16973_v58 = vld [vmem:[#allocation37_spill] sm:$0xff]  ;;  %v16974_v51 = vld [vmem:[#allocation6_spill] sm:$0xff] }
 0x386   :  { %16963 = vst [vmem:[#allocation98_spill] sm:$0xff] %v13244_v41  ;;  %v13256_v5 = vadd.f32 %v16969_v37, %v12690_v4  ;;  %16971 = vst [vmem:[#allocation38_spill] sm:$0xff] %v13258_v53  ;;  %v13261_v35 = vmul.f32 %v3336_v27, %v13194_v16  ;;  %v13264_v8 = vmul.f32 0.5, %v16965_v36  ;;  %v4210_v41 = vadd.f32 %v16974_v51, %v16973_v58  ;;  %v13268_v34 = vpop.f32.mrb[30].mxu0  ;;  %v16978_v36 = vld [vmem:[#allocation4_spill] sm:$0xff] }
 0x387   :  { %v5654_v9 = vpack.c.bf16 %v5478_v52, %v5474_v6  ;;  %16975 = vst [vmem:[#allocation36_spill] sm:$0xff] %v13268_v34  ;;  %v3340_v54 = vmul.f32 %v3020_v13, %v13221_v24  ;;  %v4521_v10 = vmul.f32 0.7978846, %v4201_v59  ;;  %v4525_v30 = vmul.f32 0.7978846, %v4205_v40  ;;  %v16976_v6 = vld [vmem:[#allocation3_spill] sm:$0xff] }
 0x388   :  { %16970 = vst [vmem:[#allocation101_spill] sm:$0xff] %v13256_v5  ;;  %16972 = vst [vmem:[#allocation19_spill] sm:$0xff] %v13261_v35  ;;  %v3024_v37 = vmul.f32 0.044715, %v13256_v5  ;;  %v16977_v52 = vld [vmem:[#allocation13_spill] sm:$0xff]  ;;  %v13276_v35 = vadd.f32 %v16978_v36, %v12686_v48  ;;  %v16980_v51 = vld [vmem:[#allocation40_spill] sm:$0xff]  ;;  %v13283_v59 = vmul.f32 %v3339_v25, %v13216_v45  ;;  %v3343_v40 = vmul.f32 %v3023_v21, %v13232_v11 }
 0x389   :  { %v8671_v39 = vpop.eup %8670  ;;  %6451 = vmatprep.mubr.bf16.mxu1 %v5654_v9  ;;  %v4214_v27 = vadd.f32 %v16977_v52, %v16976_v6  ;;  %v4530_v53 = vmul.f32 0.7978846, %v4210_v41  ;;  %v13280_v16 = vadd.f32 %v16980_v51, %v12690_v4  ;;  %8678 = vtanh.f32 %v4521_v10  ;;  %v16983_v51 = vld [vmem:[#allocation9_spill] sm:$0xff]  ;;  %v13295_v10 = vpop.f32.mrb[31].mxu0  ;;  %v16988_v45 = vld [vmem:[#allocation68_spill] sm:$0xff] }
 0x38a   :  { %16979 = vst [vmem:[#allocation97_spill] sm:$0xff] %v13276_v35  ;;  %v8673_v34 = vpop.eup %8672  ;;  %v5153_v13 = vadd.f32 1.0, %v8671_v39  ;;  %16982 = vst [vmem:[#allocation100_spill] sm:$0xff] %v13283_v59  ;;  %8680 = vtanh.f32 %v4525_v30  ;;  %v3027_v41 = vmul.f32 0.044715, %v13276_v35  ;;  %v3344_v44 = vmul.f32 %v3024_v37, %v13256_v5 }
 0x38b   :  { %16981 = vst [vmem:[#allocation56_spill] sm:$0xff] %v13280_v16  ;;  %v5157_v9 = vadd.f32 1.0, %v8673_v34  ;;  %v4534_v52 = vmul.f32 0.7978846, %v4214_v27  ;;  %v8675_v33 = vpop.eup %8674  ;;  %8682 = vtanh.f32 %v4530_v53  ;;  %v13291_v39 = vadd.f32 %v16983_v51, %v12686_v48 }
 0x38c   :  { %v5473_v36 = vmul.f32 %v5153_v13, %v13202_v56  ;;  %v8677_v25 = vpop.eup %8676  ;;  %v5162_v21 = vadd.f32 1.0, %v8675_v33  ;;  %v3028_v30 = vmul.f32 0.044715, %v13280_v16  ;;  %v13298_v27 = vmul.f32 %v3340_v54, %v13221_v24 }
 0x38d   :  { %16984 = vst [vmem:[#allocation106_spill] sm:$0xff] %v13291_v39  ;;  %v5477_v59 = vmul.f32 %v5157_v9, %v13208_v2  ;;  %8684 = vtanh.f32 %v4534_v52  ;;  %v5166_v34 = vadd.f32 1.0, %v8677_v25  ;;  %v2925_v56 = vmul.f32 0.5, %v16967_v22  ;;  %v16987_v25 = vld [vmem:[#allocation65_spill] sm:$0xff] }
 0x38e   :  { %16985 = vst [vmem:[#allocation37_spill] sm:$0xff] %v13298_v27  ;;  %v2930_v53 = vmul.f32 0.5, %v16973_v58  ;;  %v5482_v13 = vmul.f32 %v5162_v21, %v2922_v20  ;;  %v2934_v51 = vmul.f32 0.5, %v16976_v6  ;;  %v3347_v2 = vmul.f32 %v3027_v41, %v13276_v35  ;;  %v13310_v27 = vpop.f32.mrb[32].mxu0  ;;  %v16991_v58 = vld [vmem:[#allocation102_spill] sm:$0xff]  ;;  %v16992_v6 = vld [vmem:[#allocation105_spill] sm:$0xff] }
 0x38f   :  { %v5653_v37 = vpack.c.bf16 %v5477_v59, %v5473_v36  ;;  %v5486_v33 = vmul.f32 %v5166_v34, %v2926_v18  ;;  %v13305_v9 = vmul.f32 %v3343_v40, %v13232_v11  ;;  %v3031_v52 = vmul.f32 0.044715, %v13291_v39  ;;  %16989 = vst [vmem:[#allocation3_spill] sm:$0xff] %v13310_v27  ;;  %v13322_v40 = vpop.f32.mrb[33].mxu0  ;;  %v16995_v21 = vld [vmem:[#allocation27_spill] sm:$0xff]  ;;  %v16996_v34 = vld [vmem:[#allocation34_spill] sm:$0xff] }
 0x390   :  { %v4209_v54 = vadd.f32 %v16988_v45, %v16987_v25  ;;  %v13313_v22 = vmul.f32 %v3344_v44, %v13256_v5  ;;  %v3348_v20 = vmul.f32 %v3028_v30, %v13280_v16  ;;  %v4213_v59 = vadd.f32 %v16992_v6, %v16991_v58  ;;  %16994 = vst [vmem:[#allocation40_spill] sm:$0xff] %v13322_v40  ;;  %v17000_v11 = vld [vmem:[#allocation113_spill] sm:$0xff] }
 0x391   :  { %16986 = vst [vmem:[#allocation6_spill] sm:$0xff] %v13305_v9  ;;  %6452 = vmatmul.mubr.bf16.gmra.mrb[172].mxu1 %v5653_v37  ;;  %v13320_v18 = vadd.f32 %v12688_v15, %v12690_v4  ;;  %v5658_v41 = vpack.c.bf16 %v5486_v33, %v5482_v13  ;;  %v13325_v45 = vmul.f32 0.5, %v16987_v25  ;;  %v4218_v44 = vadd.f32 %v16996_v34, %v16995_v21  ;;  %v13329_v37 = vpop.f32.mrb[34].mxu0  ;;  %v16999_v15 = vld [vmem:[#allocation72_spill] sm:$0xff]  ;;  %v17001_v25 = vld [vmem:[#allocation107_spill] sm:$0xff] }
 0x392   :  { %16990 = vst [vmem:[#allocation13_spill] sm:$0xff] %v13313_v22  ;;  %v4529_v36 = vmul.f32 0.7978846, %v4209_v54  ;;  %16997 = vst [vmem:[#allocation9_spill] sm:$0xff] %v13329_v37  ;;  %v13332_v30 = vmul.f32 %v3347_v2, %v13276_v35  ;;  %v4533_v6 = vmul.f32 0.7978846, %v4213_v59  ;;  %v4222_v27 = vadd.f32 %v17000_v11, %v16999_v15 }
 0x393   :  { %16993 = vst [vmem:[#allocation4_spill] sm:$0xff] %v13320_v18  ;;  %v3032_v9 = vmul.f32 0.044715, %v13320_v18  ;;  %v8679_v40 = vpop.eup %8678  ;;  %6461 = vmatprep.mubr.bf16.mxu1 %v5658_v41  ;;  %v3351_v13 = vmul.f32 %v3031_v52, %v13291_v39  ;;  %v4538_v33 = vmul.f32 0.7978846, %v4218_v44  ;;  %v13340_v54 = vadd.f32 %v17001_v25, %v12686_v48  ;;  %v17002_v59 = vld [vmem:[#allocation108_spill] sm:$0xff] }
 0x394   :  { %16998 = vst [vmem:[#allocation65_spill] sm:$0xff] %v13332_v30  ;;  %8686 = vtanh.f32 %v4529_v36  ;;  %v8681_v34 = vpop.eup %8680  ;;  %v5161_v37 = vadd.f32 1.0, %v8679_v40  ;;  %v4542_v2 = vmul.f32 0.7978846, %v4222_v27  ;;  %v13344_v30 = vadd.f32 %v17002_v59, %v12690_v4  ;;  %v13348_v36 = vpop.f32.mrb[35].mxu0  ;;  %v17004_v27 = vld [vmem:[#allocation41_spill] sm:$0xff] }
 0x395   :  { %8688 = vtanh.f32 %v4533_v6  ;;  %v8683_v35 = vpop.eup %8682  ;;  %v5165_v11 = vadd.f32 1.0, %v8681_v34  ;;  %v2933_v41 = vmul.f32 0.5, %v16991_v58  ;;  %v3352_v52 = vmul.f32 %v3032_v9, %v13320_v18  ;;  %17003 = vst [vmem:[#allocation68_spill] sm:$0xff] %v13348_v36 }
 0x396   :  { %8690 = vtanh.f32 %v4538_v33  ;;  %v5481_v25 = vmul.f32 %v5161_v37, %v13264_v8  ;;  %v5170_v22 = vadd.f32 1.0, %v8683_v35  ;;  %v13353_v40 = vadd.f32 %v17004_v27, %v12686_v48 }
 0x397   :  { %v8685_v44 = vpop.eup %8684  ;;  %8692 = vtanh.f32 %v4542_v2  ;;  %v5485_v6 = vmul.f32 %v5165_v11, %v2925_v56  ;;  %v13356_v34 = vmul.f32 %v3348_v20, %v13280_v16  ;;  %v3035_v58 = vmul.f32 0.044715, %v13340_v54  ;;  %v17009_v11 = vld [vmem:[#allocation12_spill] sm:$0xff]  ;;  %v17011_v16 = vld [vmem:[#allocation71_spill] sm:$0xff] }
 0x398   :  { %17005 = vst [vmem:[#allocation102_spill] sm:$0xff] %v13353_v40  ;;  %v5174_v59 = vadd.f32 1.0, %v8685_v44  ;;  %v13360_v9 = vmul.f32 %v3351_v13, %v13291_v39  ;;  %v2938_v33 = vmul.f32 0.5, %v16995_v21  ;;  %v2942_v8 = vmul.f32 0.5, %v16999_v15  ;;  %v17010_v44 = vld [vmem:[#allocation78_spill] sm:$0xff]  ;;  %v17013_v21 = vld [vmem:[#allocation109_spill] sm:$0xff] }
 0x399   :  { %17006 = vst [vmem:[#allocation105_spill] sm:$0xff] %v13356_v34  ;;  %v3036_v35 = vmul.f32 0.044715, %v13344_v30  ;;  %v5657_v37 = vpack.c.bf16 %v5485_v6, %v5481_v25  ;;  %v5490_v2 = vmul.f32 %v5170_v22, %v2930_v53  ;;  %v13366_v56 = vmul.f32 %v3352_v52, %v13320_v18  ;;  %v17012_v13 = vld [vmem:[#allocation110_spill] sm:$0xff]  ;;  %v13377_v15 = vpop.f32.mrb[36].mxu0  ;;  %v17015_v52 = vld [vmem:[#allocation77_spill] sm:$0xff] }
 0x39a   :  { %17007 = vst [vmem:[#allocation27_spill] sm:$0xff] %v13360_v9  ;;  %v5494_v27 = vmul.f32 %v5174_v59, %v2934_v51  ;;  %v3039_v20 = vmul.f32 0.044715, %v13353_v40  ;;  %v4217_v34 = vadd.f32 %v17010_v44, %v17009_v11  ;;  %v4221_v9 = vadd.f32 %v17012_v13, %v17011_v16  ;;  %17014 = vst [vmem:[#allocation72_spill] sm:$0xff] %v13377_v15  ;;  %v17016_v25 = vld [vmem:[#allocation95_spill] sm:$0xff]  ;;  %v13385_v59 = vpop.f32.mrb[37].mxu0 }
 0x39b   :  { %17008 = vst [vmem:[#allocation34_spill] sm:$0xff] %v13366_v56  ;;  %v13375_v39 = vadd.f32 %v17013_v21, %v12690_v4  ;;  %6462 = vmatmul.mubr.bf16.gmra.mrb[176].mxu1 %v5657_v37  ;;  %v3355_v51 = vmul.f32 %v3035_v58, %v13340_v54  ;;  %v13381_v22 = vmul.f32 0.5, %v17009_v11  ;;  %v4226_v6 = vadd.f32 %v17016_v25, %v17015_v52  ;;  %v17018_v58 = vld [vmem:[#allocation82_spill] sm:$0xff] }
 0x39c   :  { %v5662_v53 = vpack.c.bf16 %v5494_v27, %v5490_v2  ;;  %17017 = vst [vmem:[#allocation113_spill] sm:$0xff] %v13385_v59  ;;  %v3356_v44 = vmul.f32 %v3036_v35, %v13344_v30  ;;  %v4537_v13 = vmul.f32 0.7978846, %v4217_v34  ;;  %v4541_v56 = vmul.f32 0.7978846, %v4221_v9  ;;  %v17019_v2 = vld [vmem:[#allocation16_spill] sm:$0xff] }
 0x39d   :  { %v3040_v21 = vmul.f32 0.044715, %v13375_v39  ;;  %v13390_v37 = vmul.f32 0.5, %v17011_v16  ;;  %v4230_v27 = vadd.f32 %v17019_v2, %v17018_v58  ;;  %v4546_v11 = vmul.f32 0.7978846, %v4226_v6  ;;  %v13398_v59 = vpop.f32.mrb[38].mxu0 }
 0x39e   :  { %v8687_v18 = vpop.eup %8686  ;;  %6471 = vmatprep.mubr.bf16.mxu1 %v5662_v53  ;;  %v13396_v25 = vadd.f32 %v12765_v29, %v12686_v48  ;;  %17021 = vst [vmem:[#allocation108_spill] sm:$0xff] %v13398_v59  ;;  %v3359_v9 = vmul.f32 %v3039_v20, %v13353_v40  ;;  %8694 = vtanh.f32 %v4537_v13  ;;  %v13403_v53 = vadd.f32 %v12770_v61, %v12690_v4  ;;  %v13412_v59 = vpop.f32.mrb[39].mxu0 }
 0x39f   :  { %v8689_v35 = vpop.eup %8688  ;;  %v5169_v34 = vadd.f32 1.0, %v8687_v18  ;;  %8696 = vtanh.f32 %v4541_v56  ;;  %v4550_v2 = vmul.f32 0.7978846, %v4230_v27  ;;  %v3360_v5 = vmul.f32 %v3040_v21, %v13375_v39 }
 0x3a0   :  { %17020 = vst [vmem:[#allocation107_spill] sm:$0xff] %v13396_v25  ;;  %v8691_v16 = vpop.eup %8690  ;;  %v5173_v15 = vadd.f32 1.0, %v8689_v35  ;;  %v3043_v6 = vmul.f32 0.044715, %v13396_v25  ;;  %8698 = vtanh.f32 %v4546_v11  ;;  %v13409_v18 = vadd.f32 %v12777_v12, %v12686_v48 }
 0x3a1   :  { %v8693_v36 = vpop.eup %8692  ;;  %v5178_v29 = vadd.f32 1.0, %v8691_v16  ;;  %v5489_v20 = vmul.f32 %v5169_v34, %v13325_v45  ;;  %8700 = vtanh.f32 %v4550_v2  ;;  %v13415_v27 = vmul.f32 %v3355_v51, %v13340_v54  ;;  %v17025_v51 = vld [vmem:[#allocation47_spill] sm:$0xff]  ;;  %v17027_v2 = vld [vmem:[#allocation85_spill] sm:$0xff] }
 0x3a2   :  { %17022 = vst [vmem:[#allocation41_spill] sm:$0xff] %v13409_v18  ;;  %v5493_v13 = vmul.f32 %v5173_v15, %v2933_v41  ;;  %v5182_v61 = vadd.f32 1.0, %v8693_v36  ;;  %v13418_v35 = vmul.f32 %v3356_v44, %v13344_v30  ;;  %v3363_v21 = vmul.f32 %v3043_v6, %v13396_v25  ;;  %v13423_v41 = vpop.f32.mrb[40].mxu0  ;;  %v17024_v15 = vld [vmem:[#allocation76_spill] sm:$0xff]  ;;  %v17026_v44 = vld [vmem:[#allocation62_spill] sm:$0xff] }
 0x3a3   :  { %v5498_v56 = vmul.f32 %v5178_v29, %v2938_v33  ;;  %v2946_v12 = vmul.f32 0.5, %v17015_v52  ;;  %v2950_v45 = vmul.f32 0.5, %v17018_v58  ;;  %v13426_v36 = vmul.f32 %v3359_v9, %v13353_v40  ;;  %v13433_v6 = vpop.f32.mrb[41].mxu0 }
 0x3a4   :  { %v5661_v11 = vpack.c.bf16 %v5493_v13, %v5489_v20  ;;  %v5502_v16 = vmul.f32 %v5182_v61, %v2942_v8  ;;  %v3044_v33 = vmul.f32 0.044715, %v13403_v53  ;;  %v4225_v34 = vadd.f32 %v17025_v51, %v17024_v15  ;;  %v13443_v20 = vpop.f32.mrb[42].mxu0 }
 0x3a5   :  { %17023 = vst [vmem:[#allocation12_spill] sm:$0xff] %v13426_v36  ;;  %v4229_v29 = vadd.f32 %v17027_v2, %v17026_v44  ;;  %v13436_v52 = vmul.f32 %v3360_v5, %v13375_v39  ;;  %v3047_v58 = vmul.f32 0.044715, %v13409_v18  ;;  %v13441_v9 = vadd.f32 %v12809_v60, %v12690_v4 }
 0x3a6   :  { %6472 = vmatmul.mubr.bf16.gmra.mrb[180].mxu1 %v5661_v11  ;;  %v5666_v8 = vpack.c.bf16 %v5502_v16, %v5498_v56  ;;  %v13446_v13 = vmul.f32 %v3363_v21, %v13396_v25  ;;  %v13449_v61 = vmul.f32 0.5, %v17024_v15  ;;  %v4545_v51 = vmul.f32 0.7978846, %v4225_v34 }
 0x3a7   :  { %v4549_v11 = vmul.f32 0.7978846, %v4229_v29  ;;  %v13452_v5 = vmul.f32 0.5, %v17026_v44  ;;  %v3916_v56 = vadd.f32 %v12785_v55, %v12718_v14  ;;  %v3920_v60 = vadd.f32 %v12834_v62, %v12756_v7 }
 0x3a8   :  { %17028 = vst [vmem:[#allocation78_spill] sm:$0xff] %v13446_v13  ;;  %6481 = vmatprep.mubr.bf16.mxu1 %v5666_v8  ;;  %v13460_v16 = vadd.f32 %v12824_v46, %v12686_v48  ;;  %v8695_v21 = vpop.eup %8694  ;;  %v3364_v15 = vmul.f32 %v3044_v33, %v13403_v53  ;;  %8702 = vtanh.f32 %v4545_v51  ;;  %v3048_v34 = vmul.f32 0.044715, %v13441_v9 }
 0x3a9   :  { %v13466_v44 = vadd.f32 %v12831_v50, %v12690_v4  ;;  %v8697_v2 = vpop.eup %8696  ;;  %v5177_v29 = vadd.f32 1.0, %v8695_v21  ;;  %8704 = vtanh.f32 %v4549_v11  ;;  %v4236_v55 = vmul.f32 0.7978846, %v3916_v56  ;;  %v13476_v11 = vpop.f32.mrb[43].mxu0 }
 0x3aa   :  { %17029 = vst [vmem:[#allocation71_spill] sm:$0xff] %v13460_v16  ;;  %v4875_v62 = vadd.f32 1.0, %v12847_v26  ;;  %v8699_v8 = vpop.eup %8698  ;;  %v5181_v13 = vadd.f32 1.0, %v8697_v2  ;;  %v4240_v46 = vmul.f32 0.7978846, %v3920_v60  ;;  %v4879_v33 = vadd.f32 1.0, %v12886_v63 }
 0x3ab   :  { %17030 = vst [vmem:[#allocation110_spill] sm:$0xff] %v13466_v44  ;;  %v3051_v25 = vmul.f32 0.044715, %v13460_v16  ;;  %v8701_v51 = vpop.eup %8700  ;;  %v5497_v36 = vmul.f32 %v5177_v29, %v13381_v22  ;;  %v5186_v40 = vadd.f32 1.0, %v8699_v8  ;;  %8706 = vtanh.f32 %v4236_v55 }
 0x3ac   :  { %v13474_v50 = vadd.f32 %v12837_v32, %v12686_v48  ;;  %v5501_v26 = vmul.f32 %v5181_v13, %v13390_v37  ;;  %v5190_v56 = vadd.f32 1.0, %v8701_v51  ;;  %v3367_v60 = vmul.f32 %v3047_v58, %v13409_v18 }
 0x3ad   :  { %8708 = vtanh.f32 %v4240_v46  ;;  %v5506_v21 = vmul.f32 %v5186_v40, %v2946_v12  ;;  %v3368_v63 = vmul.f32 %v3048_v34, %v13441_v9  ;;  %v2636_v2 = vmul.f32 0.5, %v12718_v14  ;;  %v13495_v14 = vpop.f32.mrb[44].mxu0 }
 0x3ae   :  { %17031 = vst [vmem:[#allocation109_spill] sm:$0xff] %v13474_v50  ;;  %v3371_v22 = vmul.f32 %v3051_v25, %v13460_v16  ;;  %v5665_v29 = vpack.c.bf16 %v5501_v26, %v5497_v36  ;;  %v5510_v55 = vmul.f32 %v5190_v56, %v2950_v45  ;;  %v13484_v32 = vmul.f32 %v4875_v62, %v12768_v28  ;;  %v17033_v45 = vld [vmem:[#allocation111_spill] sm:$0xff]  ;;  %v17034_v36 = vld [vmem:[#allocation44_spill] sm:$0xff] }
 0x3af   :  { %v13487_v8 = vmul.f32 %v4879_v33, %v12780_v1  ;;  %v13490_v37 = vmul.f32 %v3364_v15, %v13403_v53  ;;  %v2640_v58 = vmul.f32 0.5, %v12756_v7  ;;  %v3052_v40 = vmul.f32 0.044715, %v13466_v44  ;;  %v13505_v15 = vpop.f32.mrb[45].mxu0  ;;  %v17037_v26 = vld [vmem:[#allocation92_spill] sm:$0xff] }
 0x3b0   :  { %v3055_v12 = vmul.f32 0.044715, %v13474_v50  ;;  %6482 = vmatmul.mubr.bf16.gmra.mrb[184].mxu1 %v5665_v29  ;;  %v5670_v25 = vpack.c.bf16 %v5510_v55, %v5506_v21  ;;  %v13501_v1 = vadd.f32 %v12862_v47, %v12690_v4  ;;  %v3924_v13 = vadd.f32 %v17034_v36, %v17033_v45  ;;  %v13518_v33 = vpop.f32.mrb[46].mxu0 }
 0x3b1   :  { %v13508_v7 = vmul.f32 %v3367_v60, %v13409_v18  ;;  %v13511_v34 = vmul.f32 %v3368_v63, %v13441_v9  ;;  %v13514_v62 = vmul.f32 %v3371_v22, %v13460_v16  ;;  %v3928_v46 = vadd.f32 %v12894_v42, %v12817_v17  ;;  %v13546_v28 = vpop.f32.mrb[47].mxu0  ;;  %v17045_v16 = vld [vmem:[#allocation7_spill] sm:$0xff] }
 0x3b2   :  { %17032 = vst [vmem:[#allocation77_spill] sm:$0xff] %v13501_v1  ;;  %v8703_v47 = vpop.eup %8702  ;;  %6491 = vmatprep.mubr.bf16.mxu1 %v5670_v25  ;;  %v4244_v51 = vmul.f32 0.7978846, %v3924_v13  ;;  %v13522_v56 = vadd.f32 %v17037_v26, %v12686_v48  ;;  %v13526_v60 = vadd.f32 %v12896_v49, %v12690_v4  ;;  %v13530_v21 = vadd.f32 %v12903_v3, %v12686_v48 }
 0x3b3   :  { %17035 = vst [vmem:[#allocation95_spill] sm:$0xff] %v13508_v7  ;;  %17036 = vst [vmem:[#allocation82_spill] sm:$0xff] %v13514_v62  ;;  %v8705_v63 = vpop.eup %8704  ;;  %v5185_v22 = vadd.f32 1.0, %v8703_v47  ;;  %v3372_v42 = vmul.f32 %v3052_v40, %v13466_v44  ;;  %v3375_v29 = vmul.f32 %v3055_v12, %v13474_v50  ;;  %v4248_v55 = vmul.f32 0.7978846, %v3928_v46 }
 0x3b4   :  { %17038 = vst [vmem:[#allocation16_spill] sm:$0xff] %v13522_v56  ;;  %17039 = vst [vmem:[#allocation76_spill] sm:$0xff] %v13526_v60  ;;  %v5189_v25 = vadd.f32 1.0, %v8705_v63  ;;  %v3056_v36 = vmul.f32 0.044715, %v13501_v1  ;;  %8710 = vtanh.f32 %v4244_v51  ;;  %v13537_v49 = vmul.f32 0.5, %v17033_v45 }
 0x3b5   :  { %17040 = vst [vmem:[#allocation47_spill] sm:$0xff] %v13530_v21  ;;  %v3059_v13 = vmul.f32 0.044715, %v13522_v56  ;;  %v8707_v26 = vpop.eup %8706  ;;  %v13540_v3 = vmul.f32 0.5, %v12817_v17  ;;  %8712 = vtanh.f32 %v4248_v55  ;;  %v3060_v47 = vmul.f32 0.044715, %v13526_v60 }
 0x3b6   :  { %v5505_v12 = vmul.f32 %v5185_v22, %v13449_v61  ;;  %v5509_v46 = vmul.f32 %v5189_v25, %v13452_v5  ;;  %v4876_v63 = vadd.f32 1.0, %v8707_v26  ;;  %v3063_v51 = vmul.f32 0.044715, %v13530_v21  ;;  %17041 = vst [vmem:[#allocation62_spill] sm:$0xff] %v13546_v28  ;;  %v17044_v55 = vld [vmem:[#allocation79_spill] sm:$0xff]  ;;  %v17047_v28 = vld [vmem:[#allocation81_spill] sm:$0xff] }
 0x3b7   :  { %v8709_v40 = vpop.eup %8708  ;;  %v13549_v45 = vmul.f32 %v3372_v42, %v13466_v44  ;;  %v13552_v17 = vmul.f32 %v3375_v29, %v13474_v50  ;;  %v3923_v7 = vadd.f32 %v17045_v16, %v17044_v55  ;;  %v3376_v61 = vmul.f32 %v3056_v36, %v13501_v1  ;;  %v13563_v44 = vpop.f32.mrb[48].mxu0 }
 0x3b8   :  { %v4880_v62 = vadd.f32 1.0, %v8709_v40  ;;  %v5669_v18 = vpack.c.bf16 %v5509_v46, %v5505_v12  ;;  %v3379_v5 = vmul.f32 %v3059_v13, %v13522_v56  ;;  %v13559_v22 = vmul.f32 0.5, %v17044_v55  ;;  %v17046_v40 = vld [vmem:[#allocation43_spill] sm:$0xff]  ;;  %17048 = vst [vmem:[#allocation44_spill] sm:$0xff] %v13563_v44  ;;  %v17049_v13 = vld [vmem:[#allocation21_spill] sm:$0xff] }
 0x3b9   :  { %17042 = vst [vmem:[#allocation85_spill] sm:$0xff] %v13549_v45  ;;  %17043 = vst [vmem:[#allocation111_spill] sm:$0xff] %v13552_v17  ;;  %v5196_v25 = vmul.f32 %v4876_v63, %v2636_v2  ;;  %v3927_v42 = vadd.f32 %v17047_v28, %v17046_v40  ;;  %v4243_v45 = vmul.f32 0.7978846, %v3923_v7  ;;  %v3380_v29 = vmul.f32 %v3060_v47, %v13526_v60  ;;  %v13573_v2 = vpop.f32.mrb[49].mxu0  ;;  %v17051_v28 = vld [vmem:[#allocation80_spill] sm:$0xff] }
 0x3ba   :  { %v5200_v26 = vmul.f32 %v4880_v62, %v2640_v58  ;;  %6492 = vmatmul.mubr.bf16.gmra.mrb[188].mxu1 %v5669_v18  ;;  %v3383_v16 = vmul.f32 %v3063_v51, %v13530_v21  ;;  %v13569_v36 = vadd.f32 %v12932_v31, %v12690_v4  ;;  %v3932_v12 = vadd.f32 %v17049_v13, %v12829_v57  ;;  %v17052_v7 = vld [vmem:[#allocation11_spill] sm:$0xff]  ;;  %v13577_v18 = vpop.f32.mrb[50].mxu0  ;;  %v17055_v31 = vld [vmem:[#allocation93_spill] sm:$0xff] }
 0x3bb   :  { %17050 = vst [vmem:[#allocation92_spill] sm:$0xff] %v13573_v2  ;;  %v4247_v62 = vmul.f32 0.7978846, %v3927_v42  ;;  %8714 = vtanh.f32 %v4243_v45  ;;  %v3936_v46 = vadd.f32 %v17052_v7, %v17051_v28  ;;  %17053 = vst [vmem:[#allocation79_spill] sm:$0xff] %v13577_v18  ;;  %v13580_v47 = vmul.f32 %v3376_v61, %v13501_v1  ;;  %v17057_v55 = vld [vmem:[#allocation17_spill] sm:$0xff]  ;;  %v17060_v7 = vld [vmem:[#allocation50_spill] sm:$0xff] }
 0x3bc   :  { %v5516_v58 = vpack.c.bf16 %v5200_v26, %v5196_v25  ;;  %v4252_v63 = vmul.f32 0.7978846, %v3932_v12  ;;  %v13584_v51 = vadd.f32 %v17055_v31, %v12686_v48  ;;  %v13588_v13 = vadd.f32 %v17057_v55, %v12690_v4  ;;  %v17076_v18 = vld [vmem:[#allocation24_spill] sm:$0xff] }
 0x3bd   :  { %17054 = vst [vmem:[#allocation7_spill] sm:$0xff] %v13580_v47  ;;  %v13591_v45 = vmul.f32 0.5, %v17046_v40  ;;  %8716 = vtanh.f32 %v4247_v62  ;;  %v3064_v25 = vmul.f32 0.044715, %v13569_v36  ;;  %v4256_v26 = vmul.f32 0.7978846, %v3936_v46 }
 0x3be   :  { %17056 = vst [vmem:[#allocation43_spill] sm:$0xff] %v13584_v51  ;;  %6534 = vmatprep.mubr.bf16.mxu1 %v5516_v58  ;;  %v8711_v42 = vpop.eup %8710  ;;  %v13595_v61 = vmul.f32 %v3379_v5, %v13522_v56  ;;  %v13598_v12 = vmul.f32 %v3380_v29, %v13526_v60  ;;  %8718 = vtanh.f32 %v4252_v63  ;;  %v13602_v31 = vadd.f32 %v17060_v7, %v12686_v48  ;;  %v13611_v63 = vpop.f32.mrb[51].mxu0  ;;  %v17064_v56 = vld [vmem:[#allocation112_spill] sm:$0xff] }
 0x3bf   :  { %v8713_v58 = vpop.eup %8712  ;;  %v4884_v55 = vadd.f32 1.0, %v8711_v42  ;;  %v13605_v40 = vmul.f32 %v3383_v16, %v13530_v21  ;;  %8720 = vtanh.f32 %v4256_v26  ;;  %v3067_v62 = vmul.f32 0.044715, %v13584_v51  ;;  %17063 = vst [vmem:[#allocation93_spill] sm:$0xff] %v13611_v63  ;;  %v17065_v16 = vld [vmem:[#allocation91_spill] sm:$0xff]  ;;  %v17066_v26 = vld [vmem:[#allocation28_spill] sm:$0xff] }
 0x3c0   :  { %17058 = vst [vmem:[#allocation81_spill] sm:$0xff] %v13595_v61  ;;  %17059 = vst [vmem:[#allocation21_spill] sm:$0xff] %v13598_v12  ;;  %v4888_v46 = vadd.f32 1.0, %v8713_v58  ;;  %v2652_v5 = vmul.f32 0.5, %v12829_v57  ;;  %v2656_v61 = vmul.f32 0.5, %v17051_v28  ;;  %v3384_v7 = vmul.f32 %v3064_v25, %v13569_v36  ;;  %v17069_v25 = vld [vmem:[#allocation18_spill] sm:$0xff] }
 0x3c1   :  { %17061 = vst [vmem:[#allocation80_spill] sm:$0xff] %v13602_v31  ;;  %17062 = vst [vmem:[#allocation11_spill] sm:$0xff] %v13605_v40  ;;  %v3068_v29 = vmul.f32 0.044715, %v13588_v13  ;;  %v13615_v12 = vmul.f32 0.5, %v17064_v56  ;;  %v3931_v42 = vadd.f32 %v17065_v16, %v17064_v56  ;;  %v17067_v40 = vld [vmem:[#allocation23_spill] sm:$0xff]  ;;  %v17068_v57 = vpack.c.bf16 %v13487_v8, %v13484_v32 }
 0x3c2   :  { %v3935_v21 = vadd.f32 %v17067_v40, %v17066_v26  ;;  %v5204_v28 = vmul.f32 %v4884_v55, %v13537_v49  ;;  %v5208_v58 = vmul.f32 %v4888_v46, %v13540_v3  ;;  %v3071_v60 = vmul.f32 0.044715, %v13602_v31  ;;  %v13635_v50 = vpop.f32.mrb[52].mxu0  ;;  %v17072_v3 = vld [vmem:[#allocation90_spill] sm:$0xff]  ;;  %v17073_v55 = vld [vmem:[#allocation53_spill] sm:$0xff] }
 0x3c3   :  { %6535 = vmatmul.mubr.bf16.vlgmr.msra.gmra.mrb[32].mxu1 %v17068_v57  ;;  %v13629_v63 = vadd.f32 %v17069_v25, %v12690_v4  ;;  %v3387_v17 = vmul.f32 %v3067_v62, %v13584_v51  ;;  %v13633_v56 = vmul.f32 0.5, %v17066_v26  ;;  %v4251_v40 = vmul.f32 0.7978846, %v3931_v42  ;;  %17071 = vst [vmem:[#allocation50_spill] sm:$0xff] %v13635_v50  ;;  %v13641_v57 = vpop.f32.mrb[53].mxu0  ;;  %v17075_v62 = vld [vmem:[#allocation48_spill] sm:$0xff] }
 0x3c4   :  { %v4255_v16 = vmul.f32 0.7978846, %v3935_v21  ;;  %v5520_v32 = vpack.c.bf16 %v5208_v58, %v5204_v28  ;;  %v3388_v8 = vmul.f32 %v3068_v29, %v13588_v13  ;;  %v3940_v46 = vadd.f32 %v17073_v55, %v17072_v3  ;;  %17074 = vst [vmem:[#allocation112_spill] sm:$0xff] %v13641_v57  ;;  %v17077_v42 = vld [vmem:[#allocation49_spill] sm:$0xff]  ;;  %v17079_v28 = vld [vmem:[#allocation52_spill] sm:$0xff]  ;;  %v13653_v29 = vpop.f32.mrb[54].mxu0 }
 0x3c5   :  { %17070 = vst [vmem:[#allocation17_spill] sm:$0xff] %v13629_v63  ;;  %v3072_v49 = vmul.f32 0.044715, %v13629_v63  ;;  %v8715_v25 = vpop.eup %8714  ;;  %8722 = vtanh.f32 %v4251_v40  ;;  %v3944_v26 = vadd.f32 %v17076_v18, %v17075_v62  ;;  %v13647_v21 = vadd.f32 %v17077_v42, %v12686_v48 }
 0x3c6   :  { %v13651_v58 = vadd.f32 %v17079_v28, %v12690_v4  ;;  %6544 = vmatprep.mubr.bf16.mxu1 %v5520_v32  ;;  %v4883_v50 = vadd.f32 1.0, %v8715_v25  ;;  %v3391_v55 = vmul.f32 %v3071_v60, %v13602_v31  ;;  %8724 = vtanh.f32 %v4255_v16 }
 0x3c7   :  { %17078 = vst [vmem:[#allocation91_spill] sm:$0xff] %v13647_v21  ;;  %v4260_v57 = vmul.f32 0.7978846, %v3940_v46  ;;  %v8717_v40 = vpop.eup %8716  ;;  %v13657_v2 = vmul.f32 %v3384_v7, %v13569_v36  ;;  %v3392_v18 = vmul.f32 %v3072_v49, %v13629_v63  ;;  %v4264_v42 = vmul.f32 0.7978846, %v3944_v26  ;;  %v17083_v46 = vld [vmem:[#allocation61_spill] sm:$0xff] }
 0x3c8   :  { %17080 = vst [vmem:[#allocation28_spill] sm:$0xff] %v13651_v58  ;;  %v3075_v44 = vmul.f32 0.044715, %v13647_v21  ;;  %v8719_v47 = vpop.eup %8718  ;;  %v4887_v28 = vadd.f32 1.0, %v8717_v40  ;;  %v13662_v1 = vmul.f32 %v3387_v17, %v13584_v51  ;;  %v13665_v32 = vmul.f32 %v3388_v8, %v13588_v13 }
 0x3c9   :  { %8726 = vtanh.f32 %v4260_v57  ;;  %v8721_v60 = vpop.eup %8720  ;;  %v4892_v16 = vadd.f32 1.0, %v8719_v47  ;;  %v3076_v7 = vmul.f32 0.044715, %v13651_v58  ;;  %v13670_v49 = vadd.f32 %v17083_v46, %v12686_v48 }
 0x3ca   :  { %17081 = vst [vmem:[#allocation23_spill] sm:$0xff] %v13662_v1  ;;  %17082 = vst [vmem:[#allocation18_spill] sm:$0xff] %v13665_v32  ;;  %8728 = vtanh.f32 %v4264_v42  ;;  %v5203_v25 = vmul.f32 %v4883_v50, %v13559_v22  ;;  %v5207_v26 = vmul.f32 %v4887_v28, %v13591_v45  ;;  %v4896_v40 = vadd.f32 1.0, %v8721_v60  ;;  %v13683_v1 = vpop.f32.mrb[55].mxu0  ;;  %v17087_v22 = vld [vmem:[#allocation45_spill] sm:$0xff]  ;;  %v17088_v45 = vld [vmem:[#allocation30_spill] sm:$0xff] }
 0x3cb   :  { %17084 = vst [vmem:[#allocation90_spill] sm:$0xff] %v13670_v49  ;;  %v13675_v17 = vmul.f32 %v3391_v55, %v13602_v31  ;;  %v13678_v8 = vmul.f32 %v3392_v18, %v13629_v63  ;;  %v2660_v47 = vmul.f32 0.5, %v17072_v3  ;;  %v2664_v57 = vmul.f32 0.5, %v17075_v62  ;;  %v17089_v18 = vld [vmem:[#allocation8_spill] sm:$0xff] }
 0x3cc   :  { %v3395_v42 = vmul.f32 %v3075_v44, %v13647_v21  ;;  %v5519_v46 = vpack.c.bf16 %v5207_v26, %v5203_v25  ;;  %v5212_v51 = vmul.f32 %v4892_v16, %v2652_v5  ;;  %v5216_v50 = vmul.f32 %v4896_v40, %v2656_v61  ;;  %v13695_v44 = vpop.f32.mrb[56].mxu0 }
 0x3cd   :  { %17085 = vst [vmem:[#allocation53_spill] sm:$0xff] %v13675_v17  ;;  %17086 = vst [vmem:[#allocation48_spill] sm:$0xff] %v13678_v8  ;;  %v3939_v28 = vadd.f32 %v17088_v45, %v17087_v22  ;;  %v3396_v55 = vmul.f32 %v3076_v7, %v13651_v58  ;;  %v3079_v60 = vmul.f32 0.044715, %v13670_v49  ;;  %v17090_v17 = vld [vmem:[#allocation26_spill] sm:$0xff]  ;;  %v13693_v3 = vadd.f32 %v13043_v43, %v12690_v4  ;;  %v13702_v7 = vpop.f32.mrb[57].mxu0 }
 0x3ce   :  { %v3943_v31 = vadd.f32 %v17090_v17, %v17089_v18  ;;  %17092 = vst [vmem:[#allocation49_spill] sm:$0xff] %v13695_v44  ;;  %6545 = vmatmul.mubr.bf16.gmra.mrb[36].mxu1 %v5519_v46  ;;  %v5524_v62 = vpack.c.bf16 %v5216_v50, %v5212_v51  ;;  %v13698_v61 = vmul.f32 0.5, %v17087_v22  ;;  %v3948_v16 = vadd.f32 %v13052_v38, %v12972_v19  ;;  %v17094_v17 = vld [vmem:[#allocation57_spill] sm:$0xff]  ;;  %v17095_v43 = vld [vmem:[#allocation54_spill] sm:$0xff]  ;;  %v13711_v51 = vpop.f32.mrb[58].mxu0 }
 0x3cf   :  { %17091 = vst [vmem:[#allocation24_spill] sm:$0xff] %v13693_v3  ;;  %v4259_v5 = vmul.f32 0.7978846, %v3939_v28  ;;  %17093 = vst [vmem:[#allocation52_spill] sm:$0xff] %v13702_v7  ;;  %v8723_v25 = vpop.eup %8722  ;;  %v3080_v40 = vmul.f32 0.044715, %v13693_v3  ;;  %v3952_v45 = vadd.f32 %v17095_v43, %v17094_v17  ;;  %v13718_v8 = vmul.f32 %v3395_v42, %v13647_v21 }
 0x3d0   :  { %v4263_v26 = vmul.f32 0.7978846, %v3943_v31  ;;  %v17096_v44 = vld [vmem:[#allocation25_spill] sm:$0xff]  ;;  %17098 = vst [vmem:[#allocation45_spill] sm:$0xff] %v13711_v51  ;;  %v8725_v50 = vpop.eup %8724  ;;  %6554 = vmatprep.mubr.bf16.mxu1 %v5524_v62  ;;  %v4891_v22 = vadd.f32 1.0, %v8723_v25  ;;  %v17099_v28 = vld [vmem:[#allocation22_spill] sm:$0xff]  ;;  %v3399_v51 = vmul.f32 %v3079_v60, %v13670_v49  ;;  %v13726_v42 = vmul.f32 %v3396_v55, %v13651_v58 }
 0x3d1   :  { %v13709_v46 = vadd.f32 %v17096_v44, %v12686_v48  ;;  %8730 = vtanh.f32 %v4259_v5  ;;  %v4268_v38 = vmul.f32 0.7978846, %v3948_v16  ;;  %v13715_v7 = vadd.f32 %v17099_v28, %v12690_v4  ;;  %17101 = vst [vmem:[#allocation8_spill] sm:$0xff] %v13718_v8  ;;  %v17117_v21 = vld [vmem:[#allocation58_spill] sm:$0xff] }
 0x3d2   :  { %v4895_v31 = vadd.f32 1.0, %v8725_v50  ;;  %8732 = vtanh.f32 %v4263_v26  ;;  %v4272_v43 = vmul.f32 0.7978846, %v3952_v45  ;;  %v5211_v44 = vmul.f32 %v4891_v22, %v13615_v12  ;;  %17102 = vst [vmem:[#allocation26_spill] sm:$0xff] %v13726_v42  ;;  %v17103_v12 = vld [vmem:[#allocation67_spill] sm:$0xff] }
 0x3d3   :  { %17097 = vst [vmem:[#allocation61_spill] sm:$0xff] %v13709_v46  ;;  %17100 = vst [vmem:[#allocation30_spill] sm:$0xff] %v13715_v7  ;;  %v8727_v63 = vpop.eup %8726  ;;  %v3400_v62 = vmul.f32 %v3080_v40, %v13693_v3  ;;  %8734 = vtanh.f32 %v4268_v38  ;;  %v3083_v50 = vmul.f32 0.044715, %v13709_v46  ;;  %v3084_v26 = vmul.f32 0.044715, %v13715_v7 }
 0x3d4   :  { %v8729_v5 = vpop.eup %8728  ;;  %v5215_v16 = vmul.f32 %v4895_v31, %v13633_v56  ;;  %v4900_v25 = vadd.f32 1.0, %v8727_v63  ;;  %8736 = vtanh.f32 %v4272_v43  ;;  %v13731_v45 = vadd.f32 %v17103_v12, %v12686_v48  ;;  %v13742_v43 = vpop.f32.mrb[59].mxu0  ;;  %v17110_v12 = vld [vmem:[#allocation46_spill] sm:$0xff] }
 0x3d5   :  { %v4904_v28 = vadd.f32 1.0, %v8729_v5  ;;  %v2663_v40 = vmul.f32 0.5, %v17089_v18  ;;  %v2668_v22 = vmul.f32 0.5, %v12972_v19  ;;  %v2672_v63 = vmul.f32 0.5, %v17094_v17  ;;  %17107 = vst [vmem:[#allocation22_spill] sm:$0xff] %v13742_v43  ;;  %v17111_v19 = vld [vmem:[#allocation32_spill] sm:$0xff] }
 0x3d6   :  { %17104 = vst [vmem:[#allocation57_spill] sm:$0xff] %v13731_v45  ;;  %v5523_v60 = vpack.c.bf16 %v5215_v16, %v5211_v44  ;;  %v5220_v56 = vmul.f32 %v4900_v25, %v2660_v47  ;;  %v13737_v31 = vmul.f32 %v3399_v51, %v13670_v49  ;;  %v13740_v55 = vmul.f32 %v3400_v62, %v13693_v3  ;;  %v17108_v44 = vld [vmem:[#allocation59_spill] sm:$0xff] }
 0x3d7   :  { %v5224_v38 = vmul.f32 %v4904_v28, %v2664_v57  ;;  %v3403_v5 = vmul.f32 %v3083_v50, %v13709_v46  ;;  %v17109_v16 = vld [vmem:[#allocation31_spill] sm:$0xff]  ;;  %v3951_v8 = vadd.f32 %v17111_v19, %v17110_v12  ;;  %v3404_v51 = vmul.f32 %v3084_v26, %v13715_v7 }
 0x3d8   :  { %17105 = vst [vmem:[#allocation54_spill] sm:$0xff] %v13737_v31  ;;  %17106 = vst [vmem:[#allocation25_spill] sm:$0xff] %v13740_v55  ;;  %6555 = vmatmul.mubr.bf16.gmra.mrb[40].mxu1 %v5523_v60  ;;  %v3947_v18 = vadd.f32 %v17109_v16, %v17108_v44  ;;  %v17112_v47 = vld [vmem:[#allocation75_spill] sm:$0xff]  ;;  %v3087_v62 = vmul.f32 0.044715, %v13731_v45  ;;  %v13757_v31 = vpop.f32.mrb[60].mxu0 }
 0x3d9   :  { %v13751_v57 = vadd.f32 %v17112_v47, %v12690_v4  ;;  %v5528_v17 = vpack.c.bf16 %v5224_v38, %v5220_v56  ;;  %v17114_v25 = vld [vmem:[#allocation55_spill] sm:$0xff]  ;;  %17116 = vst [vmem:[#allocation59_spill] sm:$0xff] %v13757_v31  ;;  %v4271_v49 = vmul.f32 0.7978846, %v3951_v8  ;;  %v13763_v56 = vmul.f32 0.5, %v17108_v44  ;;  %v17119_v47 = vld [vmem:[#allocation42_spill] sm:$0xff] }
 0x3da   :  { %v17115_v28 = vld [vmem:[#allocation87_spill] sm:$0xff]  ;;  %v4267_v50 = vmul.f32 0.7978846, %v3947_v18  ;;  %v13766_v26 = vmul.f32 0.5, %v17110_v12  ;;  %v13772_v18 = vpop.f32.mrb[61].mxu0 }
 0x3db   :  { %17113 = vst [vmem:[#allocation67_spill] sm:$0xff] %v13751_v57  ;;  %v3956_v60 = vadd.f32 %v17115_v28, %v17114_v25  ;;  %v3088_v16 = vmul.f32 0.044715, %v13751_v57  ;;  %v17118_v19 = vld [vmem:[#allocation99_spill] sm:$0xff]  ;;  %v8731_v3 = vpop.eup %8730  ;;  %6564 = vmatprep.mubr.bf16.mxu1 %v5528_v17  ;;  %v13770_v28 = vadd.f32 %v17119_v47, %v12686_v48  ;;  %17121 = vst [vmem:[#allocation46_spill] sm:$0xff] %v13772_v18  ;;  %v13778_v44 = vpop.f32.mrb[62].mxu0 }
 0x3dc   :  { %v3960_v55 = vadd.f32 %v17118_v19, %v17117_v21  ;;  %v8733_v8 = vpop.eup %8732  ;;  %v4899_v31 = vadd.f32 1.0, %v8731_v3  ;;  %8738 = vtanh.f32 %v4267_v50  ;;  %v17122_v19 = vld [vmem:[#allocation5_spill] sm:$0xff]  ;;  %17124 = vst [vmem:[#allocation75_spill] sm:$0xff] %v13778_v44  ;;  %v3407_v3 = vmul.f32 %v3087_v62, %v13731_v45 }
 0x3dd   :  { %v4276_v38 = vmul.f32 0.7978846, %v3956_v60  ;;  %17120 = vst [vmem:[#allocation31_spill] sm:$0xff] %v13770_v28  ;;  %v13776_v17 = vadd.f32 %v17122_v19, %v12690_v4  ;;  %v8735_v58 = vpop.eup %8734  ;;  %v4903_v12 = vadd.f32 1.0, %v8733_v8  ;;  %v13781_v60 = vmul.f32 %v3403_v5, %v13709_v46 }
 0x3de   :  { %v4280_v42 = vmul.f32 0.7978846, %v3960_v55  ;;  %8740 = vtanh.f32 %v4271_v49  ;;  %v3091_v47 = vmul.f32 0.044715, %v13770_v28  ;;  %v8737_v43 = vpop.eup %8736  ;;  %v4908_v18 = vadd.f32 1.0, %v8735_v58 }
 0x3df   :  { %17123 = vst [vmem:[#allocation32_spill] sm:$0xff] %v13776_v17  ;;  %17125 = vst [vmem:[#allocation55_spill] sm:$0xff] %v13781_v60  ;;  %v3408_v55 = vmul.f32 %v3088_v16, %v13751_v57  ;;  %8742 = vtanh.f32 %v4276_v38  ;;  %v5219_v50 = vmul.f32 %v4899_v31, %v13698_v61  ;;  %v5223_v19 = vmul.f32 %v4903_v12, %v2663_v40  ;;  %v17127_v60 = vld [vmem:[#allocation33_spill] sm:$0xff]  ;;  %v13797_v61 = vpop.f32.mrb[63].mxu0  ;;  %v17130_v31 = vld [vmem:[#allocation64_spill] sm:$0xff] }
 0x3e0   :  { %v4912_v32 = vadd.f32 1.0, %v8737_v43  ;;  %8744 = vtanh.f32 %v4280_v42  ;;  %v13788_v8 = vmul.f32 %v3404_v51, %v13715_v7  ;;  %v2676_v5 = vmul.f32 0.5, %v17114_v25  ;;  %17129 = vst [vmem:[#allocation99_spill] sm:$0xff] %v13797_v61  ;;  %v17131_v43 = vld [vmem:[#allocation10_spill] sm:$0xff]  ;;  %v17132_v25 = vld [vmem:[#allocation69_spill] sm:$0xff] }
 0x3e1   :  { %v3092_v49 = vmul.f32 0.044715, %v13776_v17  ;;  %v13794_v58 = vadd.f32 %v17127_v60, %v12686_v48  ;;  %v5527_v62 = vpack.c.bf16 %v5223_v19, %v5219_v50  ;;  %v5228_v46 = vmul.f32 %v4908_v18, %v2668_v22  ;;  %v17133_v12 = vld [vmem:[#allocation89_spill] sm:$0xff]  ;;  %v17138_v19 = vld [vmem:[#allocation84_spill] sm:$0xff] }
 0x3e2   :  { %17126 = vst [vmem:[#allocation87_spill] sm:$0xff] %v13788_v8  ;;  %v5232_v16 = vmul.f32 %v4912_v32, %v2672_v63  ;;  %v3411_v38 = vmul.f32 %v3091_v47, %v13770_v28  ;;  %v2680_v42 = vmul.f32 0.5, %v17117_v21  ;;  %v3955_v51 = vadd.f32 %v17131_v43, %v17130_v31  ;;  %v13815_v21 = vpop.f32.mrb[64].mxu0  ;;  %v17139_v43 = vld [vmem:[#allocation94_spill] sm:$0xff] }
 0x3e3   :  { %17128 = vst [vmem:[#allocation58_spill] sm:$0xff] %v13794_v58  ;;  %v3095_v40 = vmul.f32 0.044715, %v13794_v58  ;;  %v3959_v8 = vadd.f32 %v17133_v12, %v17132_v25  ;;  %6565 = vmatmul.mubr.bf16.gmra.mrb[44].mxu1 %v5527_v62  ;;  %v13806_v50 = vmul.f32 %v3407_v3, %v13731_v45  ;;  %v13809_v32 = vmul.f32 %v3408_v55, %v13751_v57  ;;  %v17143_v12 = vld [vmem:[#allocation104_spill] sm:$0xff] }
 0x3e4   :  { %v5532_v60 = vpack.c.bf16 %v5232_v16, %v5228_v46  ;;  %v13813_v22 = vadd.f32 %v13172_v0, %v12690_v4  ;;  %17137 = vst [vmem:[#allocation64_spill] sm:$0xff] %v13815_v21  ;;  %v3412_v63 = vmul.f32 %v3092_v49, %v13776_v17  ;;  %v4275_v18 = vmul.f32 0.7978846, %v3955_v51  ;;  %v13820_v46 = vpop.f32.mrb[65].mxu0  ;;  %v17142_v16 = vld [vmem:[#allocation103_spill] sm:$0xff] }
 0x3e5   :  { %17134 = vst [vmem:[#allocation42_spill] sm:$0xff] %v13806_v50  ;;  %17135 = vst [vmem:[#allocation5_spill] sm:$0xff] %v13809_v32  ;;  %v4279_v47 = vmul.f32 0.7978846, %v3959_v8  ;;  %v3964_v62 = vadd.f32 %v17139_v43, %v17138_v19  ;;  %v13823_v3 = vmul.f32 %v3411_v38, %v13770_v28  ;;  %v13826_v55 = vmul.f32 0.5, %v17130_v31  ;;  %v13831_v49 = vpop.f32.mrb[66].mxu0 }
 0x3e6   :  { %17136 = vst [vmem:[#allocation33_spill] sm:$0xff] %v13813_v22  ;;  %17140 = vst [vmem:[#allocation10_spill] sm:$0xff] %v13820_v46  ;;  %6574 = vmatprep.mubr.bf16.mxu1 %v5532_v60  ;;  %v3096_v0 = vmul.f32 0.044715, %v13813_v22  ;;  %v3968_v50 = vadd.f32 %v17143_v12, %v17142_v16  ;;  %v8739_v8 = vpop.eup %8738  ;;  %v3415_v51 = vmul.f32 %v3095_v40, %v13794_v58  ;;  %8746 = vtanh.f32 %v4275_v18  ;;  %v17145_v60 = vld [vmem:[#allocation60_spill] sm:$0xff]  ;;  %v17147_v28 = vld [vmem:[#allocation70_spill] sm:$0xff] }
 0x3e7   :  { %17141 = vst [vmem:[#allocation69_spill] sm:$0xff] %v13823_v3  ;;  %17144 = vst [vmem:[#allocation89_spill] sm:$0xff] %v13831_v49  ;;  %v4284_v43 = vmul.f32 0.7978846, %v3964_v62  ;;  %v13836_v45 = vadd.f32 %v17145_v60, %v12686_v48  ;;  %v4907_v3 = vadd.f32 1.0, %v8739_v8  ;;  %8748 = vtanh.f32 %v4279_v47  ;;  %v17149_v47 = vld [vmem:[#allocation83_spill] sm:$0xff] }
 0x3e8   :  { %v8741_v38 = vpop.eup %8740  ;;  %v4288_v31 = vmul.f32 0.7978846, %v3968_v50  ;;  %v13840_v46 = vadd.f32 %v17147_v28, %v12690_v4  ;;  %v2679_v49 = vmul.f32 0.5, %v17132_v25  ;;  %v3416_v40 = vmul.f32 %v3096_v0, %v13813_v22 }
 0x3e9   :  { %17146 = vst [vmem:[#allocation84_spill] sm:$0xff] %v13836_v45  ;;  %v8743_v12 = vpop.eup %8742  ;;  %v4911_v21 = vadd.f32 1.0, %v8741_v38  ;;  %8750 = vtanh.f32 %v4284_v43  ;;  %v13845_v60 = vmul.f32 %v3412_v63, %v13776_v17  ;;  %v13849_v50 = vadd.f32 %v17149_v47, %v12686_v48 }
 0x3ea   :  { %v8745_v18 = vpop.eup %8744  ;;  %v4916_v62 = vadd.f32 1.0, %v8743_v12  ;;  %8752 = vtanh.f32 %v4288_v31  ;;  %v5227_v28 = vmul.f32 %v4907_v3, %v13763_v56  ;;  %v3099_v25 = vmul.f32 0.044715, %v13836_v45  ;;  %v13863_v56 = vpop.f32.mrb[67].mxu0  ;;  %v17155_v3 = vld [vmem:[#allocation88_spill] sm:$0xff] }
 0x3eb   :  { %17148 = vst [vmem:[#allocation94_spill] sm:$0xff] %v13845_v60  ;;  %17150 = vst [vmem:[#allocation103_spill] sm:$0xff] %v13849_v50  ;;  %v5231_v8 = vmul.f32 %v4911_v21, %v13766_v26  ;;  %v4920_v38 = vadd.f32 1.0, %v8745_v18  ;;  %v13855_v0 = vmul.f32 %v3415_v51, %v13794_v58  ;;  %v2684_v43 = vmul.f32 0.5, %v17138_v19  ;;  %v17154_v21 = vld [vmem:[#allocation66_spill] sm:$0xff]  ;;  %v17156_v18 = vld [vmem:[#allocation73_spill] sm:$0xff] }
 0x3ec   :  { %v2688_v63 = vmul.f32 0.5, %v17142_v16  ;;  %v3100_v31 = vmul.f32 0.044715, %v13840_v46  ;;  %v5236_v60 = vmul.f32 %v4916_v62, %v2676_v5  ;;  %v13861_v17 = vmul.f32 %v3416_v40, %v13813_v22  ;;  %17153 = vst [vmem:[#allocation70_spill] sm:$0xff] %v13863_v56  ;;  %v17158_v62 = vld [vmem:[#allocation39_spill] sm:$0xff] }
 0x3ed   :  { %17151 = vst [vmem:[#allocation104_spill] sm:$0xff] %v13855_v0  ;;  %v5531_v12 = vpack.c.bf16 %v5231_v8, %v5227_v28  ;;  %v5240_v47 = vmul.f32 %v4920_v38, %v2680_v42  ;;  %v3103_v26 = vmul.f32 0.044715, %v13849_v50  ;;  %v3963_v51 = vadd.f32 %v17155_v3, %v17154_v21  ;;  %v17157_v0 = vld [vmem:[#allocation15_spill] sm:$0xff]  ;;  %v13880_v38 = vpop.f32.mrb[68].mxu0 }
 0x3ee   :  { %17152 = vst [vmem:[#allocation60_spill] sm:$0xff] %v13861_v17  ;;  %v3967_v19 = vadd.f32 %v17157_v0, %v17156_v18  ;;  %v13872_v16 = vadd.f32 %v13238_v23, %v12690_v4  ;;  %v3419_v42 = vmul.f32 %v3099_v25, %v13836_v45  ;;  %v13876_v40 = vmul.f32 0.5, %v17154_v21  ;;  %v17159_v28 = vld [vmem:[#allocation51_spill] sm:$0xff]  ;;  %17160 = vst [vmem:[#allocation83_spill] sm:$0xff] %v13880_v38  ;;  %v17161_v25 = vld [vmem:[#allocation20_spill] sm:$0xff]  ;;  %v13893_v38 = vpop.f32.mrb[69].mxu0 }
 0x3ef   :  { %6575 = vmatmul.mubr.bf16.gmra.mrb[48].mxu1 %v5531_v12  ;;  %v5536_v5 = vpack.c.bf16 %v5240_v47, %v5236_v60  ;;  %v3972_v8 = vadd.f32 %v17159_v28, %v17158_v62  ;;  %v3420_v3 = vmul.f32 %v3100_v31, %v13840_v46  ;;  %v4283_v58 = vmul.f32 0.7978846, %v3963_v51  ;;  %v17162_v12 = vld [vmem:[#allocation19_spill] sm:$0xff]  ;;  %17165 = vst [vmem:[#allocation88_spill] sm:$0xff] %v13893_v38 }
 0x3f0   :  { %v4287_v0 = vmul.f32 0.7978846, %v3967_v19  ;;  %v3104_v17 = vmul.f32 0.044715, %v13872_v16  ;;  %v8747_v23 = vpop.eup %8746  ;;  %v13885_v60 = vmul.f32 0.5, %v17156_v18  ;;  %v3976_v47 = vadd.f32 %v17162_v12, %v17161_v25  ;;  %v17163_v22 = vld [vmem:[#allocation63_spill] sm:$0xff] }
 0x3f1   :  { %6584 = vmatprep.mubr.bf16.mxu1 %v5536_v5  ;;  %v4292_v21 = vmul.f32 0.7978846, %v3972_v8  ;;  %v13891_v28 = vadd.f32 %v17163_v22, %v12686_v48  ;;  %v8749_v31 = vpop.eup %8748  ;;  %v4915_v51 = vadd.f32 1.0, %v8747_v23  ;;  %v3423_v19 = vmul.f32 %v3103_v26, %v13849_v50  ;;  %v17166_v5 = vld [vmem:[#allocation38_spill] sm:$0xff]  ;;  %v13900_v18 = vpop.f32.mrb[70].mxu0  ;;  %v17168_v26 = vld [vmem:[#allocation36_spill] sm:$0xff] }
 0x3f2   :  { %8754 = vtanh.f32 %v4283_v58  ;;  %v13898_v56 = vadd.f32 %v17166_v5, %v12690_v4  ;;  %17167 = vst [vmem:[#allocation73_spill] sm:$0xff] %v13900_v18  ;;  %v4919_v12 = vadd.f32 1.0, %v8749_v31  ;;  %v4296_v8 = vmul.f32 0.7978846, %v3976_v47  ;;  %v13918_v44 = vpop.f32.mrb[71].mxu0 }
 0x3f3   :  { %17164 = vst [vmem:[#allocation66_spill] sm:$0xff] %v13891_v28  ;;  %v8751_v32 = vpop.eup %8750  ;;  %8756 = vtanh.f32 %v4287_v0  ;;  %v3107_v22 = vmul.f32 0.044715, %v13891_v28  ;;  %v3424_v38 = vmul.f32 %v3104_v17, %v13872_v16  ;;  %v13906_v58 = vadd.f32 %v17168_v26, %v12686_v48 }
 0x3f4   :  { %v8753_v57 = vpop.eup %8752  ;;  %v4924_v7 = vadd.f32 1.0, %v8751_v32  ;;  %8758 = vtanh.f32 %v4292_v21  ;;  %v5235_v23 = vmul.f32 %v4915_v51, %v13826_v55  ;;  %v5239_v5 = vmul.f32 %v4919_v12, %v2679_v49  ;;  %v17171_v49 = vld [vmem:[#allocation74_spill] sm:$0xff] }
 0x3f5   :  { %17169 = vst [vmem:[#allocation15_spill] sm:$0xff] %v13906_v58  ;;  %v4928_v61 = vadd.f32 1.0, %v8753_v57  ;;  %8760 = vtanh.f32 %v4296_v8  ;;  %v13910_v31 = vmul.f32 %v3419_v42, %v13836_v45  ;;  %v13913_v0 = vmul.f32 %v3420_v3, %v13840_v46  ;;  %v17172_v42 = vld [vmem:[#allocation14_spill] sm:$0xff] }
 0x3f6   :  { %v2692_v32 = vmul.f32 0.5, %v17158_v62  ;;  %v3427_v17 = vmul.f32 %v3107_v22, %v13891_v28  ;;  %v5535_v47 = vpack.c.bf16 %v5239_v5, %v5235_v23  ;;  %v5244_v21 = vmul.f32 %v4924_v7, %v2684_v43  ;;  %v17173_v3 = vld [vmem:[#allocation86_spill] sm:$0xff]  ;;  %v13942_v5 = vpop.f32.mrb[72].mxu0 }
 0x3f7   :  { %17170 = vst [vmem:[#allocation39_spill] sm:$0xff] %v13910_v31  ;;  %v5248_v18 = vmul.f32 %v4928_v61, %v2688_v63  ;;  %v2696_v26 = vmul.f32 0.5, %v17161_v25  ;;  %v3108_v57 = vmul.f32 0.044715, %v13898_v56  ;;  %v3111_v55 = vmul.f32 0.044715, %v13906_v58 }
 0x3f8   :  { %v3971_v51 = vadd.f32 %v17172_v42, %v17171_v49  ;;  %v17174_v12 = vld [vmem:[#allocation98_spill] sm:$0xff]  ;;  %6585 = vmatmul.mubr.bf16.gmra.mrb[52].mxu1 %v5535_v47  ;;  %v13927_v22 = vmul.f32 %v3423_v19, %v13849_v50  ;;  %v13930_v7 = vmul.f32 %v3424_v38, %v13872_v16  ;;  %v13934_v61 = vadd.f32 %v13295_v10, %v12690_v4  ;;  %v17180_v38 = vld [vmem:[#allocation37_spill] sm:$0xff] }
 0x3f9   :  { %v3975_v8 = vadd.f32 %v17174_v12, %v17173_v3  ;;  %v5540_v62 = vpack.c.bf16 %v5248_v18, %v5244_v21  ;;  %v13937_v43 = vmul.f32 %v3427_v17, %v13891_v28  ;;  %v13940_v63 = vmul.f32 0.5, %v17171_v49  ;;  %17179 = vst [vmem:[#allocation38_spill] sm:$0xff] %v13942_v5  ;;  %v17181_v47 = vld [vmem:[#allocation101_spill] sm:$0xff]  ;;  %v17183_v17 = vld [vmem:[#allocation3_spill] sm:$0xff]  ;;  %v13955_v49 = vpop.f32.mrb[73].mxu0 }
 0x3fa   :  { %17175 = vst [vmem:[#allocation51_spill] sm:$0xff] %v13927_v22  ;;  %17176 = vst [vmem:[#allocation20_spill] sm:$0xff] %v13930_v7  ;;  %v4291_v25 = vmul.f32 0.7978846, %v3971_v51  ;;  %v13945_v19 = vmul.f32 0.5, %v17173_v3  ;;  %v3980_v18 = vadd.f32 %v17180_v38, %v13221_v24  ;;  %v17182_v10 = vld [vmem:[#allocation13_spill] sm:$0xff]  ;;  %v13953_v42 = vadd.f32 %v17183_v17, %v12686_v48 }
 0x3fb   :  { %17177 = vst [vmem:[#allocation19_spill] sm:$0xff] %v13934_v61  ;;  %17178 = vst [vmem:[#allocation63_spill] sm:$0xff] %v13937_v43  ;;  %v4295_v23 = vmul.f32 0.7978846, %v3975_v8  ;;  %6594 = vmatprep.mubr.bf16.mxu1 %v5540_v62  ;;  %v3984_v21 = vadd.f32 %v17182_v10, %v17181_v47  ;;  %v3428_v12 = vmul.f32 %v3108_v57, %v13898_v56  ;;  %v13960_v3 = vmul.f32 0.5, %v13221_v24  ;;  %v13962_v62 = vpop.f32.mrb[74].mxu0 }
 0x3fc   :  { %17184 = vst [vmem:[#allocation36_spill] sm:$0xff] %v13953_v42  ;;  %17185 = vst [vmem:[#allocation74_spill] sm:$0xff] %v13955_v49  ;;  %v8755_v51 = vpop.eup %8754  ;;  %v3431_v8 = vmul.f32 %v3111_v55, %v13906_v58  ;;  %8762 = vtanh.f32 %v4291_v25  ;;  %v3112_v10 = vmul.f32 0.044715, %v13934_v61  ;;  %v4300_v17 = vmul.f32 0.7978846, %v3980_v18 }
 0x3fd   :  { %17186 = vst [vmem:[#allocation14_spill] sm:$0xff] %v13962_v62  ;;  %v8757_v38 = vpop.eup %8756  ;;  %v4923_v43 = vadd.f32 1.0, %v8755_v51  ;;  %8764 = vtanh.f32 %v4295_v23  ;;  %v13966_v50 = vmul.f32 0.5, %v17181_v47  ;;  %v4304_v57 = vmul.f32 0.7978846, %v3984_v21  ;;  %v17187_v55 = vld [vmem:[#allocation40_spill] sm:$0xff] }
 0x3fe   :  { %v8759_v28 = vpop.eup %8758  ;;  %v4927_v22 = vadd.f32 1.0, %v8757_v38  ;;  %v13970_v25 = vadd.f32 %v17187_v55, %v12690_v4  ;;  %8766 = vtanh.f32 %v4300_v17  ;;  %v3115_v45 = vmul.f32 0.044715, %v13953_v42  ;;  %v17188_v23 = vld [vmem:[#allocation9_spill] sm:$0xff]  ;;  %v13979_v21 = vpop.f32.mrb[75].mxu0  ;;  %v17192_v62 = vld [vmem:[#allocation35_spill] sm:$0xff] }
 0x3ff   :  { %v8761_v24 = vpop.eup %8760  ;;  %v4932_v31 = vadd.f32 1.0, %v8759_v28  ;;  %v13975_v51 = vadd.f32 %v17188_v23, %v12686_v48  ;;  %v5243_v18 = vmul.f32 %v4923_v43, %v13876_v40  ;;  %8768 = vtanh.f32 %v4304_v57  ;;  %v17193_v49 = vld [vmem:[#allocation100_spill] sm:$0xff] }
 0x400   :  { %v5247_v38 = vmul.f32 %v4927_v22, %v13885_v60  ;;  %v4936_v47 = vadd.f32 1.0, %v8761_v24  ;;  %v13982_v55 = vmul.f32 %v3428_v12, %v13898_v56  ;;  %v13985_v28 = vmul.f32 %v3431_v8, %v13906_v58  ;;  %v17194_v43 = vld [vmem:[#allocation96_spill] sm:$0xff]  ;;  %v17195_v60 = vld [vmem:[#allocation6_spill] sm:$0xff] }
 0x401   :  { %17189 = vst [vmem:[#allocation86_spill] sm:$0xff] %v13975_v51  ;;  %v3432_v17 = vmul.f32 %v3112_v10, %v13934_v61  ;;  %v3979_v23 = vadd.f32 %v17193_v49, %v17192_v62  ;;  %v5252_v7 = vmul.f32 %v4932_v31, %v2692_v32  ;;  %v3983_v22 = vadd.f32 %v17195_v60, %v17194_v43 }
 0x402   :  { %17190 = vst [vmem:[#allocation98_spill] sm:$0xff] %v13982_v55  ;;  %17191 = vst [vmem:[#allocation37_spill] sm:$0xff] %v13985_v28  ;;  %v5539_v5 = vpack.c.bf16 %v5247_v38, %v5243_v18  ;;  %v5256_v40 = vmul.f32 %v4936_v47, %v2696_v26  ;;  %v3435_v57 = vmul.f32 %v3115_v45, %v13953_v42  ;;  %v3116_v24 = vmul.f32 0.044715, %v13970_v25  ;;  %v17196_v55 = vld [vmem:[#allocation68_spill] sm:$0xff]  ;;  %v14009_v18 = vpop.f32.mrb[76].mxu0 }
 0x403   :  { %v4299_v12 = vmul.f32 0.7978846, %v3979_v23  ;;  %v13996_v8 = vadd.f32 %v17196_v55, %v12690_v4  ;;  %v3119_v28 = vmul.f32 0.044715, %v13975_v51  ;;  %v14000_v49 = vmul.f32 0.5, %v17192_v62  ;;  %17199 = vst [vmem:[#allocation3_spill] sm:$0xff] %v14009_v18 }
 0x404   :  { %6595 = vmatmul.mubr.bf16.gmra.mrb[56].mxu1 %v5539_v5  ;;  %v5544_v10 = vpack.c.bf16 %v5256_v40, %v5252_v7  ;;  %v4303_v31 = vmul.f32 0.7978846, %v3983_v22  ;;  %v14003_v32 = vmul.f32 %v3432_v17, %v13934_v61  ;;  %v14006_v45 = vmul.f32 0.5, %v17194_v43  ;;  %v17200_v7 = vld [vmem:[#allocation56_spill] sm:$0xff]  ;;  %v17201_v5 = vld [vmem:[#allocation105_spill] sm:$0xff]  ;;  %v17203_v55 = vld [vmem:[#allocation34_spill] sm:$0xff] }
 0x405   :  { %17197 = vst [vmem:[#allocation101_spill] sm:$0xff] %v13996_v8  ;;  %8770 = vtanh.f32 %v4299_v12  ;;  %v3120_v26 = vmul.f32 0.044715, %v13996_v8  ;;  %v3988_v47 = vadd.f32 %v17201_v5, %v17200_v7  ;;  %v17202_v62 = vld [vmem:[#allocation4_spill] sm:$0xff]  ;;  %v14019_v43 = vpop.f32.mrb[77].mxu0  ;;  %v14022_v12 = vmul.f32 %v3435_v57, %v13953_v42 }
 0x406   :  { %17198 = vst [vmem:[#allocation13_spill] sm:$0xff] %v14003_v32  ;;  %v8763_v38 = vpop.eup %8762  ;;  %6604 = vmatprep.mubr.bf16.mxu1 %v5544_v10  ;;  %8772 = vtanh.f32 %v4303_v31  ;;  %v3992_v23 = vadd.f32 %v17203_v55, %v17202_v62  ;;  %v17204_v17 = vld [vmem:[#allocation72_spill] sm:$0xff]  ;;  %17205 = vst [vmem:[#allocation40_spill] sm:$0xff] %v14019_v43  ;;  %v3436_v10 = vmul.f32 %v3116_v24, %v13970_v25  ;;  %v17207_v31 = vld [vmem:[#allocation113_spill] sm:$0xff]  ;;  %v14029_v5 = vpop.f32.mrb[78].mxu0  ;;  %v14035_v57 = vmul.f32 0.5, %v17200_v7 }
 0x407   :  { %v14017_v40 = vadd.f32 %v17204_v17, %v12686_v48  ;;  %v8765_v60 = vpop.eup %8764  ;;  %v4931_v22 = vadd.f32 1.0, %v8763_v38  ;;  %17206 = vst [vmem:[#allocation9_spill] sm:$0xff] %v14022_v12  ;;  %v14027_v58 = vadd.f32 %v17207_v31, %v12690_v4  ;;  %v3439_v18 = vmul.f32 %v3119_v28, %v13975_v51  ;;  %v17208_v24 = vld [vmem:[#allocation108_spill] sm:$0xff] }
 0x408   :  { %v4935_v55 = vadd.f32 1.0, %v8765_v60  ;;  %v4308_v17 = vmul.f32 0.7978846, %v3988_v47  ;;  %v4312_v32 = vmul.f32 0.7978846, %v3992_v23  ;;  %v8767_v61 = vpop.eup %8766  ;;  %v3440_v38 = vmul.f32 %v3120_v26, %v13996_v8 }
 0x409   :  { %v5251_v43 = vmul.f32 %v4931_v22, %v13940_v63  ;;  %v14039_v12 = vadd.f32 %v17208_v24, %v12686_v48  ;;  %v8769_v31 = vpop.eup %8768  ;;  %v4940_v60 = vadd.f32 1.0, %v8767_v61  ;;  %v3123_v28 = vmul.f32 0.044715, %v14017_v40  ;;  %v17211_v24 = vld [vmem:[#allocation97_spill] sm:$0xff]  ;;  %v14056_v61 = vpop.f32.mrb[79].mxu0 }
 0x40a   :  { %v5255_v42 = vmul.f32 %v4935_v55, %v13945_v19  ;;  %8774 = vtanh.f32 %v4308_v17  ;;  %v4944_v47 = vadd.f32 1.0, %v8769_v31  ;;  %v14044_v23 = vmul.f32 0.5, %v17202_v62  ;;  %v17214_v17 = vld [vmem:[#allocation106_spill] sm:$0xff]  ;;  %v17215_v31 = vld [vmem:[#allocation27_spill] sm:$0xff] }
 0x40b   :  { %17209 = vst [vmem:[#allocation35_spill] sm:$0xff] %v14039_v12  ;;  %8776 = vtanh.f32 %v4312_v32  ;;  %v3124_v63 = vmul.f32 0.044715, %v14027_v58  ;;  %v14048_v7 = vmul.f32 %v3436_v10, %v13970_v25  ;;  %v14051_v22 = vmul.f32 %v3439_v18, %v13975_v51 }
 0x40c   :  { %v5543_v26 = vpack.c.bf16 %v5255_v42, %v5251_v43  ;;  %v14054_v19 = vmul.f32 0.5, %v17211_v24  ;;  %v5260_v55 = vmul.f32 %v4940_v60, %v13960_v3  ;;  %v5264_v62 = vmul.f32 %v4944_v47, %v13966_v50  ;;  %v17213_v42 = vld [vmem:[#allocation65_spill] sm:$0xff]  ;;  %v14073_v3 = vpop.f32.mrb[80].mxu0 }
 0x40d   :  { %17210 = vst [vmem:[#allocation100_spill] sm:$0xff] %v14051_v22  ;;  %v14061_v32 = vmul.f32 %v3440_v38, %v13996_v8  ;;  %v3987_v43 = vadd.f32 %v17213_v42, %v17211_v24  ;;  %v3443_v10 = vmul.f32 %v3123_v28, %v14017_v40  ;;  %v3127_v18 = vmul.f32 0.044715, %v14039_v12  ;;  %v14078_v28 = vpop.f32.mrb[81].mxu0 }
 0x40e   :  { %6605 = vmatmul.mubr.bf16.gmra.mrb[60].mxu1 %v5543_v26  ;;  %v3991_v22 = vadd.f32 %v17215_v31, %v17214_v17  ;;  %v14071_v51 = vadd.f32 %v13412_v59, %v12690_v4  ;;  %v5548_v38 = vpack.c.bf16 %v5264_v62, %v5260_v55  ;;  %v3444_v60 = vmul.f32 %v3124_v63, %v14027_v58  ;;  %v14083_v8 = vpop.f32.mrb[82].mxu0 }
 0x40f   :  { %17212 = vst [vmem:[#allocation96_spill] sm:$0xff] %v14061_v32  ;;  %v8771_v50 = vpop.eup %8770  ;;  %v4307_v47 = vmul.f32 0.7978846, %v3987_v43  ;;  %v3996_v26 = vadd.f32 %v13418_v35, %v13344_v30  ;;  %v4000_v59 = vadd.f32 %v13436_v52, %v13375_v39  ;;  %v14087_v62 = vadd.f32 %v13423_v41, %v12686_v48 }
 0x410   :  { %v8773_v24 = vpop.eup %8772  ;;  %v4939_v42 = vadd.f32 1.0, %v8771_v50  ;;  %v4311_v32 = vmul.f32 0.7978846, %v3991_v22  ;;  %v3128_v31 = vmul.f32 0.044715, %v14071_v51  ;;  %6614 = vmatprep.mubr.bf16.mxu1 %v5548_v38  ;;  %v3447_v43 = vmul.f32 %v3127_v18, %v14039_v12 }
 0x411   :  { %v4943_v55 = vadd.f32 1.0, %v8773_v24  ;;  %8778 = vtanh.f32 %v4307_v47  ;;  %v4316_v63 = vmul.f32 0.7978846, %v3996_v26  ;;  %17216 = vst [vmem:[#allocation6_spill] sm:$0xff] %v14087_v62  ;;  %v4320_v22 = vmul.f32 0.7978846, %v4000_v59 }
 0x412   :  { %v5259_v35 = vmul.f32 %v4939_v42, %v14000_v49  ;;  %8780 = vtanh.f32 %v4311_v32  ;;  %v3131_v52 = vmul.f32 0.044715, %v14087_v62  ;;  %v14095_v38 = vadd.f32 %v13433_v6, %v12690_v4  ;;  %v14109_v6 = vpop.f32.mrb[83].mxu0 }
 0x413   :  { %v5263_v50 = vmul.f32 %v4943_v55, %v14006_v45  ;;  %8782 = vtanh.f32 %v4316_v63  ;;  %v14098_v26 = vmul.f32 %v3443_v10, %v14017_v40  ;;  %v14101_v41 = vmul.f32 %v3444_v60, %v14027_v58 }
 0x414   :  { %17217 = vst [vmem:[#allocation68_spill] sm:$0xff] %v14095_v38  ;;  %v8775_v47 = vpop.eup %8774  ;;  %v2711_v49 = vmul.f32 0.5, %v17214_v17  ;;  %8784 = vtanh.f32 %v4320_v22  ;;  %v3448_v24 = vmul.f32 %v3128_v31, %v14071_v51  ;;  %v14107_v42 = vadd.f32 %v13443_v20, %v12686_v48  ;;  %v17220_v20 = vld [vmem:[#allocation102_spill] sm:$0xff] }
 0x415   :  { %v8777_v32 = vpop.eup %8776  ;;  %v5547_v18 = vpack.c.bf16 %v5263_v50, %v5259_v35  ;;  %v4948_v45 = vadd.f32 1.0, %v8775_v47  ;;  %v14112_v10 = vmul.f32 %v3447_v43, %v14039_v12  ;;  %v3132_v60 = vmul.f32 0.044715, %v14095_v38  ;;  %v17221_v35 = vld [vmem:[#allocation12_spill] sm:$0xff] }
 0x416   :  { %17218 = vst [vmem:[#allocation56_spill] sm:$0xff] %v14107_v42  ;;  %v4952_v59 = vadd.f32 1.0, %v8777_v32  ;;  %v3995_v17 = vadd.f32 %v13415_v27, %v13340_v54  ;;  %v2716_v55 = vmul.f32 0.5, %v13344_v30  ;;  %v2720_v31 = vmul.f32 0.5, %v13375_v39 }
 0x417   :  { %17219 = vst [vmem:[#allocation105_spill] sm:$0xff] %v14112_v10  ;;  %6615 = vmatmul.mubr.bf16.gmra.mrb[64].mxu1 %v5547_v18  ;;  %v3451_v63 = vmul.f32 %v3131_v52, %v14087_v62  ;;  %v3999_v22 = vadd.f32 %v17221_v35, %v17220_v20  ;;  %v5268_v50 = vmul.f32 %v4948_v45, %v14035_v57  ;;  %v3135_v30 = vmul.f32 0.044715, %v14107_v42 }
 0x418   :  { %v5272_v43 = vmul.f32 %v4952_v59, %v14044_v23  ;;  %v4315_v47 = vmul.f32 0.7978846, %v3995_v17  ;;  %v14126_v32 = vadd.f32 %v13476_v11, %v12690_v4  ;;  %v14129_v27 = vmul.f32 %v3448_v24, %v14071_v51  ;;  %v14137_v23 = vpop.f32.mrb[84].mxu0 }
 0x419   :  { %v14133_v39 = vmul.f32 0.5, %v13340_v54  ;;  %v4319_v52 = vmul.f32 0.7978846, %v3999_v22  ;;  %v3452_v35 = vmul.f32 %v3132_v60, %v14095_v38  ;;  %v14140_v11 = vmul.f32 0.5, %v17220_v20  ;;  %v14146_v59 = vpop.f32.mrb[85].mxu0 }
 0x41a   :  { %17222 = vst [vmem:[#allocation4_spill] sm:$0xff] %v14126_v32  ;;  %v5552_v18 = vpack.c.bf16 %v5272_v43, %v5268_v50  ;;  %8786 = vtanh.f32 %v4315_v47  ;;  %v3136_v57 = vmul.f32 0.044715, %v14126_v32  ;;  %v4004_v24 = vadd.f32 %v13490_v37, %v13403_v53  ;;  %v14159_v37 = vpop.f32.mrb[86].mxu0 }
 0x41b   :  { %v8779_v45 = vpop.eup %8778  ;;  %8788 = vtanh.f32 %v4319_v52  ;;  %v4008_v54 = vadd.f32 %v13511_v34, %v13441_v9  ;;  %v14149_v22 = vmul.f32 %v3451_v63, %v14087_v62  ;;  %v14153_v50 = vadd.f32 %v13495_v14, %v12686_v48 }
 0x41c   :  { %v8781_v17 = vpop.eup %8780  ;;  %6624 = vmatprep.mubr.bf16.mxu1 %v5552_v18  ;;  %v4947_v60 = vadd.f32 1.0, %v8779_v45  ;;  %v14157_v20 = vadd.f32 %v13505_v15, %v12690_v4  ;;  %v3455_v47 = vmul.f32 %v3135_v30, %v14107_v42  ;;  %v4324_v52 = vmul.f32 0.7978846, %v4004_v24 }
 0x41d   :  { %17223 = vst [vmem:[#allocation34_spill] sm:$0xff] %v14149_v22  ;;  %17224 = vst [vmem:[#allocation72_spill] sm:$0xff] %v14153_v50  ;;  %v8783_v43 = vpop.eup %8782  ;;  %v4951_v34 = vadd.f32 1.0, %v8781_v17  ;;  %v4328_v18 = vmul.f32 0.7978846, %v4008_v54  ;;  %v14163_v63 = vmul.f32 %v3452_v35, %v14095_v38  ;;  %v3456_v14 = vmul.f32 %v3136_v57, %v14126_v32 }
 0x41e   :  { %17225 = vst [vmem:[#allocation113_spill] sm:$0xff] %v14157_v20  ;;  %v8785_v45 = vpop.eup %8784  ;;  %v4956_v10 = vadd.f32 1.0, %v8783_v43  ;;  %v14168_v22 = vadd.f32 %v13518_v33, %v12686_v48  ;;  %v5267_v15 = vmul.f32 %v4947_v60, %v14054_v19  ;;  %8790 = vtanh.f32 %v4324_v52  ;;  %v14177_v33 = vpop.f32.mrb[87].mxu0  ;;  %v17231_v52 = vld [vmem:[#allocation41_spill] sm:$0xff] }
 0x41f   :  { %17226 = vst [vmem:[#allocation108_spill] sm:$0xff] %v14163_v63  ;;  %v5271_v62 = vmul.f32 %v4951_v34, %v2711_v49  ;;  %v4960_v12 = vadd.f32 1.0, %v8785_v45  ;;  %v14172_v30 = vmul.f32 0.5, %v13403_v53  ;;  %8792 = vtanh.f32 %v4328_v18  ;;  %v17229_v49 = vld [vmem:[#allocation107_spill] sm:$0xff]  ;;  %v17230_v53 = vld [vmem:[#allocation78_spill] sm:$0xff] }
 0x420   :  { %17227 = vst [vmem:[#allocation97_spill] sm:$0xff] %v14168_v22  ;;  %v3139_v24 = vmul.f32 0.044715, %v14153_v50  ;;  %v3140_v35 = vmul.f32 0.044715, %v14157_v20  ;;  %v5276_v17 = vmul.f32 %v4956_v10, %v2716_v55  ;;  %v2728_v43 = vmul.f32 0.5, %v13441_v9 }
 0x421   :  { %v5551_v54 = vpack.c.bf16 %v5271_v62, %v5267_v15  ;;  %v5280_v57 = vmul.f32 %v4960_v12, %v2720_v31  ;;  %v14180_v19 = vmul.f32 %v3455_v47, %v14107_v42  ;;  %v14183_v60 = vmul.f32 0.5, %v17229_v49  ;;  %v17232_v18 = vld [vmem:[#allocation95_spill] sm:$0xff]  ;;  %v17234_v10 = vld [vmem:[#allocation62_spill] sm:$0xff] }
 0x422   :  { %v4003_v34 = vadd.f32 %v17230_v53, %v17229_v49  ;;  %v4007_v45 = vadd.f32 %v17232_v18, %v17231_v52  ;;  %v14190_v12 = vmul.f32 %v3456_v14, %v14126_v32  ;;  %v3143_v9 = vmul.f32 0.044715, %v14168_v22  ;;  %v17238_v18 = vld [vmem:[#allocation85_spill] sm:$0xff] }
 0x423   :  { %17228 = vst [vmem:[#allocation65_spill] sm:$0xff] %v14180_v19  ;;  %6625 = vmatmul.mubr.bf16.gmra.mrb[68].mxu1 %v5551_v54  ;;  %v5556_v62 = vpack.c.bf16 %v5280_v57, %v5276_v17  ;;  %v14195_v55 = vadd.f32 %v17234_v10, %v12690_v4  ;;  %v3459_v47 = vmul.f32 %v3139_v24, %v14153_v50  ;;  %v14199_v19 = vpop.f32.mrb[88].mxu0  ;;  %v17237_v57 = vld [vmem:[#allocation110_spill] sm:$0xff]  ;;  %v17240_v10 = vld [vmem:[#allocation7_spill] sm:$0xff] }
 0x424   :  { %17233 = vst [vmem:[#allocation106_spill] sm:$0xff] %v14190_v12  ;;  %v8787_v31 = vpop.eup %8786  ;;  %v3460_v15 = vmul.f32 %v3140_v35, %v14157_v20  ;;  %v4323_v49 = vmul.f32 0.7978846, %v4003_v34  ;;  %v4327_v53 = vmul.f32 0.7978846, %v4007_v45  ;;  %17236 = vst [vmem:[#allocation102_spill] sm:$0xff] %v14199_v19  ;;  %v4012_v42 = vadd.f32 %v17238_v18, %v17237_v57 }
 0x425   :  { %17235 = vst [vmem:[#allocation27_spill] sm:$0xff] %v14195_v55  ;;  %v8789_v54 = vpop.eup %8788  ;;  %6634 = vmatprep.mubr.bf16.mxu1 %v5556_v62  ;;  %v4955_v17 = vadd.f32 1.0, %v8787_v31  ;;  %v3144_v14 = vmul.f32 0.044715, %v14195_v55  ;;  %v17239_v12 = vld [vmem:[#allocation77_spill] sm:$0xff]  ;;  %v14206_v63 = vpop.f32.mrb[89].mxu0  ;;  %v3463_v31 = vmul.f32 %v3143_v9, %v14168_v22 }
 0x426   :  { %v4016_v32 = vadd.f32 %v17240_v10, %v17239_v12  ;;  %17241 = vst [vmem:[#allocation12_spill] sm:$0xff] %v14206_v63  ;;  %v4959_v24 = vadd.f32 1.0, %v8789_v54  ;;  %v14209_v35 = vmul.f32 0.5, %v17231_v52  ;;  %8794 = vtanh.f32 %v4323_v49  ;;  %v17242_v34 = vld [vmem:[#allocation44_spill] sm:$0xff]  ;;  %v14215_v62 = vpop.f32.mrb[90].mxu0 }
 0x427   :  { %v14213_v45 = vadd.f32 %v17242_v34, %v12686_v48  ;;  %17244 = vst [vmem:[#allocation78_spill] sm:$0xff] %v14215_v62  ;;  %8796 = vtanh.f32 %v4327_v53  ;;  %v4332_v18 = vmul.f32 0.7978846, %v4012_v42  ;;  %v17245_v19 = vld [vmem:[#allocation92_spill] sm:$0xff]  ;;  %v5275_v54 = vmul.f32 %v4955_v17, %v14133_v39  ;;  %v17249_v39 = vld [vmem:[#allocation79_spill] sm:$0xff] }
 0x428   :  { %v14220_v10 = vadd.f32 %v17245_v19, %v12690_v4  ;;  %v5279_v52 = vmul.f32 %v4959_v24, %v14140_v11  ;;  %v3464_v49 = vmul.f32 %v3144_v14, %v14195_v55  ;;  %v4336_v63 = vmul.f32 0.7978846, %v4016_v32  ;;  %v8791_v38 = vpop.eup %8790  ;;  %v14241_v14 = vpop.f32.mrb[91].mxu0 }
 0x429   :  { %17243 = vst [vmem:[#allocation107_spill] sm:$0xff] %v14213_v45  ;;  %v14226_v34 = vmul.f32 %v3459_v47, %v14153_v50  ;;  %v14229_v62 = vmul.f32 %v3460_v15, %v14157_v20  ;;  %8798 = vtanh.f32 %v4332_v18  ;;  %v3147_v42 = vmul.f32 0.044715, %v14213_v45  ;;  %v8793_v9 = vpop.eup %8792  ;;  %17252 = vst [vmem:[#allocation77_spill] sm:$0xff] %v14241_v14  ;;  %v17255_v18 = vld [vmem:[#allocation82_spill] sm:$0xff] }
 0x42a   :  { %17246 = vst [vmem:[#allocation41_spill] sm:$0xff] %v14220_v10  ;;  %v5555_v19 = vpack.c.bf16 %v5279_v52, %v5275_v54  ;;  %v4964_v53 = vadd.f32 1.0, %v8791_v38  ;;  %8800 = vtanh.f32 %v4336_v63  ;;  %v14234_v11 = vadd.f32 %v17249_v39, %v12686_v48  ;;  %v17254_v63 = vld [vmem:[#allocation71_spill] sm:$0xff]  ;;  %v17256_v52 = vld [vmem:[#allocation109_spill] sm:$0xff] }
 0x42b   :  { %17247 = vst [vmem:[#allocation95_spill] sm:$0xff] %v14226_v34  ;;  %17248 = vst [vmem:[#allocation62_spill] sm:$0xff] %v14229_v62  ;;  %v4968_v17 = vadd.f32 1.0, %v8793_v9  ;;  %v14237_v32 = vmul.f32 %v3463_v31, %v14168_v22  ;;  %v2732_v47 = vmul.f32 0.5, %v17237_v57  ;;  %v3148_v15 = vmul.f32 0.044715, %v14220_v10 }
 0x42c   :  { %17250 = vst [vmem:[#allocation110_spill] sm:$0xff] %v14234_v11  ;;  %6635 = vmatmul.mubr.bf16.gmra.mrb[72].mxu1 %v5555_v19  ;;  %v14244_v24 = vmul.f32 %v3464_v49, %v14195_v55  ;;  %v2736_v38 = vmul.f32 0.5, %v17239_v12  ;;  %v4011_v54 = vadd.f32 %v17255_v18, %v17254_v63  ;;  %v17257_v9 = vld [vmem:[#allocation111_spill] sm:$0xff]  ;;  %v5284_v31 = vmul.f32 %v4964_v53, %v14172_v30  ;;  %v17258_v22 = vld [vmem:[#allocation93_spill] sm:$0xff]  ;;  %v17260_v30 = vld [vmem:[#allocation76_spill] sm:$0xff] }
 0x42d   :  { %17251 = vst [vmem:[#allocation85_spill] sm:$0xff] %v14237_v32  ;;  %v4015_v39 = vadd.f32 %v17257_v9, %v17256_v52  ;;  %v5288_v32 = vmul.f32 %v4968_v17, %v2728_v43  ;;  %v14253_v57 = vmul.f32 0.5, %v17254_v63  ;;  %v14257_v19 = vadd.f32 %v17258_v22, %v12690_v4  ;;  %v17261_v43 = vld [vmem:[#allocation21_spill] sm:$0xff]  ;;  %v14265_v17 = vpop.f32.mrb[92].mxu0 }
 0x42e   :  { %17253 = vst [vmem:[#allocation7_spill] sm:$0xff] %v14244_v24  ;;  %v3467_v49 = vmul.f32 %v3147_v42, %v14213_v45  ;;  %v3151_v12 = vmul.f32 0.044715, %v14234_v11  ;;  %v4331_v34 = vmul.f32 0.7978846, %v4011_v54  ;;  %v3468_v24 = vmul.f32 %v3148_v15, %v14220_v10  ;;  %17262 = vst [vmem:[#allocation92_spill] sm:$0xff] %v14265_v17 }
 0x42f   :  { %17259 = vst [vmem:[#allocation44_spill] sm:$0xff] %v14257_v19  ;;  %v4335_v50 = vmul.f32 0.7978846, %v4015_v39  ;;  %v5560_v18 = vpack.c.bf16 %v5288_v32, %v5284_v31  ;;  %v3152_v9 = vmul.f32 0.044715, %v14257_v19  ;;  %v4020_v53 = vadd.f32 %v17261_v43, %v17260_v30  ;;  %v17263_v42 = vld [vmem:[#allocation50_spill] sm:$0xff] }
 0x430   :  { %v8795_v63 = vpop.eup %8794  ;;  %8802 = vtanh.f32 %v4331_v34  ;;  %v4024_v22 = vadd.f32 %v13657_v2, %v13569_v36  ;;  %v14271_v55 = vadd.f32 %v17263_v42, %v12686_v48  ;;  %v17265_v32 = vld [vmem:[#allocation112_spill] sm:$0xff]  ;;  %v14277_v15 = vpop.f32.mrb[93].mxu0  ;;  %v14280_v43 = vmul.f32 0.5, %v17256_v52 }
 0x431   :  { %v14275_v54 = vadd.f32 %v17265_v32, %v12690_v4  ;;  %v8797_v39 = vpop.eup %8796  ;;  %6644 = vmatprep.mubr.bf16.mxu1 %v5560_v18  ;;  %v4963_v31 = vadd.f32 1.0, %v8795_v63  ;;  %8804 = vtanh.f32 %v4335_v50  ;;  %v4340_v34 = vmul.f32 0.7978846, %v4020_v53  ;;  %v14282_v17 = vpop.f32.mrb[94].mxu0 }
 0x432   :  { %17264 = vst [vmem:[#allocation79_spill] sm:$0xff] %v14271_v55  ;;  %17267 = vst [vmem:[#allocation82_spill] sm:$0xff] %v14282_v17  ;;  %v4967_v2 = vadd.f32 1.0, %v8797_v39  ;;  %v3471_v42 = vmul.f32 %v3151_v12, %v14234_v11  ;;  %v3472_v62 = vmul.f32 %v3152_v9, %v14257_v19  ;;  %v4344_v20 = vmul.f32 0.7978846, %v4024_v22 }
 0x433   :  { %17266 = vst [vmem:[#allocation71_spill] sm:$0xff] %v14275_v54  ;;  %v8799_v32 = vpop.eup %8798  ;;  %v5283_v14 = vmul.f32 %v4963_v31, %v14183_v60  ;;  %8806 = vtanh.f32 %v4340_v34  ;;  %v3155_v18 = vmul.f32 0.044715, %v14271_v55  ;;  %v14290_v52 = vadd.f32 %v13653_v29, %v12686_v48 }
 0x434   :  { %v8801_v50 = vpop.eup %8800  ;;  %v5287_v53 = vmul.f32 %v4967_v2, %v14209_v35  ;;  %v4972_v63 = vadd.f32 1.0, %v8799_v32  ;;  %8808 = vtanh.f32 %v4344_v20  ;;  %v3156_v12 = vmul.f32 0.044715, %v14275_v54  ;;  %v14308_v35 = vpop.f32.mrb[95].mxu0 }
 0x435   :  { %17268 = vst [vmem:[#allocation109_spill] sm:$0xff] %v14290_v52  ;;  %v4976_v39 = vadd.f32 1.0, %v8801_v50  ;;  %v14295_v9 = vmul.f32 %v3467_v49, %v14213_v45  ;;  %v14298_v60 = vmul.f32 %v3468_v24, %v14220_v10  ;;  %v2740_v22 = vmul.f32 0.5, %v17260_v30  ;;  %17273 = vst [vmem:[#allocation50_spill] sm:$0xff] %v14308_v35  ;;  %v17274_v50 = vld [vmem:[#allocation16_spill] sm:$0xff]  ;;  %v17275_v24 = vld [vmem:[#allocation81_spill] sm:$0xff] }
 0x436   :  { %v5559_v31 = vpack.c.bf16 %v5287_v53, %v5283_v14  ;;  %v14302_v29 = vmul.f32 %v3471_v42, %v14234_v11  ;;  %v14305_v34 = vmul.f32 %v3472_v62, %v14257_v19  ;;  %v2744_v20 = vmul.f32 0.5, %v13569_v36  ;;  %v17276_v42 = vld [vmem:[#allocation47_spill] sm:$0xff]  ;;  %v17282_v11 = vld [vmem:[#allocation17_spill] sm:$0xff]  ;;  %v17283_v45 = vld [vmem:[#allocation48_spill] sm:$0xff] }
 0x437   :  { %17269 = vst [vmem:[#allocation111_spill] sm:$0xff] %v14295_v9  ;;  %17270 = vst [vmem:[#allocation93_spill] sm:$0xff] %v14298_v60  ;;  %v5292_v2 = vmul.f32 %v4972_v63, %v2732_v47  ;;  %v5296_v32 = vmul.f32 %v4976_v39, %v2736_v38  ;;  %v3475_v49 = vmul.f32 %v3155_v18, %v14271_v55  ;;  %v3159_v30 = vmul.f32 0.044715, %v14290_v52  ;;  %v17277_v53 = vld [vmem:[#allocation11_spill] sm:$0xff]  ;;  %v17280_v63 = vld [vmem:[#allocation18_spill] sm:$0xff] }
 0x438   :  { %17271 = vst [vmem:[#allocation76_spill] sm:$0xff] %v14302_v29  ;;  %17272 = vst [vmem:[#allocation21_spill] sm:$0xff] %v14305_v34  ;;  %v4019_v9 = vadd.f32 %v17275_v24, %v17274_v50  ;;  %6645 = vmatmul.mubr.bf16.gmra.mrb[76].mxu1 %v5559_v31  ;;  %v3476_v14 = vmul.f32 %v3156_v12, %v14275_v54  ;;  %v4023_v62 = vadd.f32 %v17277_v53, %v17276_v42  ;;  %v14321_v29 = vpop.f32.mrb[96].mxu0  ;;  %v17284_v34 = vld [vmem:[#allocation49_spill] sm:$0xff] }
 0x439   :  { %v14319_v36 = vadd.f32 %v13683_v1, %v12690_v4  ;;  %17279 = vst [vmem:[#allocation16_spill] sm:$0xff] %v14321_v29  ;;  %v5564_v47 = vpack.c.bf16 %v5296_v32, %v5292_v2  ;;  %v14324_v38 = vmul.f32 0.5, %v17274_v50  ;;  %v4028_v39 = vadd.f32 %v17280_v63, %v13588_v13  ;;  %v14328_v12 = vpop.f32.mrb[97].mxu0  ;;  %v17287_v63 = vld [vmem:[#allocation52_spill] sm:$0xff] }
 0x43a   :  { %v4339_v18 = vmul.f32 0.7978846, %v4019_v9  ;;  %17281 = vst [vmem:[#allocation81_spill] sm:$0xff] %v14328_v12  ;;  %v8803_v31 = vpop.eup %8802  ;;  %v4343_v24 = vmul.f32 0.7978846, %v4023_v62  ;;  %v4032_v1 = vadd.f32 %v17283_v45, %v17282_v11  ;;  %v14335_v29 = vadd.f32 %v17284_v34, %v12686_v48  ;;  %v14337_v2 = vpop.f32.mrb[98].mxu0 }
 0x43b   :  { %17278 = vst [vmem:[#allocation112_spill] sm:$0xff] %v14319_v36  ;;  %v3160_v53 = vmul.f32 0.044715, %v14319_v36  ;;  %17286 = vst [vmem:[#allocation11_spill] sm:$0xff] %v14337_v2  ;;  %v8805_v32 = vpop.eup %8804  ;;  %6654 = vmatprep.mubr.bf16.mxu1 %v5564_v47  ;;  %v4971_v9 = vadd.f32 1.0, %v8803_v31  ;;  %v14341_v12 = vadd.f32 %v17287_v63, %v12690_v4  ;;  %v14344_v19 = vmul.f32 %v3475_v49, %v14271_v55  ;;  %v17305_v55 = vld [vmem:[#allocation24_spill] sm:$0xff] }
 0x43c   :  { %17285 = vst [vmem:[#allocation47_spill] sm:$0xff] %v14335_v29  ;;  %8810 = vtanh.f32 %v4339_v18  ;;  %v4348_v50 = vmul.f32 0.7978846, %v4028_v39  ;;  %v4975_v62 = vadd.f32 1.0, %v8805_v32  ;;  %v4352_v45 = vmul.f32 0.7978846, %v4032_v1 }
 0x43d   :  { %17288 = vst [vmem:[#allocation18_spill] sm:$0xff] %v14341_v12  ;;  %17289 = vst [vmem:[#allocation17_spill] sm:$0xff] %v14344_v19  ;;  %8812 = vtanh.f32 %v4343_v24  ;;  %v8807_v60 = vpop.eup %8806  ;;  %v5291_v34 = vmul.f32 %v4971_v9, %v14253_v57  ;;  %v3479_v2 = vmul.f32 %v3159_v30, %v14290_v52  ;;  %v3480_v47 = vmul.f32 %v3160_v53, %v14319_v36  ;;  %v17290_v1 = vld [vmem:[#allocation45_spill] sm:$0xff] }
 0x43e   :  { %8814 = vtanh.f32 %v4348_v50  ;;  %v8809_v18 = vpop.eup %8808  ;;  %v5295_v39 = vmul.f32 %v4975_v62, %v14280_v43  ;;  %v4980_v31 = vadd.f32 1.0, %v8807_v60  ;;  %v3163_v32 = vmul.f32 0.044715, %v14335_v29 }
 0x43f   :  { %8816 = vtanh.f32 %v4352_v45  ;;  %v4984_v63 = vadd.f32 1.0, %v8809_v18  ;;  %v2743_v49 = vmul.f32 0.5, %v17276_v42  ;;  %v3164_v24 = vmul.f32 0.044715, %v14341_v12  ;;  %v14368_v45 = vpop.f32.mrb[99].mxu0  ;;  %v17296_v18 = vld [vmem:[#allocation43_spill] sm:$0xff] }
 0x440   :  { %v14355_v57 = vadd.f32 %v17290_v1, %v12686_v48  ;;  %v5563_v30 = vpack.c.bf16 %v5295_v39, %v5291_v34  ;;  %v14358_v53 = vmul.f32 %v3476_v14, %v14275_v54  ;;  %v2748_v9 = vmul.f32 0.5, %v13588_v13  ;;  %17295 = vst [vmem:[#allocation114_spill] sm:$0xff] %v14368_v45  ;;  %v17297_v14 = vld [vmem:[#allocation23_spill] sm:$0xff]  ;;  %v17298_v1 = vld [vmem:[#allocation80_spill] sm:$0xff]  ;;  %v17299_v13 = vld [vmem:[#allocation53_spill] sm:$0xff] }
 0x441   :  { %v2752_v43 = vmul.f32 0.5, %v17282_v11  ;;  %v5300_v60 = vmul.f32 %v4980_v31, %v2740_v22  ;;  %v5304_v50 = vmul.f32 %v4984_v63, %v2744_v20  ;;  %v14363_v62 = vmul.f32 %v3479_v2, %v14290_v52  ;;  %v17300_v11 = vld [vmem:[#allocation22_spill] sm:$0xff]  ;;  %v17302_v31 = vld [vmem:[#allocation28_spill] sm:$0xff] }
 0x442   :  { %17291 = vst [vmem:[#allocation48_spill] sm:$0xff] %v14355_v57  ;;  %17292 = vst [vmem:[#allocation49_spill] sm:$0xff] %v14358_v53  ;;  %v14366_v42 = vmul.f32 %v3480_v47, %v14319_v36  ;;  %6655 = vmatmul.mubr.bf16.gmra.mrb[80].mxu1 %v5563_v30  ;;  %v3483_v34 = vmul.f32 %v3163_v32, %v14335_v29  ;;  %v4027_v39 = vadd.f32 %v17297_v14, %v17296_v18  ;;  %v17303_v63 = vld [vmem:[#allocation26_spill] sm:$0xff] }
 0x443   :  { %17293 = vst [vmem:[#allocation52_spill] sm:$0xff] %v14363_v62  ;;  %v4031_v19 = vadd.f32 %v17299_v13, %v17298_v1  ;;  %v14377_v22 = vadd.f32 %v17300_v11, %v12690_v4  ;;  %v5568_v20 = vpack.c.bf16 %v5304_v50, %v5300_v60  ;;  %v3484_v2 = vmul.f32 %v3164_v24, %v14341_v12  ;;  %v14383_v62 = vpop.f32.mrb[100].mxu0  ;;  %v17306_v13 = vld [vmem:[#allocation25_spill] sm:$0xff]  ;;  %v17307_v11 = vld [vmem:[#allocation59_spill] sm:$0xff] }
 0x444   :  { %17294 = vst [vmem:[#allocation45_spill] sm:$0xff] %v14366_v42  ;;  %v3167_v47 = vmul.f32 0.044715, %v14355_v57  ;;  %v4036_v30 = vadd.f32 %v17303_v63, %v17302_v31  ;;  %17304 = vst [vmem:[#allocation23_spill] sm:$0xff] %v14383_v62  ;;  %v4347_v32 = vmul.f32 0.7978846, %v4027_v39  ;;  %v4040_v42 = vadd.f32 %v17306_v13, %v17305_v55 }
 0x445   :  { %17301 = vst [vmem:[#allocation43_spill] sm:$0xff] %v14377_v22  ;;  %v4351_v52 = vmul.f32 0.7978846, %v4031_v19  ;;  %v3168_v14 = vmul.f32 0.044715, %v14377_v22  ;;  %6664 = vmatprep.mubr.bf16.mxu1 %v5568_v20  ;;  %v14389_v60 = vmul.f32 0.5, %v17296_v18  ;;  %v14396_v63 = vadd.f32 %v17307_v11, %v12686_v48 }
 0x446   :  { %v8811_v36 = vpop.eup %8810  ;;  %v14392_v24 = vmul.f32 0.5, %v17298_v1  ;;  %v4356_v50 = vmul.f32 0.7978846, %v4036_v30  ;;  %v14398_v39 = vpop.f32.mrb[101].mxu0  ;;  %8818 = vtanh.f32 %v4347_v32  ;;  %v4360_v53 = vmul.f32 0.7978846, %v4040_v42 }
 0x447   :  { %17308 = vst [vmem:[#allocation80_spill] sm:$0xff] %v14396_v63  ;;  %17309 = vst [vmem:[#allocation53_spill] sm:$0xff] %v14398_v39  ;;  %v8813_v19 = vpop.eup %8812  ;;  %v4979_v62 = vadd.f32 1.0, %v8811_v36  ;;  %v17310_v13 = vld [vmem:[#allocation46_spill] sm:$0xff]  ;;  %v14404_v18 = vpop.f32.mrb[102].mxu0  ;;  %v14407_v30 = vmul.f32 %v3483_v34, %v14335_v29  ;;  %8820 = vtanh.f32 %v4351_v52  ;;  %v3487_v36 = vmul.f32 %v3167_v47, %v14355_v57 }
 0x448   :  { %v14402_v20 = vadd.f32 %v17310_v13, %v12690_v4  ;;  %17312 = vst [vmem:[#allocation28_spill] sm:$0xff] %v14404_v18  ;;  %v8815_v54 = vpop.eup %8814  ;;  %v4983_v1 = vadd.f32 1.0, %v8813_v19  ;;  %v3171_v11 = vmul.f32 0.044715, %v14396_v63  ;;  %v3488_v42 = vmul.f32 %v3168_v14, %v14377_v22 }
 0x449   :  { %17313 = vst [vmem:[#allocation26_spill] sm:$0xff] %v14407_v30  ;;  %v8817_v45 = vpop.eup %8816  ;;  %v4988_v39 = vadd.f32 1.0, %v8815_v54  ;;  %8822 = vtanh.f32 %v4356_v50  ;;  %v5299_v32 = vmul.f32 %v4979_v62, %v14324_v38  ;;  %v14414_v19 = vmul.f32 %v3484_v2, %v14341_v12  ;;  %v17315_v30 = vld [vmem:[#allocation75_spill] sm:$0xff]  ;;  %v14423_v38 = vpop.f32.mrb[103].mxu0 }
 0x44a   :  { %17311 = vst [vmem:[#allocation22_spill] sm:$0xff] %v14402_v20  ;;  %v5303_v13 = vmul.f32 %v4983_v1, %v2743_v49  ;;  %v4992_v10 = vadd.f32 1.0, %v8817_v45  ;;  %8824 = vtanh.f32 %v4360_v53  ;;  %v2756_v34 = vmul.f32 0.5, %v17302_v31  ;;  %17317 = vst [vmem:[#allocation59_spill] sm:$0xff] %v14423_v38  ;;  %v17318_v62 = vld [vmem:[#allocation91_spill] sm:$0xff]  ;;  %v17319_v45 = vld [vmem:[#allocation8_spill] sm:$0xff] }
 0x44b   :  { %17314 = vst [vmem:[#allocation24_spill] sm:$0xff] %v14414_v19  ;;  %v3172_v52 = vmul.f32 0.044715, %v14402_v20  ;;  %v14420_v54 = vadd.f32 %v17315_v30, %v12686_v48  ;;  %v5308_v29 = vmul.f32 %v4988_v39, %v2748_v9  ;;  %v3491_v50 = vmul.f32 %v3171_v11, %v14396_v63  ;;  %v17320_v31 = vld [vmem:[#allocation90_spill] sm:$0xff]  ;;  %v17324_v9 = vld [vmem:[#allocation99_spill] sm:$0xff] }
 0x44c   :  { %v5567_v47 = vpack.c.bf16 %v5303_v13, %v5299_v32  ;;  %v5312_v14 = vmul.f32 %v4992_v10, %v2752_v43  ;;  %v2760_v49 = vmul.f32 0.5, %v17305_v55  ;;  %v4035_v2 = vadd.f32 %v17319_v45, %v17318_v62  ;;  %v17321_v1 = vld [vmem:[#allocation54_spill] sm:$0xff]  ;;  %v14441_v55 = vpop.f32.mrb[104].mxu0 }
 0x44d   :  { %17316 = vst [vmem:[#allocation25_spill] sm:$0xff] %v14420_v54  ;;  %v3175_v53 = vmul.f32 0.044715, %v14420_v54  ;;  %v4039_v19 = vadd.f32 %v17321_v1, %v17320_v31  ;;  %v14432_v32 = vmul.f32 %v3487_v36, %v14355_v57  ;;  %v14435_v10 = vmul.f32 %v3488_v42, %v14377_v22  ;;  %17326 = vst [vmem:[#allocation8_spill] sm:$0xff] %v14441_v55  ;;  %v17327_v45 = vld [vmem:[#allocation30_spill] sm:$0xff]  ;;  %v17328_v1 = vld [vmem:[#allocation87_spill] sm:$0xff] }
 0x44e   :  { %6665 = vmatmul.mubr.bf16.gmra.mrb[84].mxu1 %v5567_v47  ;;  %v5572_v30 = vpack.c.bf16 %v5312_v14, %v5308_v29  ;;  %v14439_v43 = vadd.f32 %v17324_v9, %v12690_v4  ;;  %v3492_v39 = vmul.f32 %v3172_v52, %v14402_v20  ;;  %v4355_v11 = vmul.f32 0.7978846, %v4035_v2  ;;  %v14446_v29 = vpop.f32.mrb[105].mxu0  ;;  %v17331_v9 = vld [vmem:[#allocation67_spill] sm:$0xff] }
 0x44f   :  { %17322 = vst [vmem:[#allocation46_spill] sm:$0xff] %v14432_v32  ;;  %17323 = vst [vmem:[#allocation75_spill] sm:$0xff] %v14435_v10  ;;  %v4359_v13 = vmul.f32 0.7978846, %v4039_v19  ;;  %v4044_v47 = vadd.f32 %v17328_v1, %v17327_v45  ;;  %v14449_v36 = vmul.f32 %v3491_v50, %v14396_v63  ;;  %v14452_v42 = vmul.f32 0.5, %v17318_v62  ;;  %v17332_v32 = vld [vmem:[#allocation5_spill] sm:$0xff] }
 0x450   :  { %17325 = vst [vmem:[#allocation91_spill] sm:$0xff] %v14439_v43  ;;  %17329 = vst [vmem:[#allocation90_spill] sm:$0xff] %v14446_v29  ;;  %6674 = vmatprep.mubr.bf16.mxu1 %v5572_v30  ;;  %v3176_v14 = vmul.f32 0.044715, %v14439_v43  ;;  %v4048_v57 = vadd.f32 %v17332_v32, %v17331_v9  ;;  %v14457_v52 = vpop.f32.mrb[106].mxu0  ;;  %v8819_v19 = vpop.eup %8818  ;;  %v3495_v2 = vmul.f32 %v3175_v53, %v14420_v54  ;;  %8826 = vtanh.f32 %v4355_v11  ;;  %v17334_v30 = vld [vmem:[#allocation64_spill] sm:$0xff] }
 0x451   :  { %17330 = vst [vmem:[#allocation54_spill] sm:$0xff] %v14449_v36  ;;  %17333 = vst [vmem:[#allocation99_spill] sm:$0xff] %v14457_v52  ;;  %v4364_v1 = vmul.f32 0.7978846, %v4044_v47  ;;  %v14462_v29 = vadd.f32 %v17334_v30, %v12686_v48  ;;  %v8821_v50 = vpop.eup %8820  ;;  %v4987_v36 = vadd.f32 1.0, %v8819_v19  ;;  %8828 = vtanh.f32 %v4359_v13  ;;  %v17336_v63 = vld [vmem:[#allocation10_spill] sm:$0xff] }
 0x452   :  { %v4368_v62 = vmul.f32 0.7978846, %v4048_v57  ;;  %v14466_v55 = vadd.f32 %v17336_v63, %v12690_v4  ;;  %v4991_v10 = vadd.f32 1.0, %v8821_v50  ;;  %v2759_v52 = vmul.f32 0.5, %v17320_v31  ;;  %v17338_v13 = vld [vmem:[#allocation89_spill] sm:$0xff] }
 0x453   :  { %17335 = vst [vmem:[#allocation30_spill] sm:$0xff] %v14462_v29  ;;  %v8823_v32 = vpop.eup %8822  ;;  %v3496_v53 = vmul.f32 %v3176_v14, %v14439_v43  ;;  %8830 = vtanh.f32 %v4364_v1  ;;  %v14471_v30 = vmul.f32 %v3492_v39, %v14402_v20  ;;  %v14475_v57 = vadd.f32 %v17338_v13, %v12686_v48 }
 0x454   :  { %v8825_v11 = vpop.eup %8824  ;;  %v4996_v47 = vadd.f32 1.0, %v8823_v32  ;;  %8832 = vtanh.f32 %v4368_v62  ;;  %v5307_v63 = vmul.f32 %v4987_v36, %v14389_v60  ;;  %v5311_v19 = vmul.f32 %v4991_v10, %v14392_v24  ;;  %v14489_v60 = vpop.f32.mrb[107].mxu0  ;;  %v17343_v10 = vld [vmem:[#allocation61_spill] sm:$0xff]  ;;  %v17344_v36 = vld [vmem:[#allocation55_spill] sm:$0xff] }
 0x455   :  { %17337 = vst [vmem:[#allocation87_spill] sm:$0xff] %v14471_v30  ;;  %17339 = vst [vmem:[#allocation67_spill] sm:$0xff] %v14475_v57  ;;  %v5000_v50 = vadd.f32 1.0, %v8825_v11  ;;  %v3179_v31 = vmul.f32 0.044715, %v14462_v29  ;;  %v14481_v14 = vmul.f32 %v3495_v2, %v14420_v54  ;;  %v2764_v1 = vmul.f32 0.5, %v17327_v45 }
 0x456   :  { %v2768_v39 = vmul.f32 0.5, %v17331_v9  ;;  %v3180_v62 = vmul.f32 0.044715, %v14466_v55  ;;  %v5571_v32 = vpack.c.bf16 %v5311_v19, %v5307_v63  ;;  %v5316_v30 = vmul.f32 %v4996_v47, %v2756_v34  ;;  %17342 = vst [vmem:[#allocation10_spill] sm:$0xff] %v14489_v60  ;;  %v17345_v11 = vld [vmem:[#allocation57_spill] sm:$0xff]  ;;  %v17347_v9 = vld [vmem:[#allocation70_spill] sm:$0xff] }
 0x457   :  { %17340 = vst [vmem:[#allocation5_spill] sm:$0xff] %v14481_v14  ;;  %v5320_v13 = vmul.f32 %v5000_v50, %v2760_v49  ;;  %v14487_v20 = vmul.f32 %v3496_v53, %v14439_v43  ;;  %v3183_v24 = vmul.f32 0.044715, %v14475_v57  ;;  %v4043_v2 = vadd.f32 %v17344_v36, %v17343_v10  ;;  %v17346_v14 = vld [vmem:[#allocation42_spill] sm:$0xff]  ;;  %v17348_v47 = vld [vmem:[#allocation32_spill] sm:$0xff]  ;;  %v14506_v50 = vpop.f32.mrb[108].mxu0 }
 0x458   :  { %v4047_v45 = vadd.f32 %v17346_v14, %v17345_v11  ;;  %v14498_v54 = vadd.f32 %v17347_v9, %v12690_v4  ;;  %6675 = vmatmul.mubr.bf16.gmra.mrb[88].mxu1 %v5571_v32  ;;  %v3499_v49 = vmul.f32 %v3179_v31, %v14462_v29  ;;  %v14502_v53 = vmul.f32 0.5, %v17343_v10  ;;  %v17349_v63 = vld [vmem:[#allocation94_spill] sm:$0xff]  ;;  %17350 = vst [vmem:[#allocation89_spill] sm:$0xff] %v14506_v50  ;;  %v17351_v31 = vld [vmem:[#allocation33_spill] sm:$0xff]  ;;  %v17352_v32 = vld [vmem:[#allocation60_spill] sm:$0xff]  ;;  %v14519_v50 = vpop.f32.mrb[109].mxu0 }
 0x459   :  { %17341 = vst [vmem:[#allocation64_spill] sm:$0xff] %v14487_v20  ;;  %v5576_v34 = vpack.c.bf16 %v5320_v13, %v5316_v30  ;;  %v4052_v19 = vadd.f32 %v17349_v63, %v17348_v47  ;;  %v3500_v36 = vmul.f32 %v3180_v62, %v14466_v55  ;;  %v4363_v20 = vmul.f32 0.7978846, %v4043_v2  ;;  %v17353_v60 = vld [vmem:[#allocation83_spill] sm:$0xff]  ;;  %17355 = vst [vmem:[#allocation55_spill] sm:$0xff] %v14519_v50 }
 0x45a   :  { %v4367_v14 = vmul.f32 0.7978846, %v4047_v45  ;;  %v3184_v43 = vmul.f32 0.044715, %v14498_v54  ;;  %v8827_v9 = vpop.eup %8826  ;;  %v14511_v30 = vmul.f32 0.5, %v17345_v11  ;;  %v4056_v13 = vadd.f32 %v17352_v32, %v17351_v31  ;;  %v14526_v11 = vpop.f32.mrb[110].mxu0 }
 0x45b   :  { %6684 = vmatprep.mubr.bf16.mxu1 %v5576_v34  ;;  %v4372_v10 = vmul.f32 0.7978846, %v4052_v19  ;;  %v14517_v63 = vadd.f32 %v17353_v60, %v12686_v48  ;;  %v8829_v62 = vpop.eup %8828  ;;  %v4995_v2 = vadd.f32 1.0, %v8827_v9  ;;  %v3503_v45 = vmul.f32 %v3183_v24, %v14475_v57  ;;  %v17356_v34 = vld [vmem:[#allocation88_spill] sm:$0xff]  ;;  %17357 = vst [vmem:[#allocation57_spill] sm:$0xff] %v14526_v11  ;;  %v17358_v24 = vld [vmem:[#allocation73_spill] sm:$0xff] }
 0x45c   :  { %8834 = vtanh.f32 %v4363_v20  ;;  %v14524_v22 = vadd.f32 %v17356_v34, %v12690_v4  ;;  %v4999_v32 = vadd.f32 1.0, %v8829_v62  ;;  %v4376_v19 = vmul.f32 0.7978846, %v4056_v13  ;;  %v14544_v17 = vpop.f32.mrb[111].mxu0 }
 0x45d   :  { %17354 = vst [vmem:[#allocation61_spill] sm:$0xff] %v14517_v63  ;;  %v8831_v12 = vpop.eup %8830  ;;  %8836 = vtanh.f32 %v4367_v14  ;;  %v3187_v60 = vmul.f32 0.044715, %v14517_v63  ;;  %v3504_v50 = vmul.f32 %v3184_v43, %v14498_v54  ;;  %v14532_v20 = vadd.f32 %v17358_v24, %v12686_v48 }
 0x45e   :  { %v8833_v38 = vpop.eup %8832  ;;  %v5004_v18 = vadd.f32 1.0, %v8831_v12  ;;  %8838 = vtanh.f32 %v4372_v10  ;;  %v5315_v9 = vmul.f32 %v4995_v2, %v14452_v42  ;;  %v5319_v34 = vmul.f32 %v4999_v32, %v2759_v52  ;;  %v17360_v52 = vld [vmem:[#allocation31_spill] sm:$0xff]  ;;  %v17363_v32 = vld [vmem:[#allocation104_spill] sm:$0xff] }
 0x45f   :  { %v5008_v35 = vadd.f32 1.0, %v8833_v38  ;;  %8840 = vtanh.f32 %v4376_v19  ;;  %v14536_v62 = vmul.f32 %v3499_v49, %v14462_v29  ;;  %v14539_v14 = vmul.f32 %v3500_v36, %v14466_v55  ;;  %v17361_v49 = vld [vmem:[#allocation69_spill] sm:$0xff]  ;;  %v17362_v36 = vld [vmem:[#allocation58_spill] sm:$0xff]  ;;  %v17375_v29 = vld [vmem:[#allocation103_spill] sm:$0xff] }
 0x460   :  { %v2772_v12 = vmul.f32 0.5, %v17348_v47  ;;  %v3507_v43 = vmul.f32 %v3187_v60, %v14517_v63  ;;  %v5575_v13 = vpack.c.bf16 %v5319_v34, %v5315_v9  ;;  %v5324_v10 = vmul.f32 %v5004_v18, %v2764_v1 }
 0x461   :  { %17359 = vst [vmem:[#allocation42_spill] sm:$0xff] %v14536_v62  ;;  %v5328_v11 = vmul.f32 %v5008_v35, %v2768_v39  ;;  %v2776_v24 = vmul.f32 0.5, %v17351_v31  ;;  %v3188_v38 = vmul.f32 0.044715, %v14524_v22  ;;  %v3191_v42 = vmul.f32 0.044715, %v14532_v20 }
 0x462   :  { %v4051_v2 = vadd.f32 %v17361_v49, %v17360_v52  ;;  %v4055_v19 = vadd.f32 %v17363_v32, %v17362_v36  ;;  %6685 = vmatmul.mubr.bf16.gmra.mrb[92].mxu1 %v5575_v13  ;;  %v14553_v60 = vmul.f32 %v3503_v45, %v14475_v57  ;;  %v14556_v35 = vmul.f32 %v3504_v50, %v14498_v54  ;;  %v17366_v45 = vld [vmem:[#allocation20_spill] sm:$0xff] }
 0x463   :  { %v5580_v47 = vpack.c.bf16 %v5328_v11, %v5324_v10  ;;  %v14560_v18 = vadd.f32 %v13918_v44, %v12690_v4  ;;  %v14563_v1 = vmul.f32 %v3507_v43, %v14517_v63  ;;  %v14566_v39 = vmul.f32 0.5, %v17360_v52  ;;  %v17367_v44 = vld [vmem:[#allocation38_spill] sm:$0xff]  ;;  %v17374_v63 = vld [vmem:[#allocation39_spill] sm:$0xff] }
 0x464   :  { %17364 = vst [vmem:[#allocation70_spill] sm:$0xff] %v14553_v60  ;;  %v4371_v31 = vmul.f32 0.7978846, %v4051_v2  ;;  %v4375_v9 = vmul.f32 0.7978846, %v4055_v19  ;;  %v14569_v11 = vmul.f32 0.5, %v17362_v36  ;;  %v4060_v50 = vadd.f32 %v13913_v0, %v13840_v46 }
 0x465   :  { %17365 = vst [vmem:[#allocation32_spill] sm:$0xff] %v14563_v1  ;;  %6694 = vmatprep.mubr.bf16.mxu1 %v5580_v47  ;;  %v4064_v34 = vadd.f32 %v17366_v45, %v13872_v16  ;;  %v14577_v13 = vadd.f32 %v17367_v44, %v12686_v48  ;;  %v3508_v10 = vmul.f32 %v3188_v38, %v14524_v22  ;;  %v14582_v49 = vmul.f32 0.5, %v13840_v46  ;;  %v17369_v38 = vld [vmem:[#allocation74_spill] sm:$0xff] }
 0x466   :  { %v8835_v43 = vpop.eup %8834  ;;  %v3511_v52 = vmul.f32 %v3191_v42, %v14532_v20  ;;  %8842 = vtanh.f32 %v4371_v31  ;;  %v3192_v0 = vmul.f32 0.044715, %v14560_v18  ;;  %v4380_v32 = vmul.f32 0.7978846, %v4060_v50 }
 0x467   :  { %17368 = vst [vmem:[#allocation94_spill] sm:$0xff] %v14577_v13  ;;  %v8837_v2 = vpop.eup %8836  ;;  %v5003_v36 = vadd.f32 1.0, %v8835_v43  ;;  %8844 = vtanh.f32 %v4375_v9  ;;  %v14586_v45 = vmul.f32 0.5, %v13872_v16  ;;  %v4384_v44 = vmul.f32 0.7978846, %v4064_v34  ;;  %v17370_v9 = vld [vmem:[#allocation14_spill] sm:$0xff] }
 0x468   :  { %v8839_v19 = vpop.eup %8838  ;;  %v5007_v47 = vadd.f32 1.0, %v8837_v2  ;;  %v14590_v1 = vadd.f32 %v17369_v38, %v12690_v4  ;;  %8846 = vtanh.f32 %v4380_v32  ;;  %v3195_v46 = vmul.f32 0.044715, %v14577_v13 }
 0x469   :  { %v8841_v42 = vpop.eup %8840  ;;  %v5012_v31 = vadd.f32 1.0, %v8839_v19  ;;  %v14595_v43 = vadd.f32 %v17370_v9, %v12686_v48  ;;  %v5323_v50 = vmul.f32 %v5003_v36, %v14502_v53  ;;  %8848 = vtanh.f32 %v4384_v44  ;;  %v17373_v19 = vld [vmem:[#allocation84_spill] sm:$0xff]  ;;  %v17376_v53 = vld [vmem:[#allocation51_spill] sm:$0xff] }
 0x46a   :  { %v5327_v2 = vmul.f32 %v5007_v47, %v14511_v30  ;;  %v5016_v16 = vadd.f32 1.0, %v8841_v42  ;;  %v14600_v34 = vmul.f32 %v3508_v10, %v14524_v22  ;;  %v14603_v38 = vmul.f32 %v3511_v52, %v14532_v20 }
 0x46b   :  { %17371 = vst [vmem:[#allocation33_spill] sm:$0xff] %v14595_v43  ;;  %v3512_v32 = vmul.f32 %v3192_v0, %v14560_v18  ;;  %v4059_v60 = vadd.f32 %v17374_v63, %v17373_v19  ;;  %v5332_v9 = vmul.f32 %v5012_v31, %v2772_v12  ;;  %v4063_v36 = vadd.f32 %v17376_v53, %v17375_v29  ;;  %v17383_v53 = vld [vmem:[#allocation40_spill] sm:$0xff] }
 0x46c   :  { %17372 = vst [vmem:[#allocation60_spill] sm:$0xff] %v14603_v38  ;;  %v5579_v57 = vpack.c.bf16 %v5327_v2, %v5323_v50  ;;  %v5336_v62 = vmul.f32 %v5016_v16, %v2776_v24  ;;  %v3515_v30 = vmul.f32 %v3195_v46, %v14577_v13  ;;  %v3196_v47 = vmul.f32 0.044715, %v14590_v1  ;;  %v17379_v46 = vld [vmem:[#allocation13_spill] sm:$0xff]  ;;  %v17380_v2 = vld [vmem:[#allocation3_spill] sm:$0xff] }
 0x46d   :  { %v4379_v10 = vmul.f32 0.7978846, %v4059_v60  ;;  %v14614_v52 = vadd.f32 %v13979_v21, %v12690_v4  ;;  %v3199_v44 = vmul.f32 0.044715, %v14595_v43  ;;  %v14618_v63 = vmul.f32 0.5, %v17373_v19  ;;  %v17377_v21 = vld [vmem:[#allocation98_spill] sm:$0xff] }
 0x46e   :  { %6695 = vmatmul.mubr.bf16.gmra.mrb[96].mxu1 %v5579_v57  ;;  %v5584_v0 = vpack.c.bf16 %v5336_v62, %v5332_v9  ;;  %v4383_v12 = vmul.f32 0.7978846, %v4063_v36  ;;  %v14621_v24 = vmul.f32 %v3512_v32, %v14560_v18  ;;  %v14624_v42 = vmul.f32 0.5, %v17375_v29  ;;  %v17378_v62 = vld [vmem:[#allocation19_spill] sm:$0xff] }
 0x46f   :  { %8850 = vtanh.f32 %v4379_v10  ;;  %v3200_v60 = vmul.f32 0.044715, %v14614_v52  ;;  %v4068_v57 = vadd.f32 %v17377_v21, %v13898_v56  ;;  %v4072_v50 = vadd.f32 %v17379_v46, %v17378_v62 }
 0x470   :  { %v8843_v31 = vpop.eup %8842  ;;  %6704 = vmatprep.mubr.bf16.mxu1 %v5584_v0  ;;  %8852 = vtanh.f32 %v4383_v12  ;;  %v14633_v16 = vadd.f32 %v17380_v2, %v12686_v48  ;;  %v14636_v29 = vmul.f32 %v3515_v30, %v14577_v13  ;;  %v3516_v9 = vmul.f32 %v3196_v47, %v14590_v1 }
 0x471   :  { %v8845_v32 = vpop.eup %8844  ;;  %v5011_v19 = vadd.f32 1.0, %v8843_v31  ;;  %v14641_v36 = vadd.f32 %v17383_v53, %v12690_v4  ;;  %v3519_v0 = vmul.f32 %v3199_v44, %v14595_v43  ;;  %v4388_v12 = vmul.f32 0.7978846, %v4068_v57 }
 0x472   :  { %17381 = vst [vmem:[#allocation83_spill] sm:$0xff] %v14633_v16  ;;  %17382 = vst [vmem:[#allocation88_spill] sm:$0xff] %v14636_v29  ;;  %v5015_v10 = vadd.f32 1.0, %v8845_v32  ;;  %v4392_v21 = vmul.f32 0.7978846, %v4072_v50  ;;  %v8847_v46 = vpop.eup %8846  ;;  %v3520_v38 = vmul.f32 %v3200_v60, %v14614_v52  ;;  %v14647_v31 = vmul.f32 0.5, %v13898_v56 }
 0x473   :  { %17384 = vst [vmem:[#allocation73_spill] sm:$0xff] %v14641_v36  ;;  %v5331_v2 = vmul.f32 %v5011_v19, %v14566_v39  ;;  %v14651_v30 = vadd.f32 %v14029_v5, %v12686_v48  ;;  %v8849_v47 = vpop.eup %8848  ;;  %v5020_v32 = vadd.f32 1.0, %v8847_v46  ;;  %8854 = vtanh.f32 %v4388_v12  ;;  %v17387_v19 = vld [vmem:[#allocation66_spill] sm:$0xff] }
 0x474   :  { %v5335_v53 = vmul.f32 %v5015_v10, %v14569_v11  ;;  %v3203_v44 = vmul.f32 0.044715, %v14633_v16  ;;  %v5024_v57 = vadd.f32 1.0, %v8849_v47  ;;  %v2792_v50 = vmul.f32 0.5, %v17378_v62  ;;  %v17388_v62 = vld [vmem:[#allocation63_spill] sm:$0xff] }
 0x475   :  { %17385 = vst [vmem:[#allocation31_spill] sm:$0xff] %v14651_v30  ;;  %8856 = vtanh.f32 %v4392_v21  ;;  %v3204_v39 = vmul.f32 0.044715, %v14641_v36  ;;  %v14658_v56 = vmul.f32 %v3516_v9, %v14590_v1  ;;  %v14661_v5 = vmul.f32 %v3519_v0, %v14595_v43  ;;  %v17389_v0 = vld [vmem:[#allocation15_spill] sm:$0xff]  ;;  %v17393_v43 = vld [vmem:[#allocation96_spill] sm:$0xff] }
 0x476   :  { %v5583_v60 = vpack.c.bf16 %v5335_v53, %v5331_v2  ;;  %v14664_v29 = vmul.f32 0.5, %v17387_v19  ;;  %v5340_v11 = vmul.f32 %v5020_v32, %v14582_v49  ;;  %v5344_v10 = vmul.f32 %v5024_v57, %v14586_v45  ;;  %v17390_v2 = vld [vmem:[#allocation37_spill] sm:$0xff] }
 0x477   :  { %17386 = vst [vmem:[#allocation69_spill] sm:$0xff] %v14661_v5  ;;  %v14669_v12 = vmul.f32 %v3520_v38, %v14614_v52  ;;  %v4067_v21 = vadd.f32 %v17388_v62, %v17387_v19  ;;  %v3523_v9 = vmul.f32 %v3203_v44, %v14633_v16  ;;  %v3207_v46 = vmul.f32 0.044715, %v14651_v30  ;;  %v17392_v5 = vld [vmem:[#allocation101_spill] sm:$0xff] }
 0x478   :  { %6705 = vmatmul.mubr.bf16.gmra.mrb[100].mxu1 %v5583_v60  ;;  %v4071_v47 = vadd.f32 %v17390_v2, %v17389_v0  ;;  %v14679_v53 = vadd.f32 %v14056_v61, %v12690_v4  ;;  %v5588_v45 = vpack.c.bf16 %v5344_v10, %v5340_v11  ;;  %v3524_v38 = vmul.f32 %v3204_v39, %v14641_v36 }
 0x479   :  { %v8851_v49 = vpop.eup %8850  ;;  %v4387_v32 = vmul.f32 0.7978846, %v4067_v21  ;;  %v4076_v57 = vadd.f32 %v14048_v7, %v13970_v25  ;;  %v4080_v2 = vadd.f32 %v17393_v43, %v17392_v5  ;;  %v14689_v11 = vadd.f32 %v14073_v3, %v12686_v48 }
 0x47a   :  { %17391 = vst [vmem:[#allocation58_spill] sm:$0xff] %v14679_v53  ;;  %v8853_v60 = vpop.eup %8852  ;;  %v5019_v19 = vadd.f32 1.0, %v8851_v49  ;;  %v4391_v44 = vmul.f32 0.7978846, %v4071_v47  ;;  %v3208_v62 = vmul.f32 0.044715, %v14679_v53  ;;  %6714 = vmatprep.mubr.bf16.mxu1 %v5588_v45  ;;  %v3527_v7 = vmul.f32 %v3207_v46, %v14651_v30 }
 0x47b   :  { %v5023_v13 = vadd.f32 1.0, %v8853_v60  ;;  %8858 = vtanh.f32 %v4387_v32  ;;  %v4396_v61 = vmul.f32 0.7978846, %v4076_v57  ;;  %17394 = vst [vmem:[#allocation104_spill] sm:$0xff] %v14689_v11  ;;  %v4400_v10 = vmul.f32 0.7978846, %v4080_v2 }
 0x47c   :  { %v5339_v39 = vmul.f32 %v5019_v19, %v14618_v63  ;;  %8860 = vtanh.f32 %v4391_v44  ;;  %v3211_v47 = vmul.f32 0.044715, %v14689_v11  ;;  %v14697_v43 = vadd.f32 %v14078_v28, %v12690_v4  ;;  %v17401_v19 = vld [vmem:[#allocation9_spill] sm:$0xff] }
 0x47d   :  { %v5343_v21 = vmul.f32 %v5023_v13, %v14624_v42  ;;  %8862 = vtanh.f32 %v4396_v61  ;;  %v8855_v49 = vpop.eup %8854  ;;  %v14700_v45 = vmul.f32 %v3523_v9, %v14633_v16  ;;  %v14703_v3 = vmul.f32 %v3524_v38, %v14641_v36  ;;  %v17400_v38 = vld [vmem:[#allocation36_spill] sm:$0xff]  ;;  %v17402_v61 = vld [vmem:[#allocation86_spill] sm:$0xff] }
 0x47e   :  { %17395 = vst [vmem:[#allocation20_spill] sm:$0xff] %v14697_v43  ;;  %v2791_v63 = vmul.f32 0.5, %v17389_v0  ;;  %8864 = vtanh.f32 %v4400_v10  ;;  %v5028_v13 = vadd.f32 1.0, %v8855_v49  ;;  %v3528_v42 = vmul.f32 %v3208_v62, %v14679_v53 }
 0x47f   :  { %17396 = vst [vmem:[#allocation38_spill] sm:$0xff] %v14700_v45  ;;  %17397 = vst [vmem:[#allocation74_spill] sm:$0xff] %v14703_v3  ;;  %v8857_v46 = vpop.eup %8856  ;;  %v5587_v32 = vpack.c.bf16 %v5343_v21, %v5339_v39  ;;  %v14709_v57 = vadd.f32 %v14083_v8, %v12686_v48  ;;  %v14712_v60 = vmul.f32 %v3527_v7, %v14651_v30  ;;  %v3212_v9 = vmul.f32 0.044715, %v14697_v43  ;;  %v17403_v39 = vld [vmem:[#allocation100_spill] sm:$0xff] }
 0x480   :  { %v5032_v28 = vadd.f32 1.0, %v8857_v46  ;;  %v4075_v44 = vadd.f32 %v17401_v19, %v17400_v38  ;;  %v2796_v0 = vmul.f32 0.5, %v13970_v25  ;;  %v2800_v2 = vmul.f32 0.5, %v17392_v5 }
 0x481   :  { %17398 = vst [vmem:[#allocation14_spill] sm:$0xff] %v14709_v57  ;;  %17399 = vst [vmem:[#allocation84_spill] sm:$0xff] %v14712_v60  ;;  %6715 = vmatmul.mubr.bf16.gmra.mrb[104].mxu1 %v5587_v32  ;;  %v3531_v62 = vmul.f32 %v3211_v47, %v14689_v11  ;;  %v4079_v8 = vadd.f32 %v17403_v39, %v17402_v61  ;;  %v5348_v10 = vmul.f32 %v5028_v13, %v14647_v31 }
 0x482   :  { %v5352_v21 = vmul.f32 %v5032_v28, %v2792_v50  ;;  %v4395_v7 = vmul.f32 0.7978846, %v4075_v44  ;;  %v14725_v49 = vadd.f32 %v14109_v6, %v12690_v4  ;;  %v14728_v46 = vmul.f32 %v3528_v42, %v14679_v53 }
 0x483   :  { %v3215_v25 = vmul.f32 0.044715, %v14709_v57  ;;  %v14732_v5 = vmul.f32 0.5, %v17400_v38  ;;  %v4399_v47 = vmul.f32 0.7978846, %v4079_v8  ;;  %v3532_v19 = vmul.f32 %v3212_v9, %v14697_v43  ;;  %v6483_v39 = vpop.f32.mrb[184].mxu1 }
 0x484   :  { %17404 = vst [vmem:[#allocation39_spill] sm:$0xff] %v14725_v49  ;;  %17405 = vst [vmem:[#allocation103_spill] sm:$0xff] %v14728_v46  ;;  %v5592_v32 = vpack.c.bf16 %v5352_v21, %v5348_v10  ;;  %8866 = vtanh.f32 %v4395_v7  ;;  %v3216_v31 = vmul.f32 0.044715, %v14725_v49  ;;  %v14737_v13 = vmul.f32 0.5, %v17402_v61 }
 0x485   :  { %v8859_v50 = vpop.eup %8858  ;;  %8868 = vtanh.f32 %v4399_v47  ;;  %v4084_v6 = vadd.f32 %v14101_v41, %v14027_v58  ;;  %v4088_v42 = vadd.f32 %v14129_v27, %v14071_v51  ;;  %v14744_v44 = vmul.f32 %v3531_v62, %v14689_v11 }
 0x486   :  { %v8861_v28 = vpop.eup %8860  ;;  %6724 = vmatprep.mubr.bf16.mxu1 %v5592_v32  ;;  %v5027_v38 = vadd.f32 1.0, %v8859_v50  ;;  %v14748_v9 = vadd.f32 %v14137_v23, %v12686_v48  ;;  %v14752_v61 = vadd.f32 %v14146_v59, %v12690_v4  ;;  %v3535_v10 = vmul.f32 %v3215_v25, %v14709_v57  ;;  %v6485_v59 = vpop.f32.mrb[185].mxu1 }
 0x487   :  { %17406 = vst [vmem:[#allocation51_spill] sm:$0xff] %v14744_v44  ;;  %v8863_v8 = vpop.eup %8862  ;;  %v5031_v41 = vadd.f32 1.0, %v8861_v28  ;;  %v4404_v27 = vmul.f32 0.7978846, %v4084_v6  ;;  %v4408_v21 = vmul.f32 0.7978846, %v4088_v42  ;;  %v14756_v62 = vmul.f32 %v3532_v19, %v14697_v43 }
 0x488   :  { %17407 = vst [vmem:[#allocation98_spill] sm:$0xff] %v14748_v9  ;;  %17408 = vst [vmem:[#allocation19_spill] sm:$0xff] %v14752_v61  ;;  %v8865_v7 = vpop.eup %8864  ;;  %v5036_v47 = vadd.f32 1.0, %v8863_v8  ;;  %v3536_v32 = vmul.f32 %v3216_v31, %v14725_v49  ;;  %v14761_v23 = vadd.f32 %v14159_v37, %v12686_v48  ;;  %v5347_v50 = vmul.f32 %v5027_v38, %v14664_v29  ;;  %v6487_v25 = vpop.f32.mrb[186].mxu1  ;;  %v17412_v38 = vld [vmem:[#allocation35_spill] sm:$0xff] }
 0x489   :  { %17409 = vst [vmem:[#allocation13_spill] sm:$0xff] %v14756_v62  ;;  %v5351_v39 = vmul.f32 %v5031_v41, %v2791_v63  ;;  %v5040_v28 = vadd.f32 1.0, %v8865_v7  ;;  %8870 = vtanh.f32 %v4404_v27  ;;  %v14765_v6 = vmul.f32 0.5, %v14027_v58  ;;  %v6489_v31 = vpop.f32.mrb[187].mxu1  ;;  %v17413_v41 = vld [vmem:[#allocation105_spill] sm:$0xff] }
 0x48a   :  { %17410 = vst [vmem:[#allocation3_spill] sm:$0xff] %v14761_v23  ;;  %8872 = vtanh.f32 %v4408_v21  ;;  %v3219_v19 = vmul.f32 0.044715, %v14748_v9  ;;  %v3220_v42 = vmul.f32 0.044715, %v14752_v61  ;;  %v5356_v44 = vmul.f32 %v5036_v47, %v2796_v0  ;;  %v17418_v31 = vld [vmem:[#allocation4_spill] sm:$0xff] }
 0x48b   :  { %v5591_v8 = vpack.c.bf16 %v5351_v39, %v5347_v50  ;;  %v5360_v37 = vmul.f32 %v5040_v28, %v2800_v2  ;;  %v2808_v59 = vmul.f32 0.5, %v14071_v51  ;;  %v14771_v29 = vmul.f32 %v3535_v10, %v14709_v57  ;;  %v17417_v28 = vld [vmem:[#allocation108_spill] sm:$0xff] }
 0x48c   :  { %v14774_v63 = vmul.f32 0.5, %v14017_v40  ;;  %v4083_v58 = vadd.f32 %v14098_v26, %v14017_v40  ;;  %v4087_v27 = vadd.f32 %v17413_v41, %v17412_v38  ;;  %v14781_v7 = vmul.f32 %v3536_v32, %v14725_v49  ;;  %v17416_v32 = vld [vmem:[#allocation68_spill] sm:$0xff] }
 0x48d   :  { %17411 = vst [vmem:[#allocation40_spill] sm:$0xff] %v14771_v29  ;;  %6725 = vmatmul.mubr.bf16.gmra.mrb[108].mxu1 %v5591_v8  ;;  %v5596_v21 = vpack.c.bf16 %v5360_v37, %v5356_v44  ;;  %v3223_v0 = vmul.f32 0.044715, %v14761_v23  ;;  %v14786_v51 = vadd.f32 %v14177_v33, %v12690_v4  ;;  %v3539_v10 = vmul.f32 %v3219_v19, %v14748_v9  ;;  %v17419_v8 = vld [vmem:[#allocation106_spill] sm:$0xff] }
 0x48e   :  { %17414 = vst [vmem:[#allocation66_spill] sm:$0xff] %v14781_v7  ;;  %v8867_v2 = vpop.eup %8866  ;;  %v3540_v47 = vmul.f32 %v3220_v42, %v14752_v61  ;;  %v4403_v40 = vmul.f32 0.7978846, %v4083_v58  ;;  %v4407_v26 = vmul.f32 0.7978846, %v4087_v27  ;;  %v4092_v25 = vadd.f32 %v17417_v28, %v17416_v32  ;;  %v17420_v19 = vld [vmem:[#allocation102_spill] sm:$0xff] }
 0x48f   :  { %17415 = vst [vmem:[#allocation63_spill] sm:$0xff] %v14786_v51  ;;  %v8869_v50 = vpop.eup %8868  ;;  %6734 = vmatprep.mubr.bf16.mxu1 %v5596_v21  ;;  %v5035_v39 = vadd.f32 1.0, %v8867_v2  ;;  %v3224_v44 = vmul.f32 0.044715, %v14786_v51  ;;  %v4096_v37 = vadd.f32 %v17419_v8, %v17418_v31  ;;  %v14796_v41 = vmul.f32 0.5, %v17412_v38  ;;  %v6493_v58 = vpop.f32.mrb[188].mxu1 }
 0x490   :  { %v5039_v33 = vadd.f32 1.0, %v8869_v50  ;;  %8874 = vtanh.f32 %v4403_v40  ;;  %v14800_v42 = vadd.f32 %v17420_v19, %v12686_v48  ;;  %v3543_v27 = vmul.f32 %v3223_v0, %v14761_v23  ;;  %v17422_v2 = vld [vmem:[#allocation12_spill] sm:$0xff]  ;;  %v6495_v29 = vpop.f32.mrb[189].mxu1 }
 0x491   :  { %8876 = vtanh.f32 %v4407_v26  ;;  %v4412_v21 = vmul.f32 0.7978846, %v4092_v25  ;;  %v14805_v28 = vadd.f32 %v17422_v2, %v12690_v4  ;;  %v5355_v50 = vmul.f32 %v5035_v39, %v14732_v5  ;;  %v6497_v25 = vpop.f32.mrb[190].mxu1  ;;  %v17426_v5 = vld [vmem:[#allocation78_spill] sm:$0xff] }
 0x492   :  { %17421 = vst [vmem:[#allocation15_spill] sm:$0xff] %v14800_v42  ;;  %v5359_v38 = vmul.f32 %v5039_v33, %v14737_v13  ;;  %v3544_v40 = vmul.f32 %v3224_v44, %v14786_v51  ;;  %v4416_v8 = vmul.f32 0.7978846, %v4096_v37  ;;  %v14811_v19 = vmul.f32 %v3539_v10, %v14748_v9  ;;  %v6499_v39 = vpop.f32.mrb[191].mxu1  ;;  %v17433_v25 = vld [vmem:[#allocation65_spill] sm:$0xff]  ;;  %v17439_v9 = vld [vmem:[#allocation7_spill] sm:$0xff] }
 0x493   :  { %17423 = vst [vmem:[#allocation37_spill] sm:$0xff] %v14805_v28  ;;  %v8871_v57 = vpop.eup %8870  ;;  %v14814_v0 = vmul.f32 %v3540_v47, %v14752_v61  ;;  %8878 = vtanh.f32 %v4412_v21  ;;  %v3227_v26 = vmul.f32 0.044715, %v14800_v42  ;;  %v14819_v13 = vadd.f32 %v17426_v5, %v12686_v48  ;;  %v17430_v21 = vld [vmem:[#allocation6_spill] sm:$0xff] }
 0x494   :  { %17424 = vst [vmem:[#allocation101_spill] sm:$0xff] %v14811_v19  ;;  %v8873_v58 = vpop.eup %8872  ;;  %v5595_v29 = vpack.c.bf16 %v5359_v38, %v5355_v50  ;;  %v5044_v2 = vadd.f32 1.0, %v8871_v57  ;;  %8880 = vtanh.f32 %v4416_v8  ;;  %v14822_v10 = vmul.f32 %v3543_v27, %v14761_v23  ;;  %v17431_v50 = vld [vmem:[#allocation34_spill] sm:$0xff]  ;;  %v17432_v8 = vld [vmem:[#allocation56_spill] sm:$0xff] }
 0x495   :  { %17425 = vst [vmem:[#allocation96_spill] sm:$0xff] %v14814_v0  ;;  %17427 = vst [vmem:[#allocation36_spill] sm:$0xff] %v14819_v13  ;;  %v5048_v44 = vadd.f32 1.0, %v8873_v58  ;;  %v2812_v47 = vmul.f32 0.5, %v17416_v32  ;;  %v3228_v37 = vmul.f32 0.044715, %v14805_v28  ;;  %v14827_v33 = vmul.f32 %v3544_v40, %v14786_v51 }
 0x496   :  { %17428 = vst [vmem:[#allocation9_spill] sm:$0xff] %v14822_v10  ;;  %6735 = vmatmul.mubr.bf16.gmra.mrb[112].mxu1 %v5595_v29  ;;  %v2816_v57 = vmul.f32 0.5, %v17418_v31  ;;  %v4091_v38 = vadd.f32 %v17431_v50, %v17430_v21  ;;  %v4095_v5 = vadd.f32 %v17433_v25, %v17432_v8  ;;  %v5364_v58 = vmul.f32 %v5044_v2, %v14765_v6  ;;  %v17434_v32 = vld [vmem:[#allocation77_spill] sm:$0xff] }
 0x497   :  { %17429 = vst [vmem:[#allocation86_spill] sm:$0xff] %v14827_v33  ;;  %v5368_v27 = vmul.f32 %v5048_v44, %v2808_v59  ;;  %v14836_v39 = vmul.f32 0.5, %v17430_v21  ;;  %v14840_v29 = vadd.f32 %v17434_v32, %v12690_v4  ;;  %v3547_v40 = vmul.f32 %v3227_v26, %v14800_v42  ;;  %v17436_v6 = vld [vmem:[#allocation113_spill] sm:$0xff]  ;;  %v17437_v59 = vld [vmem:[#allocation62_spill] sm:$0xff]  ;;  %v14848_v44 = vpop.f32.mrb[32].mxu1  ;;  %v17438_v32 = vld [vmem:[#allocation27_spill] sm:$0xff] }
 0x498   :  { %v3231_v31 = vmul.f32 0.044715, %v14819_v13  ;;  %v4411_v10 = vmul.f32 0.7978846, %v4091_v38  ;;  %v4415_v23 = vmul.f32 0.7978846, %v4095_v5  ;;  %v3548_v19 = vmul.f32 %v3228_v37, %v14805_v28 }
 0x499   :  { %17435 = vst [vmem:[#allocation100_spill] sm:$0xff] %v14840_v29  ;;  %v5600_v50 = vpack.c.bf16 %v5368_v27, %v5364_v58  ;;  %v3232_v25 = vmul.f32 0.044715, %v14840_v29  ;;  %v4100_v2 = vadd.f32 %v17437_v59, %v17436_v6  ;;  %v4104_v33 = vadd.f32 %v17439_v9, %v17438_v32  ;;  %v17440_v26 = vld [vmem:[#allocation92_spill] sm:$0xff]  ;;  %v14860_v37 = vpop.f32.mrb[33].mxu1 }
 0x49a   :  { %v8875_v21 = vpop.eup %8874  ;;  %8882 = vtanh.f32 %v4411_v10  ;;  %v14854_v51 = vadd.f32 %v17440_v26, %v12686_v48  ;;  %v14858_v38 = vadd.f32 %v14277_v15, %v12690_v4  ;;  %v14863_v27 = vmul.f32 0.5, %v17432_v8  ;;  %v14865_v59 = vpop.f32.mrb[34].mxu1  ;;  %v17443_v8 = vld [vmem:[#allocation82_spill] sm:$0xff] }
 0x49b   :  { %v8877_v5 = vpop.eup %8876  ;;  %6744 = vmatprep.mubr.bf16.mxu1 %v5600_v50  ;;  %v5043_v58 = vadd.f32 1.0, %v8875_v21  ;;  %8884 = vtanh.f32 %v4415_v23  ;;  %v4420_v10 = vmul.f32 0.7978846, %v4100_v2  ;;  %v3551_v26 = vmul.f32 %v3231_v31, %v14819_v13  ;;  %v14869_v15 = vpop.f32.mrb[35].mxu1 }
 0x49c   :  { %17441 = vst [vmem:[#allocation35_spill] sm:$0xff] %v14854_v51  ;;  %17442 = vst [vmem:[#allocation105_spill] sm:$0xff] %v14858_v38  ;;  %v5047_v9 = vadd.f32 1.0, %v8877_v5  ;;  %v3552_v0 = vmul.f32 %v3232_v25, %v14840_v29  ;;  %v4424_v61 = vmul.f32 0.7978846, %v4104_v33  ;;  %v14875_v23 = vadd.f32 %v17443_v8, %v12686_v48 }
 0x49d   :  { %v8879_v11 = vpop.eup %8878  ;;  %v5363_v7 = vmul.f32 %v5043_v58, %v14774_v63  ;;  %8886 = vtanh.f32 %v4420_v10  ;;  %v3235_v50 = vmul.f32 0.044715, %v14854_v51  ;;  %v3236_v31 = vmul.f32 0.044715, %v14858_v38 }
 0x49e   :  { %17444 = vst [vmem:[#allocation68_spill] sm:$0xff] %v14875_v23  ;;  %v8881_v2 = vpop.eup %8880  ;;  %v5367_v21 = vmul.f32 %v5047_v9, %v14796_v41  ;;  %v5052_v5 = vadd.f32 1.0, %v8879_v11  ;;  %8888 = vtanh.f32 %v4424_v61  ;;  %v14880_v25 = vmul.f32 %v3547_v40, %v14800_v42  ;;  %v17449_v40 = vld [vmem:[#allocation72_spill] sm:$0xff]  ;;  %v17458_v42 = vld [vmem:[#allocation21_spill] sm:$0xff] }
 0x49f   :  { %v5056_v33 = vadd.f32 1.0, %v8881_v2  ;;  %v14883_v63 = vmul.f32 %v3548_v19, %v14805_v28  ;;  %v2820_v58 = vmul.f32 0.5, %v17436_v6  ;;  %v14887_v8 = vmul.f32 %v3551_v26, %v14819_v13  ;;  %v17450_v2 = vld [vmem:[#allocation95_spill] sm:$0xff]  ;;  %v17451_v6 = vld [vmem:[#allocation97_spill] sm:$0xff]  ;;  %v17457_v13 = vld [vmem:[#allocation44_spill] sm:$0xff] }
 0x4a0   :  { %17445 = vst [vmem:[#allocation108_spill] sm:$0xff] %v14880_v25  ;;  %v5599_v10 = vpack.c.bf16 %v5367_v21, %v5363_v7  ;;  %v14890_v49 = vmul.f32 %v3552_v0, %v14840_v29  ;;  %v2824_v11 = vmul.f32 0.5, %v17438_v32  ;;  %v5372_v61 = vmul.f32 %v5052_v5, %v2812_v47  ;;  %v17452_v26 = vld [vmem:[#allocation85_spill] sm:$0xff]  ;;  %v17453_v0 = vld [vmem:[#allocation50_spill] sm:$0xff] }
 0x4a1   :  { %17446 = vst [vmem:[#allocation4_spill] sm:$0xff] %v14883_v63  ;;  %17447 = vst [vmem:[#allocation106_spill] sm:$0xff] %v14887_v8  ;;  %v5376_v41 = vmul.f32 %v5056_v33, %v2816_v57  ;;  %v3555_v9 = vmul.f32 %v3235_v50, %v14854_v51  ;;  %v4099_v25 = vadd.f32 %v17450_v2, %v17449_v40  ;;  %v3239_v7 = vmul.f32 0.044715, %v14875_v23  ;;  %v17455_v50 = vld [vmem:[#allocation41_spill] sm:$0xff] }
 0x4a2   :  { %17448 = vst [vmem:[#allocation102_spill] sm:$0xff] %v14890_v49  ;;  %6745 = vmatmul.mubr.bf16.gmra.mrb[116].mxu1 %v5599_v10  ;;  %v3556_v19 = vmul.f32 %v3236_v31, %v14858_v38  ;;  %v4103_v21 = vadd.f32 %v17452_v26, %v17451_v6  ;;  %v14902_v8 = vadd.f32 %v17453_v0, %v12690_v4  ;;  %v14905_v47 = vmul.f32 0.5, %v17449_v40  ;;  %v17456_v5 = vld [vmem:[#allocation93_spill] sm:$0xff]  ;;  %v17459_v26 = vld [vmem:[#allocation16_spill] sm:$0xff]  ;;  %v14916_v0 = vpop.f32.mrb[36].mxu1 }
 0x4a3   :  { %v5604_v32 = vpack.c.bf16 %v5376_v41, %v5372_v61  ;;  %v4419_v57 = vmul.f32 0.7978846, %v4099_v25  ;;  %v4108_v33 = vadd.f32 %v17456_v5, %v17455_v50  ;;  %v4112_v49 = vadd.f32 %v17458_v42, %v17457_v13  ;;  %v17461_v40 = vld [vmem:[#allocation81_spill] sm:$0xff] }
 0x4a4   :  { %17454 = vst [vmem:[#allocation12_spill] sm:$0xff] %v14902_v8  ;;  %v8883_v10 = vpop.eup %8882  ;;  %v4423_v2 = vmul.f32 0.7978846, %v4103_v21  ;;  %v3240_v31 = vmul.f32 0.044715, %v14902_v8  ;;  %v14914_v29 = vadd.f32 %v17459_v26, %v12686_v48  ;;  %v14920_v5 = vadd.f32 %v17461_v40, %v12690_v4  ;;  %v14922_v21 = vpop.f32.mrb[37].mxu1 }
 0x4a5   :  { %v8885_v61 = vpop.eup %8884  ;;  %6754 = vmatprep.mubr.bf16.mxu1 %v5604_v32  ;;  %v5051_v41 = vadd.f32 1.0, %v8883_v10  ;;  %8890 = vtanh.f32 %v4419_v57  ;;  %v4428_v25 = vmul.f32 0.7978846, %v4108_v33  ;;  %v14925_v42 = vmul.f32 %v3555_v9, %v14854_v51  ;;  %v14927_v28 = vpop.f32.mrb[38].mxu1  ;;  %v17472_v51 = vld [vmem:[#allocation76_spill] sm:$0xff] }
 0x4a6   :  { %17460 = vst [vmem:[#allocation78_spill] sm:$0xff] %v14914_v29  ;;  %17462 = vst [vmem:[#allocation6_spill] sm:$0xff] %v14920_v5  ;;  %v5055_v63 = vadd.f32 1.0, %v8885_v61  ;;  %8892 = vtanh.f32 %v4423_v2  ;;  %v4432_v26 = vmul.f32 0.7978846, %v4112_v49  ;;  %v3559_v57 = vmul.f32 %v3239_v7, %v14875_v23  ;;  %v14932_v10 = vpop.f32.mrb[39].mxu1 }
 0x4a7   :  { %17463 = vst [vmem:[#allocation34_spill] sm:$0xff] %v14925_v42  ;;  %v8887_v62 = vpop.eup %8886  ;;  %v5371_v32 = vmul.f32 %v5051_v41, %v14836_v39  ;;  %v3560_v33 = vmul.f32 %v3240_v31, %v14902_v8  ;;  %8894 = vtanh.f32 %v4428_v25  ;;  %v3243_v9 = vmul.f32 0.044715, %v14914_v29  ;;  %v17464_v39 = vld [vmem:[#allocation11_spill] sm:$0xff] }
 0x4a8   :  { %v8889_v40 = vpop.eup %8888  ;;  %v5375_v61 = vmul.f32 %v5055_v63, %v14863_v27  ;;  %v5060_v43 = vadd.f32 1.0, %v8887_v62  ;;  %8896 = vtanh.f32 %v4432_v26  ;;  %v2823_v2 = vmul.f32 0.5, %v17451_v6 }
 0x4a9   :  { %v5064_v49 = vadd.f32 1.0, %v8889_v40  ;;  %v3244_v42 = vmul.f32 0.044715, %v14920_v5  ;;  %v14940_v7 = vadd.f32 %v17464_v39, %v12686_v48  ;;  %v14943_v41 = vmul.f32 %v3556_v19, %v14858_v38  ;;  %v17469_v39 = vld [vmem:[#allocation107_spill] sm:$0xff]  ;;  %v17471_v19 = vld [vmem:[#allocation110_spill] sm:$0xff] }
 0x4aa   :  { %v5603_v31 = vpack.c.bf16 %v5375_v61, %v5371_v32  ;;  %v2828_v25 = vmul.f32 0.5, %v17455_v50  ;;  %v2832_v62 = vmul.f32 0.5, %v17457_v13  ;;  %v5380_v27 = vmul.f32 %v5060_v43, %v2820_v58  ;;  %v17470_v32 = vld [vmem:[#allocation111_spill] sm:$0xff]  ;;  %v17473_v50 = vld [vmem:[#allocation114_spill] sm:$0xff] }
 0x4ab   :  { %17465 = vst [vmem:[#allocation56_spill] sm:$0xff] %v14940_v7  ;;  %17466 = vst [vmem:[#allocation65_spill] sm:$0xff] %v14943_v41  ;;  %v5384_v63 = vmul.f32 %v5064_v49, %v2824_v11  ;;  %v14948_v26 = vmul.f32 %v3559_v57, %v14875_v23  ;;  %v14951_v6 = vmul.f32 %v3560_v33, %v14902_v8  ;;  %v3247_v11 = vmul.f32 0.044715, %v14940_v7  ;;  %v17475_v57 = vld [vmem:[#allocation71_spill] sm:$0xff]  ;;  %v17476_v33 = vld [vmem:[#allocation49_spill] sm:$0xff] }
 0x4ac   :  { %6755 = vmatmul.mubr.bf16.gmra.mrb[120].mxu1 %v5603_v31  ;;  %v3563_v40 = vmul.f32 %v3243_v9, %v14914_v29  ;;  %v4107_v61 = vadd.f32 %v17470_v32, %v17469_v39  ;;  %v4111_v41 = vadd.f32 %v17472_v51, %v17471_v19  ;;  %v14960_v13 = vadd.f32 %v17473_v50, %v12690_v4  ;;  %v14966_v31 = vpop.f32.mrb[40].mxu1  ;;  %v17477_v23 = vld [vmem:[#allocation112_spill] sm:$0xff]  ;;  %v17478_v51 = vld [vmem:[#allocation45_spill] sm:$0xff]  ;;  %v17479_v50 = vld [vmem:[#allocation23_spill] sm:$0xff] }
 0x4ad   :  { %17467 = vst [vmem:[#allocation77_spill] sm:$0xff] %v14948_v26  ;;  %17468 = vst [vmem:[#allocation113_spill] sm:$0xff] %v14951_v6  ;;  %v5608_v43 = vpack.c.bf16 %v5384_v63, %v5380_v27  ;;  %v3564_v58 = vmul.f32 %v3244_v42, %v14920_v5  ;;  %v4116_v49 = vadd.f32 %v17476_v33, %v17475_v57  ;;  %v14972_v27 = vmul.f32 0.5, %v17469_v39 }
 0x4ae   :  { %17474 = vst [vmem:[#allocation62_spill] sm:$0xff] %v14960_v13  ;;  %v4427_v9 = vmul.f32 0.7978846, %v4107_v61  ;;  %v4431_v26 = vmul.f32 0.7978846, %v4111_v41  ;;  %v4120_v6 = vadd.f32 %v17478_v51, %v17477_v23  ;;  %v14975_v42 = vmul.f32 0.5, %v17471_v19 }
 0x4af   :  { %v3248_v32 = vmul.f32 0.044715, %v14960_v13  ;;  %v8891_v8 = vpop.eup %8890  ;;  %6764 = vmatprep.mubr.bf16.mxu1 %v5608_v43  ;;  %v4436_v63 = vmul.f32 0.7978846, %v4116_v49  ;;  %v14979_v33 = vadd.f32 %v17479_v50, %v12686_v48  ;;  %v14981_v61 = vpop.f32.mrb[41].mxu1  ;;  %v17481_v51 = vld [vmem:[#allocation53_spill] sm:$0xff]  ;;  %v14990_v49 = vmul.f32 %v3563_v40, %v14914_v29 }
 0x4b0   :  { %v8893_v41 = vpop.eup %8892  ;;  %v5059_v38 = vadd.f32 1.0, %v8891_v8  ;;  %8898 = vtanh.f32 %v4427_v9  ;;  %v4440_v60 = vmul.f32 0.7978846, %v4120_v6  ;;  %v14985_v43 = vadd.f32 %v17481_v51, %v12690_v4  ;;  %v14987_v39 = vpop.f32.mrb[42].mxu1 }
 0x4b1   :  { %17480 = vst [vmem:[#allocation27_spill] sm:$0xff] %v14979_v33  ;;  %v8895_v30 = vpop.eup %8894  ;;  %v5063_v19 = vadd.f32 1.0, %v8893_v41  ;;  %17483 = vst [vmem:[#allocation92_spill] sm:$0xff] %v14990_v49  ;;  %v3567_v50 = vmul.f32 %v3247_v11, %v14940_v7  ;;  %8900 = vtanh.f32 %v4431_v26  ;;  %v14993_v45 = vpop.f32.mrb[43].mxu1  ;;  %v3568_v6 = vmul.f32 %v3248_v32, %v14960_v13  ;;  %v17485_v41 = vld [vmem:[#allocation28_spill] sm:$0xff] }
 0x4b2   :  { %17482 = vst [vmem:[#allocation7_spill] sm:$0xff] %v14985_v43  ;;  %v8897_v16 = vpop.eup %8896  ;;  %v5068_v8 = vadd.f32 1.0, %v8895_v30  ;;  %8902 = vtanh.f32 %v4436_v63  ;;  %v3251_v9 = vmul.f32 0.044715, %v14979_v33  ;;  %v5379_v51 = vmul.f32 %v5059_v38, %v14905_v47  ;;  %v17489_v47 = vld [vmem:[#allocation17_spill] sm:$0xff] }
 0x4b3   :  { %v5383_v46 = vmul.f32 %v5063_v19, %v2823_v2  ;;  %v5072_v53 = vadd.f32 1.0, %v8897_v16  ;;  %8904 = vtanh.f32 %v4440_v60  ;;  %v14999_v40 = vmul.f32 %v3564_v58, %v14920_v5  ;;  %v17488_v60 = vld [vmem:[#allocation79_spill] sm:$0xff]  ;;  %v17490_v58 = vld [vmem:[#allocation109_spill] sm:$0xff] }
 0x4b4   :  { %v2836_v11 = vmul.f32 0.5, %v17475_v57  ;;  %v3252_v26 = vmul.f32 0.044715, %v14985_v43  ;;  %v15005_v30 = vadd.f32 %v17485_v41, %v12686_v48  ;;  %v5388_v63 = vmul.f32 %v5068_v8, %v2828_v25  ;;  %v17491_v57 = vld [vmem:[#allocation52_spill] sm:$0xff]  ;;  %v17495_v8 = vld [vmem:[#allocation18_spill] sm:$0xff] }
 0x4b5   :  { %17484 = vst [vmem:[#allocation82_spill] sm:$0xff] %v14999_v40  ;;  %v5607_v32 = vpack.c.bf16 %v5383_v46, %v5379_v51  ;;  %v5392_v49 = vmul.f32 %v5072_v53, %v2832_v62  ;;  %v2840_v29 = vmul.f32 0.5, %v17477_v23  ;;  %v15009_v38 = vmul.f32 %v3567_v50, %v14940_v7  ;;  %v17493_v46 = vld [vmem:[#allocation59_spill] sm:$0xff] }
 0x4b6   :  { %17486 = vst [vmem:[#allocation72_spill] sm:$0xff] %v15005_v30  ;;  %v3571_v16 = vmul.f32 %v3251_v9, %v14979_v33  ;;  %v4115_v2 = vadd.f32 %v17489_v47, %v17488_v60  ;;  %v4119_v19 = vadd.f32 %v17491_v57, %v17490_v58  ;;  %v15017_v41 = vmul.f32 %v3568_v6, %v14960_v13  ;;  %v17496_v9 = vld [vmem:[#allocation24_spill] sm:$0xff]  ;;  %v15027_v47 = vpop.f32.mrb[44].mxu1 }
 0x4b7   :  { %17487 = vst [vmem:[#allocation95_spill] sm:$0xff] %v15009_v38  ;;  %6765 = vmatmul.mubr.bf16.gmra.mrb[124].mxu1 %v5607_v32  ;;  %v5612_v40 = vpack.c.bf16 %v5392_v49, %v5388_v63  ;;  %v3255_v53 = vmul.f32 0.044715, %v15005_v30  ;;  %v15022_v23 = vadd.f32 %v17493_v46, %v12690_v4  ;;  %v3572_v25 = vmul.f32 %v3252_v26, %v14985_v43  ;;  %v17498_v32 = vld [vmem:[#allocation43_spill] sm:$0xff]  ;;  %v17500_v46 = vld [vmem:[#allocation8_spill] sm:$0xff]  ;;  %v15039_v26 = vpop.f32.mrb[45].mxu1 }
 0x4b8   :  { %17492 = vst [vmem:[#allocation97_spill] sm:$0xff] %v15017_v41  ;;  %v4435_v62 = vmul.f32 0.7978846, %v4115_v2  ;;  %v4439_v50 = vmul.f32 0.7978846, %v4119_v19  ;;  %v4124_v51 = vadd.f32 %v17496_v9, %v17495_v8  ;;  %17497 = vst [vmem:[#allocation50_spill] sm:$0xff] %v15027_v47  ;;  %v15037_v38 = vadd.f32 %v17500_v46, %v12686_v48 }
 0x4b9   :  { %17494 = vst [vmem:[#allocation85_spill] sm:$0xff] %v15022_v23  ;;  %6774 = vmatprep.mubr.bf16.mxu1 %v5612_v40  ;;  %v15030_v49 = vmul.f32 0.5, %v17488_v60  ;;  %v3256_v6 = vmul.f32 0.044715, %v15022_v23  ;;  %v17499_v63 = vld [vmem:[#allocation75_spill] sm:$0xff]  ;;  %17501 = vst [vmem:[#allocation41_spill] sm:$0xff] %v15039_v26  ;;  %v15042_v19 = vmul.f32 %v3571_v16, %v14979_v33  ;;  %v3575_v13 = vmul.f32 %v3255_v53, %v15005_v30 }
 0x4ba   :  { %v4128_v57 = vadd.f32 %v17499_v63, %v17498_v32  ;;  %v8899_v2 = vpop.eup %8898  ;;  %8906 = vtanh.f32 %v4435_v62  ;;  %v4444_v40 = vmul.f32 0.7978846, %v4124_v51  ;;  %v17503_v60 = vld [vmem:[#allocation90_spill] sm:$0xff]  ;;  %v15048_v7 = vpop.f32.mrb[46].mxu1  ;;  %v2839_v16 = vmul.f32 0.5, %v17490_v58 }
 0x4bb   :  { %17502 = vst [vmem:[#allocation93_spill] sm:$0xff] %v15042_v19  ;;  %v15046_v9 = vadd.f32 %v17503_v60, %v12690_v4  ;;  %17504 = vst [vmem:[#allocation44_spill] sm:$0xff] %v15048_v7  ;;  %v8901_v41 = vpop.eup %8900  ;;  %v5067_v63 = vadd.f32 1.0, %v8899_v2  ;;  %8908 = vtanh.f32 %v4439_v50  ;;  %v15051_v5 = vpop.f32.mrb[47].mxu1  ;;  %v3576_v62 = vmul.f32 %v3256_v6, %v15022_v23  ;;  %v17506_v2 = vld [vmem:[#allocation99_spill] sm:$0xff] }
 0x4bc   :  { %v4448_v46 = vmul.f32 0.7978846, %v4128_v57  ;;  %17505 = vst [vmem:[#allocation21_spill] sm:$0xff] %v15051_v5  ;;  %v8903_v3 = vpop.eup %8902  ;;  %v5071_v36 = vadd.f32 1.0, %v8901_v41  ;;  %8910 = vtanh.f32 %v4444_v40  ;;  %v3259_v19 = vmul.f32 0.044715, %v15037_v38 }
 0x4bd   :  { %v8905_v51 = vpop.eup %8904  ;;  %v5076_v60 = vadd.f32 1.0, %v8903_v3  ;;  %v15058_v33 = vadd.f32 %v17506_v2, %v12686_v48  ;;  %v5387_v53 = vmul.f32 %v5067_v63, %v14972_v27  ;;  %v3260_v41 = vmul.f32 0.044715, %v15046_v9  ;;  %v17511_v63 = vld [vmem:[#allocation26_spill] sm:$0xff] }
 0x4be   :  { %8912 = vtanh.f32 %v4448_v46  ;;  %v5391_v50 = vmul.f32 %v5071_v36, %v14975_v42  ;;  %v5080_v57 = vadd.f32 1.0, %v8905_v51  ;;  %v15064_v58 = vmul.f32 %v3572_v25, %v14985_v43  ;;  %v17510_v42 = vld [vmem:[#allocation47_spill] sm:$0xff]  ;;  %v17512_v25 = vld [vmem:[#allocation48_spill] sm:$0xff] }
 0x4bf   :  { %v15067_v6 = vmul.f32 %v3575_v13, %v15005_v30  ;;  %v2844_v3 = vmul.f32 0.5, %v17495_v8  ;;  %v2848_v40 = vmul.f32 0.5, %v17498_v32  ;;  %v5396_v2 = vmul.f32 %v5076_v60, %v2836_v11  ;;  %v17514_v13 = vld [vmem:[#allocation10_spill] sm:$0xff]  ;;  %v5737_v11 = vld [vmem:[%s16051_s6] sm:$0x3] }
 0x4c0   :  { %17507 = vst [vmem:[#allocation16_spill] sm:$0xff] %v15064_v58  ;;  %v5611_v46 = vpack.c.bf16 %v5391_v50, %v5387_v53  ;;  %v5400_v5 = vmul.f32 %v5080_v57, %v2840_v29  ;;  %v15072_v27 = vmul.f32 %v3576_v62, %v15022_v23  ;;  %v3579_v36 = vmul.f32 %v3259_v19, %v15037_v38  ;;  %v17513_v58 = vld [vmem:[#allocation46_spill] sm:$0xff]  ;;  %v17516_v62 = vld [vmem:[#allocation87_spill] sm:$0xff] }
 0x4c1   :  { %17508 = vst [vmem:[#allocation81_spill] sm:$0xff] %v15067_v6  ;;  %v4123_v51 = vadd.f32 %v17511_v63, %v17510_v42  ;;  %v4127_v43 = vadd.f32 %v17513_v58, %v17512_v25  ;;  %v15081_v6 = vadd.f32 %v17514_v13, %v12690_v4  ;;  %v3580_v8 = vmul.f32 %v3260_v41, %v15046_v9  ;;  %v17515_v19 = vld [vmem:[#allocation22_spill] sm:$0xff]  ;;  %v17517_v13 = vld [vmem:[#allocation91_spill] sm:$0xff]  ;;  %v17519_v41 = vld [vmem:[#allocation29_spill] sm:$0xff] }
 0x4c2   :  { %17509 = vst [vmem:[#allocation11_spill] sm:$0xff] %v15072_v27  ;;  %6775 = vmatmul.mubr.bf16.gmra.mrb[128].mxu1 %v5611_v46  ;;  %v5616_v29 = vpack.c.bf16 %v5400_v5, %v5396_v2  ;;  %v3263_v32 = vmul.f32 0.044715, %v15058_v33  ;;  %v4132_v60 = vadd.f32 %v17516_v62, %v17515_v19  ;;  %v15091_v53 = vmul.f32 0.5, %v17510_v42  ;;  %v17518_v46 = vld [vmem:[#allocation64_spill] sm:$0xff]  ;;  %v15106_v42 = vpop.f32.mrb[48].mxu1 }
 0x4c3   :  { %v15094_v50 = vmul.f32 0.5, %v17512_v25  ;;  %v4443_v57 = vmul.f32 0.7978846, %v4123_v51  ;;  %v4447_v58 = vmul.f32 0.7978846, %v4127_v43  ;;  %v4136_v5 = vadd.f32 %v17518_v46, %v17517_v13  ;;  %17522 = vst [vmem:[#allocation107_spill] sm:$0xff] %v15106_v42 }
 0x4c4   :  { %v8907_v63 = vpop.eup %8906  ;;  %6784 = vmatprep.mubr.bf16.mxu1 %v5616_v29  ;;  %v4452_v2 = vmul.f32 0.7978846, %v4132_v60  ;;  %v17520_v30 = vsub.s32 0, %v17519_v41  ;;  %v17521_v62 = vsub.s32 1, %v17519_v41  ;;  %v3264_v43 = vmul.f32 0.044715, %v15081_v6 }
 0x4c5   :  { %v8909_v25 = vpop.eup %8908  ;;  %v5075_v7 = vadd.f32 1.0, %v8907_v63  ;;  %8914 = vtanh.f32 %v4443_v57  ;;  %v17523_v51 = vld [vmem:[#allocation89_spill] sm:$0xff]  ;;  %v15113_v60 = vpop.f32.mrb[49].mxu1  ;;  %v4456_v26 = vmul.f32 0.7978846, %v4136_v5  ;;  %v3583_v42 = vmul.f32 %v3263_v32, %v15058_v33 }
 0x4c6   :  { %v15100_v27 = vrot.slane %v5737_v11, %v17520_v30  ;;  %v15104_v23 = vrot.slane %v5737_v11, %v17521_v62  ;;  %v15111_v29 = vadd.f32 %v17523_v51, %v12686_v48  ;;  %17524 = vst [vmem:[#allocation111_spill] sm:$0xff] %v15113_v60  ;;  %v8911_v46 = vpop.eup %8910  ;;  %v5079_v30 = vadd.f32 1.0, %v8909_v25  ;;  %v15117_v41 = vpop.f32.mrb[50].mxu1 }
 0x4c7   :  { %8916 = vtanh.f32 %v4447_v58  ;;  %v5395_v57 = vmul.f32 %v5075_v7, %v15030_v49  ;;  %v5084_v63 = vadd.f32 1.0, %v8911_v46  ;;  %v15121_v51 = vpop.f32.mrb[51].mxu1  ;;  %v3584_v58 = vmul.f32 %v3264_v43, %v15081_v6  ;;  %v17530_v46 = vld [vmem:[#allocation5_spill] sm:$0xff] }
 0x4c8   :  { %v7734_v11 = vadd.f32 %v14848_v44, %v15100_v27  ;;  %v8913_v62 = vpop.eup %8912  ;;  %8918 = vtanh.f32 %v4452_v2  ;;  %v5399_v47 = vmul.f32 %v5079_v30, %v2839_v16  ;;  %v7735_v44 = vadd.f32 %v14860_v37, %v15104_v23 }
 0x4c9   :  { %v5088_v60 = vadd.f32 1.0, %v8913_v62  ;;  %8920 = vtanh.f32 %v4456_v26  ;;  %v7736_v7 = vadd.f32 %v14865_v59, %v15100_v27  ;;  %v3267_v49 = vmul.f32 0.044715, %v15111_v29 }
 0x4ca   :  { %7110 = vst [vmem:[%s16052_s7] sm:$0xff] %v7734_v11  ;;  %v7737_v32 = vadd.f32 %v14869_v15, %v15104_v23  ;;  %v5615_v16 = vpack.c.bf16 %v5399_v47, %v5395_v57  ;;  %v5404_v5 = vmul.f32 %v5084_v63, %v2844_v3  ;;  %v15135_v2 = vmul.f32 %v3579_v36, %v15037_v38  ;;  %v17525_v15 = vld [vmem:[#allocation55_spill] sm:$0xff]  ;;  %v17526_v3 = vld [vmem:[#allocation80_spill] sm:$0xff] }
 0x4cb   :  { %v5408_v26 = vmul.f32 %v5088_v60, %v2848_v40  ;;  %7112 = vst [vmem:[%s16052_s7 + $0x8] sm:$0xff] %v7735_v44  ;;  %v15141_v37 = vmul.f32 %v3580_v8, %v15046_v9  ;;  %v2852_v59 = vmul.f32 0.5, %v17515_v19  ;;  %7114 = vst [vmem:[%s16052_s7 + $0x10] sm:$0xff] %v7736_v7  ;;  %v15152_v47 = vadd.f32 %v17525_v15, %v12690_v4  ;;  %v17527_v40 = vld [vmem:[#allocation54_spill] sm:$0xff]  ;;  %v17528_v19 = vld [vmem:[#allocation57_spill] sm:$0xff]  ;;  %v15170_v44 = vpop.f32.mrb[52].mxu1 }
 0x4cc   :  { %7116 = vst [vmem:[%s16052_s7 + $0x18] sm:$0xff] %v7737_v32  ;;  %v4131_v36 = vadd.f32 %v17527_v40, %v17526_v3  ;;  %6785 = vmatmul.mubr.bf16.gmra.mrb[132].mxu1 %v5615_v16  ;;  %v3587_v25 = vmul.f32 %v3267_v49, %v15111_v29  ;;  %v15159_v43 = vadd.f32 %v17528_v19, %v12686_v48  ;;  %v17529_v60 = vld [vmem:[#allocation25_spill] sm:$0xff]  ;;  %v2856_v57 = vmul.f32 0.5, %v17517_v13  ;;  %v15182_v32 = vpop.f32.mrb[53].mxu1 }
 0x4cd   :  { %v5620_v8 = vpack.c.bf16 %v5408_v26, %v5404_v5  ;;  %v4135_v30 = vadd.f32 %v17530_v46, %v17529_v60  ;;  %v15164_v11 = vmul.f32 %v3583_v42, %v15058_v33  ;;  %v15167_v62 = vmul.f32 %v3584_v58, %v15081_v6  ;;  %v15189_v26 = vpop.f32.mrb[54].mxu1 }
 0x4ce   :  { %v4451_v63 = vmul.f32 0.7978846, %v4131_v36  ;;  %v15173_v7 = vmul.f32 0.5, %v17526_v3  ;;  %v15176_v48 = vmul.f32 0.5, %v17529_v60  ;;  %v15180_v42 = vadd.f32 %v14544_v17, %v12690_v4  ;;  %v15195_v17 = vpop.f32.mrb[55].mxu1 }
 0x4cf   :  { %6794 = vmatprep.mubr.bf16.mxu1 %v5620_v8  ;;  %v4455_v49 = vmul.f32 0.7978846, %v4135_v30  ;;  %v8915_v58 = vpop.eup %8914  ;;  %v3268_v13 = vmul.f32 0.044715, %v15152_v47  ;;  %v4140_v16 = vadd.f32 %v14539_v14, %v14466_v55  ;;  %v4144_v5 = vadd.f32 %v14556_v35, %v14498_v54 }
 0x4d0   :  { %8922 = vtanh.f32 %v4451_v63  ;;  %v5083_v3 = vadd.f32 1.0, %v8915_v58  ;;  %v15192_v40 = vmul.f32 %v3587_v25, %v15111_v29  ;;  %v3271_v4 = vmul.f32 0.044715, %v15159_v43 }
 0x4d1   :  { %v8917_v15 = vpop.eup %8916  ;;  %8924 = vtanh.f32 %v4455_v49  ;;  %v15198_v19 = vmul.f32 0.5, %v14466_v55  ;;  %v4460_v14 = vmul.f32 0.7978846, %v4140_v16  ;;  %v4464_v60 = vmul.f32 0.7978846, %v4144_v5 }
 0x4d2   :  { %v8919_v36 = vpop.eup %8918  ;;  %v5087_v8 = vadd.f32 1.0, %v8917_v15  ;;  %v3272_v30 = vmul.f32 0.044715, %v15180_v42  ;;  %v7738_v25 = vadd.f32 %v14916_v0, %v15100_v27  ;;  %v7739_v63 = vadd.f32 %v14922_v21, %v15104_v23 }
 0x4d3   :  { %v8921_v35 = vpop.eup %8920  ;;  %v5092_v46 = vadd.f32 1.0, %v8919_v36  ;;  %v5403_v49 = vmul.f32 %v5083_v3, %v15091_v53  ;;  %8926 = vtanh.f32 %v4460_v14  ;;  %v3588_v55 = vmul.f32 %v3268_v13, %v15152_v47  ;;  %v17532_v36 = vld [vmem:[#allocation42_spill] sm:$0xff] }
 0x4d4   :  { %v5407_v58 = vmul.f32 %v5087_v8, %v15094_v50  ;;  %v5096_v15 = vadd.f32 1.0, %v8921_v35  ;;  %8928 = vtanh.f32 %v4464_v60  ;;  %7118 = vst [vmem:[%s16052_s7 + $0x20] sm:$0xff] %v7738_v25  ;;  %7120 = vst [vmem:[%s16052_s7 + $0x28] sm:$0xff] %v7739_v63  ;;  %v7740_v0 = vadd.f32 %v14927_v28, %v15100_v27  ;;  %v17531_v28 = vld [vmem:[#allocation30_spill] sm:$0xff]  ;;  %v17533_v8 = vld [vmem:[#allocation67_spill] sm:$0xff] }
 0x4d5   :  { %v7741_v21 = vadd.f32 %v14932_v10, %v15104_v23  ;;  %v5412_v50 = vmul.f32 %v5092_v46, %v2852_v59  ;;  %v3591_v13 = vmul.f32 %v3271_v4, %v15159_v43  ;;  %v3592_v5 = vmul.f32 %v3272_v30, %v15180_v42  ;;  %v17534_v59 = vld [vmem:[#allocation70_spill] sm:$0xff] }
 0x4d6   :  { %v5619_v53 = vpack.c.bf16 %v5407_v58, %v5403_v49  ;;  %v5416_v16 = vmul.f32 %v5096_v15, %v2856_v57  ;;  %v2864_v3 = vmul.f32 0.5, %v14498_v54  ;;  %7122 = vst [vmem:[%s16052_s7 + $0x30] sm:$0xff] %v7740_v0  ;;  %v4139_v10 = vadd.f32 %v17532_v36, %v17531_v28 }
 0x4d7   :  { %7124 = vst [vmem:[%s16052_s7 + $0x38] sm:$0xff] %v7741_v21  ;;  %v4143_v57 = vadd.f32 %v17534_v59, %v17533_v8  ;;  %v4148_v14 = vadd.f32 %v14600_v34, %v14524_v22  ;;  %v4152_v54 = vadd.f32 %v14621_v24, %v14560_v18  ;;  %v7742_v60 = vadd.f32 %v14966_v31, %v15100_v27  ;;  %v15241_v63 = vpop.f32.mrb[56].mxu1  ;;  %v17536_v21 = vld [vmem:[#allocation32_spill] sm:$0xff] }
 0x4d8   :  { %6795 = vmatmul.mubr.bf16.gmra.mrb[136].mxu1 %v5619_v53  ;;  %v5624_v4 = vpack.c.bf16 %v5416_v16, %v5412_v50  ;;  %v4459_v35 = vmul.f32 0.7978846, %v4139_v10  ;;  %v7743_v30 = vadd.f32 %v14981_v61, %v15104_v23  ;;  %v7744_v25 = vadd.f32 %v14987_v39, %v15100_v27  ;;  %v15251_v61 = vpop.f32.mrb[57].mxu1 }
 0x4d9   :  { %v4463_v46 = vmul.f32 0.7978846, %v4143_v57  ;;  %v15244_v34 = vmul.f32 %v3588_v55, %v15152_v47  ;;  %v4468_v58 = vmul.f32 0.7978846, %v4148_v14  ;;  %v4472_v24 = vmul.f32 0.7978846, %v4152_v54 }
 0x4da   :  { %v8923_v49 = vpop.eup %8922  ;;  %6804 = vmatprep.mubr.bf16.mxu1 %v5624_v4  ;;  %7126 = vst [vmem:[%s16052_s7 + $0x40] sm:$0xff] %v7742_v60  ;;  %v7745_v31 = vadd.f32 %v14993_v45, %v15104_v23  ;;  %v15254_v39 = vmul.f32 %v3591_v13, %v15159_v43  ;;  %8930 = vtanh.f32 %v4459_v35  ;;  %7128 = vst [vmem:[%s16052_s7 + $0x48] sm:$0xff] %v7743_v30  ;;  %v17535_v55 = vld [vmem:[#allocation61_spill] sm:$0xff]  ;;  %v15264_v45 = vpop.f32.mrb[58].mxu1  ;;  %v17537_v13 = vld [vmem:[#allocation60_spill] sm:$0xff]  ;;  %v15278_v57 = vmul.f32 0.5, %v17531_v28 }
 0x4db   :  { %v8925_v15 = vpop.eup %8924  ;;  %v5091_v0 = vadd.f32 1.0, %v8923_v49  ;;  %7130 = vst [vmem:[%s16052_s7 + $0x50] sm:$0xff] %v7744_v25  ;;  %v4147_v53 = vadd.f32 %v17536_v21, %v17535_v55  ;;  %v15267_v16 = vmul.f32 %v3592_v5, %v15180_v42  ;;  %8932 = vtanh.f32 %v4463_v46  ;;  %v15274_v10 = vpop.f32.mrb[59].mxu1 }
 0x4dc   :  { %v5095_v50 = vadd.f32 1.0, %v8925_v15  ;;  %7132 = vst [vmem:[%s16052_s7 + $0x58] sm:$0xff] %v7745_v31  ;;  %v4151_v36 = vadd.f32 %v17537_v13, %v14532_v20  ;;  %8934 = vtanh.f32 %v4468_v58  ;;  %v4156_v60 = vadd.f32 %v14658_v56, %v14590_v1  ;;  %v17539_v56 = vld [vmem:[#allocation41_spill] sm:$0xff]  ;;  %v17540_v15 = vld [vmem:[#allocation44_spill] sm:$0xff]  ;;  %v17542_v13 = vld [vmem:[#allocation94_spill] sm:$0xff] }
 0x4dd   :  { %v5411_v59 = vmul.f32 %v5091_v0, %v15173_v7  ;;  %v4467_v4 = vmul.f32 0.7978846, %v4147_v53  ;;  %v8927_v14 = vpop.eup %8926  ;;  %8936 = vtanh.f32 %v4472_v24  ;;  %v4160_v30 = vadd.f32 %v14669_v12, %v14614_v52  ;;  %v17538_v7 = vld [vmem:[#allocation50_spill] sm:$0xff]  ;;  %v17541_v53 = vld [vmem:[#allocation21_spill] sm:$0xff] }
 0x4de   :  { %v5415_v5 = vmul.f32 %v5095_v50, %v15176_v48  ;;  %v4471_v54 = vmul.f32 0.7978846, %v4151_v36  ;;  %v8929_v35 = vpop.eup %8928  ;;  %v5100_v46 = vadd.f32 1.0, %v8927_v14  ;;  %v7746_v28 = vadd.f32 %v17538_v7, %v15100_v27  ;;  %v17543_v36 = vld [vmem:[#allocation88_spill] sm:$0xff] }
 0x4df   :  { %8938 = vtanh.f32 %v4467_v4  ;;  %v5104_v49 = vadd.f32 1.0, %v8929_v35  ;;  %v4476_v58 = vmul.f32 0.7978846, %v4156_v60  ;;  %v2863_v48 = vmul.f32 0.5, %v17533_v8  ;;  %v17546_v60 = vld [vmem:[#allocation73_spill] sm:$0xff]  ;;  %v17547_v35 = vld [vmem:[#allocation74_spill] sm:$0xff] }
 0x4e0   :  { %v5623_v25 = vpack.c.bf16 %v5415_v5, %v5411_v59  ;;  %8940 = vtanh.f32 %v4471_v54  ;;  %v4480_v24 = vmul.f32 0.7978846, %v4160_v30  ;;  %7134 = vst [vmem:[%s16052_s7 + $0x60] sm:$0xff] %v7746_v28  ;;  %v7747_v31 = vadd.f32 %v17539_v56, %v15104_v23  ;;  %v17550_v56 = vld [vmem:[#allocation107_spill] sm:$0xff] }
 0x4e1   :  { %v7748_v12 = vadd.f32 %v17540_v15, %v15100_v27  ;;  %v5420_v0 = vmul.f32 %v5100_v46, %v15198_v19  ;;  %v5424_v21 = vmul.f32 %v5104_v49, %v2864_v3  ;;  %8942 = vtanh.f32 %v4476_v58  ;;  %v17544_v19 = vld [vmem:[#allocation33_spill] sm:$0xff]  ;;  %v15309_v14 = vpop.f32.mrb[60].mxu1  ;;  %v17548_v49 = vld [vmem:[#allocation58_spill] sm:$0xff]  ;;  %v17549_v58 = vld [vmem:[#allocation103_spill] sm:$0xff] }
 0x4e2   :  { %6805 = vmatmul.mubr.bf16.gmra.mrb[140].mxu1 %v5623_v25  ;;  %v7749_v50 = vadd.f32 %v17541_v53, %v15104_v23  ;;  %v2868_v8 = vmul.f32 0.5, %v14524_v22  ;;  %8944 = vtanh.f32 %v4480_v24  ;;  %7136 = vst [vmem:[%s16052_s7 + $0x68] sm:$0xff] %v7747_v31  ;;  %v4155_v59 = vadd.f32 %v17543_v36, %v17542_v13  ;;  %v17545_v3 = vld [vmem:[#allocation69_spill] sm:$0xff]  ;;  %v15318_v30 = vpop.f32.mrb[61].mxu1 }
 0x4e3   :  { %7138 = vst [vmem:[%s16052_s7 + $0x70] sm:$0xff] %v7748_v12  ;;  %v4159_v4 = vadd.f32 %v17545_v3, %v17544_v19  ;;  %v5628_v5 = vpack.c.bf16 %v5424_v21, %v5420_v0  ;;  %v2872_v22 = vmul.f32 0.5, %v14560_v18  ;;  %v2867_v54 = vmul.f32 0.5, %v17535_v55  ;;  %v15324_v31 = vpop.f32.mrb[62].mxu1  ;;  %v17551_v0 = vld [vmem:[#allocation111_spill] sm:$0xff] }
 0x4e4   :  { %7140 = vst [vmem:[%s16052_s7 + $0x78] sm:$0xff] %v7749_v50  ;;  %v4164_v46 = vadd.f32 %v17547_v35, %v17546_v60  ;;  %v8931_v7 = vpop.eup %8930  ;;  %v4475_v28 = vmul.f32 0.7978846, %v4155_v59  ;;  %v4168_v24 = vadd.f32 %v17549_v58, %v17548_v49  ;;  %v7750_v18 = vadd.f32 %v17550_v56, %v15100_v27  ;;  %v15330_v50 = vpop.f32.mrb[63].mxu1  ;;  %v17553_v56 = vld [vmem:[#allocation38_spill] sm:$0xff] }
 0x4e5   :  { %v4479_v25 = vmul.f32 0.7978846, %v4159_v4  ;;  %v8933_v55 = vpop.eup %8932  ;;  %6814 = vmatprep.mubr.bf16.mxu1 %v5628_v5  ;;  %v5099_v15 = vadd.f32 1.0, %v8931_v7  ;;  %v7751_v21 = vadd.f32 %v17551_v0, %v15104_v23  ;;  %v7752_v53 = vadd.f32 %v15117_v41, %v15100_v27 }
 0x4e6   :  { %v4484_v12 = vmul.f32 0.7978846, %v4164_v46  ;;  %v8935_v36 = vpop.eup %8934  ;;  %v5103_v59 = vadd.f32 1.0, %v8933_v55  ;;  %8946 = vtanh.f32 %v4475_v28  ;;  %v4488_v3 = vmul.f32 0.7978846, %v4168_v24  ;;  %7142 = vst [vmem:[%s16052_s7 + $0x80] sm:$0xff] %v7750_v18 }
 0x4e7   :  { %v7753_v4 = vadd.f32 %v15121_v51, %v15104_v23  ;;  %v8937_v5 = vpop.eup %8936  ;;  %v5108_v35 = vadd.f32 1.0, %v8935_v36  ;;  %v2871_v46 = vmul.f32 0.5, %v14532_v20  ;;  %v2876_v7 = vmul.f32 0.5, %v14590_v1  ;;  %7144 = vst [vmem:[%s16052_s7 + $0x88] sm:$0xff] %v7751_v21  ;;  %7146 = vst [vmem:[%s16052_s7 + $0x90] sm:$0xff] %v7752_v53  ;;  %v17552_v24 = vld [vmem:[#allocation83_spill] sm:$0xff] }
 0x4e8   :  { %8948 = vtanh.f32 %v4479_v25  ;;  %v5419_v28 = vmul.f32 %v5099_v15, %v15278_v57  ;;  %v5423_v58 = vmul.f32 %v5103_v59, %v2863_v48  ;;  %v5112_v51 = vadd.f32 1.0, %v8937_v5  ;;  %v17554_v53 = vld [vmem:[#allocation31_spill] sm:$0xff]  ;;  %v17555_v36 = vld [vmem:[#allocation84_spill] sm:$0xff] }
 0x4e9   :  { %v8939_v41 = vpop.eup %8938  ;;  %8950 = vtanh.f32 %v4484_v12  ;;  %7148 = vst [vmem:[%s16052_s7 + $0x98] sm:$0xff] %v7753_v4  ;;  %v5428_v1 = vmul.f32 %v5108_v35, %v2868_v8  ;;  %v4163_v18 = vadd.f32 %v17553_v56, %v17552_v24  ;;  %v4167_v57 = vadd.f32 %v17555_v36, %v17554_v53 }
 0x4ea   :  { %v8941_v20 = vpop.eup %8940  ;;  %v5107_v25 = vadd.f32 1.0, %v8939_v41  ;;  %8952 = vtanh.f32 %v4488_v3  ;;  %v5627_v55 = vpack.c.bf16 %v5423_v58, %v5419_v28  ;;  %v5432_v0 = vmul.f32 %v5112_v51, %v2872_v22  ;;  %v15355_v5 = vpop.f32.mrb[64].mxu1  ;;  %v17556_v51 = vld [vmem:[#allocation20_spill] sm:$0xff] }
 0x4eb   :  { %v5111_v21 = vadd.f32 1.0, %v8941_v20  ;;  %v8943_v48 = vpop.eup %8942  ;;  %v2880_v12 = vmul.f32 0.5, %v14614_v52  ;;  %v2875_v59 = vmul.f32 0.5, %v17542_v13  ;;  %v4483_v4 = vmul.f32 0.7978846, %v4163_v18  ;;  %v15357_v22 = vpop.f32.mrb[65].mxu1 }
 0x4ec   :  { %v5427_v15 = vmul.f32 %v5107_v25, %v2867_v54  ;;  %v8945_v8 = vpop.eup %8944  ;;  %6815 = vmatmul.mubr.bf16.gmra.mrb[144].mxu1 %v5627_v55  ;;  %v5632_v3 = vpack.c.bf16 %v5432_v0, %v5428_v1  ;;  %v5116_v41 = vadd.f32 1.0, %v8943_v48  ;;  %v4487_v28 = vmul.f32 0.7978846, %v4167_v57  ;;  %v17557_v20 = vld [vmem:[#allocation13_spill] sm:$0xff]  ;;  %v17558_v25 = vld [vmem:[#allocation39_spill] sm:$0xff]  ;;  %v17559_v52 = vld [vmem:[#allocation66_spill] sm:$0xff] }
 0x4ed   :  { %v5431_v35 = vmul.f32 %v5111_v21, %v2871_v46  ;;  %v5120_v58 = vadd.f32 1.0, %v8945_v8  ;;  %8954 = vtanh.f32 %v4483_v4  ;;  %v4172_v54 = vadd.f32 %v17557_v20, %v17556_v51  ;;  %v15363_v13 = vpop.f32.mrb[66].mxu1 }
 0x4ee   :  { %v4176_v56 = vadd.f32 %v17559_v52, %v17558_v25  ;;  %6824 = vmatprep.mubr.bf16.mxu1 %v5632_v3  ;;  %v5436_v36 = vmul.f32 %v5116_v41, %v2876_v7  ;;  %8956 = vtanh.f32 %v4487_v28  ;;  %v7754_v46 = vadd.f32 %v15170_v44, %v15100_v27  ;;  %v15367_v1 = vpop.f32.mrb[67].mxu1 }
 0x4ef   :  { %v5631_v18 = vpack.c.bf16 %v5431_v35, %v5427_v15  ;;  %v5440_v55 = vmul.f32 %v5120_v58, %v2880_v12  ;;  %v4492_v0 = vmul.f32 0.7978846, %v4172_v54  ;;  %v7755_v57 = vadd.f32 %v15182_v32, %v15104_v23  ;;  %v17560_v32 = vld [vmem:[#allocation104_spill] sm:$0xff] }
 0x4f0   :  { %v4496_v21 = vmul.f32 0.7978846, %v4176_v56  ;;  %v8947_v48 = vpop.eup %8946  ;;  %v2879_v4 = vmul.f32 0.5, %v17544_v19  ;;  %v2884_v8 = vmul.f32 0.5, %v17546_v60  ;;  %7150 = vst [vmem:[%s16052_s7 + $0xa0] sm:$0xff] %v7754_v46  ;;  %v7756_v44 = vadd.f32 %v15189_v26, %v15100_v27  ;;  %v17561_v19 = vld [vmem:[#allocation51_spill] sm:$0xff] }
 0x4f1   :  { %v7757_v7 = vadd.f32 %v15195_v17, %v15104_v23  ;;  %v5636_v12 = vpack.c.bf16 %v5440_v55, %v5436_v36  ;;  %v5115_v3 = vadd.f32 1.0, %v8947_v48  ;;  %8958 = vtanh.f32 %v4492_v0  ;;  %7152 = vst [vmem:[%s16052_s7 + $0xa8] sm:$0xff] %v7755_v57  ;;  %v17562_v26 = vld [vmem:[#allocation14_spill] sm:$0xff]  ;;  %v17563_v17 = vld [vmem:[#allocation40_spill] sm:$0xff]  ;;  %v17564_v0 = vld [vmem:[#allocation19_spill] sm:$0xff] }
 0x4f2   :  { %v8949_v15 = vpop.eup %8948  ;;  %v4171_v60 = vadd.f32 %v17561_v19, %v17560_v32  ;;  %v2888_v28 = vmul.f32 0.5, %v17548_v49  ;;  %8960 = vtanh.f32 %v4496_v21  ;;  %7154 = vst [vmem:[%s16052_s7 + $0xb0] sm:$0xff] %v7756_v44  ;;  %v4175_v58 = vadd.f32 %v17563_v17, %v17562_v26  ;;  %v17565_v21 = vld [vmem:[#allocation96_spill] sm:$0xff]  ;;  %v17566_v44 = vld [vmem:[#allocation63_spill] sm:$0xff] }
 0x4f3   :  { %v8951_v35 = vpop.eup %8950  ;;  %v5119_v41 = vadd.f32 1.0, %v8949_v15  ;;  %7156 = vst [vmem:[%s16052_s7 + $0xb8] sm:$0xff] %v7757_v7  ;;  %v5435_v54 = vmul.f32 %v5115_v3, %v2875_v59  ;;  %v2883_v56 = vmul.f32 0.5, %v17552_v24  ;;  %v4180_v57 = vadd.f32 %v17565_v21, %v17564_v0  ;;  %v17567_v7 = vld [vmem:[#allocation86_spill] sm:$0xff] }
 0x4f4   :  { %v8953_v20 = vpop.eup %8952  ;;  %v5124_v52 = vadd.f32 1.0, %v8951_v35  ;;  %v4491_v36 = vmul.f32 0.7978846, %v4171_v60  ;;  %6825 = vmatmul.mubr.bf16.gmra.mrb[148].mxu1 %v5631_v18  ;;  %v4495_v55 = vmul.f32 0.7978846, %v4175_v58  ;;  %v4184_v15 = vadd.f32 %v17567_v7, %v17566_v44 }
 0x4f5   :  { %v5439_v49 = vmul.f32 %v5119_v41, %v2879_v4  ;;  %v5128_v46 = vadd.f32 1.0, %v8953_v20  ;;  %6834 = vmatprep.mubr.bf16.mxu1 %v5636_v12  ;;  %v7758_v59 = vadd.f32 %v15241_v63, %v15100_v27  ;;  %v4500_v24 = vmul.f32 0.7978846, %v4180_v57 }
 0x4f6   :  { %v5444_v48 = vmul.f32 %v5124_v52, %v2884_v8  ;;  %8962 = vtanh.f32 %v4491_v36  ;;  %v4504_v4 = vmul.f32 0.7978846, %v4184_v15  ;;  %v7759_v8 = vadd.f32 %v15251_v61, %v15104_v23  ;;  %v15410_v63 = vpop.f32.mrb[68].mxu1  ;;  %v17568_v61 = vld [vmem:[#allocation98_spill] sm:$0xff]  ;;  %v17572_v15 = vld [vmem:[#allocation37_spill] sm:$0xff] }
 0x4f7   :  { %v5635_v3 = vpack.c.bf16 %v5439_v49, %v5435_v54  ;;  %v5448_v19 = vmul.f32 %v5128_v46, %v2888_v28  ;;  %8964 = vtanh.f32 %v4495_v55  ;;  %v8955_v18 = vpop.eup %8954  ;;  %7158 = vst [vmem:[%s16052_s7 + $0xc0] sm:$0xff] %v7758_v59  ;;  %v7760_v12 = vadd.f32 %v15264_v45, %v15100_v27  ;;  %v15413_v58 = vpop.f32.mrb[69].mxu1  ;;  %v17569_v45 = vld [vmem:[#allocation101_spill] sm:$0xff]  ;;  %v17570_v49 = vld [vmem:[#allocation3_spill] sm:$0xff]  ;;  %v17573_v59 = vld [vmem:[#allocation4_spill] sm:$0xff] }
 0x4f8   :  { %v7761_v60 = vadd.f32 %v15274_v10, %v15104_v23  ;;  %v8957_v35 = vpop.eup %8956  ;;  %v2887_v28 = vmul.f32 0.5, %v17554_v53  ;;  %v5123_v17 = vadd.f32 1.0, %v8955_v18  ;;  %8966 = vtanh.f32 %v4500_v24  ;;  %7160 = vst [vmem:[%s16052_s7 + $0xc8] sm:$0xff] %v7759_v8  ;;  %v15427_v53 = vpop.f32.mrb[70].mxu1  ;;  %v17571_v46 = vld [vmem:[#allocation9_spill] sm:$0xff]  ;;  %v17574_v24 = vld [vmem:[#allocation100_spill] sm:$0xff] }
 0x4f9   :  { %v5640_v41 = vpack.c.bf16 %v5448_v19, %v5444_v48  ;;  %v5127_v20 = vadd.f32 1.0, %v8957_v35  ;;  %v2892_v54 = vmul.f32 0.5, %v17556_v51  ;;  %8968 = vtanh.f32 %v4504_v4  ;;  %7162 = vst [vmem:[%s16052_s7 + $0xd0] sm:$0xff] %v7760_v12  ;;  %v15433_v21 = vpop.f32.mrb[71].mxu1  ;;  %v17575_v18 = vld [vmem:[#allocation102_spill] sm:$0xff] }
 0x4fa   :  { %7164 = vst [vmem:[%s16052_s7 + $0xd8] sm:$0xff] %v7761_v60  ;;  %v4179_v10 = vadd.f32 %v17569_v45, %v17568_v61  ;;  %v5443_v52 = vmul.f32 %v5123_v17, %v2883_v56  ;;  %v2896_v51 = vmul.f32 0.5, %v17558_v25  ;;  %v2891_v36 = vmul.f32 0.5, %v17560_v32 }
 0x4fb   :  { %v4183_v55 = vadd.f32 %v17571_v46, %v17570_v49  ;;  %v8959_v57 = vpop.eup %8958  ;;  %v5447_v48 = vmul.f32 %v5127_v20, %v2887_v28  ;;  %v4188_v19 = vadd.f32 %v17573_v59, %v17572_v15  ;;  %v4192_v4 = vadd.f32 %v17575_v18, %v17574_v24  ;;  %v17576_v46 = vld [vmem:[#allocation15_spill] sm:$0xff] }
 0x4fc   :  { %v4499_v7 = vmul.f32 0.7978846, %v4179_v10  ;;  %v8961_v8 = vpop.eup %8960  ;;  %6835 = vmatmul.mubr.bf16.gmra.mrb[152].mxu1 %v5635_v3  ;;  %v5132_v56 = vadd.f32 1.0, %v8959_v57  ;;  %v7762_v32 = vadd.f32 %v15309_v14, %v15100_v27  ;;  %v7763_v12 = vadd.f32 %v15318_v30, %v15104_v23 }
 0x4fd   :  { %v4503_v25 = vmul.f32 0.7978846, %v4183_v55  ;;  %6844 = vmatprep.mubr.bf16.mxu1 %v5640_v41  ;;  %v5639_v60 = vpack.c.bf16 %v5447_v48, %v5443_v52  ;;  %v5136_v35 = vadd.f32 1.0, %v8961_v8  ;;  %v4508_v28 = vmul.f32 0.7978846, %v4188_v19  ;;  %v17577_v55 = vld [vmem:[#allocation108_spill] sm:$0xff] }
 0x4fe   :  { %8970 = vtanh.f32 %v4499_v7  ;;  %v2895_v17 = vmul.f32 0.5, %v17562_v26  ;;  %v4512_v20 = vmul.f32 0.7978846, %v4192_v4  ;;  %7166 = vst [vmem:[%s16052_s7 + $0xe0] sm:$0xff] %v7762_v32  ;;  %7168 = vst [vmem:[%s16052_s7 + $0xe8] sm:$0xff] %v7763_v12  ;;  %v7764_v14 = vadd.f32 %v15324_v31, %v15100_v27 }
 0x4ff   :  { %8972 = vtanh.f32 %v4503_v25  ;;  %v5452_v3 = vmul.f32 %v5132_v56, %v2892_v54  ;;  %v5456_v41 = vmul.f32 %v5136_v35, %v2896_v51  ;;  %v7765_v26 = vadd.f32 %v15330_v50, %v15104_v23  ;;  %v15460_v31 = vpop.f32.mrb[72].mxu1  ;;  %v17578_v50 = vld [vmem:[#allocation36_spill] sm:$0xff]  ;;  %v17580_v56 = vld [vmem:[#allocation105_spill] sm:$0xff] }
 0x500   :  { %v8963_v30 = vpop.eup %8962  ;;  %8974 = vtanh.f32 %v4508_v28  ;;  %v2900_v52 = vmul.f32 0.5, %v17564_v0  ;;  %7170 = vst [vmem:[%s16052_s7 + $0xf0] sm:$0xff] %v7764_v14  ;;  %v4187_v57 = vadd.f32 %v17577_v55, %v17576_v46  ;;  %v2904_v48 = vmul.f32 0.5, %v17566_v44  ;;  %v17579_v0 = vld [vmem:[#allocation106_spill] sm:$0xff]  ;;  %v15468_v59 = vpop.f32.mrb[73].mxu1  ;;  %v17581_v25 = vld [vmem:[#allocation65_spill] sm:$0xff] }
 0x501   :  { %v8965_v45 = vpop.eup %8964  ;;  %v5131_v10 = vadd.f32 1.0, %v8963_v30  ;;  %8976 = vtanh.f32 %v4512_v20  ;;  %v5644_v54 = vpack.c.bf16 %v5456_v41, %v5452_v3  ;;  %7172 = vst [vmem:[%s16052_s7 + $0xf8] sm:$0xff] %v7765_v26  ;;  %v4191_v7 = vadd.f32 %v17579_v0, %v17578_v50  ;;  %v15473_v12 = vpop.f32.mrb[74].mxu1  ;;  %v17582_v14 = vld [vmem:[#allocation12_spill] sm:$0xff]  ;;  %v17583_v30 = vld [vmem:[#allocation113_spill] sm:$0xff] }
 0x502   :  { %v5135_v51 = vadd.f32 1.0, %v8965_v45  ;;  %v8967_v19 = vpop.eup %8966  ;;  %v2899_v4 = vmul.f32 0.5, %v17568_v61  ;;  %v4507_v8 = vmul.f32 0.7978846, %v4187_v57  ;;  %v4196_v32 = vadd.f32 %v17581_v25, %v17580_v56  ;;  %v15477_v41 = vpop.f32.mrb[75].mxu1 }
 0x503   :  { %v5451_v18 = vmul.f32 %v5131_v10, %v2891_v36  ;;  %v8969_v44 = vpop.eup %8968  ;;  %v5140_v28 = vadd.f32 1.0, %v8967_v19  ;;  %v4511_v20 = vmul.f32 0.7978846, %v4191_v7  ;;  %v4200_v3 = vadd.f32 %v17583_v30, %v17582_v14  ;;  %v17586_v19 = vld [vmem:[#allocation68_spill] sm:$0xff] }
 0x504   :  { %v5455_v35 = vmul.f32 %v5135_v51, %v2895_v17  ;;  %6845 = vmatmul.mubr.bf16.gmra.mrb[156].mxu1 %v5639_v60  ;;  %v5144_v26 = vadd.f32 1.0, %v8969_v44  ;;  %8978 = vtanh.f32 %v4507_v8  ;;  %v4516_v36 = vmul.f32 0.7978846, %v4196_v32  ;;  %v17588_v44 = vld [vmem:[#allocation6_spill] sm:$0xff] }
 0x505   :  { %v7766_v61 = vadd.f32 %v15355_v5, %v15100_v27  ;;  %6854 = vmatprep.mubr.bf16.mxu1 %v5644_v54  ;;  %v5460_v10 = vmul.f32 %v5140_v28, %v2900_v52  ;;  %8980 = vtanh.f32 %v4511_v20  ;;  %v4520_v55 = vmul.f32 0.7978846, %v4200_v3 }
 0x506   :  { %v5643_v45 = vpack.c.bf16 %v5455_v35, %v5451_v18  ;;  %v5464_v17 = vmul.f32 %v5144_v26, %v2904_v48  ;;  %8982 = vtanh.f32 %v4516_v36  ;;  %v7767_v60 = vadd.f32 %v15357_v22, %v15104_v23  ;;  %v17584_v22 = vld [vmem:[#allocation35_spill] sm:$0xff]  ;;  %v17589_v35 = vld [vmem:[#allocation82_spill] sm:$0xff] }
 0x507   :  { %7174 = vst [vmem:[%s16052_s7 + $0x100] sm:$0xff] %v7766_v61  ;;  %v7768_v57 = vadd.f32 %v15363_v13, %v15100_v27  ;;  %v2903_v5 = vmul.f32 0.5, %v17570_v49  ;;  %v2908_v54 = vmul.f32 0.5, %v17572_v15  ;;  %8984 = vtanh.f32 %v4520_v55  ;;  %v17585_v13 = vld [vmem:[#allocation34_spill] sm:$0xff]  ;;  %v17587_v15 = vld [vmem:[#allocation77_spill] sm:$0xff] }
 0x508   :  { %v8971_v51 = vpop.eup %8970  ;;  %v7769_v52 = vadd.f32 %v15367_v1, %v15104_v23  ;;  %v5648_v0 = vpack.c.bf16 %v5464_v17, %v5460_v10  ;;  %7176 = vst [vmem:[%s16052_s7 + $0x108] sm:$0xff] %v7767_v60  ;;  %v4195_v49 = vadd.f32 %v17585_v13, %v17584_v22  ;;  %v4199_v18 = vadd.f32 %v17587_v15, %v17586_v19  ;;  %v17590_v55 = vld [vmem:[#allocation62_spill] sm:$0xff]  ;;  %v17591_v17 = vld [vmem:[#allocation97_spill] sm:$0xff] }
 0x509   :  { %v8973_v48 = vpop.eup %8972  ;;  %v5139_v7 = vadd.f32 1.0, %v8971_v51  ;;  %7178 = vst [vmem:[%s16052_s7 + $0x110] sm:$0xff] %v7768_v57  ;;  %v2912_v1 = vmul.f32 0.5, %v17574_v24  ;;  %v2907_v32 = vmul.f32 0.5, %v17576_v46  ;;  %v4204_v28 = vadd.f32 %v17589_v35, %v17588_v44 }
 0x50a   :  { %v8975_v8 = vpop.eup %8974  ;;  %v5143_v25 = vadd.f32 1.0, %v8973_v48  ;;  %7180 = vst [vmem:[%s16052_s7 + $0x118] sm:$0xff] %v7769_v52  ;;  %v4515_v26 = vmul.f32 0.7978846, %v4195_v49  ;;  %v4519_v36 = vmul.f32 0.7978846, %v4199_v18  ;;  %v4208_v60 = vadd.f32 %v17591_v17, %v17590_v55 }
 0x50b   :  { %v8977_v20 = vpop.eup %8976  ;;  %v5459_v30 = vmul.f32 %v5139_v7, %v2899_v4  ;;  %v5148_v3 = vadd.f32 1.0, %v8975_v8  ;;  %v4524_v24 = vmul.f32 0.7978846, %v4204_v28  ;;  %v7770_v57 = vadd.f32 %v15410_v63, %v15100_v27  ;;  %v15515_v52 = vpop.f32.mrb[76].mxu1  ;;  %v17594_v28 = vld [vmem:[#allocation56_spill] sm:$0xff] }
 0x50c   :  { %v5463_v61 = vmul.f32 %v5143_v25, %v2903_v5  ;;  %v5152_v10 = vadd.f32 1.0, %v8977_v20  ;;  %6855 = vmatmul.mubr.bf16.gmra.mrb[160].mxu1 %v5643_v45  ;;  %8986 = vtanh.f32 %v4515_v26  ;;  %v7771_v51 = vadd.f32 %v15413_v58, %v15104_v23  ;;  %v15517_v7 = vpop.f32.mrb[77].mxu1 }
 0x50d   :  { %v5468_v46 = vmul.f32 %v5148_v3, %v2908_v54  ;;  %6864 = vmatprep.mubr.bf16.mxu1 %v5648_v0  ;;  %8988 = vtanh.f32 %v4519_v36  ;;  %v4528_v5 = vmul.f32 0.7978846, %v4208_v60  ;;  %v2911_v45 = vmul.f32 0.5, %v17578_v50  ;;  %7182 = vst [vmem:[%s16052_s7 + $0x120] sm:$0xff] %v7770_v57  ;;  %v15530_v54 = vpop.f32.mrb[78].mxu1 }
 0x50e   :  { %v5647_v4 = vpack.c.bf16 %v5463_v61, %v5459_v30  ;;  %v5472_v48 = vmul.f32 %v5152_v10, %v2912_v1  ;;  %v8979_v13 = vpop.eup %8978  ;;  %8990 = vtanh.f32 %v4524_v24  ;;  %7184 = vst [vmem:[%s16052_s7 + $0x128] sm:$0xff] %v7771_v51  ;;  %v7772_v63 = vadd.f32 %v15427_v53, %v15100_v27  ;;  %v15533_v18 = vpop.f32.mrb[79].mxu1  ;;  %v17592_v53 = vld [vmem:[#allocation78_spill] sm:$0xff]  ;;  %v17597_v61 = vld [vmem:[#allocation16_spill] sm:$0xff]  ;;  %v17598_v51 = vld [vmem:[#allocation85_spill] sm:$0xff] }
 0x50f   :  { %v7773_v58 = vadd.f32 %v15433_v21, %v15104_v23  ;;  %v8981_v0 = vpop.eup %8980  ;;  %v5147_v50 = vadd.f32 1.0, %v8979_v13  ;;  %v2916_v15 = vmul.f32 0.5, %v17580_v56  ;;  %8992 = vtanh.f32 %v4528_v5  ;;  %v17593_v21 = vld [vmem:[#allocation92_spill] sm:$0xff]  ;;  %v17595_v56 = vld [vmem:[#allocation95_spill] sm:$0xff] }
 0x510   :  { %v5652_v49 = vpack.c.bf16 %v5472_v48, %v5468_v46  ;;  %v8983_v8 = vpop.eup %8982  ;;  %v5151_v25 = vadd.f32 1.0, %v8981_v0  ;;  %v2920_v1 = vmul.f32 0.5, %v17582_v14  ;;  %7186 = vst [vmem:[%s16052_s7 + $0x130] sm:$0xff] %v7772_v63  ;;  %v4203_v35 = vadd.f32 %v17593_v21, %v17592_v53  ;;  %v17596_v14 = vld [vmem:[#allocation7_spill] sm:$0xff] }
 0x511   :  { %7188 = vst [vmem:[%s16052_s7 + $0x138] sm:$0xff] %v7773_v58  ;;  %v4207_v20 = vadd.f32 %v17595_v56, %v17594_v28  ;;  %v8985_v30 = vpop.eup %8984  ;;  %v5467_v3 = vmul.f32 %v5147_v50, %v2907_v32  ;;  %v5156_v26 = vadd.f32 1.0, %v8983_v8  ;;  %v2915_v36 = vmul.f32 0.5, %v17584_v22  ;;  %v17599_v48 = vld [vmem:[#allocation11_spill] sm:$0xff] }
 0x512   :  { %v4212_v10 = vadd.f32 %v17597_v61, %v17596_v14  ;;  %v5471_v17 = vmul.f32 %v5151_v25, %v2911_v45  ;;  %v5160_v60 = vadd.f32 1.0, %v8985_v30  ;;  %v4523_v24 = vmul.f32 0.7978846, %v4203_v35 }
 0x513   :  { %v4527_v46 = vmul.f32 0.7978846, %v4207_v20  ;;  %v5476_v57 = vmul.f32 %v5156_v26, %v2916_v15  ;;  %v4216_v5 = vadd.f32 %v17599_v48, %v17598_v51  ;;  %v7774_v63 = vadd.f32 %v15460_v31, %v15100_v27 }
 0x514   :  { %v4532_v13 = vmul.f32 0.7978846, %v4212_v10  ;;  %6865 = vmatmul.mubr.bf16.gmra.mrb[164].mxu1 %v5647_v4  ;;  %v5651_v32 = vpack.c.bf16 %v5471_v17, %v5467_v3  ;;  %v5480_v58 = vmul.f32 %v5160_v60, %v2920_v1  ;;  %8994 = vtanh.f32 %v4523_v24  ;;  %v17603_v1 = vld [vmem:[#allocation81_spill] sm:$0xff] }
 0x515   :  { %v7775_v22 = vadd.f32 %v15468_v59, %v15104_v23  ;;  %6874 = vmatprep.mubr.bf16.mxu1 %v5652_v49  ;;  %8996 = vtanh.f32 %v4527_v46  ;;  %v4536_v45 = vmul.f32 0.7978846, %v4216_v5  ;;  %7190 = vst [vmem:[%s16052_s7 + $0x140] sm:$0xff] %v7774_v63  ;;  %v7776_v0 = vadd.f32 %v15473_v12, %v15100_v27  ;;  %v6656_v59 = vpop.f32.mrb[80].mxu1  ;;  %v17600_v12 = vld [vmem:[#allocation27_spill] sm:$0xff] }
 0x516   :  { %v7777_v31 = vadd.f32 %v15477_v41, %v15104_v23  ;;  %v8987_v4 = vpop.eup %8986  ;;  %v5656_v50 = vpack.c.bf16 %v5480_v58, %v5476_v57  ;;  %v2919_v15 = vmul.f32 0.5, %v17586_v19  ;;  %v2924_v8 = vmul.f32 0.5, %v17588_v44  ;;  %v17601_v41 = vld [vmem:[#allocation93_spill] sm:$0xff]  ;;  %v17602_v44 = vld [vmem:[#allocation72_spill] sm:$0xff]  ;;  %v15577_v35 = vpop.f32.mrb[81].mxu1 }
 0x517   :  { %8998 = vtanh.f32 %v4532_v13  ;;  %7192 = vst [vmem:[%s16052_s7 + $0x148] sm:$0xff] %v7775_v22  ;;  %v8989_v49 = vpop.eup %8988  ;;  %v5155_v25 = vadd.f32 1.0, %v8987_v4  ;;  %7194 = vst [vmem:[%s16052_s7 + $0x150] sm:$0xff] %v7776_v0  ;;  %v4211_v19 = vadd.f32 %v17601_v41, %v17600_v12  ;;  %v4215_v21 = vadd.f32 %v17603_v1, %v17602_v44  ;;  %v15583_v61 = vpop.f32.mrb[82].mxu1 }
 0x518   :  { %9000 = vtanh.f32 %v4536_v45  ;;  %7196 = vst [vmem:[%s16052_s7 + $0x158] sm:$0xff] %v7777_v31  ;;  %v8991_v56 = vpop.eup %8990  ;;  %v5159_v20 = vadd.f32 1.0, %v8989_v49  ;;  %v2928_v30 = vmul.f32 0.5, %v17590_v55  ;;  %v2923_v3 = vmul.f32 0.5, %v17592_v53  ;;  %v15585_v57 = vpop.f32.mrb[83].mxu1 }
 0x519   :  { %v4220_v26 = vadd.f32 %v15141_v37, %v15046_v9  ;;  %v8993_v10 = vpop.eup %8992  ;;  %v5475_v17 = vmul.f32 %v5155_v25, %v2915_v36  ;;  %v5164_v60 = vadd.f32 1.0, %v8991_v56  ;;  %v4531_v24 = vmul.f32 0.7978846, %v4211_v19 }
 0x51a   :  { %v4535_v46 = vmul.f32 0.7978846, %v4215_v21  ;;  %v5479_v48 = vmul.f32 %v5159_v20, %v2919_v15  ;;  %v5168_v5 = vadd.f32 1.0, %v8993_v10  ;;  %v4224_v13 = vadd.f32 %v15167_v62, %v15081_v6 }
 0x51b   :  { %v4540_v55 = vmul.f32 0.7978846, %v4220_v26  ;;  %v5484_v63 = vmul.f32 %v5164_v60, %v2924_v8  ;;  %9002 = vtanh.f32 %v4531_v24  ;;  %v7778_v37 = vadd.f32 %v15515_v52, %v15100_v27 }
 0x51c   :  { %v7779_v53 = vadd.f32 %v15517_v7, %v15104_v23  ;;  %6875 = vmatmul.mubr.bf16.gmra.mrb[168].mxu1 %v5651_v32  ;;  %v5655_v36 = vpack.c.bf16 %v5479_v48, %v5475_v17  ;;  %v5488_v58 = vmul.f32 %v5168_v5, %v2928_v30  ;;  %9004 = vtanh.f32 %v4535_v46 }
 0x51d   :  { %v4544_v22 = vmul.f32 0.7978846, %v4224_v13  ;;  %6884 = vmatprep.mubr.bf16.mxu1 %v5656_v50  ;;  %v2927_v45 = vmul.f32 0.5, %v17594_v28  ;;  %9006 = vtanh.f32 %v4540_v55  ;;  %7198 = vst [vmem:[%s16052_s7 + $0x160] sm:$0xff] %v7778_v37  ;;  %v7780_v62 = vadd.f32 %v15530_v54, %v15100_v27 }
 0x51e   :  { %7200 = vst [vmem:[%s16052_s7 + $0x168] sm:$0xff] %v7779_v53  ;;  %v7781_v52 = vadd.f32 %v15533_v18, %v15104_v23  ;;  %v8995_v7 = vpop.eup %8994  ;;  %v5660_v32 = vpack.c.bf16 %v5488_v58, %v5484_v63  ;;  %v2932_v0 = vmul.f32 0.5, %v17596_v14  ;;  %v4219_v28 = vadd.f32 %v15135_v2, %v15037_v38 }
 0x51f   :  { %9008 = vtanh.f32 %v4544_v22  ;;  %v8997_v31 = vpop.eup %8996  ;;  %v5163_v4 = vadd.f32 1.0, %v8995_v7  ;;  %v2936_v50 = vmul.f32 0.5, %v17598_v51  ;;  %v2931_v15 = vmul.f32 0.5, %v17600_v12  ;;  %7202 = vst [vmem:[%s16052_s7 + $0x170] sm:$0xff] %v7780_v62 }
 0x520   :  { %7204 = vst [vmem:[%s16052_s7 + $0x178] sm:$0xff] %v7781_v52  ;;  %v4223_v54 = vadd.f32 %v15164_v11, %v15058_v33  ;;  %v5167_v14 = vadd.f32 1.0, %v8997_v31  ;;  %v4539_v2 = vmul.f32 0.7978846, %v4219_v28  ;;  %v4228_v8 = vadd.f32 %v15244_v34, %v15152_v47 }
 0x521   :  { %v8999_v18 = vpop.eup %8998  ;;  %v4232_v51 = vadd.f32 %v15267_v16, %v15180_v42  ;;  %v5483_v25 = vmul.f32 %v5163_v4, %v2923_v3  ;;  %v7782_v19 = vadd.f32 %v6656_v59, %v15100_v27  ;;  %v6666_v1 = vpop.f32.mrb[84].mxu1  ;;  %v7783_v34 = vadd.f32 %v15577_v35, %v15104_v23 }
 0x522   :  { %v9001_v49 = vpop.eup %9000  ;;  %v5172_v12 = vadd.f32 1.0, %v8999_v18  ;;  %v4543_v41 = vmul.f32 0.7978846, %v4223_v54  ;;  %v5487_v21 = vmul.f32 %v5167_v14, %v2927_v45  ;;  %9010 = vtanh.f32 %v4539_v2  ;;  %v6668_v20 = vpop.f32.mrb[85].mxu1 }
 0x523   :  { %v5176_v56 = vadd.f32 1.0, %v9001_v49  ;;  %v4548_v11 = vmul.f32 0.7978846, %v4228_v8  ;;  %v4552_v26 = vmul.f32 0.7978846, %v4232_v51  ;;  %7206 = vst [vmem:[%s16052_s7 + $0x180] sm:$0xff] %v7782_v19  ;;  %v7784_v10 = vadd.f32 %v15583_v61, %v15100_v27 }
 0x524   :  { %v5492_v30 = vmul.f32 %v5172_v12, %v2932_v0  ;;  %9012 = vtanh.f32 %v4543_v41  ;;  %v6670_v16 = vpop.f32.mrb[86].mxu1  ;;  %6885 = vmatmul.mubr.bf16.gmra.mrb[172].mxu1 %v5655_v36  ;;  %v5659_v3 = vpack.c.bf16 %v5487_v21, %v5483_v25  ;;  %v2935_v24 = vmul.f32 0.5, %v17602_v44  ;;  %7208 = vst [vmem:[%s16052_s7 + $0x188] sm:$0xff] %v7783_v34 }
 0x525   :  { %v5496_v59 = vmul.f32 %v5176_v56, %v2936_v50  ;;  %9014 = vtanh.f32 %v4548_v11  ;;  %v6672_v17 = vpop.f32.mrb[87].mxu1  ;;  %v9003_v60 = vpop.eup %9002  ;;  %6894 = vmatprep.mubr.bf16.mxu1 %v5660_v32  ;;  %v2940_v46 = vmul.f32 0.5, %v15046_v9  ;;  %v7785_v35 = vadd.f32 %v15585_v57, %v15104_v23  ;;  %7210 = vst [vmem:[%s16052_s7 + $0x190] sm:$0xff] %v7784_v10 }
 0x526   :  { %9016 = vtanh.f32 %v4552_v26  ;;  %v9005_v48 = vpop.eup %9004  ;;  %v5171_v13 = vadd.f32 1.0, %v9003_v60  ;;  %v4227_v44 = vadd.f32 %v15192_v40, %v15111_v29  ;;  %v4231_v9 = vadd.f32 %v15254_v39, %v15159_v43 }
 0x527   :  { %v5664_v5 = vpack.c.bf16 %v5496_v59, %v5492_v30  ;;  %v9007_v61 = vpop.eup %9006  ;;  %v5175_v55 = vadd.f32 1.0, %v9005_v48  ;;  %7212 = vst [vmem:[%s16052_s7 + $0x198] sm:$0xff] %v7785_v35  ;;  %v7786_v57 = vadd.f32 %v6666_v1, %v15100_v27  ;;  %v7787_v63 = vadd.f32 %v6668_v20, %v15104_v23 }
 0x528   :  { %v7788_v37 = vadd.f32 %v6670_v16, %v15100_v27  ;;  %v2944_v36 = vmul.f32 0.5, %v15081_v6  ;;  %v5180_v58 = vadd.f32 1.0, %v9007_v61  ;;  %v4547_v40 = vmul.f32 0.7978846, %v4227_v44 }
 0x529   :  { %v9009_v53 = vpop.eup %9008  ;;  %v4551_v22 = vmul.f32 0.7978846, %v4231_v9  ;;  %v5491_v45 = vmul.f32 %v5171_v13, %v2931_v15  ;;  %v5495_v39 = vmul.f32 %v5175_v55, %v2935_v24  ;;  %7214 = vst [vmem:[%s16052_s7 + $0x1a0] sm:$0xff] %v7786_v57  ;;  %7216 = vst [vmem:[%s16052_s7 + $0x1a8] sm:$0xff] %v7787_v63  ;;  %v7789_v6 = vadd.f32 %v6672_v17, %v15104_v23 }
 0x52a   :  { %v5184_v62 = vadd.f32 1.0, %v9009_v53  ;;  %7218 = vst [vmem:[%s16052_s7 + $0x1b0] sm:$0xff] %v7788_v37  ;;  %9018 = vtanh.f32 %v4547_v40  ;;  %v5500_v7 = vmul.f32 %v5180_v58, %v2940_v46  ;;  %v2939_v14 = vmul.f32 0.5, %v15037_v38 }
 0x52b   :  { %v5663_v52 = vpack.c.bf16 %v5495_v39, %v5491_v45  ;;  %9020 = vtanh.f32 %v4551_v22  ;;  %7220 = vst [vmem:[%s16052_s7 + $0x1b8] sm:$0xff] %v7789_v6  ;;  %v6676_v28 = vpop.f32.mrb[88].mxu1  ;;  %v2943_v2 = vmul.f32 0.5, %v15058_v33  ;;  %v2948_v12 = vmul.f32 0.5, %v15152_v47 }
 0x52c   :  { %v5504_v32 = vmul.f32 %v5184_v62, %v2944_v36  ;;  %v9011_v0 = vpop.eup %9010  ;;  %6895 = vmatmul.mubr.bf16.gmra.mrb[176].mxu1 %v5659_v3  ;;  %v7790_v15 = vadd.f32 %v6676_v28, %v15100_v27  ;;  %v6678_v54 = vpop.f32.mrb[89].mxu1  ;;  %v2952_v41 = vmul.f32 0.5, %v15180_v42  ;;  %v2947_v3 = vmul.f32 0.5, %v15111_v29 }
 0x52d   :  { %6904 = vmatprep.mubr.bf16.mxu1 %v5664_v5  ;;  %v5179_v50 = vadd.f32 1.0, %v9011_v0  ;;  %v7791_v51 = vadd.f32 %v6678_v54, %v15104_v23  ;;  %v6680_v49 = vpop.f32.mrb[90].mxu1  ;;  %v2951_v59 = vmul.f32 0.5, %v15159_v43 }
 0x52e   :  { %v9013_v31 = vpop.eup %9012  ;;  %v5668_v4 = vpack.c.bf16 %v5504_v32, %v5500_v7  ;;  %7222 = vst [vmem:[%s16052_s7 + $0x1c0] sm:$0xff] %v7790_v15  ;;  %v7792_v1 = vadd.f32 %v6680_v49, %v15100_v27  ;;  %v6682_v21 = vpop.f32.mrb[91].mxu1 }
 0x52f   :  { %v9015_v18 = vpop.eup %9014  ;;  %v5183_v8 = vadd.f32 1.0, %v9013_v31  ;;  %v5499_v38 = vmul.f32 %v5179_v50, %v2939_v14  ;;  %7224 = vst [vmem:[%s16052_s7 + $0x1c8] sm:$0xff] %v7791_v51  ;;  %v7793_v11 = vadd.f32 %v6682_v21, %v15104_v23 }
 0x530   :  { %v9017_v25 = vpop.eup %9016  ;;  %v5188_v19 = vadd.f32 1.0, %v9015_v18  ;;  %7226 = vst [vmem:[%s16052_s7 + $0x1d0] sm:$0xff] %v7792_v1 }
 0x531   :  { %v5503_v56 = vmul.f32 %v5183_v8, %v2943_v2  ;;  %v5192_v33 = vadd.f32 1.0, %v9017_v25  ;;  %7228 = vst [vmem:[%s16052_s7 + $0x1d8] sm:$0xff] %v7793_v11 }
 0x532   :  { %v5508_v42 = vmul.f32 %v5188_v19, %v2948_v12 }
 0x533   :  { %v5667_v47 = vpack.c.bf16 %v5503_v56, %v5499_v38  ;;  %v5512_v20 = vmul.f32 %v5192_v33, %v2952_v41 }
 0x534   :  { %v9019_v30 = vpop.eup %9018  ;;  %6905 = vmatmul.mubr.bf16.gmra.mrb[180].mxu1 %v5663_v52 }
 0x535   :  { %v5672_v26 = vpack.c.bf16 %v5512_v20, %v5508_v42  ;;  %v9021_v34 = vpop.eup %9020  ;;  %6914 = vmatprep.mubr.bf16.mxu1 %v5668_v4  ;;  %v5187_v16 = vadd.f32 1.0, %v9019_v30  ;;  %v6686_v17 = vpop.f32.mrb[92].mxu1 }
 0x536   :  { %v5191_v10 = vadd.f32 1.0, %v9021_v34  ;;  %v7794_v60 = vadd.f32 %v6686_v17, %v15100_v27  ;;  %v6688_v24 = vpop.f32.mrb[93].mxu1 }
 0x537   :  { %v5507_v46 = vmul.f32 %v5187_v16, %v2947_v3  ;;  %v7795_v48 = vadd.f32 %v6688_v24, %v15104_v23  ;;  %v6690_v5 = vpop.f32.mrb[94].mxu1 }
 0x538   :  { %v5511_v35 = vmul.f32 %v5191_v10, %v2951_v59  ;;  %7230 = vst [vmem:[%s16052_s7 + $0x1e0] sm:$0xff] %v7794_v60  ;;  %v7796_v13 = vadd.f32 %v6690_v5, %v15100_v27  ;;  %v6692_v44 = vpop.f32.mrb[95].mxu1 }
 0x539   :  { %7232 = vst [vmem:[%s16052_s7 + $0x1e8] sm:$0xff] %v7795_v48  ;;  %v7797_v43 = vadd.f32 %v6692_v44, %v15104_v23 }
 0x53a   :  { %v5671_v29 = vpack.c.bf16 %v5511_v35, %v5507_v46  ;;  %7234 = vst [vmem:[%s16052_s7 + $0x1f0] sm:$0xff] %v7796_v13 }
 0x53b   :  { %7236 = vst [vmem:[%s16052_s7 + $0x1f8] sm:$0xff] %v7797_v43 }
 0x53c   :  { %6915 = vmatmul.mubr.bf16.gmra.mrb[192].mxu1 %v5667_v47 }
 0x53d   :  { %6924 = vmatprep.mubr.bf16.mxu1 %v5672_v26 }
 0x541   :  { %v6696_v9 = vpop.f32.mrb[96].mxu1 }
 0x542   :  { %v7798_v61 = vadd.f32 %v6696_v9, %v15100_v27  ;;  %v6698_v55 = vpop.f32.mrb[97].mxu1 }
 0x543   :  { %v7799_v57 = vadd.f32 %v6698_v55, %v15104_v23  ;;  %v6700_v63 = vpop.f32.mrb[98].mxu1 }
 0x544   :  { %6925 = vmatmul.mubr.bf16.gmra.mrb[196].mxu1 %v5671_v29  ;;  %7238 = vst [vmem:[%s16052_s7 + $0x200] sm:$0xff] %v7798_v61  ;;  %v7800_v37 = vadd.f32 %v6700_v63, %v15100_v27  ;;  %v6702_v53 = vpop.f32.mrb[99].mxu1 }
 0x545   :  { %7240 = vst [vmem:[%s16052_s7 + $0x208] sm:$0xff] %v7799_v57  ;;  %v7801_v36 = vadd.f32 %v6702_v53, %v15104_v23 }
 0x546   :  { %7242 = vst [vmem:[%s16052_s7 + $0x210] sm:$0xff] %v7800_v37 }
 0x547   :  { %7244 = vst [vmem:[%s16052_s7 + $0x218] sm:$0xff] %v7801_v36 }
 0x54b   :  { %v6706_v58 = vpop.f32.mrb[100].mxu1 }
 0x54c   :  { %v7802_v40 = vadd.f32 %v6706_v58, %v15100_v27  ;;  %v6708_v22 = vpop.f32.mrb[101].mxu1 }
 0x54d   :  { %v7803_v45 = vadd.f32 %v6708_v22, %v15104_v23  ;;  %v6710_v39 = vpop.f32.mrb[102].mxu1 }
 0x54e   :  { %7246 = vst [vmem:[%s16052_s7 + $0x220] sm:$0xff] %v7802_v40  ;;  %v7804_v62 = vadd.f32 %v6710_v39, %v15100_v27  ;;  %v6712_v6 = vpop.f32.mrb[103].mxu1 }
 0x54f   :  { %7248 = vst [vmem:[%s16052_s7 + $0x228] sm:$0xff] %v7803_v45  ;;  %v7805_v52 = vadd.f32 %v6712_v6, %v15104_v23 }
 0x550   :  { %7250 = vst [vmem:[%s16052_s7 + $0x230] sm:$0xff] %v7804_v62 }
 0x551   :  { %7252 = vst [vmem:[%s16052_s7 + $0x238] sm:$0xff] %v7805_v52 }
 0x554   :  { %v6716_v7 = vpop.f32.mrb[104].mxu1 }
 0x555   :  { %v7806_v32 = vadd.f32 %v6716_v7, %v15100_v27  ;;  %v6718_v0 = vpop.f32.mrb[105].mxu1 }
 0x556   :  { %v7807_v28 = vadd.f32 %v6718_v0, %v15104_v23  ;;  %v6720_v31 = vpop.f32.mrb[106].mxu1 }
 0x557   :  { %7254 = vst [vmem:[%s16052_s7 + $0x240] sm:$0xff] %v7806_v32  ;;  %v7808_v4 = vadd.f32 %v6720_v31, %v15100_v27  ;;  %v6722_v50 = vpop.f32.mrb[107].mxu1 }
 0x558   :  { %7256 = vst [vmem:[%s16052_s7 + $0x248] sm:$0xff] %v7807_v28  ;;  %v7809_v15 = vadd.f32 %v6722_v50, %v15104_v23 }
 0x559   :  { %7258 = vst [vmem:[%s16052_s7 + $0x250] sm:$0xff] %v7808_v4 }
 0x55a   :  { %7260 = vst [vmem:[%s16052_s7 + $0x258] sm:$0xff] %v7809_v15 }
 0x560   :  { %v6726_v54 = vpop.f32.mrb[108].mxu1 }
 0x561   :  { %v7810_v18 = vadd.f32 %v6726_v54, %v15100_v27  ;;  %v6728_v14 = vpop.f32.mrb[109].mxu1 }
 0x562   :  { %v7811_v2 = vadd.f32 %v6728_v14, %v15104_v23  ;;  %v6730_v8 = vpop.f32.mrb[110].mxu1 }
 0x563   :  { %7262 = vst [vmem:[%s16052_s7 + $0x260] sm:$0xff] %v7810_v18  ;;  %v7812_v51 = vadd.f32 %v6730_v8, %v15100_v27  ;;  %v6732_v49 = vpop.f32.mrb[111].mxu1 }
 0x564   :  { %7264 = vst [vmem:[%s16052_s7 + $0x268] sm:$0xff] %v7811_v2  ;;  %v7813_v25 = vadd.f32 %v6732_v49, %v15104_v23 }
 0x565   :  { %7266 = vst [vmem:[%s16052_s7 + $0x270] sm:$0xff] %v7812_v51 }
 0x566   :  { %7268 = vst [vmem:[%s16052_s7 + $0x278] sm:$0xff] %v7813_v25 }
 0x569   :  { %v6736_v12 = vpop.f32.mrb[112].mxu1 }
 0x56a   :  { %v7814_v41 = vadd.f32 %v6736_v12, %v15100_v27  ;;  %v6738_v19 = vpop.f32.mrb[113].mxu1 }
 0x56b   :  { %v7815_v1 = vadd.f32 %v6738_v19, %v15104_v23  ;;  %v6740_v21 = vpop.f32.mrb[114].mxu1 }
 0x56c   :  { %7270 = vst [vmem:[%s16052_s7 + $0x280] sm:$0xff] %v7814_v41  ;;  %v7816_v38 = vadd.f32 %v6740_v21, %v15100_v27  ;;  %v6742_v56 = vpop.f32.mrb[115].mxu1 }
 0x56d   :  { %7272 = vst [vmem:[%s16052_s7 + $0x288] sm:$0xff] %v7815_v1  ;;  %v7817_v33 = vadd.f32 %v6742_v56, %v15104_v23 }
 0x56e   :  { %7274 = vst [vmem:[%s16052_s7 + $0x290] sm:$0xff] %v7816_v38 }
 0x56f   :  { %7276 = vst [vmem:[%s16052_s7 + $0x298] sm:$0xff] %v7817_v33 }
 0x575   :  { %v6746_v11 = vpop.f32.mrb[116].mxu1 }
 0x576   :  { %v7818_v47 = vadd.f32 %v6746_v11, %v15100_v27  ;;  %v6748_v42 = vpop.f32.mrb[117].mxu1 }
 0x577   :  { %v7819_v20 = vadd.f32 %v6748_v42, %v15104_v23  ;;  %v6750_v30 = vpop.f32.mrb[118].mxu1 }
 0x578   :  { %7278 = vst [vmem:[%s16052_s7 + $0x2a0] sm:$0xff] %v7818_v47  ;;  %v7820_v26 = vadd.f32 %v6750_v30, %v15100_v27  ;;  %v6752_v34 = vpop.f32.mrb[119].mxu1 }
 0x579   :  { %7280 = vst [vmem:[%s16052_s7 + $0x2a8] sm:$0xff] %v7819_v20  ;;  %v7821_v16 = vadd.f32 %v6752_v34, %v15104_v23 }
 0x57a   :  { %7282 = vst [vmem:[%s16052_s7 + $0x2b0] sm:$0xff] %v7820_v26 }
 0x57b   :  { %7284 = vst [vmem:[%s16052_s7 + $0x2b8] sm:$0xff] %v7821_v16 }
 0x57f   :  { %v6756_v3 = vpop.f32.mrb[120].mxu1 }
 0x580   :  { %v7822_v59 = vadd.f32 %v6756_v3, %v15100_v27  ;;  %v6758_v10 = vpop.f32.mrb[121].mxu1 }
 0x581   :  { %v7823_v17 = vadd.f32 %v6758_v10, %v15104_v23  ;;  %v6760_v60 = vpop.f32.mrb[122].mxu1 }
 0x582   :  { %7286 = vst [vmem:[%s16052_s7 + $0x2c0] sm:$0xff] %v7822_v59  ;;  %v7824_v24 = vadd.f32 %v6760_v60, %v15100_v27  ;;  %v6762_v46 = vpop.f32.mrb[123].mxu1 }
 0x583   :  { %7288 = vst [vmem:[%s16052_s7 + $0x2c8] sm:$0xff] %v7823_v17  ;;  %v7825_v35 = vadd.f32 %v6762_v46, %v15104_v23 }
 0x584   :  { %7290 = vst [vmem:[%s16052_s7 + $0x2d0] sm:$0xff] %v7824_v24 }
 0x585   :  { %7292 = vst [vmem:[%s16052_s7 + $0x2d8] sm:$0xff] %v7825_v35 }
 0x58a   :  { %v6766_v48 = vpop.f32.mrb[124].mxu1 }
 0x58b   :  { %v7826_v5 = vadd.f32 %v6766_v48, %v15100_v27  ;;  %v6768_v13 = vpop.f32.mrb[125].mxu1 }
 0x58c   :  { %v7827_v44 = vadd.f32 %v6768_v13, %v15104_v23  ;;  %v6770_v29 = vpop.f32.mrb[126].mxu1 }
 0x58d   :  { %7294 = vst [vmem:[%s16052_s7 + $0x2e0] sm:$0xff] %v7826_v5  ;;  %v7828_v43 = vadd.f32 %v6770_v29, %v15100_v27  ;;  %v6772_v9 = vpop.f32.mrb[127].mxu1 }
 0x58e   :  { %7296 = vst [vmem:[%s16052_s7 + $0x2e8] sm:$0xff] %v7827_v44  ;;  %v7829_v61 = vadd.f32 %v6772_v9, %v15104_v23 }
 0x58f   :  { %7298 = vst [vmem:[%s16052_s7 + $0x2f0] sm:$0xff] %v7828_v43 }
 0x590   :  { %7300 = vst [vmem:[%s16052_s7 + $0x2f8] sm:$0xff] %v7829_v61 }
 0x595   :  { %v6776_v55 = vpop.f32.mrb[128].mxu1 }
 0x596   :  { %v7830_v57 = vadd.f32 %v6776_v55, %v15100_v27  ;;  %v6778_v63 = vpop.f32.mrb[129].mxu1 }
 0x597   :  { %v7831_v37 = vadd.f32 %v6778_v63, %v15104_v23  ;;  %v6780_v53 = vpop.f32.mrb[130].mxu1 }
 0x598   :  { %7302 = vst [vmem:[%s16052_s7 + $0x300] sm:$0xff] %v7830_v57  ;;  %v7832_v36 = vadd.f32 %v6780_v53, %v15100_v27  ;;  %v6782_v58 = vpop.f32.mrb[131].mxu1 }
 0x599   :  { %7304 = vst [vmem:[%s16052_s7 + $0x308] sm:$0xff] %v7831_v37  ;;  %v7833_v40 = vadd.f32 %v6782_v58, %v15104_v23 }
 0x59a   :  { %7306 = vst [vmem:[%s16052_s7 + $0x310] sm:$0xff] %v7832_v36 }
 0x59b   :  { %7308 = vst [vmem:[%s16052_s7 + $0x318] sm:$0xff] %v7833_v40 }
 0x59f   :  { %v6786_v22 = vpop.f32.mrb[132].mxu1 }
 0x5a0   :  { %v7834_v45 = vadd.f32 %v6786_v22, %v15100_v27  ;;  %v6788_v39 = vpop.f32.mrb[133].mxu1 }
 0x5a1   :  { %v7835_v62 = vadd.f32 %v6788_v39, %v15104_v23  ;;  %v6790_v6 = vpop.f32.mrb[134].mxu1 }
 0x5a2   :  { %7310 = vst [vmem:[%s16052_s7 + $0x320] sm:$0xff] %v7834_v45  ;;  %v7836_v52 = vadd.f32 %v6790_v6, %v15100_v27  ;;  %v6792_v7 = vpop.f32.mrb[135].mxu1 }
 0x5a3   :  { %7312 = vst [vmem:[%s16052_s7 + $0x328] sm:$0xff] %v7835_v62  ;;  %v7837_v32 = vadd.f32 %v6792_v7, %v15104_v23 }
 0x5a4   :  { %7314 = vst [vmem:[%s16052_s7 + $0x330] sm:$0xff] %v7836_v52 }
 0x5a5   :  { %7316 = vst [vmem:[%s16052_s7 + $0x338] sm:$0xff] %v7837_v32 }
 0x5ab   :  { %v6796_v0 = vpop.f32.mrb[136].mxu1 }
 0x5ac   :  { %v7838_v28 = vadd.f32 %v6796_v0, %v15100_v27  ;;  %v6798_v31 = vpop.f32.mrb[137].mxu1 }
 0x5ad   :  { %v7839_v4 = vadd.f32 %v6798_v31, %v15104_v23  ;;  %v6800_v50 = vpop.f32.mrb[138].mxu1 }
 0x5ae   :  { %7318 = vst [vmem:[%s16052_s7 + $0x340] sm:$0xff] %v7838_v28  ;;  %v7840_v15 = vadd.f32 %v6800_v50, %v15100_v27  ;;  %v6802_v54 = vpop.f32.mrb[139].mxu1 }
 0x5af   :  { %7320 = vst [vmem:[%s16052_s7 + $0x348] sm:$0xff] %v7839_v4  ;;  %v7841_v18 = vadd.f32 %v6802_v54, %v15104_v23 }
 0x5b0   :  { %7322 = vst [vmem:[%s16052_s7 + $0x350] sm:$0xff] %v7840_v15 }
 0x5b1   :  { %7324 = vst [vmem:[%s16052_s7 + $0x358] sm:$0xff] %v7841_v18 }
 0x5b5   :  { %v6806_v14 = vpop.f32.mrb[140].mxu1 }
 0x5b6   :  { %v7842_v2 = vadd.f32 %v6806_v14, %v15100_v27  ;;  %v6808_v8 = vpop.f32.mrb[141].mxu1 }
 0x5b7   :  { %v7843_v51 = vadd.f32 %v6808_v8, %v15104_v23  ;;  %v6810_v49 = vpop.f32.mrb[142].mxu1 }
 0x5b8   :  { %7326 = vst [vmem:[%s16052_s7 + $0x360] sm:$0xff] %v7842_v2  ;;  %v7844_v25 = vadd.f32 %v6810_v49, %v15100_v27  ;;  %v6812_v12 = vpop.f32.mrb[143].mxu1 }
 0x5b9   :  { %7328 = vst [vmem:[%s16052_s7 + $0x368] sm:$0xff] %v7843_v51  ;;  %v7845_v41 = vadd.f32 %v6812_v12, %v15104_v23 }
 0x5ba   :  { %7330 = vst [vmem:[%s16052_s7 + $0x370] sm:$0xff] %v7844_v25 }
 0x5bb   :  { %7332 = vst [vmem:[%s16052_s7 + $0x378] sm:$0xff] %v7845_v41 }
 0x5bf   :  { %v6816_v19 = vpop.f32.mrb[144].mxu1 }
 0x5c0   :  { %v7846_v1 = vadd.f32 %v6816_v19, %v15100_v27  ;;  %v6818_v21 = vpop.f32.mrb[145].mxu1 }
 0x5c1   :  { %v7847_v38 = vadd.f32 %v6818_v21, %v15104_v23  ;;  %v6820_v56 = vpop.f32.mrb[146].mxu1 }
 0x5c2   :  { %7334 = vst [vmem:[%s16052_s7 + $0x380] sm:$0xff] %v7846_v1  ;;  %v7848_v33 = vadd.f32 %v6820_v56, %v15100_v27  ;;  %v6822_v11 = vpop.f32.mrb[147].mxu1 }
 0x5c3   :  { %7336 = vst [vmem:[%s16052_s7 + $0x388] sm:$0xff] %v7847_v38  ;;  %v7849_v47 = vadd.f32 %v6822_v11, %v15104_v23 }
 0x5c4   :  { %7338 = vst [vmem:[%s16052_s7 + $0x390] sm:$0xff] %v7848_v33 }
 0x5c5   :  { %7340 = vst [vmem:[%s16052_s7 + $0x398] sm:$0xff] %v7849_v47 }
 0x5c7   :  { %v6826_v42 = vpop.f32.mrb[148].mxu1 }
 0x5c8   :  { %v7850_v20 = vadd.f32 %v6826_v42, %v15100_v27  ;;  %v6828_v30 = vpop.f32.mrb[149].mxu1 }
 0x5c9   :  { %v7851_v26 = vadd.f32 %v6828_v30, %v15104_v23  ;;  %v6830_v34 = vpop.f32.mrb[150].mxu1 }
 0x5ca   :  { %7342 = vst [vmem:[%s16052_s7 + $0x3a0] sm:$0xff] %v7850_v20  ;;  %v7852_v16 = vadd.f32 %v6830_v34, %v15100_v27  ;;  %v6832_v3 = vpop.f32.mrb[151].mxu1 }
 0x5cb   :  { %7344 = vst [vmem:[%s16052_s7 + $0x3a8] sm:$0xff] %v7851_v26  ;;  %v7853_v59 = vadd.f32 %v6832_v3, %v15104_v23 }
 0x5cc   :  { %7346 = vst [vmem:[%s16052_s7 + $0x3b0] sm:$0xff] %v7852_v16 }
 0x5cd   :  { %7348 = vst [vmem:[%s16052_s7 + $0x3b8] sm:$0xff] %v7853_v59 }
 0x5cf   :  { %v6836_v10 = vpop.f32.mrb[152].mxu1 }
 0x5d0   :  { %v7854_v17 = vadd.f32 %v6836_v10, %v15100_v27  ;;  %v6838_v60 = vpop.f32.mrb[153].mxu1 }
 0x5d1   :  { %v7855_v24 = vadd.f32 %v6838_v60, %v15104_v23  ;;  %v6840_v46 = vpop.f32.mrb[154].mxu1 }
 0x5d2   :  { %7350 = vst [vmem:[%s16052_s7 + $0x3c0] sm:$0xff] %v7854_v17  ;;  %v7856_v35 = vadd.f32 %v6840_v46, %v15100_v27  ;;  %v6842_v48 = vpop.f32.mrb[155].mxu1 }
 0x5d3   :  { %7352 = vst [vmem:[%s16052_s7 + $0x3c8] sm:$0xff] %v7855_v24  ;;  %v7857_v5 = vadd.f32 %v6842_v48, %v15104_v23 }
 0x5d4   :  { %7354 = vst [vmem:[%s16052_s7 + $0x3d0] sm:$0xff] %v7856_v35 }
 0x5d5   :  { %7356 = vst [vmem:[%s16052_s7 + $0x3d8] sm:$0xff] %v7857_v5 }
 0x5d7   :  { %v6846_v13 = vpop.f32.mrb[156].mxu1 }
 0x5d8   :  { %v7858_v44 = vadd.f32 %v6846_v13, %v15100_v27  ;;  %v6848_v29 = vpop.f32.mrb[157].mxu1 }
 0x5d9   :  { %v7859_v43 = vadd.f32 %v6848_v29, %v15104_v23  ;;  %v6850_v9 = vpop.f32.mrb[158].mxu1 }
 0x5da   :  { %7358 = vst [vmem:[%s16052_s7 + $0x3e0] sm:$0xff] %v7858_v44  ;;  %v7860_v61 = vadd.f32 %v6850_v9, %v15100_v27  ;;  %v6852_v55 = vpop.f32.mrb[159].mxu1 }
 0x5db   :  { %7360 = vst [vmem:[%s16052_s7 + $0x3e8] sm:$0xff] %v7859_v43  ;;  %v7861_v57 = vadd.f32 %v6852_v55, %v15104_v23 }
 0x5dc   :  { %7362 = vst [vmem:[%s16052_s7 + $0x3f0] sm:$0xff] %v7860_v61 }
 0x5dd   :  { %7364 = vst [vmem:[%s16052_s7 + $0x3f8] sm:$0xff] %v7861_v57 }
 0x5df   :  { %v6856_v63 = vpop.f32.mrb[160].mxu1 }
 0x5e0   :  { %v7862_v37 = vadd.f32 %v6856_v63, %v15100_v27  ;;  %v6858_v53 = vpop.f32.mrb[161].mxu1 }
 0x5e1   :  { %v7863_v36 = vadd.f32 %v6858_v53, %v15104_v23  ;;  %v6860_v58 = vpop.f32.mrb[162].mxu1 }
 0x5e2   :  { %7366 = vst [vmem:[%s16052_s7 + $0x400] sm:$0xff] %v7862_v37  ;;  %v7864_v40 = vadd.f32 %v6860_v58, %v15100_v27  ;;  %v6862_v22 = vpop.f32.mrb[163].mxu1 }
 0x5e3   :  { %7368 = vst [vmem:[%s16052_s7 + $0x408] sm:$0xff] %v7863_v36  ;;  %v7865_v45 = vadd.f32 %v6862_v22, %v15104_v23 }
 0x5e4   :  { %7370 = vst [vmem:[%s16052_s7 + $0x410] sm:$0xff] %v7864_v40 }
 0x5e5   :  { %7372 = vst [vmem:[%s16052_s7 + $0x418] sm:$0xff] %v7865_v45 }
 0x5e7   :  { %v6866_v39 = vpop.f32.mrb[164].mxu1 }
 0x5e8   :  { %v7866_v62 = vadd.f32 %v6866_v39, %v15100_v27  ;;  %v6868_v6 = vpop.f32.mrb[165].mxu1 }
 0x5e9   :  { %v7867_v52 = vadd.f32 %v6868_v6, %v15104_v23  ;;  %v6870_v7 = vpop.f32.mrb[166].mxu1 }
 0x5ea   :  { %7374 = vst [vmem:[%s16052_s7 + $0x420] sm:$0xff] %v7866_v62  ;;  %v7868_v32 = vadd.f32 %v6870_v7, %v15100_v27  ;;  %v6872_v0 = vpop.f32.mrb[167].mxu1 }
 0x5eb   :  { %7376 = vst [vmem:[%s16052_s7 + $0x428] sm:$0xff] %v7867_v52  ;;  %v7869_v28 = vadd.f32 %v6872_v0, %v15104_v23 }
 0x5ec   :  { %7378 = vst [vmem:[%s16052_s7 + $0x430] sm:$0xff] %v7868_v32 }
 0x5ed   :  { %7380 = vst [vmem:[%s16052_s7 + $0x438] sm:$0xff] %v7869_v28 }
 0x5ef   :  { %v6876_v31 = vpop.f32.mrb[168].mxu1 }
 0x5f0   :  { %v7870_v4 = vadd.f32 %v6876_v31, %v15100_v27  ;;  %v6878_v50 = vpop.f32.mrb[169].mxu1 }
 0x5f1   :  { %v7871_v15 = vadd.f32 %v6878_v50, %v15104_v23  ;;  %v6880_v54 = vpop.f32.mrb[170].mxu1 }
 0x5f2   :  { %7382 = vst [vmem:[%s16052_s7 + $0x440] sm:$0xff] %v7870_v4  ;;  %v7872_v18 = vadd.f32 %v6880_v54, %v15100_v27  ;;  %v6882_v14 = vpop.f32.mrb[171].mxu1 }
 0x5f3   :  { %7384 = vst [vmem:[%s16052_s7 + $0x448] sm:$0xff] %v7871_v15  ;;  %v7873_v2 = vadd.f32 %v6882_v14, %v15104_v23 }
 0x5f4   :  { %7386 = vst [vmem:[%s16052_s7 + $0x450] sm:$0xff] %v7872_v18 }
 0x5f5   :  { %7388 = vst [vmem:[%s16052_s7 + $0x458] sm:$0xff] %v7873_v2 }
 0x5f7   :  { %v6886_v8 = vpop.f32.mrb[172].mxu1 }
 0x5f8   :  { %v7874_v51 = vadd.f32 %v6886_v8, %v15100_v27  ;;  %v6888_v49 = vpop.f32.mrb[173].mxu1 }
 0x5f9   :  { %v7875_v25 = vadd.f32 %v6888_v49, %v15104_v23  ;;  %v6890_v12 = vpop.f32.mrb[174].mxu1 }
 0x5fa   :  { %7390 = vst [vmem:[%s16052_s7 + $0x460] sm:$0xff] %v7874_v51  ;;  %v7876_v41 = vadd.f32 %v6890_v12, %v15100_v27  ;;  %v6892_v19 = vpop.f32.mrb[175].mxu1 }
 0x5fb   :  { %7392 = vst [vmem:[%s16052_s7 + $0x468] sm:$0xff] %v7875_v25  ;;  %v7877_v1 = vadd.f32 %v6892_v19, %v15104_v23 }
 0x5fc   :  { %7394 = vst [vmem:[%s16052_s7 + $0x470] sm:$0xff] %v7876_v41 }
 0x5fd   :  { %7396 = vst [vmem:[%s16052_s7 + $0x478] sm:$0xff] %v7877_v1 }
 0x5ff   :  { %v6896_v21 = vpop.f32.mrb[176].mxu1 }
 0x600   :  { %v7878_v38 = vadd.f32 %v6896_v21, %v15100_v27  ;;  %v6898_v56 = vpop.f32.mrb[177].mxu1 }
 0x601   :  { %v7879_v33 = vadd.f32 %v6898_v56, %v15104_v23  ;;  %v6900_v11 = vpop.f32.mrb[178].mxu1 }
 0x602   :  { %7398 = vst [vmem:[%s16052_s7 + $0x480] sm:$0xff] %v7878_v38  ;;  %v7880_v47 = vadd.f32 %v6900_v11, %v15100_v27  ;;  %v6902_v42 = vpop.f32.mrb[179].mxu1 }
 0x603   :  { %7400 = vst [vmem:[%s16052_s7 + $0x488] sm:$0xff] %v7879_v33  ;;  %v7881_v20 = vadd.f32 %v6902_v42, %v15104_v23 }
 0x604   :  { %7402 = vst [vmem:[%s16052_s7 + $0x490] sm:$0xff] %v7880_v47 }
 0x605   :  { %7404 = vst [vmem:[%s16052_s7 + $0x498] sm:$0xff] %v7881_v20 }
 0x607   :  { %v6906_v30 = vpop.f32.mrb[180].mxu1 }
 0x608   :  { %v7882_v26 = vadd.f32 %v6906_v30, %v15100_v27  ;;  %v6908_v34 = vpop.f32.mrb[181].mxu1 }
 0x609   :  { %v7883_v16 = vadd.f32 %v6908_v34, %v15104_v23  ;;  %v6910_v3 = vpop.f32.mrb[182].mxu1 }
 0x60a   :  { %7406 = vst [vmem:[%s16052_s7 + $0x4a0] sm:$0xff] %v7882_v26  ;;  %v6912_v59 = vpop.f32.mrb[183].mxu1 }
 0x60b   :  { %7408 = vst [vmem:[%s16052_s7 + $0x4a8] sm:$0xff] %v7883_v16 }
 0x60f   :  { %v6916_v10 = vpop.f32.mrb[192].mxu1 }
 0x610   :  { %v6918_v17 = vpop.f32.mrb[193].mxu1 }
 0x611   :  { %v6920_v60 = vpop.f32.mrb[194].mxu1 }
 0x612   :  { %v6922_v24 = vpop.f32.mrb[195].mxu1 }
 0x617   :  { %v6926_v46 = vpop.f32.mrb[196].mxu1 }
 0x618   :  { %v6928_v35 = vpop.f32.mrb[197].mxu1 }
 0x619   :  { %v6930_v27 = vpop.f32.mrb[198].mxu1 }
 0x61a   :  { %v6932_v48 = vpop.f32.mrb[199].mxu1 }

</bundles_post_ra>
